<compile_context>
chip_gen: v7x
topology: tpu7x:2x2x1
jax: 0.10.0
libtpu: 0.0.40
codegen_flags: <defaults>
</compile_context>

<pallas_src>
import functools

import jax
import jax.numpy as jnp
from jax import lax
from jax.experimental import pallas as pl
from jax.experimental.pallas import tpu as pltpu

EPS = 1e-5
NUM_OPS = 5          # [linear, linear_relu, linear_bn_relu, skip, zero]
NUM_PARAM_OPS = 3    # ops that own a Linear (op2 also owns a BN)

VMEM_SPEC = pl.BlockSpec(memory_space=pltpu.MemorySpace.VMEM)
SMEM_SPEC = pl.BlockSpec(memory_space=pltpu.MemorySpace.SMEM)
HBM_SPEC = pl.BlockSpec(memory_space=pl.ANY)


# ----------------------------- Pallas kernel -----------------------------

def _search_cell_kernel(w_ref, x_ref, lw_hbm, lb_ref, g_ref, b_ref, o_ref,
                        wbuf, sem, *, num_layers):
    """Fused forward of the whole cell with double-buffered weight streaming.

    w_ref : SMEM (L, NUM_OPS) f32   softmax(alphas) mixture weights (scalars)
    x_ref : VMEM (B, D)       f32   input activations
    lw_hbm: HBM  (L, D, 3D)   bf16  per-layer concatenated linear weights
    lb_ref: VMEM (L, 3D)      f32   per-layer concatenated linear biases
    g_ref : VMEM (L, D)       f32   BN gamma for op2
    b_ref : VMEM (L, D)       f32   BN beta  for op2
    o_ref : VMEM (B, D)       f32   output activations
    wbuf  : VMEM (2, D, 3D)   bf16  weight double buffer (scratch)
    sem   : DMA semaphores (2,)
    """
    dim = x_ref.shape[1]

    def layer_copy(layer, slot):
        return pltpu.make_async_copy(lw_hbm.at[layer], wbuf.at[slot],
                                     sem.at[slot])

    # Prime the pipeline: layer 0 weights into slot 0.
    layer_copy(0, 0).start()

    x = x_ref[...]                                        # (B, D) f32
    for i in range(num_layers):                           # static unroll
        slot = i & 1
        layer_copy(i, slot).wait()
        if i + 1 < num_layers:                            # prefetch next layer
            layer_copy(i + 1, 1 - slot).start()

        # One fused (B,D)x(D,3D) bf16 matmul covers all 3 parameterized ops.
        h_all = jnp.dot(x.astype(jnp.bfloat16), wbuf[slot],
                        preferred_element_type=jnp.float32)
        h_all = h_all + lb_ref[pl.ds(i, 1), :]            # (B,3D) + (1,3D)

        # op 0: Linear
        y0 = h_all[:, 0:dim]

        # op 1: Linear + ReLU
        y1 = jnp.maximum(h_all[:, dim:2 * dim], 0.0)

        # op 2: Linear + BatchNorm1d (training-mode batch stats, two-pass
        #       variance) + ReLU
        h2 = h_all[:, 2 * dim:3 * dim]
        mean = jnp.mean(h2, axis=0, keepdims=True)
        c = h2 - mean
        var = jnp.mean(c * c, axis=0, keepdims=True)
        y2 = c * lax.rsqrt(var + EPS) * g_ref[pl.ds(i, 1), :] \
             + b_ref[pl.ds(i, 1), :]
        y2 = jnp.maximum(y2, 0.0)

        # op 3: skip (identity).  op 4: zero -> contributes nothing.
        x = (w_ref[i, 0] * y0 + w_ref[i, 1] * y1 +
             w_ref[i, 2] * y2 + w_ref[i, 3] * x)

    o_ref[...] = x


# ----------------------------- wrapper -----------------------------

def search_cell_forward(params, x):
    """SearchCell.forward: softmax over alphas, then the fused mixed-op stack."""
    alphas = params["alphas"]                             # (L, NUM_OPS)
    weights = jax.nn.softmax(alphas, axis=1).astype(jnp.float32)
    num_layers = alphas.shape[0]
    batch, dim = x.shape
    cat = NUM_PARAM_OPS * dim

    flops = 2 * batch * dim * cat * num_layers
    bytes_accessed = (params["lin_w"].size * 2 + params["lin_b"].size * 4 +
                      params["bn_g"].size * 4 + params["bn_b"].size * 4 +
                      2 * batch * dim * 4)

    kern = functools.partial(_search_cell_kernel, num_layers=num_layers)
    return pl.pallas_call(
        kern,
        out_shape=jax.ShapeDtypeStruct((batch, dim), jnp.float32),
        in_specs=[SMEM_SPEC, VMEM_SPEC, HBM_SPEC, VMEM_SPEC, VMEM_SPEC,
                  VMEM_SPEC],
        out_specs=VMEM_SPEC,
        scratch_shapes=[pltpu.VMEM((2, dim, cat), jnp.bfloat16),
                        pltpu.SemaphoreType.DMA((2,))],
        cost_estimate=pl.CostEstimate(flops=flops,
                                      transcendentals=num_layers * dim,
                                      bytes_accessed=bytes_accessed),
    )(weights, x.astype(jnp.float32),
      params["lin_w"], params["lin_b"], params["bn_g"], params["bn_b"])


# ----------------------------- pure-JAX reference -----------------------------

def search_cell_reference(params, x):
    """Mirrors the kernel's mixed precision (bf16 matmul operands, f32 accum)."""
    weights = jax.nn.softmax(params["alphas"], axis=1)
    num_layers = params["alphas"].shape[0]
    dim = x.shape[1]
    x = x.astype(jnp.float32)
    for i in range(num_layers):
        h_all = jnp.dot(x.astype(jnp.bfloat16), params["lin_w"][i],
                        preferred_element_type=jnp.float32) + params["lin_b"][i]
        y0 = h_all[:, :dim]
        y1 = jnp.maximum(h_all[:, dim:2 * dim], 0.0)
        h2 = h_all[:, 2 * dim:]
        mean = jnp.mean(h2, axis=0, keepdims=True)
        var = jnp.mean((h2 - mean) ** 2, axis=0, keepdims=True)
        y2 = jnp.maximum((h2 - mean) * lax.rsqrt(var + EPS)
                         * params["bn_g"][i] + params["bn_b"][i], 0.0)
        x = (weights[i, 0] * y0 + weights[i, 1] * y1 +
             weights[i, 2] * y2 + weights[i, 3] * x)
    return x


# ----------------------------- params -----------------------------

def init_params(key, *, dim=128, num_layers=9):
    kw, kb, ka = jax.random.split(key, 3)
    cat = NUM_PARAM_OPS * dim
    return {
        # Per-layer weights of the 3 parameterized ops concatenated along N,
        # stored in bfloat16 (halves the dominant HBM->VMEM traffic).
        "lin_w": (0.05 * jax.random.normal(kw, (num_layers, dim, cat))
                  ).astype(jnp.bfloat16),
        "lin_b": (0.05 * jax.random.normal(kb, (num_layers, cat))
                  ).astype(jnp.float32),
        "bn_g": jnp.ones((num_layers, dim), jnp.float32),
        "bn_b": jnp.zeros((num_layers, dim), jnp.float32),
        # reference init is zeros; small random alphas exercise non-uniform mixing
        "alphas": (0.1 * jax.random.normal(ka, (num_layers, NUM_OPS))
                   ).astype(jnp.float32),
    }


if __name__ == "__main__":
    key = jax.random.PRNGKey(0)
    kp, kx = jax.random.split(key)

    B, DIM, NUM_LAYERS = 128, 128, 9      # lane-dense D, sublane-packed batch
    params = init_params(kp, dim=DIM, num_layers=NUM_LAYERS)
    x = jax.random.normal(kx, (B, DIM), jnp.float32)

    out = jax.jit(search_cell_forward)(params, x)
    jax.block_until_ready(out)

    assert out.shape == (B, DIM)
    assert bool(jnp.all(jnp.isfinite(out)))

    ref = search_cell_reference(params, x)
    rel_err = float(jnp.max(jnp.abs(out - ref)) / (jnp.max(jnp.abs(ref)) + 1e-6))
    assert rel_err < 5e-2, rel_err

    print("KERNEL_OK")
</pallas_src>

<mosaic_0001>
module attributes {stable_mosaic.version = 11 : i64} {
  func.func @_search_cell_kernel(%arg0: memref<9x5xf32, #tpu.memory_space<smem>>, %arg1: memref<128x128xf32, #tpu.memory_space<vmem>>, %arg2: memref<9x128x384xbf16, #tpu.memory_space<any>>, %arg3: memref<9x384xf32, #tpu.memory_space<vmem>>, %arg4: memref<9x128xf32, #tpu.memory_space<vmem>>, %arg5: memref<9x128xf32, #tpu.memory_space<vmem>>, %arg6: memref<128x128xf32, #tpu.memory_space<vmem>>, %arg7: memref<2x128x384xbf16, #tpu.memory_space<vmem>>, %arg8: memref<2x!tpu.dma_semaphore, #tpu.memory_space<semaphore_mem>>) attributes {dimension_semantics = [], scalar_prefetch = 0 : i64, scratch_operands = 2 : i64, tpu.core_type = #tpu.core_type<tc>} {
    %c0_i32 = arith.constant 0 : i32
    %c0_i32_0 = arith.constant 0 : i32
    %c0_i32_1 = arith.constant 0 : i32
    %c0_i32_2 = arith.constant 0 : i32
    %c0_i32_3 = arith.constant 0 : i32
    %0 = tpu.memref_slice %arg2[%c0_i32, %c0_i32_2, %c0_i32_3] : memref<9x128x384xbf16, #tpu.memory_space<any>> -> memref<1x128x384xbf16, #tpu.memory_space<any>>
    %1 = tpu.memref_squeeze %0 : memref<1x128x384xbf16, #tpu.memory_space<any>> -> memref<128x384xbf16, #tpu.memory_space<any>>
    %c0_i32_4 = arith.constant 0 : i32
    %c0_i32_5 = arith.constant 0 : i32
    %2 = tpu.memref_slice %arg7[%c0_i32_0, %c0_i32_4, %c0_i32_5] : memref<2x128x384xbf16, #tpu.memory_space<vmem>> -> memref<1x128x384xbf16, #tpu.memory_space<vmem>>
    %3 = tpu.memref_squeeze %2 : memref<1x128x384xbf16, #tpu.memory_space<vmem>> -> memref<128x384xbf16, #tpu.memory_space<vmem>>
    %4 = tpu.memref_slice %arg8[%c0_i32_1] : memref<2x!tpu.dma_semaphore, #tpu.memory_space<semaphore_mem>> -> memref<1x!tpu.dma_semaphore, #tpu.memory_space<semaphore_mem>>
    %5 = tpu.memref_squeeze %4 : memref<1x!tpu.dma_semaphore, #tpu.memory_space<semaphore_mem>> -> memref<!tpu.dma_semaphore, #tpu.memory_space<semaphore_mem>>
    tpu.enqueue_dma source(%1 : memref<128x384xbf16, #tpu.memory_space<any>>) target(%3 : memref<128x384xbf16, #tpu.memory_space<vmem>>) target_semaphore(%5 : memref<!tpu.dma_semaphore, #tpu.memory_space<semaphore_mem>>)
    %c0 = arith.constant 0 : index
    %c0_6 = arith.constant 0 : index
    %6 = vector.load %arg1[%c0, %c0_6] : memref<128x128xf32, #tpu.memory_space<vmem>>, vector<128x128xf32>
    %c0_i32_7 = arith.constant 0 : i32
    %c0_i32_8 = arith.constant 0 : i32
    %c0_i32_9 = arith.constant 0 : i32
    %c0_i32_10 = arith.constant 0 : i32
    %c0_i32_11 = arith.constant 0 : i32
    %7 = tpu.memref_slice %arg2[%c0_i32_7, %c0_i32_10, %c0_i32_11] : memref<9x128x384xbf16, #tpu.memory_space<any>> -> memref<1x128x384xbf16, #tpu.memory_space<any>>
    %8 = tpu.memref_squeeze %7 : memref<1x128x384xbf16, #tpu.memory_space<any>> -> memref<128x384xbf16, #tpu.memory_space<any>>
    %c0_i32_12 = arith.constant 0 : i32
    %c0_i32_13 = arith.constant 0 : i32
    %9 = tpu.memref_slice %arg7[%c0_i32_8, %c0_i32_12, %c0_i32_13] : memref<2x128x384xbf16, #tpu.memory_space<vmem>> -> memref<1x128x384xbf16, #tpu.memory_space<vmem>>
    %10 = tpu.memref_squeeze %9 : memref<1x128x384xbf16, #tpu.memory_space<vmem>> -> memref<128x384xbf16, #tpu.memory_space<vmem>>
    %11 = tpu.memref_slice %arg8[%c0_i32_9] : memref<2x!tpu.dma_semaphore, #tpu.memory_space<semaphore_mem>> -> memref<1x!tpu.dma_semaphore, #tpu.memory_space<semaphore_mem>>
    %12 = tpu.memref_squeeze %11 : memref<1x!tpu.dma_semaphore, #tpu.memory_space<semaphore_mem>> -> memref<!tpu.dma_semaphore, #tpu.memory_space<semaphore_mem>>
    tpu.wait_dma2 semaphore(%12 : memref<!tpu.dma_semaphore, #tpu.memory_space<semaphore_mem>>) src(%8 : memref<128x384xbf16, #tpu.memory_space<any>>) dst(%10 : memref<128x384xbf16, #tpu.memory_space<vmem>>)
    %c1_i32 = arith.constant 1 : i32
    %c1_i32_14 = arith.constant 1 : i32
    %c1_i32_15 = arith.constant 1 : i32
    %c0_i32_16 = arith.constant 0 : i32
    %c0_i32_17 = arith.constant 0 : i32
    %13 = tpu.memref_slice %arg2[%c1_i32, %c0_i32_16, %c0_i32_17] : memref<9x128x384xbf16, #tpu.memory_space<any>> -> memref<1x128x384xbf16, #tpu.memory_space<any>>
    %14 = tpu.memref_squeeze %13 : memref<1x128x384xbf16, #tpu.memory_space<any>> -> memref<128x384xbf16, #tpu.memory_space<any>>
    %c0_i32_18 = arith.constant 0 : i32
    %c0_i32_19 = arith.constant 0 : i32
    %15 = tpu.memref_slice %arg7[%c1_i32_14, %c0_i32_18, %c0_i32_19] : memref<2x128x384xbf16, #tpu.memory_space<vmem>> -> memref<1x128x384xbf16, #tpu.memory_space<vmem>>
    %16 = tpu.memref_squeeze %15 : memref<1x128x384xbf16, #tpu.memory_space<vmem>> -> memref<128x384xbf16, #tpu.memory_space<vmem>>
    %17 = tpu.memref_slice %arg8[%c1_i32_15] : memref<2x!tpu.dma_semaphore, #tpu.memory_space<semaphore_mem>> -> memref<1x!tpu.dma_semaphore, #tpu.memory_space<semaphore_mem>>
    %18 = tpu.memref_squeeze %17 : memref<1x!tpu.dma_semaphore, #tpu.memory_space<semaphore_mem>> -> memref<!tpu.dma_semaphore, #tpu.memory_space<semaphore_mem>>
    tpu.enqueue_dma source(%14 : memref<128x384xbf16, #tpu.memory_space<any>>) target(%16 : memref<128x384xbf16, #tpu.memory_space<vmem>>) target_semaphore(%18 : memref<!tpu.dma_semaphore, #tpu.memory_space<semaphore_mem>>)
    %19 = arith.truncf %6 : vector<128x128xf32> to vector<128x128xbf16>
    %c0_20 = arith.constant 0 : index
    %c0_21 = arith.constant 0 : index
    %c0_22 = arith.constant 0 : index
    %20 = vector.load %arg7[%c0_20, %c0_21, %c0_22] : memref<2x128x384xbf16, #tpu.memory_space<vmem>>, vector<1x128x384xbf16>
    %21 = vector.shape_cast %20 : vector<1x128x384xbf16> to vector<128x384xbf16>
    %cst = arith.constant dense<0.000000e+00> : vector<128x384xf32>
    %22 = tpu.matmul %19, %21, %cst {dimension_numbers = #tpu.dot_dimension_numbers<[1], [0], [0], [1], [0, 0, 1, 1], [], []>} : vector<128x128xbf16>, vector<128x384xbf16>, vector<128x384xf32> -> vector<128x384xf32>
    %c0_23 = arith.constant 0 : index
    %c0_24 = arith.constant 0 : index
    %23 = vector.load %arg3[%c0_23, %c0_24] : memref<9x384xf32, #tpu.memory_space<vmem>>, vector<1x384xf32>
    %24 = vector.broadcast %23 : vector<1x384xf32> to vector<128x384xf32>
    %25 = arith.addf %22, %24 : vector<128x384xf32>
    %26 = vector.extract_strided_slice %25 {offsets = [0, 0], sizes = [128, 128], strides = [1, 1]} : vector<128x384xf32> to vector<128x128xf32>
    %27 = vector.extract_strided_slice %25 {offsets = [0, 128], sizes = [128, 128], strides = [1, 1]} : vector<128x384xf32> to vector<128x128xf32>
    %cst_25 = arith.constant 0.000000e+00 : f32
    %28 = vector.broadcast %cst_25 : f32 to vector<128x128xf32>
    %29 = arith.maximumf %27, %28 : vector<128x128xf32>
    %30 = vector.extract_strided_slice %25 {offsets = [0, 256], sizes = [128, 128], strides = [1, 1]} : vector<128x384xf32> to vector<128x128xf32>
    %cst_26 = arith.constant dense<0.000000e+00> : vector<128xf32>
    %31 = vector.multi_reduction <add>, %30, %cst_26 [0] : vector<128x128xf32> to vector<128xf32>
    %32 = vector.shape_cast %31 : vector<128xf32> to vector<1x128xf32>
    %cst_27 = arith.constant 1.280000e+02 : f32
    %33 = vector.broadcast %cst_27 : f32 to vector<1x128xf32>
    %34 = arith.divf %32, %33 : vector<1x128xf32>
    %35 = vector.broadcast %34 : vector<1x128xf32> to vector<128x128xf32>
    %36 = arith.subf %30, %35 : vector<128x128xf32>
    %37 = arith.mulf %36, %36 : vector<128x128xf32>
    %cst_28 = arith.constant dense<0.000000e+00> : vector<128xf32>
    %38 = vector.multi_reduction <add>, %37, %cst_28 [0] : vector<128x128xf32> to vector<128xf32>
    %39 = vector.shape_cast %38 : vector<128xf32> to vector<1x128xf32>
    %cst_29 = arith.constant 1.280000e+02 : f32
    %40 = vector.broadcast %cst_29 : f32 to vector<1x128xf32>
    %41 = arith.divf %39, %40 : vector<1x128xf32>
    %cst_30 = arith.constant 9.99999974E-6 : f32
    %42 = vector.broadcast %cst_30 : f32 to vector<1x128xf32>
    %43 = arith.addf %41, %42 : vector<1x128xf32>
    %44 = math.rsqrt %43 : vector<1x128xf32>
    %45 = vector.broadcast %44 : vector<1x128xf32> to vector<128x128xf32>
    %46 = arith.mulf %36, %45 : vector<128x128xf32>
    %c0_31 = arith.constant 0 : index
    %c0_32 = arith.constant 0 : index
    %47 = vector.load %arg4[%c0_31, %c0_32] : memref<9x128xf32, #tpu.memory_space<vmem>>, vector<1x128xf32>
    %48 = vector.broadcast %47 : vector<1x128xf32> to vector<128x128xf32>
    %49 = arith.mulf %46, %48 : vector<128x128xf32>
    %c0_33 = arith.constant 0 : index
    %c0_34 = arith.constant 0 : index
    %50 = vector.load %arg5[%c0_33, %c0_34] : memref<9x128xf32, #tpu.memory_space<vmem>>, vector<1x128xf32>
    %51 = vector.broadcast %50 : vector<1x128xf32> to vector<128x128xf32>
    %52 = arith.addf %49, %51 : vector<128x128xf32>
    %cst_35 = arith.constant 0.000000e+00 : f32
    %53 = vector.broadcast %cst_35 : f32 to vector<128x128xf32>
    %54 = arith.maximumf %52, %53 : vector<128x128xf32>
    %c0_36 = arith.constant 0 : index
    %c0_37 = arith.constant 0 : index
    %55 = memref.load %arg0[%c0_36, %c0_37] : memref<9x5xf32, #tpu.memory_space<smem>>
    %56 = vector.broadcast %55 : f32 to vector<128x128xf32>
    %57 = arith.mulf %56, %26 : vector<128x128xf32>
    %c0_38 = arith.constant 0 : index
    %c1 = arith.constant 1 : index
    %58 = memref.load %arg0[%c0_38, %c1] : memref<9x5xf32, #tpu.memory_space<smem>>
    %59 = vector.broadcast %58 : f32 to vector<128x128xf32>
    %60 = arith.mulf %59, %29 : vector<128x128xf32>
    %61 = arith.addf %57, %60 : vector<128x128xf32>
    %c0_39 = arith.constant 0 : index
    %c2 = arith.constant 2 : index
    %62 = memref.load %arg0[%c0_39, %c2] : memref<9x5xf32, #tpu.memory_space<smem>>
    %63 = vector.broadcast %62 : f32 to vector<128x128xf32>
    %64 = arith.mulf %63, %54 : vector<128x128xf32>
    %65 = arith.addf %61, %64 : vector<128x128xf32>
    %c0_40 = arith.constant 0 : index
    %c3 = arith.constant 3 : index
    %66 = memref.load %arg0[%c0_40, %c3] : memref<9x5xf32, #tpu.memory_space<smem>>
    %67 = vector.broadcast %66 : f32 to vector<128x128xf32>
    %68 = arith.mulf %67, %6 : vector<128x128xf32>
    %69 = arith.addf %65, %68 : vector<128x128xf32>
    %c1_i32_41 = arith.constant 1 : i32
    %c1_i32_42 = arith.constant 1 : i32
    %c1_i32_43 = arith.constant 1 : i32
    %c0_i32_44 = arith.constant 0 : i32
    %c0_i32_45 = arith.constant 0 : i32
    %70 = tpu.memref_slice %arg2[%c1_i32_41, %c0_i32_44, %c0_i32_45] : memref<9x128x384xbf16, #tpu.memory_space<any>> -> memref<1x128x384xbf16, #tpu.memory_space<any>>
    %71 = tpu.memref_squeeze %70 : memref<1x128x384xbf16, #tpu.memory_space<any>> -> memref<128x384xbf16, #tpu.memory_space<any>>
    %c0_i32_46 = arith.constant 0 : i32
    %c0_i32_47 = arith.constant 0 : i32
    %72 = tpu.memref_slice %arg7[%c1_i32_42, %c0_i32_46, %c0_i32_47] : memref<2x128x384xbf16, #tpu.memory_space<vmem>> -> memref<1x128x384xbf16, #tpu.memory_space<vmem>>
    %73 = tpu.memref_squeeze %72 : memref<1x128x384xbf16, #tpu.memory_space<vmem>> -> memref<128x384xbf16, #tpu.memory_space<vmem>>
    %74 = tpu.memref_slice %arg8[%c1_i32_43] : memref<2x!tpu.dma_semaphore, #tpu.memory_space<semaphore_mem>> -> memref<1x!tpu.dma_semaphore, #tpu.memory_space<semaphore_mem>>
    %75 = tpu.memref_squeeze %74 : memref<1x!tpu.dma_semaphore, #tpu.memory_space<semaphore_mem>> -> memref<!tpu.dma_semaphore, #tpu.memory_space<semaphore_mem>>
    tpu.wait_dma2 semaphore(%75 : memref<!tpu.dma_semaphore, #tpu.memory_space<semaphore_mem>>) src(%71 : memref<128x384xbf16, #tpu.memory_space<any>>) dst(%73 : memref<128x384xbf16, #tpu.memory_space<vmem>>)
    %c2_i32 = arith.constant 2 : i32
    %c0_i32_48 = arith.constant 0 : i32
    %c0_i32_49 = arith.constant 0 : i32
    %c0_i32_50 = arith.constant 0 : i32
    %c0_i32_51 = arith.constant 0 : i32
    %76 = tpu.memref_slice %arg2[%c2_i32, %c0_i32_50, %c0_i32_51] : memref<9x128x384xbf16, #tpu.memory_space<any>> -> memref<1x128x384xbf16, #tpu.memory_space<any>>
    %77 = tpu.memref_squeeze %76 : memref<1x128x384xbf16, #tpu.memory_space<any>> -> memref<128x384xbf16, #tpu.memory_space<any>>
    %c0_i32_52 = arith.constant 0 : i32
    %c0_i32_53 = arith.constant 0 : i32
    %78 = tpu.memref_slice %arg7[%c0_i32_48, %c0_i32_52, %c0_i32_53] : memref<2x128x384xbf16, #tpu.memory_space<vmem>> -> memref<1x128x384xbf16, #tpu.memory_space<vmem>>
    %79 = tpu.memref_squeeze %78 : memref<1x128x384xbf16, #tpu.memory_space<vmem>> -> memref<128x384xbf16, #tpu.memory_space<vmem>>
    %80 = tpu.memref_slice %arg8[%c0_i32_49] : memref<2x!tpu.dma_semaphore, #tpu.memory_space<semaphore_mem>> -> memref<1x!tpu.dma_semaphore, #tpu.memory_space<semaphore_mem>>
    %81 = tpu.memref_squeeze %80 : memref<1x!tpu.dma_semaphore, #tpu.memory_space<semaphore_mem>> -> memref<!tpu.dma_semaphore, #tpu.memory_space<semaphore_mem>>
    tpu.enqueue_dma source(%77 : memref<128x384xbf16, #tpu.memory_space<any>>) target(%79 : memref<128x384xbf16, #tpu.memory_space<vmem>>) target_semaphore(%81 : memref<!tpu.dma_semaphore, #tpu.memory_space<semaphore_mem>>)
    %82 = arith.truncf %69 : vector<128x128xf32> to vector<128x128xbf16>
    %c1_54 = arith.constant 1 : index
    %c0_55 = arith.constant 0 : index
    %c0_56 = arith.constant 0 : index
    %83 = vector.load %arg7[%c1_54, %c0_55, %c0_56] : memref<2x128x384xbf16, #tpu.memory_space<vmem>>, vector<1x128x384xbf16>
    %84 = vector.shape_cast %83 : vector<1x128x384xbf16> to vector<128x384xbf16>
    %cst_57 = arith.constant dense<0.000000e+00> : vector<128x384xf32>
    %85 = tpu.matmul %82, %84, %cst_57 {dimension_numbers = #tpu.dot_dimension_numbers<[1], [0], [0], [1], [0, 0, 1, 1], [], []>} : vector<128x128xbf16>, vector<128x384xbf16>, vector<128x384xf32> -> vector<128x384xf32>
    %c1_58 = arith.constant 1 : index
    %c0_59 = arith.constant 0 : index
    %86 = vector.load %arg3[%c1_58, %c0_59] : memref<9x384xf32, #tpu.memory_space<vmem>>, vector<1x384xf32>
    %87 = vector.broadcast %86 : vector<1x384xf32> to vector<128x384xf32>
    %88 = arith.addf %85, %87 : vector<128x384xf32>
    %89 = vector.extract_strided_slice %88 {offsets = [0, 0], sizes = [128, 128], strides = [1, 1]} : vector<128x384xf32> to vector<128x128xf32>
    %90 = vector.extract_strided_slice %88 {offsets = [0, 128], sizes = [128, 128], strides = [1, 1]} : vector<128x384xf32> to vector<128x128xf32>
    %cst_60 = arith.constant 0.000000e+00 : f32
    %91 = vector.broadcast %cst_60 : f32 to vector<128x128xf32>
    %92 = arith.maximumf %90, %91 : vector<128x128xf32>
    %93 = vector.extract_strided_slice %88 {offsets = [0, 256], sizes = [128, 128], strides = [1, 1]} : vector<128x384xf32> to vector<128x128xf32>
    %cst_61 = arith.constant dense<0.000000e+00> : vector<128xf32>
    %94 = vector.multi_reduction <add>, %93, %cst_61 [0] : vector<128x128xf32> to vector<128xf32>
    %95 = vector.shape_cast %94 : vector<128xf32> to vector<1x128xf32>
    %cst_62 = arith.constant 1.280000e+02 : f32
    %96 = vector.broadcast %cst_62 : f32 to vector<1x128xf32>
    %97 = arith.divf %95, %96 : vector<1x128xf32>
    %98 = vector.broadcast %97 : vector<1x128xf32> to vector<128x128xf32>
    %99 = arith.subf %93, %98 : vector<128x128xf32>
    %100 = arith.mulf %99, %99 : vector<128x128xf32>
    %cst_63 = arith.constant dense<0.000000e+00> : vector<128xf32>
    %101 = vector.multi_reduction <add>, %100, %cst_63 [0] : vector<128x128xf32> to vector<128xf32>
    %102 = vector.shape_cast %101 : vector<128xf32> to vector<1x128xf32>
    %cst_64 = arith.constant 1.280000e+02 : f32
    %103 = vector.broadcast %cst_64 : f32 to vector<1x128xf32>
    %104 = arith.divf %102, %103 : vector<1x128xf32>
    %cst_65 = arith.constant 9.99999974E-6 : f32
    %105 = vector.broadcast %cst_65 : f32 to vector<1x128xf32>
    %106 = arith.addf %104, %105 : vector<1x128xf32>
    %107 = math.rsqrt %106 : vector<1x128xf32>
    %108 = vector.broadcast %107 : vector<1x128xf32> to vector<128x128xf32>
    %109 = arith.mulf %99, %108 : vector<128x128xf32>
    %c1_66 = arith.constant 1 : index
    %c0_67 = arith.constant 0 : index
    %110 = vector.load %arg4[%c1_66, %c0_67] : memref<9x128xf32, #tpu.memory_space<vmem>>, vector<1x128xf32>
    %111 = vector.broadcast %110 : vector<1x128xf32> to vector<128x128xf32>
    %112 = arith.mulf %109, %111 : vector<128x128xf32>
    %c1_68 = arith.constant 1 : index
    %c0_69 = arith.constant 0 : index
    %113 = vector.load %arg5[%c1_68, %c0_69] : memref<9x128xf32, #tpu.memory_space<vmem>>, vector<1x128xf32>
    %114 = vector.broadcast %113 : vector<1x128xf32> to vector<128x128xf32>
    %115 = arith.addf %112, %114 : vector<128x128xf32>
    %cst_70 = arith.constant 0.000000e+00 : f32
    %116 = vector.broadcast %cst_70 : f32 to vector<128x128xf32>
    %117 = arith.maximumf %115, %116 : vector<128x128xf32>
    %c1_71 = arith.constant 1 : index
    %c0_72 = arith.constant 0 : index
    %118 = memref.load %arg0[%c1_71, %c0_72] : memref<9x5xf32, #tpu.memory_space<smem>>
    %119 = vector.broadcast %118 : f32 to vector<128x128xf32>
    %120 = arith.mulf %119, %89 : vector<128x128xf32>
    %c1_73 = arith.constant 1 : index
    %c1_74 = arith.constant 1 : index
    %121 = memref.load %arg0[%c1_73, %c1_74] : memref<9x5xf32, #tpu.memory_space<smem>>
    %122 = vector.broadcast %121 : f32 to vector<128x128xf32>
    %123 = arith.mulf %122, %92 : vector<128x128xf32>
    %124 = arith.addf %120, %123 : vector<128x128xf32>
    %c1_75 = arith.constant 1 : index
    %c2_76 = arith.constant 2 : index
    %125 = memref.load %arg0[%c1_75, %c2_76] : memref<9x5xf32, #tpu.memory_space<smem>>
    %126 = vector.broadcast %125 : f32 to vector<128x128xf32>
    %127 = arith.mulf %126, %117 : vector<128x128xf32>
    %128 = arith.addf %124, %127 : vector<128x128xf32>
    %c1_77 = arith.constant 1 : index
    %c3_78 = arith.constant 3 : index
    %129 = memref.load %arg0[%c1_77, %c3_78] : memref<9x5xf32, #tpu.memory_space<smem>>
    %130 = vector.broadcast %129 : f32 to vector<128x128xf32>
    %131 = arith.mulf %130, %69 : vector<128x128xf32>
    %132 = arith.addf %128, %131 : vector<128x128xf32>
    %c2_i32_79 = arith.constant 2 : i32
    %c0_i32_80 = arith.constant 0 : i32
    %c0_i32_81 = arith.constant 0 : i32
    %c0_i32_82 = arith.constant 0 : i32
    %c0_i32_83 = arith.constant 0 : i32
    %133 = tpu.memref_slice %arg2[%c2_i32_79, %c0_i32_82, %c0_i32_83] : memref<9x128x384xbf16, #tpu.memory_space<any>> -> memref<1x128x384xbf16, #tpu.memory_space<any>>
    %134 = tpu.memref_squeeze %133 : memref<1x128x384xbf16, #tpu.memory_space<any>> -> memref<128x384xbf16, #tpu.memory_space<any>>
    %c0_i32_84 = arith.constant 0 : i32
    %c0_i32_85 = arith.constant 0 : i32
    %135 = tpu.memref_slice %arg7[%c0_i32_80, %c0_i32_84, %c0_i32_85] : memref<2x128x384xbf16, #tpu.memory_space<vmem>> -> memref<1x128x384xbf16, #tpu.memory_space<vmem>>
    %136 = tpu.memref_squeeze %135 : memref<1x128x384xbf16, #tpu.memory_space<vmem>> -> memref<128x384xbf16, #tpu.memory_space<vmem>>
    %137 = tpu.memref_slice %arg8[%c0_i32_81] : memref<2x!tpu.dma_semaphore, #tpu.memory_space<semaphore_mem>> -> memref<1x!tpu.dma_semaphore, #tpu.memory_space<semaphore_mem>>
    %138 = tpu.memref_squeeze %137 : memref<1x!tpu.dma_semaphore, #tpu.memory_space<semaphore_mem>> -> memref<!tpu.dma_semaphore, #tpu.memory_space<semaphore_mem>>
    tpu.wait_dma2 semaphore(%138 : memref<!tpu.dma_semaphore, #tpu.memory_space<semaphore_mem>>) src(%134 : memref<128x384xbf16, #tpu.memory_space<any>>) dst(%136 : memref<128x384xbf16, #tpu.memory_space<vmem>>)
    %c3_i32 = arith.constant 3 : i32
    %c1_i32_86 = arith.constant 1 : i32
    %c1_i32_87 = arith.constant 1 : i32
    %c0_i32_88 = arith.constant 0 : i32
    %c0_i32_89 = arith.constant 0 : i32
    %139 = tpu.memref_slice %arg2[%c3_i32, %c0_i32_88, %c0_i32_89] : memref<9x128x384xbf16, #tpu.memory_space<any>> -> memref<1x128x384xbf16, #tpu.memory_space<any>>
    %140 = tpu.memref_squeeze %139 : memref<1x128x384xbf16, #tpu.memory_space<any>> -> memref<128x384xbf16, #tpu.memory_space<any>>
    %c0_i32_90 = arith.constant 0 : i32
    %c0_i32_91 = arith.constant 0 : i32
    %141 = tpu.memref_slice %arg7[%c1_i32_86, %c0_i32_90, %c0_i32_91] : memref<2x128x384xbf16, #tpu.memory_space<vmem>> -> memref<1x128x384xbf16, #tpu.memory_space<vmem>>
    %142 = tpu.memref_squeeze %141 : memref<1x128x384xbf16, #tpu.memory_space<vmem>> -> memref<128x384xbf16, #tpu.memory_space<vmem>>
    %143 = tpu.memref_slice %arg8[%c1_i32_87] : memref<2x!tpu.dma_semaphore, #tpu.memory_space<semaphore_mem>> -> memref<1x!tpu.dma_semaphore, #tpu.memory_space<semaphore_mem>>
    %144 = tpu.memref_squeeze %143 : memref<1x!tpu.dma_semaphore, #tpu.memory_space<semaphore_mem>> -> memref<!tpu.dma_semaphore, #tpu.memory_space<semaphore_mem>>
    tpu.enqueue_dma source(%140 : memref<128x384xbf16, #tpu.memory_space<any>>) target(%142 : memref<128x384xbf16, #tpu.memory_space<vmem>>) target_semaphore(%144 : memref<!tpu.dma_semaphore, #tpu.memory_space<semaphore_mem>>)
    %145 = arith.truncf %132 : vector<128x128xf32> to vector<128x128xbf16>
    %c0_92 = arith.constant 0 : index
    %c0_93 = arith.constant 0 : index
    %c0_94 = arith.constant 0 : index
    %146 = vector.load %arg7[%c0_92, %c0_93, %c0_94] : memref<2x128x384xbf16, #tpu.memory_space<vmem>>, vector<1x128x384xbf16>
    %147 = vector.shape_cast %146 : vector<1x128x384xbf16> to vector<128x384xbf16>
    %cst_95 = arith.constant dense<0.000000e+00> : vector<128x384xf32>
    %148 = tpu.matmul %145, %147, %cst_95 {dimension_numbers = #tpu.dot_dimension_numbers<[1], [0], [0], [1], [0, 0, 1, 1], [], []>} : vector<128x128xbf16>, vector<128x384xbf16>, vector<128x384xf32> -> vector<128x384xf32>
    %c2_96 = arith.constant 2 : index
    %c0_97 = arith.constant 0 : index
    %149 = vector.load %arg3[%c2_96, %c0_97] : memref<9x384xf32, #tpu.memory_space<vmem>>, vector<1x384xf32>
    %150 = vector.broadcast %149 : vector<1x384xf32> to vector<128x384xf32>
    %151 = arith.addf %148, %150 : vector<128x384xf32>
    %152 = vector.extract_strided_slice %151 {offsets = [0, 0], sizes = [128, 128], strides = [1, 1]} : vector<128x384xf32> to vector<128x128xf32>
    %153 = vector.extract_strided_slice %151 {offsets = [0, 128], sizes = [128, 128], strides = [1, 1]} : vector<128x384xf32> to vector<128x128xf32>
    %cst_98 = arith.constant 0.000000e+00 : f32
    %154 = vector.broadcast %cst_98 : f32 to vector<128x128xf32>
    %155 = arith.maximumf %153, %154 : vector<128x128xf32>
    %156 = vector.extract_strided_slice %151 {offsets = [0, 256], sizes = [128, 128], strides = [1, 1]} : vector<128x384xf32> to vector<128x128xf32>
    %cst_99 = arith.constant dense<0.000000e+00> : vector<128xf32>
    %157 = vector.multi_reduction <add>, %156, %cst_99 [0] : vector<128x128xf32> to vector<128xf32>
    %158 = vector.shape_cast %157 : vector<128xf32> to vector<1x128xf32>
    %cst_100 = arith.constant 1.280000e+02 : f32
    %159 = vector.broadcast %cst_100 : f32 to vector<1x128xf32>
    %160 = arith.divf %158, %159 : vector<1x128xf32>
    %161 = vector.broadcast %160 : vector<1x128xf32> to vector<128x128xf32>
    %162 = arith.subf %156, %161 : vector<128x128xf32>
    %163 = arith.mulf %162, %162 : vector<128x128xf32>
    %cst_101 = arith.constant dense<0.000000e+00> : vector<128xf32>
    %164 = vector.multi_reduction <add>, %163, %cst_101 [0] : vector<128x128xf32> to vector<128xf32>
    %165 = vector.shape_cast %164 : vector<128xf32> to vector<1x128xf32>
    %cst_102 = arith.constant 1.280000e+02 : f32
    %166 = vector.broadcast %cst_102 : f32 to vector<1x128xf32>
    %167 = arith.divf %165, %166 : vector<1x128xf32>
    %cst_103 = arith.constant 9.99999974E-6 : f32
    %168 = vector.broadcast %cst_103 : f32 to vector<1x128xf32>
    %169 = arith.addf %167, %168 : vector<1x128xf32>
    %170 = math.rsqrt %169 : vector<1x128xf32>
    %171 = vector.broadcast %170 : vector<1x128xf32> to vector<128x128xf32>
    %172 = arith.mulf %162, %171 : vector<128x128xf32>
    %c2_104 = arith.constant 2 : index
    %c0_105 = arith.constant 0 : index
    %173 = vector.load %arg4[%c2_104, %c0_105] : memref<9x128xf32, #tpu.memory_space<vmem>>, vector<1x128xf32>
    %174 = vector.broadcast %173 : vector<1x128xf32> to vector<128x128xf32>
    %175 = arith.mulf %172, %174 : vector<128x128xf32>
    %c2_106 = arith.constant 2 : index
    %c0_107 = arith.constant 0 : index
    %176 = vector.load %arg5[%c2_106, %c0_107] : memref<9x128xf32, #tpu.memory_space<vmem>>, vector<1x128xf32>
    %177 = vector.broadcast %176 : vector<1x128xf32> to vector<128x128xf32>
    %178 = arith.addf %175, %177 : vector<128x128xf32>
    %cst_108 = arith.constant 0.000000e+00 : f32
    %179 = vector.broadcast %cst_108 : f32 to vector<128x128xf32>
    %180 = arith.maximumf %178, %179 : vector<128x128xf32>
    %c2_109 = arith.constant 2 : index
    %c0_110 = arith.constant 0 : index
    %181 = memref.load %arg0[%c2_109, %c0_110] : memref<9x5xf32, #tpu.memory_space<smem>>
    %182 = vector.broadcast %181 : f32 to vector<128x128xf32>
    %183 = arith.mulf %182, %152 : vector<128x128xf32>
    %c2_111 = arith.constant 2 : index
    %c1_112 = arith.constant 1 : index
    %184 = memref.load %arg0[%c2_111, %c1_112] : memref<9x5xf32, #tpu.memory_space<smem>>
    %185 = vector.broadcast %184 : f32 to vector<128x128xf32>
    %186 = arith.mulf %185, %155 : vector<128x128xf32>
    %187 = arith.addf %183, %186 : vector<128x128xf32>
    %c2_113 = arith.constant 2 : index
    %c2_114 = arith.constant 2 : index
    %188 = memref.load %arg0[%c2_113, %c2_114] : memref<9x5xf32, #tpu.memory_space<smem>>
    %189 = vector.broadcast %188 : f32 to vector<128x128xf32>
    %190 = arith.mulf %189, %180 : vector<128x128xf32>
    %191 = arith.addf %187, %190 : vector<128x128xf32>
    %c2_115 = arith.constant 2 : index
    %c3_116 = arith.constant 3 : index
    %192 = memref.load %arg0[%c2_115, %c3_116] : memref<9x5xf32, #tpu.memory_space<smem>>
    %193 = vector.broadcast %192 : f32 to vector<128x128xf32>
    %194 = arith.mulf %193, %132 : vector<128x128xf32>
    %195 = arith.addf %191, %194 : vector<128x128xf32>
    %c3_i32_117 = arith.constant 3 : i32
    %c1_i32_118 = arith.constant 1 : i32
    %c1_i32_119 = arith.constant 1 : i32
    %c0_i32_120 = arith.constant 0 : i32
    %c0_i32_121 = arith.constant 0 : i32
    %196 = tpu.memref_slice %arg2[%c3_i32_117, %c0_i32_120, %c0_i32_121] : memref<9x128x384xbf16, #tpu.memory_space<any>> -> memref<1x128x384xbf16, #tpu.memory_space<any>>
    %197 = tpu.memref_squeeze %196 : memref<1x128x384xbf16, #tpu.memory_space<any>> -> memref<128x384xbf16, #tpu.memory_space<any>>
    %c0_i32_122 = arith.constant 0 : i32
    %c0_i32_123 = arith.constant 0 : i32
    %198 = tpu.memref_slice %arg7[%c1_i32_118, %c0_i32_122, %c0_i32_123] : memref<2x128x384xbf16, #tpu.memory_space<vmem>> -> memref<1x128x384xbf16, #tpu.memory_space<vmem>>
    %199 = tpu.memref_squeeze %198 : memref<1x128x384xbf16, #tpu.memory_space<vmem>> -> memref<128x384xbf16, #tpu.memory_space<vmem>>
    %200 = tpu.memref_slice %arg8[%c1_i32_119] : memref<2x!tpu.dma_semaphore, #tpu.memory_space<semaphore_mem>> -> memref<1x!tpu.dma_semaphore, #tpu.memory_space<semaphore_mem>>
    %201 = tpu.memref_squeeze %200 : memref<1x!tpu.dma_semaphore, #tpu.memory_space<semaphore_mem>> -> memref<!tpu.dma_semaphore, #tpu.memory_space<semaphore_mem>>
    tpu.wait_dma2 semaphore(%201 : memref<!tpu.dma_semaphore, #tpu.memory_space<semaphore_mem>>) src(%197 : memref<128x384xbf16, #tpu.memory_space<any>>) dst(%199 : memref<128x384xbf16, #tpu.memory_space<vmem>>)
    %c4_i32 = arith.constant 4 : i32
    %c0_i32_124 = arith.constant 0 : i32
    %c0_i32_125 = arith.constant 0 : i32
    %c0_i32_126 = arith.constant 0 : i32
    %c0_i32_127 = arith.constant 0 : i32
    %202 = tpu.memref_slice %arg2[%c4_i32, %c0_i32_126, %c0_i32_127] : memref<9x128x384xbf16, #tpu.memory_space<any>> -> memref<1x128x384xbf16, #tpu.memory_space<any>>
    %203 = tpu.memref_squeeze %202 : memref<1x128x384xbf16, #tpu.memory_space<any>> -> memref<128x384xbf16, #tpu.memory_space<any>>
    %c0_i32_128 = arith.constant 0 : i32
    %c0_i32_129 = arith.constant 0 : i32
    %204 = tpu.memref_slice %arg7[%c0_i32_124, %c0_i32_128, %c0_i32_129] : memref<2x128x384xbf16, #tpu.memory_space<vmem>> -> memref<1x128x384xbf16, #tpu.memory_space<vmem>>
    %205 = tpu.memref_squeeze %204 : memref<1x128x384xbf16, #tpu.memory_space<vmem>> -> memref<128x384xbf16, #tpu.memory_space<vmem>>
    %206 = tpu.memref_slice %arg8[%c0_i32_125] : memref<2x!tpu.dma_semaphore, #tpu.memory_space<semaphore_mem>> -> memref<1x!tpu.dma_semaphore, #tpu.memory_space<semaphore_mem>>
    %207 = tpu.memref_squeeze %206 : memref<1x!tpu.dma_semaphore, #tpu.memory_space<semaphore_mem>> -> memref<!tpu.dma_semaphore, #tpu.memory_space<semaphore_mem>>
    tpu.enqueue_dma source(%203 : memref<128x384xbf16, #tpu.memory_space<any>>) target(%205 : memref<128x384xbf16, #tpu.memory_space<vmem>>) target_semaphore(%207 : memref<!tpu.dma_semaphore, #tpu.memory_space<semaphore_mem>>)
    %208 = arith.truncf %195 : vector<128x128xf32> to vector<128x128xbf16>
    %c1_130 = arith.constant 1 : index
    %c0_131 = arith.constant 0 : index
    %c0_132 = arith.constant 0 : index
    %209 = vector.load %arg7[%c1_130, %c0_131, %c0_132] : memref<2x128x384xbf16, #tpu.memory_space<vmem>>, vector<1x128x384xbf16>
    %210 = vector.shape_cast %209 : vector<1x128x384xbf16> to vector<128x384xbf16>
    %cst_133 = arith.constant dense<0.000000e+00> : vector<128x384xf32>
    %211 = tpu.matmul %208, %210, %cst_133 {dimension_numbers = #tpu.dot_dimension_numbers<[1], [0], [0], [1], [0, 0, 1, 1], [], []>} : vector<128x128xbf16>, vector<128x384xbf16>, vector<128x384xf32> -> vector<128x384xf32>
    %c3_134 = arith.constant 3 : index
    %c0_135 = arith.constant 0 : index
    %212 = vector.load %arg3[%c3_134, %c0_135] : memref<9x384xf32, #tpu.memory_space<vmem>>, vector<1x384xf32>
    %213 = vector.broadcast %212 : vector<1x384xf32> to vector<128x384xf32>
    %214 = arith.addf %211, %213 : vector<128x384xf32>
    %215 = vector.extract_strided_slice %214 {offsets = [0, 0], sizes = [128, 128], strides = [1, 1]} : vector<128x384xf32> to vector<128x128xf32>
    %216 = vector.extract_strided_slice %214 {offsets = [0, 128], sizes = [128, 128], strides = [1, 1]} : vector<128x384xf32> to vector<128x128xf32>
    %cst_136 = arith.constant 0.000000e+00 : f32
    %217 = vector.broadcast %cst_136 : f32 to vector<128x128xf32>
    %218 = arith.maximumf %216, %217 : vector<128x128xf32>
    %219 = vector.extract_strided_slice %214 {offsets = [0, 256], sizes = [128, 128], strides = [1, 1]} : vector<128x384xf32> to vector<128x128xf32>
    %cst_137 = arith.constant dense<0.000000e+00> : vector<128xf32>
    %220 = vector.multi_reduction <add>, %219, %cst_137 [0] : vector<128x128xf32> to vector<128xf32>
    %221 = vector.shape_cast %220 : vector<128xf32> to vector<1x128xf32>
    %cst_138 = arith.constant 1.280000e+02 : f32
    %222 = vector.broadcast %cst_138 : f32 to vector<1x128xf32>
    %223 = arith.divf %221, %222 : vector<1x128xf32>
    %224 = vector.broadcast %223 : vector<1x128xf32> to vector<128x128xf32>
    %225 = arith.subf %219, %224 : vector<128x128xf32>
    %226 = arith.mulf %225, %225 : vector<128x128xf32>
    %cst_139 = arith.constant dense<0.000000e+00> : vector<128xf32>
    %227 = vector.multi_reduction <add>, %226, %cst_139 [0] : vector<128x128xf32> to vector<128xf32>
    %228 = vector.shape_cast %227 : vector<128xf32> to vector<1x128xf32>
    %cst_140 = arith.constant 1.280000e+02 : f32
    %229 = vector.broadcast %cst_140 : f32 to vector<1x128xf32>
    %230 = arith.divf %228, %229 : vector<1x128xf32>
    %cst_141 = arith.constant 9.99999974E-6 : f32
    %231 = vector.broadcast %cst_141 : f32 to vector<1x128xf32>
    %232 = arith.addf %230, %231 : vector<1x128xf32>
    %233 = math.rsqrt %232 : vector<1x128xf32>
    %234 = vector.broadcast %233 : vector<1x128xf32> to vector<128x128xf32>
    %235 = arith.mulf %225, %234 : vector<128x128xf32>
    %c3_142 = arith.constant 3 : index
    %c0_143 = arith.constant 0 : index
    %236 = vector.load %arg4[%c3_142, %c0_143] : memref<9x128xf32, #tpu.memory_space<vmem>>, vector<1x128xf32>
    %237 = vector.broadcast %236 : vector<1x128xf32> to vector<128x128xf32>
    %238 = arith.mulf %235, %237 : vector<128x128xf32>
    %c3_144 = arith.constant 3 : index
    %c0_145 = arith.constant 0 : index
    %239 = vector.load %arg5[%c3_144, %c0_145] : memref<9x128xf32, #tpu.memory_space<vmem>>, vector<1x128xf32>
    %240 = vector.broadcast %239 : vector<1x128xf32> to vector<128x128xf32>
    %241 = arith.addf %238, %240 : vector<128x128xf32>
    %cst_146 = arith.constant 0.000000e+00 : f32
    %242 = vector.broadcast %cst_146 : f32 to vector<128x128xf32>
    %243 = arith.maximumf %241, %242 : vector<128x128xf32>
    %c3_147 = arith.constant 3 : index
    %c0_148 = arith.constant 0 : index
    %244 = memref.load %arg0[%c3_147, %c0_148] : memref<9x5xf32, #tpu.memory_space<smem>>
    %245 = vector.broadcast %244 : f32 to vector<128x128xf32>
    %246 = arith.mulf %245, %215 : vector<128x128xf32>
    %c3_149 = arith.constant 3 : index
    %c1_150 = arith.constant 1 : index
    %247 = memref.load %arg0[%c3_149, %c1_150] : memref<9x5xf32, #tpu.memory_space<smem>>
    %248 = vector.broadcast %247 : f32 to vector<128x128xf32>
    %249 = arith.mulf %248, %218 : vector<128x128xf32>
    %250 = arith.addf %246, %249 : vector<128x128xf32>
    %c3_151 = arith.constant 3 : index
    %c2_152 = arith.constant 2 : index
    %251 = memref.load %arg0[%c3_151, %c2_152] : memref<9x5xf32, #tpu.memory_space<smem>>
    %252 = vector.broadcast %251 : f32 to vector<128x128xf32>
    %253 = arith.mulf %252, %243 : vector<128x128xf32>
    %254 = arith.addf %250, %253 : vector<128x128xf32>
    %c3_153 = arith.constant 3 : index
    %c3_154 = arith.constant 3 : index
    %255 = memref.load %arg0[%c3_153, %c3_154] : memref<9x5xf32, #tpu.memory_space<smem>>
    %256 = vector.broadcast %255 : f32 to vector<128x128xf32>
    %257 = arith.mulf %256, %195 : vector<128x128xf32>
    %258 = arith.addf %254, %257 : vector<128x128xf32>
    %c4_i32_155 = arith.constant 4 : i32
    %c0_i32_156 = arith.constant 0 : i32
    %c0_i32_157 = arith.constant 0 : i32
    %c0_i32_158 = arith.constant 0 : i32
    %c0_i32_159 = arith.constant 0 : i32
    %259 = tpu.memref_slice %arg2[%c4_i32_155, %c0_i32_158, %c0_i32_159] : memref<9x128x384xbf16, #tpu.memory_space<any>> -> memref<1x128x384xbf16, #tpu.memory_space<any>>
    %260 = tpu.memref_squeeze %259 : memref<1x128x384xbf16, #tpu.memory_space<any>> -> memref<128x384xbf16, #tpu.memory_space<any>>
    %c0_i32_160 = arith.constant 0 : i32
    %c0_i32_161 = arith.constant 0 : i32
    %261 = tpu.memref_slice %arg7[%c0_i32_156, %c0_i32_160, %c0_i32_161] : memref<2x128x384xbf16, #tpu.memory_space<vmem>> -> memref<1x128x384xbf16, #tpu.memory_space<vmem>>
    %262 = tpu.memref_squeeze %261 : memref<1x128x384xbf16, #tpu.memory_space<vmem>> -> memref<128x384xbf16, #tpu.memory_space<vmem>>
    %263 = tpu.memref_slice %arg8[%c0_i32_157] : memref<2x!tpu.dma_semaphore, #tpu.memory_space<semaphore_mem>> -> memref<1x!tpu.dma_semaphore, #tpu.memory_space<semaphore_mem>>
    %264 = tpu.memref_squeeze %263 : memref<1x!tpu.dma_semaphore, #tpu.memory_space<semaphore_mem>> -> memref<!tpu.dma_semaphore, #tpu.memory_space<semaphore_mem>>
    tpu.wait_dma2 semaphore(%264 : memref<!tpu.dma_semaphore, #tpu.memory_space<semaphore_mem>>) src(%260 : memref<128x384xbf16, #tpu.memory_space<any>>) dst(%262 : memref<128x384xbf16, #tpu.memory_space<vmem>>)
    %c5_i32 = arith.constant 5 : i32
    %c1_i32_162 = arith.constant 1 : i32
    %c1_i32_163 = arith.constant 1 : i32
    %c0_i32_164 = arith.constant 0 : i32
    %c0_i32_165 = arith.constant 0 : i32
    %265 = tpu.memref_slice %arg2[%c5_i32, %c0_i32_164, %c0_i32_165] : memref<9x128x384xbf16, #tpu.memory_space<any>> -> memref<1x128x384xbf16, #tpu.memory_space<any>>
    %266 = tpu.memref_squeeze %265 : memref<1x128x384xbf16, #tpu.memory_space<any>> -> memref<128x384xbf16, #tpu.memory_space<any>>
    %c0_i32_166 = arith.constant 0 : i32
    %c0_i32_167 = arith.constant 0 : i32
    %267 = tpu.memref_slice %arg7[%c1_i32_162, %c0_i32_166, %c0_i32_167] : memref<2x128x384xbf16, #tpu.memory_space<vmem>> -> memref<1x128x384xbf16, #tpu.memory_space<vmem>>
    %268 = tpu.memref_squeeze %267 : memref<1x128x384xbf16, #tpu.memory_space<vmem>> -> memref<128x384xbf16, #tpu.memory_space<vmem>>
    %269 = tpu.memref_slice %arg8[%c1_i32_163] : memref<2x!tpu.dma_semaphore, #tpu.memory_space<semaphore_mem>> -> memref<1x!tpu.dma_semaphore, #tpu.memory_space<semaphore_mem>>
    %270 = tpu.memref_squeeze %269 : memref<1x!tpu.dma_semaphore, #tpu.memory_space<semaphore_mem>> -> memref<!tpu.dma_semaphore, #tpu.memory_space<semaphore_mem>>
    tpu.enqueue_dma source(%266 : memref<128x384xbf16, #tpu.memory_space<any>>) target(%268 : memref<128x384xbf16, #tpu.memory_space<vmem>>) target_semaphore(%270 : memref<!tpu.dma_semaphore, #tpu.memory_space<semaphore_mem>>)
    %271 = arith.truncf %258 : vector<128x128xf32> to vector<128x128xbf16>
    %c0_168 = arith.constant 0 : index
    %c0_169 = arith.constant 0 : index
    %c0_170 = arith.constant 0 : index
    %272 = vector.load %arg7[%c0_168, %c0_169, %c0_170] : memref<2x128x384xbf16, #tpu.memory_space<vmem>>, vector<1x128x384xbf16>
    %273 = vector.shape_cast %272 : vector<1x128x384xbf16> to vector<128x384xbf16>
    %cst_171 = arith.constant dense<0.000000e+00> : vector<128x384xf32>
    %274 = tpu.matmul %271, %273, %cst_171 {dimension_numbers = #tpu.dot_dimension_numbers<[1], [0], [0], [1], [0, 0, 1, 1], [], []>} : vector<128x128xbf16>, vector<128x384xbf16>, vector<128x384xf32> -> vector<128x384xf32>
    %c4 = arith.constant 4 : index
    %c0_172 = arith.constant 0 : index
    %275 = vector.load %arg3[%c4, %c0_172] : memref<9x384xf32, #tpu.memory_space<vmem>>, vector<1x384xf32>
    %276 = vector.broadcast %275 : vector<1x384xf32> to vector<128x384xf32>
    %277 = arith.addf %274, %276 : vector<128x384xf32>
    %278 = vector.extract_strided_slice %277 {offsets = [0, 0], sizes = [128, 128], strides = [1, 1]} : vector<128x384xf32> to vector<128x128xf32>
    %279 = vector.extract_strided_slice %277 {offsets = [0, 128], sizes = [128, 128], strides = [1, 1]} : vector<128x384xf32> to vector<128x128xf32>
    %cst_173 = arith.constant 0.000000e+00 : f32
    %280 = vector.broadcast %cst_173 : f32 to vector<128x128xf32>
    %281 = arith.maximumf %279, %280 : vector<128x128xf32>
    %282 = vector.extract_strided_slice %277 {offsets = [0, 256], sizes = [128, 128], strides = [1, 1]} : vector<128x384xf32> to vector<128x128xf32>
    %cst_174 = arith.constant dense<0.000000e+00> : vector<128xf32>
    %283 = vector.multi_reduction <add>, %282, %cst_174 [0] : vector<128x128xf32> to vector<128xf32>
    %284 = vector.shape_cast %283 : vector<128xf32> to vector<1x128xf32>
    %cst_175 = arith.constant 1.280000e+02 : f32
    %285 = vector.broadcast %cst_175 : f32 to vector<1x128xf32>
    %286 = arith.divf %284, %285 : vector<1x128xf32>
    %287 = vector.broadcast %286 : vector<1x128xf32> to vector<128x128xf32>
    %288 = arith.subf %282, %287 : vector<128x128xf32>
    %289 = arith.mulf %288, %288 : vector<128x128xf32>
    %cst_176 = arith.constant dense<0.000000e+00> : vector<128xf32>
    %290 = vector.multi_reduction <add>, %289, %cst_176 [0] : vector<128x128xf32> to vector<128xf32>
    %291 = vector.shape_cast %290 : vector<128xf32> to vector<1x128xf32>
    %cst_177 = arith.constant 1.280000e+02 : f32
    %292 = vector.broadcast %cst_177 : f32 to vector<1x128xf32>
    %293 = arith.divf %291, %292 : vector<1x128xf32>
    %cst_178 = arith.constant 9.99999974E-6 : f32
    %294 = vector.broadcast %cst_178 : f32 to vector<1x128xf32>
    %295 = arith.addf %293, %294 : vector<1x128xf32>
    %296 = math.rsqrt %295 : vector<1x128xf32>
    %297 = vector.broadcast %296 : vector<1x128xf32> to vector<128x128xf32>
    %298 = arith.mulf %288, %297 : vector<128x128xf32>
    %c4_179 = arith.constant 4 : index
    %c0_180 = arith.constant 0 : index
    %299 = vector.load %arg4[%c4_179, %c0_180] : memref<9x128xf32, #tpu.memory_space<vmem>>, vector<1x128xf32>
    %300 = vector.broadcast %299 : vector<1x128xf32> to vector<128x128xf32>
    %301 = arith.mulf %298, %300 : vector<128x128xf32>
    %c4_181 = arith.constant 4 : index
    %c0_182 = arith.constant 0 : index
    %302 = vector.load %arg5[%c4_181, %c0_182] : memref<9x128xf32, #tpu.memory_space<vmem>>, vector<1x128xf32>
    %303 = vector.broadcast %302 : vector<1x128xf32> to vector<128x128xf32>
    %304 = arith.addf %301, %303 : vector<128x128xf32>
    %cst_183 = arith.constant 0.000000e+00 : f32
    %305 = vector.broadcast %cst_183 : f32 to vector<128x128xf32>
    %306 = arith.maximumf %304, %305 : vector<128x128xf32>
    %c4_184 = arith.constant 4 : index
    %c0_185 = arith.constant 0 : index
    %307 = memref.load %arg0[%c4_184, %c0_185] : memref<9x5xf32, #tpu.memory_space<smem>>
    %308 = vector.broadcast %307 : f32 to vector<128x128xf32>
    %309 = arith.mulf %308, %278 : vector<128x128xf32>
    %c4_186 = arith.constant 4 : index
    %c1_187 = arith.constant 1 : index
    %310 = memref.load %arg0[%c4_186, %c1_187] : memref<9x5xf32, #tpu.memory_space<smem>>
    %311 = vector.broadcast %310 : f32 to vector<128x128xf32>
    %312 = arith.mulf %311, %281 : vector<128x128xf32>
    %313 = arith.addf %309, %312 : vector<128x128xf32>
    %c4_188 = arith.constant 4 : index
    %c2_189 = arith.constant 2 : index
    %314 = memref.load %arg0[%c4_188, %c2_189] : memref<9x5xf32, #tpu.memory_space<smem>>
    %315 = vector.broadcast %314 : f32 to vector<128x128xf32>
    %316 = arith.mulf %315, %306 : vector<128x128xf32>
    %317 = arith.addf %313, %316 : vector<128x128xf32>
    %c4_190 = arith.constant 4 : index
    %c3_191 = arith.constant 3 : index
    %318 = memref.load %arg0[%c4_190, %c3_191] : memref<9x5xf32, #tpu.memory_space<smem>>
    %319 = vector.broadcast %318 : f32 to vector<128x128xf32>
    %320 = arith.mulf %319, %258 : vector<128x128xf32>
    %321 = arith.addf %317, %320 : vector<128x128xf32>
    %c5_i32_192 = arith.constant 5 : i32
    %c1_i32_193 = arith.constant 1 : i32
    %c1_i32_194 = arith.constant 1 : i32
    %c0_i32_195 = arith.constant 0 : i32
    %c0_i32_196 = arith.constant 0 : i32
    %322 = tpu.memref_slice %arg2[%c5_i32_192, %c0_i32_195, %c0_i32_196] : memref<9x128x384xbf16, #tpu.memory_space<any>> -> memref<1x128x384xbf16, #tpu.memory_space<any>>
    %323 = tpu.memref_squeeze %322 : memref<1x128x384xbf16, #tpu.memory_space<any>> -> memref<128x384xbf16, #tpu.memory_space<any>>
    %c0_i32_197 = arith.constant 0 : i32
    %c0_i32_198 = arith.constant 0 : i32
    %324 = tpu.memref_slice %arg7[%c1_i32_193, %c0_i32_197, %c0_i32_198] : memref<2x128x384xbf16, #tpu.memory_space<vmem>> -> memref<1x128x384xbf16, #tpu.memory_space<vmem>>
    %325 = tpu.memref_squeeze %324 : memref<1x128x384xbf16, #tpu.memory_space<vmem>> -> memref<128x384xbf16, #tpu.memory_space<vmem>>
    %326 = tpu.memref_slice %arg8[%c1_i32_194] : memref<2x!tpu.dma_semaphore, #tpu.memory_space<semaphore_mem>> -> memref<1x!tpu.dma_semaphore, #tpu.memory_space<semaphore_mem>>
    %327 = tpu.memref_squeeze %326 : memref<1x!tpu.dma_semaphore, #tpu.memory_space<semaphore_mem>> -> memref<!tpu.dma_semaphore, #tpu.memory_space<semaphore_mem>>
    tpu.wait_dma2 semaphore(%327 : memref<!tpu.dma_semaphore, #tpu.memory_space<semaphore_mem>>) src(%323 : memref<128x384xbf16, #tpu.memory_space<any>>) dst(%325 : memref<128x384xbf16, #tpu.memory_space<vmem>>)
    %c6_i32 = arith.constant 6 : i32
    %c0_i32_199 = arith.constant 0 : i32
    %c0_i32_200 = arith.constant 0 : i32
    %c0_i32_201 = arith.constant 0 : i32
    %c0_i32_202 = arith.constant 0 : i32
    %328 = tpu.memref_slice %arg2[%c6_i32, %c0_i32_201, %c0_i32_202] : memref<9x128x384xbf16, #tpu.memory_space<any>> -> memref<1x128x384xbf16, #tpu.memory_space<any>>
    %329 = tpu.memref_squeeze %328 : memref<1x128x384xbf16, #tpu.memory_space<any>> -> memref<128x384xbf16, #tpu.memory_space<any>>
    %c0_i32_203 = arith.constant 0 : i32
    %c0_i32_204 = arith.constant 0 : i32
    %330 = tpu.memref_slice %arg7[%c0_i32_199, %c0_i32_203, %c0_i32_204] : memref<2x128x384xbf16, #tpu.memory_space<vmem>> -> memref<1x128x384xbf16, #tpu.memory_space<vmem>>
    %331 = tpu.memref_squeeze %330 : memref<1x128x384xbf16, #tpu.memory_space<vmem>> -> memref<128x384xbf16, #tpu.memory_space<vmem>>
    %332 = tpu.memref_slice %arg8[%c0_i32_200] : memref<2x!tpu.dma_semaphore, #tpu.memory_space<semaphore_mem>> -> memref<1x!tpu.dma_semaphore, #tpu.memory_space<semaphore_mem>>
    %333 = tpu.memref_squeeze %332 : memref<1x!tpu.dma_semaphore, #tpu.memory_space<semaphore_mem>> -> memref<!tpu.dma_semaphore, #tpu.memory_space<semaphore_mem>>
    tpu.enqueue_dma source(%329 : memref<128x384xbf16, #tpu.memory_space<any>>) target(%331 : memref<128x384xbf16, #tpu.memory_space<vmem>>) target_semaphore(%333 : memref<!tpu.dma_semaphore, #tpu.memory_space<semaphore_mem>>)
    %334 = arith.truncf %321 : vector<128x128xf32> to vector<128x128xbf16>
    %c1_205 = arith.constant 1 : index
    %c0_206 = arith.constant 0 : index
    %c0_207 = arith.constant 0 : index
    %335 = vector.load %arg7[%c1_205, %c0_206, %c0_207] : memref<2x128x384xbf16, #tpu.memory_space<vmem>>, vector<1x128x384xbf16>
    %336 = vector.shape_cast %335 : vector<1x128x384xbf16> to vector<128x384xbf16>
    %cst_208 = arith.constant dense<0.000000e+00> : vector<128x384xf32>
    %337 = tpu.matmul %334, %336, %cst_208 {dimension_numbers = #tpu.dot_dimension_numbers<[1], [0], [0], [1], [0, 0, 1, 1], [], []>} : vector<128x128xbf16>, vector<128x384xbf16>, vector<128x384xf32> -> vector<128x384xf32>
    %c5 = arith.constant 5 : index
    %c0_209 = arith.constant 0 : index
    %338 = vector.load %arg3[%c5, %c0_209] : memref<9x384xf32, #tpu.memory_space<vmem>>, vector<1x384xf32>
    %339 = vector.broadcast %338 : vector<1x384xf32> to vector<128x384xf32>
    %340 = arith.addf %337, %339 : vector<128x384xf32>
    %341 = vector.extract_strided_slice %340 {offsets = [0, 0], sizes = [128, 128], strides = [1, 1]} : vector<128x384xf32> to vector<128x128xf32>
    %342 = vector.extract_strided_slice %340 {offsets = [0, 128], sizes = [128, 128], strides = [1, 1]} : vector<128x384xf32> to vector<128x128xf32>
    %cst_210 = arith.constant 0.000000e+00 : f32
    %343 = vector.broadcast %cst_210 : f32 to vector<128x128xf32>
    %344 = arith.maximumf %342, %343 : vector<128x128xf32>
    %345 = vector.extract_strided_slice %340 {offsets = [0, 256], sizes = [128, 128], strides = [1, 1]} : vector<128x384xf32> to vector<128x128xf32>
    %cst_211 = arith.constant dense<0.000000e+00> : vector<128xf32>
    %346 = vector.multi_reduction <add>, %345, %cst_211 [0] : vector<128x128xf32> to vector<128xf32>
    %347 = vector.shape_cast %346 : vector<128xf32> to vector<1x128xf32>
    %cst_212 = arith.constant 1.280000e+02 : f32
    %348 = vector.broadcast %cst_212 : f32 to vector<1x128xf32>
    %349 = arith.divf %347, %348 : vector<1x128xf32>
    %350 = vector.broadcast %349 : vector<1x128xf32> to vector<128x128xf32>
    %351 = arith.subf %345, %350 : vector<128x128xf32>
    %352 = arith.mulf %351, %351 : vector<128x128xf32>
    %cst_213 = arith.constant dense<0.000000e+00> : vector<128xf32>
    %353 = vector.multi_reduction <add>, %352, %cst_213 [0] : vector<128x128xf32> to vector<128xf32>
    %354 = vector.shape_cast %353 : vector<128xf32> to vector<1x128xf32>
    %cst_214 = arith.constant 1.280000e+02 : f32
    %355 = vector.broadcast %cst_214 : f32 to vector<1x128xf32>
    %356 = arith.divf %354, %355 : vector<1x128xf32>
    %cst_215 = arith.constant 9.99999974E-6 : f32
    %357 = vector.broadcast %cst_215 : f32 to vector<1x128xf32>
    %358 = arith.addf %356, %357 : vector<1x128xf32>
    %359 = math.rsqrt %358 : vector<1x128xf32>
    %360 = vector.broadcast %359 : vector<1x128xf32> to vector<128x128xf32>
    %361 = arith.mulf %351, %360 : vector<128x128xf32>
    %c5_216 = arith.constant 5 : index
    %c0_217 = arith.constant 0 : index
    %362 = vector.load %arg4[%c5_216, %c0_217] : memref<9x128xf32, #tpu.memory_space<vmem>>, vector<1x128xf32>
    %363 = vector.broadcast %362 : vector<1x128xf32> to vector<128x128xf32>
    %364 = arith.mulf %361, %363 : vector<128x128xf32>
    %c5_218 = arith.constant 5 : index
    %c0_219 = arith.constant 0 : index
    %365 = vector.load %arg5[%c5_218, %c0_219] : memref<9x128xf32, #tpu.memory_space<vmem>>, vector<1x128xf32>
    %366 = vector.broadcast %365 : vector<1x128xf32> to vector<128x128xf32>
    %367 = arith.addf %364, %366 : vector<128x128xf32>
    %cst_220 = arith.constant 0.000000e+00 : f32
    %368 = vector.broadcast %cst_220 : f32 to vector<128x128xf32>
    %369 = arith.maximumf %367, %368 : vector<128x128xf32>
    %c5_221 = arith.constant 5 : index
    %c0_222 = arith.constant 0 : index
    %370 = memref.load %arg0[%c5_221, %c0_222] : memref<9x5xf32, #tpu.memory_space<smem>>
    %371 = vector.broadcast %370 : f32 to vector<128x128xf32>
    %372 = arith.mulf %371, %341 : vector<128x128xf32>
    %c5_223 = arith.constant 5 : index
    %c1_224 = arith.constant 1 : index
    %373 = memref.load %arg0[%c5_223, %c1_224] : memref<9x5xf32, #tpu.memory_space<smem>>
    %374 = vector.broadcast %373 : f32 to vector<128x128xf32>
    %375 = arith.mulf %374, %344 : vector<128x128xf32>
    %376 = arith.addf %372, %375 : vector<128x128xf32>
    %c5_225 = arith.constant 5 : index
    %c2_226 = arith.constant 2 : index
    %377 = memref.load %arg0[%c5_225, %c2_226] : memref<9x5xf32, #tpu.memory_space<smem>>
    %378 = vector.broadcast %377 : f32 to vector<128x128xf32>
    %379 = arith.mulf %378, %369 : vector<128x128xf32>
    %380 = arith.addf %376, %379 : vector<128x128xf32>
    %c5_227 = arith.constant 5 : index
    %c3_228 = arith.constant 3 : index
    %381 = memref.load %arg0[%c5_227, %c3_228] : memref<9x5xf32, #tpu.memory_space<smem>>
    %382 = vector.broadcast %381 : f32 to vector<128x128xf32>
    %383 = arith.mulf %382, %321 : vector<128x128xf32>
    %384 = arith.addf %380, %383 : vector<128x128xf32>
    %c6_i32_229 = arith.constant 6 : i32
    %c0_i32_230 = arith.constant 0 : i32
    %c0_i32_231 = arith.constant 0 : i32
    %c0_i32_232 = arith.constant 0 : i32
    %c0_i32_233 = arith.constant 0 : i32
    %385 = tpu.memref_slice %arg2[%c6_i32_229, %c0_i32_232, %c0_i32_233] : memref<9x128x384xbf16, #tpu.memory_space<any>> -> memref<1x128x384xbf16, #tpu.memory_space<any>>
    %386 = tpu.memref_squeeze %385 : memref<1x128x384xbf16, #tpu.memory_space<any>> -> memref<128x384xbf16, #tpu.memory_space<any>>
    %c0_i32_234 = arith.constant 0 : i32
    %c0_i32_235 = arith.constant 0 : i32
    %387 = tpu.memref_slice %arg7[%c0_i32_230, %c0_i32_234, %c0_i32_235] : memref<2x128x384xbf16, #tpu.memory_space<vmem>> -> memref<1x128x384xbf16, #tpu.memory_space<vmem>>
    %388 = tpu.memref_squeeze %387 : memref<1x128x384xbf16, #tpu.memory_space<vmem>> -> memref<128x384xbf16, #tpu.memory_space<vmem>>
    %389 = tpu.memref_slice %arg8[%c0_i32_231] : memref<2x!tpu.dma_semaphore, #tpu.memory_space<semaphore_mem>> -> memref<1x!tpu.dma_semaphore, #tpu.memory_space<semaphore_mem>>
    %390 = tpu.memref_squeeze %389 : memref<1x!tpu.dma_semaphore, #tpu.memory_space<semaphore_mem>> -> memref<!tpu.dma_semaphore, #tpu.memory_space<semaphore_mem>>
    tpu.wait_dma2 semaphore(%390 : memref<!tpu.dma_semaphore, #tpu.memory_space<semaphore_mem>>) src(%386 : memref<128x384xbf16, #tpu.memory_space<any>>) dst(%388 : memref<128x384xbf16, #tpu.memory_space<vmem>>)
    %c7_i32 = arith.constant 7 : i32
    %c1_i32_236 = arith.constant 1 : i32
    %c1_i32_237 = arith.constant 1 : i32
    %c0_i32_238 = arith.constant 0 : i32
    %c0_i32_239 = arith.constant 0 : i32
    %391 = tpu.memref_slice %arg2[%c7_i32, %c0_i32_238, %c0_i32_239] : memref<9x128x384xbf16, #tpu.memory_space<any>> -> memref<1x128x384xbf16, #tpu.memory_space<any>>
    %392 = tpu.memref_squeeze %391 : memref<1x128x384xbf16, #tpu.memory_space<any>> -> memref<128x384xbf16, #tpu.memory_space<any>>
    %c0_i32_240 = arith.constant 0 : i32
    %c0_i32_241 = arith.constant 0 : i32
    %393 = tpu.memref_slice %arg7[%c1_i32_236, %c0_i32_240, %c0_i32_241] : memref<2x128x384xbf16, #tpu.memory_space<vmem>> -> memref<1x128x384xbf16, #tpu.memory_space<vmem>>
    %394 = tpu.memref_squeeze %393 : memref<1x128x384xbf16, #tpu.memory_space<vmem>> -> memref<128x384xbf16, #tpu.memory_space<vmem>>
    %395 = tpu.memref_slice %arg8[%c1_i32_237] : memref<2x!tpu.dma_semaphore, #tpu.memory_space<semaphore_mem>> -> memref<1x!tpu.dma_semaphore, #tpu.memory_space<semaphore_mem>>
    %396 = tpu.memref_squeeze %395 : memref<1x!tpu.dma_semaphore, #tpu.memory_space<semaphore_mem>> -> memref<!tpu.dma_semaphore, #tpu.memory_space<semaphore_mem>>
    tpu.enqueue_dma source(%392 : memref<128x384xbf16, #tpu.memory_space<any>>) target(%394 : memref<128x384xbf16, #tpu.memory_space<vmem>>) target_semaphore(%396 : memref<!tpu.dma_semaphore, #tpu.memory_space<semaphore_mem>>)
    %397 = arith.truncf %384 : vector<128x128xf32> to vector<128x128xbf16>
    %c0_242 = arith.constant 0 : index
    %c0_243 = arith.constant 0 : index
    %c0_244 = arith.constant 0 : index
    %398 = vector.load %arg7[%c0_242, %c0_243, %c0_244] : memref<2x128x384xbf16, #tpu.memory_space<vmem>>, vector<1x128x384xbf16>
    %399 = vector.shape_cast %398 : vector<1x128x384xbf16> to vector<128x384xbf16>
    %cst_245 = arith.constant dense<0.000000e+00> : vector<128x384xf32>
    %400 = tpu.matmul %397, %399, %cst_245 {dimension_numbers = #tpu.dot_dimension_numbers<[1], [0], [0], [1], [0, 0, 1, 1], [], []>} : vector<128x128xbf16>, vector<128x384xbf16>, vector<128x384xf32> -> vector<128x384xf32>
    %c6 = arith.constant 6 : index
    %c0_246 = arith.constant 0 : index
    %401 = vector.load %arg3[%c6, %c0_246] : memref<9x384xf32, #tpu.memory_space<vmem>>, vector<1x384xf32>
    %402 = vector.broadcast %401 : vector<1x384xf32> to vector<128x384xf32>
    %403 = arith.addf %400, %402 : vector<128x384xf32>
    %404 = vector.extract_strided_slice %403 {offsets = [0, 0], sizes = [128, 128], strides = [1, 1]} : vector<128x384xf32> to vector<128x128xf32>
    %405 = vector.extract_strided_slice %403 {offsets = [0, 128], sizes = [128, 128], strides = [1, 1]} : vector<128x384xf32> to vector<128x128xf32>
    %cst_247 = arith.constant 0.000000e+00 : f32
    %406 = vector.broadcast %cst_247 : f32 to vector<128x128xf32>
    %407 = arith.maximumf %405, %406 : vector<128x128xf32>
    %408 = vector.extract_strided_slice %403 {offsets = [0, 256], sizes = [128, 128], strides = [1, 1]} : vector<128x384xf32> to vector<128x128xf32>
    %cst_248 = arith.constant dense<0.000000e+00> : vector<128xf32>
    %409 = vector.multi_reduction <add>, %408, %cst_248 [0] : vector<128x128xf32> to vector<128xf32>
    %410 = vector.shape_cast %409 : vector<128xf32> to vector<1x128xf32>
    %cst_249 = arith.constant 1.280000e+02 : f32
    %411 = vector.broadcast %cst_249 : f32 to vector<1x128xf32>
    %412 = arith.divf %410, %411 : vector<1x128xf32>
    %413 = vector.broadcast %412 : vector<1x128xf32> to vector<128x128xf32>
    %414 = arith.subf %408, %413 : vector<128x128xf32>
    %415 = arith.mulf %414, %414 : vector<128x128xf32>
    %cst_250 = arith.constant dense<0.000000e+00> : vector<128xf32>
    %416 = vector.multi_reduction <add>, %415, %cst_250 [0] : vector<128x128xf32> to vector<128xf32>
    %417 = vector.shape_cast %416 : vector<128xf32> to vector<1x128xf32>
    %cst_251 = arith.constant 1.280000e+02 : f32
    %418 = vector.broadcast %cst_251 : f32 to vector<1x128xf32>
    %419 = arith.divf %417, %418 : vector<1x128xf32>
    %cst_252 = arith.constant 9.99999974E-6 : f32
    %420 = vector.broadcast %cst_252 : f32 to vector<1x128xf32>
    %421 = arith.addf %419, %420 : vector<1x128xf32>
    %422 = math.rsqrt %421 : vector<1x128xf32>
    %423 = vector.broadcast %422 : vector<1x128xf32> to vector<128x128xf32>
    %424 = arith.mulf %414, %423 : vector<128x128xf32>
    %c6_253 = arith.constant 6 : index
    %c0_254 = arith.constant 0 : index
    %425 = vector.load %arg4[%c6_253, %c0_254] : memref<9x128xf32, #tpu.memory_space<vmem>>, vector<1x128xf32>
    %426 = vector.broadcast %425 : vector<1x128xf32> to vector<128x128xf32>
    %427 = arith.mulf %424, %426 : vector<128x128xf32>
    %c6_255 = arith.constant 6 : index
    %c0_256 = arith.constant 0 : index
    %428 = vector.load %arg5[%c6_255, %c0_256] : memref<9x128xf32, #tpu.memory_space<vmem>>, vector<1x128xf32>
    %429 = vector.broadcast %428 : vector<1x128xf32> to vector<128x128xf32>
    %430 = arith.addf %427, %429 : vector<128x128xf32>
    %cst_257 = arith.constant 0.000000e+00 : f32
    %431 = vector.broadcast %cst_257 : f32 to vector<128x128xf32>
    %432 = arith.maximumf %430, %431 : vector<128x128xf32>
    %c6_258 = arith.constant 6 : index
    %c0_259 = arith.constant 0 : index
    %433 = memref.load %arg0[%c6_258, %c0_259] : memref<9x5xf32, #tpu.memory_space<smem>>
    %434 = vector.broadcast %433 : f32 to vector<128x128xf32>
    %435 = arith.mulf %434, %404 : vector<128x128xf32>
    %c6_260 = arith.constant 6 : index
    %c1_261 = arith.constant 1 : index
    %436 = memref.load %arg0[%c6_260, %c1_261] : memref<9x5xf32, #tpu.memory_space<smem>>
    %437 = vector.broadcast %436 : f32 to vector<128x128xf32>
    %438 = arith.mulf %437, %407 : vector<128x128xf32>
    %439 = arith.addf %435, %438 : vector<128x128xf32>
    %c6_262 = arith.constant 6 : index
    %c2_263 = arith.constant 2 : index
    %440 = memref.load %arg0[%c6_262, %c2_263] : memref<9x5xf32, #tpu.memory_space<smem>>
    %441 = vector.broadcast %440 : f32 to vector<128x128xf32>
    %442 = arith.mulf %441, %432 : vector<128x128xf32>
    %443 = arith.addf %439, %442 : vector<128x128xf32>
    %c6_264 = arith.constant 6 : index
    %c3_265 = arith.constant 3 : index
    %444 = memref.load %arg0[%c6_264, %c3_265] : memref<9x5xf32, #tpu.memory_space<smem>>
    %445 = vector.broadcast %444 : f32 to vector<128x128xf32>
    %446 = arith.mulf %445, %384 : vector<128x128xf32>
    %447 = arith.addf %443, %446 : vector<128x128xf32>
    %c7_i32_266 = arith.constant 7 : i32
    %c1_i32_267 = arith.constant 1 : i32
    %c1_i32_268 = arith.constant 1 : i32
    %c0_i32_269 = arith.constant 0 : i32
    %c0_i32_270 = arith.constant 0 : i32
    %448 = tpu.memref_slice %arg2[%c7_i32_266, %c0_i32_269, %c0_i32_270] : memref<9x128x384xbf16, #tpu.memory_space<any>> -> memref<1x128x384xbf16, #tpu.memory_space<any>>
    %449 = tpu.memref_squeeze %448 : memref<1x128x384xbf16, #tpu.memory_space<any>> -> memref<128x384xbf16, #tpu.memory_space<any>>
    %c0_i32_271 = arith.constant 0 : i32
    %c0_i32_272 = arith.constant 0 : i32
    %450 = tpu.memref_slice %arg7[%c1_i32_267, %c0_i32_271, %c0_i32_272] : memref<2x128x384xbf16, #tpu.memory_space<vmem>> -> memref<1x128x384xbf16, #tpu.memory_space<vmem>>
    %451 = tpu.memref_squeeze %450 : memref<1x128x384xbf16, #tpu.memory_space<vmem>> -> memref<128x384xbf16, #tpu.memory_space<vmem>>
    %452 = tpu.memref_slice %arg8[%c1_i32_268] : memref<2x!tpu.dma_semaphore, #tpu.memory_space<semaphore_mem>> -> memref<1x!tpu.dma_semaphore, #tpu.memory_space<semaphore_mem>>
    %453 = tpu.memref_squeeze %452 : memref<1x!tpu.dma_semaphore, #tpu.memory_space<semaphore_mem>> -> memref<!tpu.dma_semaphore, #tpu.memory_space<semaphore_mem>>
    tpu.wait_dma2 semaphore(%453 : memref<!tpu.dma_semaphore, #tpu.memory_space<semaphore_mem>>) src(%449 : memref<128x384xbf16, #tpu.memory_space<any>>) dst(%451 : memref<128x384xbf16, #tpu.memory_space<vmem>>)
    %c8_i32 = arith.constant 8 : i32
    %c0_i32_273 = arith.constant 0 : i32
    %c0_i32_274 = arith.constant 0 : i32
    %c0_i32_275 = arith.constant 0 : i32
    %c0_i32_276 = arith.constant 0 : i32
    %454 = tpu.memref_slice %arg2[%c8_i32, %c0_i32_275, %c0_i32_276] : memref<9x128x384xbf16, #tpu.memory_space<any>> -> memref<1x128x384xbf16, #tpu.memory_space<any>>
    %455 = tpu.memref_squeeze %454 : memref<1x128x384xbf16, #tpu.memory_space<any>> -> memref<128x384xbf16, #tpu.memory_space<any>>
    %c0_i32_277 = arith.constant 0 : i32
    %c0_i32_278 = arith.constant 0 : i32
    %456 = tpu.memref_slice %arg7[%c0_i32_273, %c0_i32_277, %c0_i32_278] : memref<2x128x384xbf16, #tpu.memory_space<vmem>> -> memref<1x128x384xbf16, #tpu.memory_space<vmem>>
    %457 = tpu.memref_squeeze %456 : memref<1x128x384xbf16, #tpu.memory_space<vmem>> -> memref<128x384xbf16, #tpu.memory_space<vmem>>
    %458 = tpu.memref_slice %arg8[%c0_i32_274] : memref<2x!tpu.dma_semaphore, #tpu.memory_space<semaphore_mem>> -> memref<1x!tpu.dma_semaphore, #tpu.memory_space<semaphore_mem>>
    %459 = tpu.memref_squeeze %458 : memref<1x!tpu.dma_semaphore, #tpu.memory_space<semaphore_mem>> -> memref<!tpu.dma_semaphore, #tpu.memory_space<semaphore_mem>>
    tpu.enqueue_dma source(%455 : memref<128x384xbf16, #tpu.memory_space<any>>) target(%457 : memref<128x384xbf16, #tpu.memory_space<vmem>>) target_semaphore(%459 : memref<!tpu.dma_semaphore, #tpu.memory_space<semaphore_mem>>)
    %460 = arith.truncf %447 : vector<128x128xf32> to vector<128x128xbf16>
    %c1_279 = arith.constant 1 : index
    %c0_280 = arith.constant 0 : index
    %c0_281 = arith.constant 0 : index
    %461 = vector.load %arg7[%c1_279, %c0_280, %c0_281] : memref<2x128x384xbf16, #tpu.memory_space<vmem>>, vector<1x128x384xbf16>
    %462 = vector.shape_cast %461 : vector<1x128x384xbf16> to vector<128x384xbf16>
    %cst_282 = arith.constant dense<0.000000e+00> : vector<128x384xf32>
    %463 = tpu.matmul %460, %462, %cst_282 {dimension_numbers = #tpu.dot_dimension_numbers<[1], [0], [0], [1], [0, 0, 1, 1], [], []>} : vector<128x128xbf16>, vector<128x384xbf16>, vector<128x384xf32> -> vector<128x384xf32>
    %c7 = arith.constant 7 : index
    %c0_283 = arith.constant 0 : index
    %464 = vector.load %arg3[%c7, %c0_283] : memref<9x384xf32, #tpu.memory_space<vmem>>, vector<1x384xf32>
    %465 = vector.broadcast %464 : vector<1x384xf32> to vector<128x384xf32>
    %466 = arith.addf %463, %465 : vector<128x384xf32>
    %467 = vector.extract_strided_slice %466 {offsets = [0, 0], sizes = [128, 128], strides = [1, 1]} : vector<128x384xf32> to vector<128x128xf32>
    %468 = vector.extract_strided_slice %466 {offsets = [0, 128], sizes = [128, 128], strides = [1, 1]} : vector<128x384xf32> to vector<128x128xf32>
    %cst_284 = arith.constant 0.000000e+00 : f32
    %469 = vector.broadcast %cst_284 : f32 to vector<128x128xf32>
    %470 = arith.maximumf %468, %469 : vector<128x128xf32>
    %471 = vector.extract_strided_slice %466 {offsets = [0, 256], sizes = [128, 128], strides = [1, 1]} : vector<128x384xf32> to vector<128x128xf32>
    %cst_285 = arith.constant dense<0.000000e+00> : vector<128xf32>
    %472 = vector.multi_reduction <add>, %471, %cst_285 [0] : vector<128x128xf32> to vector<128xf32>
    %473 = vector.shape_cast %472 : vector<128xf32> to vector<1x128xf32>
    %cst_286 = arith.constant 1.280000e+02 : f32
    %474 = vector.broadcast %cst_286 : f32 to vector<1x128xf32>
    %475 = arith.divf %473, %474 : vector<1x128xf32>
    %476 = vector.broadcast %475 : vector<1x128xf32> to vector<128x128xf32>
    %477 = arith.subf %471, %476 : vector<128x128xf32>
    %478 = arith.mulf %477, %477 : vector<128x128xf32>
    %cst_287 = arith.constant dense<0.000000e+00> : vector<128xf32>
    %479 = vector.multi_reduction <add>, %478, %cst_287 [0] : vector<128x128xf32> to vector<128xf32>
    %480 = vector.shape_cast %479 : vector<128xf32> to vector<1x128xf32>
    %cst_288 = arith.constant 1.280000e+02 : f32
    %481 = vector.broadcast %cst_288 : f32 to vector<1x128xf32>
    %482 = arith.divf %480, %481 : vector<1x128xf32>
    %cst_289 = arith.constant 9.99999974E-6 : f32
    %483 = vector.broadcast %cst_289 : f32 to vector<1x128xf32>
    %484 = arith.addf %482, %483 : vector<1x128xf32>
    %485 = math.rsqrt %484 : vector<1x128xf32>
    %486 = vector.broadcast %485 : vector<1x128xf32> to vector<128x128xf32>
    %487 = arith.mulf %477, %486 : vector<128x128xf32>
    %c7_290 = arith.constant 7 : index
    %c0_291 = arith.constant 0 : index
    %488 = vector.load %arg4[%c7_290, %c0_291] : memref<9x128xf32, #tpu.memory_space<vmem>>, vector<1x128xf32>
    %489 = vector.broadcast %488 : vector<1x128xf32> to vector<128x128xf32>
    %490 = arith.mulf %487, %489 : vector<128x128xf32>
    %c7_292 = arith.constant 7 : index
    %c0_293 = arith.constant 0 : index
    %491 = vector.load %arg5[%c7_292, %c0_293] : memref<9x128xf32, #tpu.memory_space<vmem>>, vector<1x128xf32>
    %492 = vector.broadcast %491 : vector<1x128xf32> to vector<128x128xf32>
    %493 = arith.addf %490, %492 : vector<128x128xf32>
    %cst_294 = arith.constant 0.000000e+00 : f32
    %494 = vector.broadcast %cst_294 : f32 to vector<128x128xf32>
    %495 = arith.maximumf %493, %494 : vector<128x128xf32>
    %c7_295 = arith.constant 7 : index
    %c0_296 = arith.constant 0 : index
    %496 = memref.load %arg0[%c7_295, %c0_296] : memref<9x5xf32, #tpu.memory_space<smem>>
    %497 = vector.broadcast %496 : f32 to vector<128x128xf32>
    %498 = arith.mulf %497, %467 : vector<128x128xf32>
    %c7_297 = arith.constant 7 : index
    %c1_298 = arith.constant 1 : index
    %499 = memref.load %arg0[%c7_297, %c1_298] : memref<9x5xf32, #tpu.memory_space<smem>>
    %500 = vector.broadcast %499 : f32 to vector<128x128xf32>
    %501 = arith.mulf %500, %470 : vector<128x128xf32>
    %502 = arith.addf %498, %501 : vector<128x128xf32>
    %c7_299 = arith.constant 7 : index
    %c2_300 = arith.constant 2 : index
    %503 = memref.load %arg0[%c7_299, %c2_300] : memref<9x5xf32, #tpu.memory_space<smem>>
    %504 = vector.broadcast %503 : f32 to vector<128x128xf32>
    %505 = arith.mulf %504, %495 : vector<128x128xf32>
    %506 = arith.addf %502, %505 : vector<128x128xf32>
    %c7_301 = arith.constant 7 : index
    %c3_302 = arith.constant 3 : index
    %507 = memref.load %arg0[%c7_301, %c3_302] : memref<9x5xf32, #tpu.memory_space<smem>>
    %508 = vector.broadcast %507 : f32 to vector<128x128xf32>
    %509 = arith.mulf %508, %447 : vector<128x128xf32>
    %510 = arith.addf %506, %509 : vector<128x128xf32>
    %c8_i32_303 = arith.constant 8 : i32
    %c0_i32_304 = arith.constant 0 : i32
    %c0_i32_305 = arith.constant 0 : i32
    %c0_i32_306 = arith.constant 0 : i32
    %c0_i32_307 = arith.constant 0 : i32
    %511 = tpu.memref_slice %arg2[%c8_i32_303, %c0_i32_306, %c0_i32_307] : memref<9x128x384xbf16, #tpu.memory_space<any>> -> memref<1x128x384xbf16, #tpu.memory_space<any>>
    %512 = tpu.memref_squeeze %511 : memref<1x128x384xbf16, #tpu.memory_space<any>> -> memref<128x384xbf16, #tpu.memory_space<any>>
    %c0_i32_308 = arith.constant 0 : i32
    %c0_i32_309 = arith.constant 0 : i32
    %513 = tpu.memref_slice %arg7[%c0_i32_304, %c0_i32_308, %c0_i32_309] : memref<2x128x384xbf16, #tpu.memory_space<vmem>> -> memref<1x128x384xbf16, #tpu.memory_space<vmem>>
    %514 = tpu.memref_squeeze %513 : memref<1x128x384xbf16, #tpu.memory_space<vmem>> -> memref<128x384xbf16, #tpu.memory_space<vmem>>
    %515 = tpu.memref_slice %arg8[%c0_i32_305] : memref<2x!tpu.dma_semaphore, #tpu.memory_space<semaphore_mem>> -> memref<1x!tpu.dma_semaphore, #tpu.memory_space<semaphore_mem>>
    %516 = tpu.memref_squeeze %515 : memref<1x!tpu.dma_semaphore, #tpu.memory_space<semaphore_mem>> -> memref<!tpu.dma_semaphore, #tpu.memory_space<semaphore_mem>>
    tpu.wait_dma2 semaphore(%516 : memref<!tpu.dma_semaphore, #tpu.memory_space<semaphore_mem>>) src(%512 : memref<128x384xbf16, #tpu.memory_space<any>>) dst(%514 : memref<128x384xbf16, #tpu.memory_space<vmem>>)
    %517 = arith.truncf %510 : vector<128x128xf32> to vector<128x128xbf16>
    %c0_310 = arith.constant 0 : index
    %c0_311 = arith.constant 0 : index
    %c0_312 = arith.constant 0 : index
    %518 = vector.load %arg7[%c0_310, %c0_311, %c0_312] : memref<2x128x384xbf16, #tpu.memory_space<vmem>>, vector<1x128x384xbf16>
    %519 = vector.shape_cast %518 : vector<1x128x384xbf16> to vector<128x384xbf16>
    %cst_313 = arith.constant dense<0.000000e+00> : vector<128x384xf32>
    %520 = tpu.matmul %517, %519, %cst_313 {dimension_numbers = #tpu.dot_dimension_numbers<[1], [0], [0], [1], [0, 0, 1, 1], [], []>} : vector<128x128xbf16>, vector<128x384xbf16>, vector<128x384xf32> -> vector<128x384xf32>
    %c8 = arith.constant 8 : index
    %c0_314 = arith.constant 0 : index
    %521 = vector.load %arg3[%c8, %c0_314] : memref<9x384xf32, #tpu.memory_space<vmem>>, vector<1x384xf32>
    %522 = vector.broadcast %521 : vector<1x384xf32> to vector<128x384xf32>
    %523 = arith.addf %520, %522 : vector<128x384xf32>
    %524 = vector.extract_strided_slice %523 {offsets = [0, 0], sizes = [128, 128], strides = [1, 1]} : vector<128x384xf32> to vector<128x128xf32>
    %525 = vector.extract_strided_slice %523 {offsets = [0, 128], sizes = [128, 128], strides = [1, 1]} : vector<128x384xf32> to vector<128x128xf32>
    %cst_315 = arith.constant 0.000000e+00 : f32
    %526 = vector.broadcast %cst_315 : f32 to vector<128x128xf32>
    %527 = arith.maximumf %525, %526 : vector<128x128xf32>
    %528 = vector.extract_strided_slice %523 {offsets = [0, 256], sizes = [128, 128], strides = [1, 1]} : vector<128x384xf32> to vector<128x128xf32>
    %cst_316 = arith.constant dense<0.000000e+00> : vector<128xf32>
    %529 = vector.multi_reduction <add>, %528, %cst_316 [0] : vector<128x128xf32> to vector<128xf32>
    %530 = vector.shape_cast %529 : vector<128xf32> to vector<1x128xf32>
    %cst_317 = arith.constant 1.280000e+02 : f32
    %531 = vector.broadcast %cst_317 : f32 to vector<1x128xf32>
    %532 = arith.divf %530, %531 : vector<1x128xf32>
    %533 = vector.broadcast %532 : vector<1x128xf32> to vector<128x128xf32>
    %534 = arith.subf %528, %533 : vector<128x128xf32>
    %535 = arith.mulf %534, %534 : vector<128x128xf32>
    %cst_318 = arith.constant dense<0.000000e+00> : vector<128xf32>
    %536 = vector.multi_reduction <add>, %535, %cst_318 [0] : vector<128x128xf32> to vector<128xf32>
    %537 = vector.shape_cast %536 : vector<128xf32> to vector<1x128xf32>
    %cst_319 = arith.constant 1.280000e+02 : f32
    %538 = vector.broadcast %cst_319 : f32 to vector<1x128xf32>
    %539 = arith.divf %537, %538 : vector<1x128xf32>
    %cst_320 = arith.constant 9.99999974E-6 : f32
    %540 = vector.broadcast %cst_320 : f32 to vector<1x128xf32>
    %541 = arith.addf %539, %540 : vector<1x128xf32>
    %542 = math.rsqrt %541 : vector<1x128xf32>
    %543 = vector.broadcast %542 : vector<1x128xf32> to vector<128x128xf32>
    %544 = arith.mulf %534, %543 : vector<128x128xf32>
    %c8_321 = arith.constant 8 : index
    %c0_322 = arith.constant 0 : index
    %545 = vector.load %arg4[%c8_321, %c0_322] : memref<9x128xf32, #tpu.memory_space<vmem>>, vector<1x128xf32>
    %546 = vector.broadcast %545 : vector<1x128xf32> to vector<128x128xf32>
    %547 = arith.mulf %544, %546 : vector<128x128xf32>
    %c8_323 = arith.constant 8 : index
    %c0_324 = arith.constant 0 : index
    %548 = vector.load %arg5[%c8_323, %c0_324] : memref<9x128xf32, #tpu.memory_space<vmem>>, vector<1x128xf32>
    %549 = vector.broadcast %548 : vector<1x128xf32> to vector<128x128xf32>
    %550 = arith.addf %547, %549 : vector<128x128xf32>
    %cst_325 = arith.constant 0.000000e+00 : f32
    %551 = vector.broadcast %cst_325 : f32 to vector<128x128xf32>
    %552 = arith.maximumf %550, %551 : vector<128x128xf32>
    %c8_326 = arith.constant 8 : index
    %c0_327 = arith.constant 0 : index
    %553 = memref.load %arg0[%c8_326, %c0_327] : memref<9x5xf32, #tpu.memory_space<smem>>
    %554 = vector.broadcast %553 : f32 to vector<128x128xf32>
    %555 = arith.mulf %554, %524 : vector<128x128xf32>
    %c8_328 = arith.constant 8 : index
    %c1_329 = arith.constant 1 : index
    %556 = memref.load %arg0[%c8_328, %c1_329] : memref<9x5xf32, #tpu.memory_space<smem>>
    %557 = vector.broadcast %556 : f32 to vector<128x128xf32>
    %558 = arith.mulf %557, %527 : vector<128x128xf32>
    %559 = arith.addf %555, %558 : vector<128x128xf32>
    %c8_330 = arith.constant 8 : index
    %c2_331 = arith.constant 2 : index
    %560 = memref.load %arg0[%c8_330, %c2_331] : memref<9x5xf32, #tpu.memory_space<smem>>
    %561 = vector.broadcast %560 : f32 to vector<128x128xf32>
    %562 = arith.mulf %561, %552 : vector<128x128xf32>
    %563 = arith.addf %559, %562 : vector<128x128xf32>
    %c8_332 = arith.constant 8 : index
    %c3_333 = arith.constant 3 : index
    %564 = memref.load %arg0[%c8_332, %c3_333] : memref<9x5xf32, #tpu.memory_space<smem>>
    %565 = vector.broadcast %564 : f32 to vector<128x128xf32>
    %566 = arith.mulf %565, %510 : vector<128x128xf32>
    %567 = arith.addf %563, %566 : vector<128x128xf32>
    %c0_334 = arith.constant 0 : index
    %c0_335 = arith.constant 0 : index
    %568 = vector.load %arg6[%c0_334, %c0_335] : memref<128x128xf32, #tpu.memory_space<vmem>>, vector<128x128xf32>
    tpu.vector_store %arg6[%c0_334, %c0_335], %567 {strides = array<i32>} : memref<128x128xf32, #tpu.memory_space<vmem>>, vector<128x128xf32>,
    return
  }
}

</mosaic_0001>

<bundles_post_ra>
// kernel: search_cell_forward.1
= control target key start
LH: loop header
LB: loop body
LE: loop exit
PB: predicated region body
PF: predicated region fallthrough
CT: control target
= control target key end

     0   :  { %11 = vsyncpa [#allocation7], 0  ;;  %s10795_s0 = inlined_call_operand.vmem [shape: f32[9,5], index: 0, kind: input, shape index: {}]   ;;  %s10796_s1 = inlined_call_operand.hbm [shape: f32[128,128], index: 1, kind: input, shape index: {}]   ;;  %s10797_s2 = inlined_call_operand.hbm [shape: bf16[9,128,384], index: 2, kind: input, shape index: {}]   ;;  %s10798_s3 = inlined_call_operand.vmem [shape: f32[9,384], index: 3, kind: input, shape index: {}]   ;;  %s10799_s4 = inlined_call_operand.vmem [shape: f32[9,128], index: 4, kind: input, shape index: {}]   ;;  %s10800_s5 = inlined_call_operand.vmem [shape: f32[9,128], index: 5, kind: input, shape index: {}]   ;;  %s10801_s6 = inlined_call_operand.hbm [shape: f32[128,128], index: 6, kind: output, shape index: {}]  }
   0x1   :  { %12 = vsyncpa [#allocation5], 0 }
   0x2   :  { %13 = vsyncpa [#allocation6], 0  ;;  %s19_s23 = sshll.u32 %s10795_s0, 4  ;;  %s20_s23 = int_to_ptr.vmem [resolvable:$true] %s19_s23 }
   0x3   :  { %s5940_s24 = scalar_lea.vmem %s20_s23, 256  ;;  %p5945_p1 = scmp.lt.s32.totalorder %s20_s23, %s20_s23 }
   0x4   :  { %p5941_p0 = scmp.ne.s32.totalorder %s20_s23, %s5940_s24  ;;  %p5946_p2 = scmp.lt.s32.totalorder %s5940_s24, %s5940_s24 }
   0x6   :  { %p5947_p3 = por %p5946_p2, %p5945_p1 }
   0x8   :  { %p5948_p4 = pnand %p5947_p3, %p5941_p0 }
   0xa   :  { %5951 = shalt.err (!%p5948_p4)
}
   0xb   :  { %s6020_s25 = smov [#allocation4]   ;;  %s6021_s26 = smov 128  }
   0xc   :  { %s6022_s27 = smov 8   ;;  %s6023_s28 = smov [#allocation8]  }
   0xd   :  { %25 = dma.vmem_to_smem %s20_s23, 256, %s6020_s25, [#allocation7], %s6021_s26, %s6021_s26, %s6022_s27  }
   0xe   :  { %s31_s29 = sshll.u32 %s6023_s28, 4  ;;  %s5952_s7 = scalar_lea.hbm %s10796_s1, 2048  ;;  %s32_s29 = int_to_ptr.vmem [resolvable:$true] %s31_s29 }
   0xf   :  { %p5953_p5 = scmp.ne.s32.totalorder %s10796_s1, %s5952_s7  ;;  %p5956_p6 = scmp.lt.u32.totalorder %s5952_s7, %s10796_s1 }
  0x11   :  { %p5958_p7 = pnand %p5956_p6, %p5953_p5 }
  0x13   :  { %5961 = shalt.err (!%p5958_p7)
}
  0x14   :  { %s5962_s12 = scalar_lea.vmem %s32_s29, 2048  ;;  %p5967_p9 = scmp.lt.s32.totalorder %s32_s29, %s32_s29 }
  0x15   :  { %p5963_p8 = scmp.ne.s32.totalorder %s32_s29, %s5962_s12  ;;  %p5968_p10 = scmp.lt.s32.totalorder %s5962_s12, %s5962_s12 }
  0x17   :  { %p5969_p11 = por %p5968_p10, %p5967_p9 }
  0x19   :  { %p5970_p12 = pnand %p5969_p11, %p5963_p8 }
  0x1b   :  { %5973 = shalt.err (!%p5970_p12)
}
  0x1c   :  { %37 = dma.hbm_to_vmem [thread:$0]  %s10796_s1, 2048, %s32_s29, [#allocation5], %s6021_s26, %s6021_s26, %s6022_s27  }
  0x1d   :  { %5996 = dma.done.wait [#allocation7], 256  }
  0x1e   :  { %5997 = vsyncadd [#allocation7], 4294967040 }
  0x1f   :  { %5998 = dma.done.wait [#allocation5], 2048  }
  0x20   :  { %5999 = vsyncadd [#allocation5], 4294965248 }
  0x21   :  { %50 = sfence }
  0x22   :  { %s56_s15 = sld [smem:[#allocation0]]   ;;  %s6024_s16 = smov [#allocation2]  }
  0x23   :  { %s64_s17 = sshll.u32 %s6024_s16, 4  ;;  %s6025_s18 = smov 384   ;;  %s6101_s17 = int_to_ptr.vmem [resolvable:$true] %s64_s17 }
  0x24   :  { %68 = sst [smem:[#allocation11]] %s6025_s18  ;;  %s6026_s19 = smov 3  }
  0x25   :  { %70 = sst [smem:[#allocation11 + $0x1]] %s6025_s18  ;;  %s6027_s1 = smov 64  }
  0x26   :  { %72 = sst [smem:[#allocation11 + $0x2]] %s6026_s19  ;;  %s6028_s22 = smov 2  }
  0x27   :  { %74 = sst [smem:[#allocation11 + $0x3]] %s6027_s1  ;;  %s6029_s23 = smov 192  }
  0x28   :  { %s5384_s20 = sshll.u32 %s56_s15, 26  ;;  %76 = sst [smem:[#allocation11 + $0x4]] %s6021_s26 }
  0x29   :  { %s6108_s21 = sadd.s32 134217728, %s5384_s20  ;;  %78 = sst [smem:[#allocation11 + $0x5]] %s6028_s22 }
  0x2a   :  { %82 = sst [smem:[#allocation11 + $0x7]] %s6027_s1  ;;  %s6030_s24 = smov 4  }
  0x2b   :  { %80 = sst [smem:[#allocation11 + $0x6]] %s6029_s23  ;;  %s6031_s25 = smov [#allocation3]  }
  0x2c   :  { %84 = sst [smem:[#allocation11 + $0x8]] %s6030_s24  ;;  %s6032_s28 = smov [#allocation10]  }
  0x2d   :  { %86 = dma.general %s10797_s2, 3072, %s6101_s17, %s6031_s25, %s6032_s28, [#allocation11], %s6108_s21, 0  }
  0x2e   :  { %v6120_v0 = vld [vmem:[#allocation8] sm:$0xff]  ;;  %v6122_v1 = vld [vmem:[#allocation8 + $0x8] sm:$0xff]  ;;  %v6124_v2 = vld [vmem:[#allocation8 + $0x10] sm:$0xff] }
  0x2f   :  { %v6126_v3 = vld [vmem:[#allocation8 + $0x18] sm:$0xff]  ;;  %v6128_v4 = vld [vmem:[#allocation8 + $0x20] sm:$0xff]  ;;  %v6130_v5 = vld [vmem:[#allocation8 + $0x28] sm:$0xff] }
  0x30   :  { %v6132_v6 = vld [vmem:[#allocation8 + $0x30] sm:$0xff]  ;;  %v6134_v7 = vld [vmem:[#allocation8 + $0x38] sm:$0xff]  ;;  %v6136_v8 = vld [vmem:[#allocation8 + $0x40] sm:$0xff] }
  0x31   :  { %v6138_v9 = vld [vmem:[#allocation8 + $0x48] sm:$0xff]  ;;  %v6140_v10 = vld [vmem:[#allocation8 + $0x50] sm:$0xff]  ;;  %v6142_v11 = vld [vmem:[#allocation8 + $0x58] sm:$0xff] }
  0x32   :  { %v6144_v12 = vld [vmem:[#allocation8 + $0x60] sm:$0xff]  ;;  %v6146_v13 = vld [vmem:[#allocation8 + $0x68] sm:$0xff]  ;;  %v6148_v14 = vld [vmem:[#allocation8 + $0x70] sm:$0xff] }
  0x33   :  { %10835 = vst [vmem:[#allocation40_spill] sm:$0xff] %v6148_v14  ;;  %v6150_v15 = vld [vmem:[#allocation8 + $0x78] sm:$0xff] }
  0x34   :  { %10836 = vst [vmem:[#allocation41_spill] sm:$0xff] %v6150_v15 }
  0x35   :  { %6000 = dma.done.wait [#allocation3], 3072 }
  0x36   :  { %6001 = vsyncadd [#allocation3], 4294964224  ;;  %v6154_v16 = vpack.c.bf16 %v6122_v1, %v6120_v0  ;;  %125 = sst [smem:[#allocation13]] %s6025_s18  ;;  %s6033_s0 = smov [#allocation2 + $0xc0]   ;;  %v10802_v17 = vmov 0   ;;  %v145_v41 = vpack.c.bf16 %v6126_v3, %v6124_v2  ;;  %v146_v43 = vpack.c.bf16 %v6130_v5, %v6128_v4 }
  0x37   :  { %127 = sst [smem:[#allocation13 + $0x1]] %s6025_s18  ;;  %s121_s7 = sshll.u32 %s6033_s0, 4  ;;  %225 = vmatprep.mubr.bf16.mxu0 %v10802_v17  ;;  %v147_v44 = vpack.c.bf16 %v6134_v7, %v6132_v6  ;;  %v148_v45 = vpack.c.bf16 %v6138_v9, %v6136_v8  ;;  %v149_v46 = vpack.c.bf16 %v6142_v11, %v6140_v10  ;;  %v150_v47 = vpack.c.bf16 %v6146_v13, %v6144_v12  ;;  %s6166_s7 = int_to_ptr.vmem [resolvable:$true] %s121_s7 }
  0x38   :  { %5625 = vmatprep.mubr.bf16.mxu1 %v6154_v16  ;;  %129 = sst [smem:[#allocation13 + $0x2]] %s6026_s19  ;;  %s107_s10 = scalar_lea.hbm %s10797_s2, 3072  ;;  %v151_v48 = vpack.c.bf16 %v6150_v15, %v6148_v14  ;;  %v178_v49 = vlaneseq }
  0x39   :  { %131 = sst [smem:[#allocation13 + $0x3]] %s6027_s1  ;;  %s6035_s11 = smov [#allocation3 + $0x1]  }
  0x3a   :  { %133 = sst [smem:[#allocation13 + $0x4]] %s6021_s26  ;;  %s6036_s12 = smov [#allocation12]   ;;  %v179_v50 = vshrl.u32 %v178_v49, 7 }
  0x3b   :  { %135 = sst [smem:[#allocation13 + $0x5]] %s6028_s22 }
  0x3c   :  { %137 = sst [smem:[#allocation13 + $0x6]] %s6029_s23  ;;  %v6197_v51 = vsub.s32 0, %v179_v50  ;;  %v6199_v52 = vsub.s32 2, %v179_v50  ;;  %v6201_v53 = vsub.s32 1, %v179_v50 }
  0x3d   :  { %139 = sst [smem:[#allocation13 + $0x7]] %s6027_s1 }
  0x3e   :  { %141 = sst [smem:[#allocation13 + $0x8]] %s6030_s24 }
  0x3f   :  { %143 = dma.general %s107_s10, 3072, %s6166_s7, %s6035_s11, %s6036_s12, [#allocation13], %s6108_s21, 0  }
  0x40   :  { %v154_v18 = vld [vmem:[#allocation2 + $0x10] sm:$0xff]  ;;  %v157_v19 = vld [vmem:[#allocation2 + $0x28] sm:$0xff]  ;;  %v152_v21 = vld [vmem:[#allocation2] sm:$0xff]  ;;  %10837 = vst [vmem:[#allocation42_spill] sm:$0xff] %v6197_v51  ;;  %s572_s13 = sld [smem:[#allocation4]]  ;;  %s5390_s16 = sld [smem:[#allocation4 + $0x1]] }
  0x41   :  { %5609 = vmatprep.subr.bf16.mxu1 %v154_v18  ;;  %v153_v20 = vld [vmem:[#allocation2 + $0x8] sm:$0xff]  ;;  %v156_v22 = vld [vmem:[#allocation2 + $0x20] sm:$0xff]  ;;  %v155_v24 = vld [vmem:[#allocation2 + $0x18] sm:$0xff]  ;;  %10838 = vst [vmem:[#allocation43_spill] sm:$0xff] %v6199_v52  ;;  %s5392_s20 = sld [smem:[#allocation4 + $0x3]]  ;;  %s5391_s28 = sld [smem:[#allocation4 + $0x2]] }
  0x42   :  { %5610 = vmatpush3.bf16.msra.mxu1 %v154_v18  ;;  %193 = vmatprep.subr.bf16.mxu0 %v153_v20  ;;  %v160_v23 = vld [vmem:[#allocation2 + $0x40] sm:$0xff]  ;;  %v159_v25 = vld [vmem:[#allocation2 + $0x38] sm:$0xff]  ;;  %v158_v27 = vld [vmem:[#allocation2 + $0x30] sm:$0xff]  ;;  %10839 = vst [vmem:[#allocation44_spill] sm:$0xff] %v6201_v53 }
  0x43   :  { %5611 = vmatprep.subr.bf16.mxu1 %v157_v19  ;;  %194 = vmatpush1.bf16.msra.mxu0 %v152_v21  ;;  %v163_v26 = vld [vmem:[#allocation2 + $0x58] sm:$0xff]  ;;  %v162_v28 = vld [vmem:[#allocation2 + $0x50] sm:$0xff]  ;;  %v161_v30 = vld [vmem:[#allocation2 + $0x48] sm:$0xff] }
  0x44   :  { %195 = vmatprep.subr.bf16.mxu0 %v156_v22  ;;  %v166_v29 = vld [vmem:[#allocation2 + $0x70] sm:$0xff]  ;;  %v165_v31 = vld [vmem:[#allocation2 + $0x68] sm:$0xff]  ;;  %v164_v33 = vld [vmem:[#allocation2 + $0x60] sm:$0xff] }
  0x45   :  { %v169_v32 = vld [vmem:[#allocation2 + $0x88] sm:$0xff]  ;;  %v168_v34 = vld [vmem:[#allocation2 + $0x80] sm:$0xff]  ;;  %v167_v36 = vld [vmem:[#allocation2 + $0x78] sm:$0xff] }
  0x46   :  { %5612 = vmatpush3.bf16.msra.mxu1 %v157_v19  ;;  %v172_v35 = vld [vmem:[#allocation2 + $0xa0] sm:$0xff]  ;;  %v171_v37 = vld [vmem:[#allocation2 + $0x98] sm:$0xff]  ;;  %v170_v39 = vld [vmem:[#allocation2 + $0x90] sm:$0xff] }
  0x47   :  { %5613 = vmatprep.subr.bf16.mxu1 %v160_v23  ;;  %196 = vmatpush1.bf16.msra.mxu0 %v155_v24  ;;  %v175_v38 = vld [vmem:[#allocation2 + $0xb8] sm:$0xff]  ;;  %v174_v40 = vld [vmem:[#allocation2 + $0xb0] sm:$0xff]  ;;  %v173_v42 = vld [vmem:[#allocation2 + $0xa8] sm:$0xff]  ;;  %v6228_v24 = vstv %s5390_s16 }
  0x48   :  { %197 = vmatprep.subr.bf16.mxu0 %v159_v25  ;;  %v176_v54 = vld [vmem:[%s10798_s3] ss:$8 sm:$0x7] }
  0x49   :  { %v6207_v55 = vrot.slane %v176_v54, %v6197_v51  ;;  %v6210_v56 = vrot.slane %v176_v54, %v6199_v52  ;;  %v6213_v58 = vrot.slane %v176_v54, %v6201_v53 }
  0x4a   :  { %5614 = vmatpush3.bf16.msra.mxu1 %v160_v23 }
  0x4b   :  { %5615 = vmatprep.subr.bf16.mxu1 %v163_v26  ;;  %198 = vmatpush1.bf16.msra.mxu0 %v158_v27 }
  0x4c   :  { %199 = vmatprep.subr.bf16.mxu0 %v162_v28 }
  0x4e   :  { %5616 = vmatpush3.bf16.msra.mxu1 %v163_v26 }
  0x4f   :  { %5617 = vmatprep.subr.bf16.mxu1 %v166_v29  ;;  %200 = vmatpush1.bf16.msra.mxu0 %v161_v30 }
  0x50   :  { %201 = vmatprep.subr.bf16.mxu0 %v165_v31 }
  0x52   :  { %5618 = vmatpush3.bf16.msra.mxu1 %v166_v29 }
  0x53   :  { %5619 = vmatprep.subr.bf16.mxu1 %v169_v32  ;;  %202 = vmatpush1.bf16.msra.mxu0 %v164_v33 }
  0x54   :  { %203 = vmatprep.subr.bf16.mxu0 %v168_v34 }
  0x56   :  { %5620 = vmatpush3.bf16.msra.mxu1 %v169_v32 }
  0x57   :  { %5621 = vmatprep.subr.bf16.mxu1 %v172_v35  ;;  %204 = vmatpush1.bf16.msra.mxu0 %v167_v36 }
  0x58   :  { %205 = vmatprep.subr.bf16.mxu0 %v171_v37 }
  0x5a   :  { %5622 = vmatpush3.bf16.msra.mxu1 %v172_v35 }
  0x5b   :  { %5623 = vmatprep.subr.bf16.mxu1 %v175_v38  ;;  %206 = vmatpush1.bf16.msra.mxu0 %v170_v39 }
  0x5c   :  { %207 = vmatprep.subr.bf16.mxu0 %v174_v40 }
  0x5e   :  { %5624 = vmatpush3.bf16.msra.mxu1 %v175_v38 }
  0x5f   :  { %208 = vmatpush1.bf16.msra.mxu0 %v173_v42 }
  0x61   :  { %5626 = vmatmul.mubr.bf16.vlgmr.msra.gmra.mrb[0].mxu1 %v145_v41 }
  0x62   :  { %5629 = vmatprep.mubr.bf16.mxu1 %v146_v43  ;;  %226 = vmatmul.mubr.bf16.vlgmr.msra.gmra.mrb[0].mxu0 %v6154_v16  ;;  %v6216_v16 = vstv %s572_s13 }
  0x63   :  { %235 = vmatprep.mubr.bf16.mxu0 %v10802_v17 }
  0x69   :  { %5630 = vmatmul.mubr.bf16.gmra.mrb[4].mxu1 %v147_v44 }
  0x6a   :  { %5633 = vmatprep.mubr.bf16.mxu1 %v148_v45  ;;  %236 = vmatmul.mubr.bf16.gmra.mrb[4].mxu0 %v145_v41 }
  0x6b   :  { %245 = vmatprep.mubr.bf16.mxu0 %v10802_v17 }
  0x71   :  { %5634 = vmatmul.mubr.bf16.gmra.mrb[8].mxu1 %v149_v46 }
  0x72   :  { %5637 = vmatprep.mubr.bf16.mxu1 %v150_v47  ;;  %246 = vmatmul.mubr.bf16.gmra.mrb[8].mxu0 %v146_v43 }
  0x73   :  { %255 = vmatprep.mubr.bf16.mxu0 %v10802_v17 }
  0x79   :  { %5638 = vmatmul.mubr.bf16.gmra.mrb[12].mxu1 %v151_v48 }
  0x7a   :  { %256 = vmatmul.mubr.bf16.gmra.mrb[12].mxu0 %v147_v44 }
  0x7b   :  { %265 = vmatprep.mubr.bf16.mxu0 %v10802_v17 }
  0x82   :  { %266 = vmatmul.mubr.bf16.gmra.mrb[16].mxu0 %v148_v45 }
  0x83   :  { %275 = vmatprep.mubr.bf16.mxu0 %v10802_v17 }
  0x8a   :  { %276 = vmatmul.mubr.bf16.gmra.mrb[20].mxu0 %v149_v46 }
  0x8b   :  { %285 = vmatprep.mubr.bf16.mxu0 %v10802_v17 }
  0x92   :  { %286 = vmatmul.mubr.bf16.gmra.mrb[24].mxu0 %v150_v47 }
  0x93   :  { %295 = vmatprep.mubr.bf16.mxu0 %v10802_v17 }
  0x9a   :  { %296 = vmatmul.mubr.bf16.gmra.mrb[28].mxu0 %v151_v48 }
 0x134   :  { %v5627_v57 = vpop.f32.mrb[0].mxu1 }
 0x135   :  { %v340_v59 = vpop.f32.mrb[1].mxu1  ;;  %v227_v61 = vpop.f32.mrb[0].mxu0  ;;  %v6226_v23 = vadd.f32 %v5627_v57, %v6210_v56 }
 0x136   :  { %v5628_v60 = vpop.f32.mrb[2].mxu1  ;;  %v228_v63 = vadd.f32 %v227_v61, %v6207_v55  ;;  %v229_v18 = vpop.f32.mrb[1].mxu0  ;;  %v6219_v19 = vadd.f32 %v340_v59, %v6210_v56 }
 0x137   :  { %v343_v62 = vpop.f32.mrb[3].mxu1  ;;  %v230_v21 = vadd.f32 %v229_v18, %v6213_v58  ;;  %v231_v22 = vpop.f32.mrb[2].mxu0  ;;  %v6236_v31 = vadd.f32 %v5628_v60, %v6210_v56 }
 0x138   :  { %v6222_v20 = vadd.f32 %v343_v62, %v6210_v56  ;;  %v232_v25 = vadd.f32 %v231_v22, %v6207_v55  ;;  %v233_v26 = vpop.f32.mrb[3].mxu0  ;;  %v574_v28 = vmul.f32 %v6216_v16, %v228_v63 }
 0x139   :  { %v403_v29 = vmax.f32 %v230_v21, 0.0  ;;  %v234_v30 = vadd.f32 %v233_v26, %v6213_v58 }
 0x13a   :  { %v419_v27 = vadd.f32 %v6222_v20, %v6219_v19  ;;  %v575_v35 = vmul.f32 %v6216_v16, %v232_v25 }
 0x13b   :  { %v592_v34 = vmul.f32 %v6228_v24, %v403_v29  ;;  %v404_v36 = vmax.f32 %v234_v30, 0.0 }
 0x13c   :  { %v420_v32 = vadd.f32 %v419_v27, %v6226_v23  ;;  %v5631_v33 = vpop.f32.mrb[4].mxu1 }
 0x13d   :  { %v356_v37 = vpop.f32.mrb[5].mxu1  ;;  %v6245_v41 = vadd.f32 %v592_v34, %v574_v28  ;;  %v593_v42 = vmul.f32 %v6228_v24, %v404_v36  ;;  %v237_v43 = vpop.f32.mrb[4].mxu0  ;;  %v6257_v57 = vadd.f32 %v5631_v33, %v6210_v56 }
 0x13e   :  { %v6242_v38 = vadd.f32 %v356_v37, %v6210_v56  ;;  %v421_v39 = vadd.f32 %v420_v32, %v6236_v31  ;;  %v5632_v40 = vpop.f32.mrb[6].mxu1  ;;  %v238_v45 = vadd.f32 %v237_v43, %v6207_v55  ;;  %v239_v46 = vpop.f32.mrb[5].mxu0 }
 0x13f   :  { %v359_v44 = vpop.f32.mrb[7].mxu1  ;;  %v6253_v49 = vadd.f32 %v593_v42, %v575_v35  ;;  %v240_v50 = vadd.f32 %v239_v46, %v6213_v58  ;;  %v241_v54 = vpop.f32.mrb[6].mxu0  ;;  %v6264_v21 = vadd.f32 %v5632_v40, %v6210_v56 }
 0x140   :  { %v422_v47 = vadd.f32 %v421_v39, %v6242_v38  ;;  %v6251_v48 = vadd.f32 %v359_v44, %v6210_v56  ;;  %v242_v59 = vadd.f32 %v241_v54, %v6207_v55  ;;  %v243_v60 = vpop.f32.mrb[7].mxu0  ;;  %v576_v62 = vmul.f32 %v6216_v16, %v238_v45 }
 0x141   :  { %v405_v63 = vmax.f32 %v240_v50, 0.0  ;;  %v244_v18 = vadd.f32 %v243_v60, %v6213_v58 }
 0x142   :  { %v423_v61 = vadd.f32 %v422_v47, %v6251_v48  ;;  %v577_v27 = vmul.f32 %v6216_v16, %v242_v59 }
 0x143   :  { %v594_v26 = vmul.f32 %v6228_v24, %v405_v63  ;;  %v406_v28 = vmax.f32 %v244_v18, 0.0 }
 0x144   :  { %v424_v22 = vadd.f32 %v423_v61, %v6257_v57  ;;  %v5635_v25 = vpop.f32.mrb[8].mxu1 }
 0x145   :  { %v372_v29 = vpop.f32.mrb[9].mxu1  ;;  %v6273_v34 = vadd.f32 %v594_v26, %v576_v62  ;;  %v595_v35 = vmul.f32 %v6228_v24, %v406_v28  ;;  %v247_v36 = vpop.f32.mrb[8].mxu0  ;;  %v6285_v47 = vadd.f32 %v5635_v25, %v6210_v56 }
 0x146   :  { %v6270_v30 = vadd.f32 %v372_v29, %v6210_v56  ;;  %v425_v32 = vadd.f32 %v424_v22, %v6264_v21  ;;  %v5636_v33 = vpop.f32.mrb[10].mxu1  ;;  %v248_v39 = vadd.f32 %v247_v36, %v6207_v55  ;;  %v249_v40 = vpop.f32.mrb[9].mxu0 }
 0x147   :  { %v375_v37 = vpop.f32.mrb[11].mxu1  ;;  %v6281_v44 = vadd.f32 %v595_v35, %v577_v27  ;;  %v250_v45 = vadd.f32 %v249_v40, %v6213_v58  ;;  %v251_v46 = vpop.f32.mrb[10].mxu0  ;;  %v6292_v63 = vadd.f32 %v5636_v33, %v6210_v56 }
 0x148   :  { %v426_v42 = vadd.f32 %v425_v32, %v6270_v30  ;;  %v6279_v43 = vadd.f32 %v375_v37, %v6210_v56  ;;  %v252_v50 = vadd.f32 %v251_v46, %v6207_v55  ;;  %v253_v54 = vpop.f32.mrb[11].mxu0  ;;  %v578_v60 = vmul.f32 %v6216_v16, %v248_v39 }
 0x149   :  { %v407_v61 = vmax.f32 %v250_v45, 0.0  ;;  %v254_v62 = vadd.f32 %v253_v54, %v6213_v58 }
 0x14a   :  { %v427_v59 = vadd.f32 %v426_v42, %v6279_v43  ;;  %v579_v25 = vmul.f32 %v6216_v16, %v252_v50 }
 0x14b   :  { %v596_v26 = vmul.f32 %v6228_v24, %v407_v61  ;;  %v408_v27 = vmax.f32 %v254_v62, 0.0 }
 0x14c   :  { %v428_v18 = vadd.f32 %v427_v59, %v6285_v47  ;;  %v5639_v22 = vpop.f32.mrb[12].mxu1 }
 0x14d   :  { %v388_v28 = vpop.f32.mrb[13].mxu1  ;;  %v6301_v36 = vadd.f32 %v596_v26, %v578_v60  ;;  %v597_v33 = vmul.f32 %v6228_v24, %v408_v27  ;;  %v257_v37 = vpop.f32.mrb[12].mxu0  ;;  %v6313_v60 = vadd.f32 %v5639_v22, %v6210_v56 }
 0x14e   :  { %v6298_v29 = vadd.f32 %v388_v28, %v6210_v56  ;;  %v429_v32 = vadd.f32 %v428_v18, %v6292_v63  ;;  %v5640_v35 = vpop.f32.mrb[14].mxu1  ;;  %v258_v40 = vadd.f32 %v257_v37, %v6207_v55  ;;  %v259_v42 = vpop.f32.mrb[13].mxu0 }
 0x14f   :  { %v391_v39 = vpop.f32.mrb[15].mxu1  ;;  %v6309_v50 = vadd.f32 %v597_v33, %v579_v25  ;;  %v260_v54 = vadd.f32 %v259_v42, %v6213_v58  ;;  %v261_v59 = vpop.f32.mrb[14].mxu0 }
 0x150   :  { %v430_v45 = vadd.f32 %v429_v32, %v6298_v29  ;;  %v6307_v46 = vadd.f32 %v391_v39, %v6210_v56  ;;  %v262_v61 = vadd.f32 %v261_v59, %v6207_v55  ;;  %v263_v62 = vpop.f32.mrb[15].mxu0  ;;  %v580_v26 = vmul.f32 %v6216_v16, %v258_v40 }
 0x151   :  { %10840 = vst [vmem:[#allocation45_spill] sm:$0xff] %v6309_v50  ;;  %v409_v27 = vmax.f32 %v260_v54, 0.0  ;;  %v264_v28 = vadd.f32 %v263_v62, %v6213_v58  ;;  %v400_v32 = vadd.f32 %v5640_v35, %v6210_v56 }
 0x152   :  { %v431_v18 = vadd.f32 %v430_v45, %v6307_v46  ;;  %v581_v37 = vmul.f32 %v6216_v16, %v262_v61 }
 0x153   :  { %v598_v33 = vmul.f32 %v6228_v24, %v409_v27  ;;  %v410_v22 = vmax.f32 %v264_v28, 0.0 }
 0x154   :  { %v432_v25 = vadd.f32 %v431_v18, %v6313_v60 }
 0x155   :  { %v6323_v42 = vadd.f32 %v598_v33, %v580_v26  ;;  %v599_v59 = vmul.f32 %v6228_v24, %v410_v22  ;;  %v267_v45 = vpop.f32.mrb[16].mxu0 }
 0x156   :  { %v433_v39 = vadd.f32 %v432_v25, %v400_v32  ;;  %v268_v40 = vadd.f32 %v267_v45, %v6207_v55  ;;  %v269_v54 = vpop.f32.mrb[17].mxu0 }
 0x157   :  { %10841 = vst [vmem:[#allocation46_spill] sm:$0xff] %v6323_v42  ;;  %v6327_v62 = vadd.f32 %v599_v59, %v581_v37  ;;  %v270_v56 = vadd.f32 %v269_v54, %v6213_v58  ;;  %v271_v35 = vpop.f32.mrb[18].mxu0 }
 0x158   :  { %v434_v17 = vrot.slane %v433_v39, 4  ;;  %v272_v18 = vadd.f32 %v271_v35, %v6207_v55  ;;  %v273_v27 = vpop.f32.mrb[19].mxu0  ;;  %v582_v28 = vmul.f32 %v6216_v16, %v268_v40 }
 0x159   :  { %10842 = vst [vmem:[#allocation47_spill] sm:$0xff] %v6327_v62  ;;  %v411_v26 = vmax.f32 %v270_v56, 0.0  ;;  %v274_v25 = vadd.f32 %v273_v27, %v6213_v58 }
 0x15a   :  { %v435_v61 = vadd.f32 %v434_v17, %v433_v39  ;;  %v583_v45 = vmul.f32 %v6216_v16, %v272_v18 }
 0x15b   :  { %v600_v22 = vmul.f32 %v6228_v24, %v411_v26  ;;  %v412_v53 = vmax.f32 %v274_v25, 0.0 }
 0x15c   :  { %v436_v33 = vrot.slane %v435_v61, 2 }
 0x15d   :  { %v6335_v59 = vadd.f32 %v600_v22, %v582_v28  ;;  %v601_v54 = vmul.f32 %v6228_v24, %v412_v53  ;;  %v277_v52 = vpop.f32.mrb[20].mxu0 }
 0x15e   :  { %v437_v37 = vadd.f32 %v436_v33, %v435_v61  ;;  %v279_v35 = vpop.f32.mrb[21].mxu0  ;;  %v278_v40 = vadd.f32 %v277_v52, %v6207_v55 }
 0x15f   :  { %10843 = vst [vmem:[#allocation48_spill] sm:$0xff] %v6335_v59  ;;  %v6338_v17 = vadd.f32 %v601_v54, %v583_v45  ;;  %v281_v39 = vpop.f32.mrb[22].mxu0  ;;  %v280_v56 = vadd.f32 %v279_v35, %v6213_v58 }
 0x160   :  { %v438_v51 = vrot.slane %v437_v37, 1  ;;  %v283_v27 = vpop.f32.mrb[23].mxu0  ;;  %v584_v18 = vmul.f32 %v6216_v16, %v278_v40  ;;  %v282_v28 = vadd.f32 %v281_v39, %v6207_v55 }
 0x161   :  { %10844 = vst [vmem:[#allocation49_spill] sm:$0xff] %v6338_v17  ;;  %v413_v61 = vmax.f32 %v280_v56, 0.0  ;;  %v284_v53 = vadd.f32 %v283_v27, %v6213_v58 }
 0x162   :  { %v439_v26 = vadd.f32 %v438_v51, %v437_v37 }
 0x163   :  { %v602_v40 = vmul.f32 %v6228_v24, %v413_v61  ;;  %v414_v56 = vmax.f32 %v284_v53, 0.0 }
 0x164   :  { %v441_v15 = vmul.f32 0.0078125, %v439_v26 }
 0x165   :  { %v287_v51 = vpop.f32.mrb[24].mxu0  ;;  %v6404_v27 = vadd.f32 %v602_v40, %v584_v18  ;;  %v603_v26 = vmul.f32 %v6228_v24, %v414_v56 }
 0x166   :  { %v6346_v25 = vsub.f32 %v6219_v19, %v441_v15  ;;  %v6349_v33 = vsub.f32 %v6222_v20, %v441_v15  ;;  %v6352_v52 = vsub.f32 %v6226_v23, %v441_v15  ;;  %v6355_v22 = vsub.f32 %v6236_v31, %v441_v15  ;;  %v289_v20 = vpop.f32.mrb[25].mxu0 }
 0x167   :  { %v6358_v45 = vsub.f32 %v6242_v38, %v441_v15  ;;  %v6361_v37 = vsub.f32 %v6251_v48, %v441_v15  ;;  %v6364_v54 = vsub.f32 %v6257_v57, %v441_v15  ;;  %v6367_v19 = vsub.f32 %v6264_v21, %v441_v15  ;;  %v291_v48 = vpop.f32.mrb[26].mxu0  ;;  %10845 = vst [vmem:[#allocation50_spill] sm:$0xff] %v6404_v27 }
 0x168   :  { %v6370_v23 = vsub.f32 %v6270_v30, %v441_v15  ;;  %v6373_v31 = vsub.f32 %v6279_v43, %v441_v15  ;;  %v6376_v35 = vsub.f32 %v6285_v47, %v441_v15  ;;  %v6379_v38 = vsub.f32 %v6292_v63, %v441_v15  ;;  %v293_v43 = vpop.f32.mrb[27].mxu0 }
 0x169   :  { %v6382_v57 = vsub.f32 %v6298_v29, %v441_v15  ;;  %v6385_v21 = vsub.f32 %v6307_v46, %v441_v15  ;;  %v6388_v39 = vsub.f32 %v6313_v60, %v441_v15  ;;  %v6390_v30 = vsub.f32 %v400_v32, %v441_v15 }
 0x16a   :  { %v458_v47 = vmul.f32 %v6346_v25, %v6346_v25  ;;  %v459_v63 = vmul.f32 %v6349_v33, %v6349_v33  ;;  %v585_v29 = vmul.f32 %v6216_v16, %v282_v28  ;;  %v460_v46 = vmul.f32 %v6352_v52, %v6352_v52 }
 0x16b   :  { %v461_v60 = vmul.f32 %v6355_v22, %v6355_v22  ;;  %v462_v15 = vmul.f32 %v6358_v45, %v6358_v45  ;;  %v288_v17 = vadd.f32 %v287_v51, %v6207_v55  ;;  %v290_v53 = vadd.f32 %v289_v20, %v6213_v58 }
 0x16c   :  { %v474_v32 = vadd.f32 %v459_v63, %v458_v47  ;;  %v292_v28 = vadd.f32 %v291_v48, %v6207_v55  ;;  %v294_v59 = vadd.f32 %v293_v43, %v6213_v58  ;;  %v6412_v50 = vadd.f32 %v603_v26, %v585_v29 }
 0x16d   :  { %v297_v61 = vpop.f32.mrb[28].mxu0  ;;  %v586_v18 = vmul.f32 %v6216_v16, %v288_v17  ;;  %v415_v40 = vmax.f32 %v290_v53, 0.0  ;;  %v463_v29 = vmul.f32 %v6361_v37, %v6361_v37 }
 0x16e   :  { %v298_v14 = vadd.f32 %v297_v61, %v6207_v55  ;;  %v299_v62 = vpop.f32.mrb[29].mxu0  ;;  %v475_v42 = vadd.f32 %v474_v32, %v460_v46  ;;  %v587_v51 = vmul.f32 %v6216_v16, %v292_v28  ;;  %v416_v56 = vmax.f32 %v294_v59, 0.0 }
 0x16f   :  { %v300_v47 = vadd.f32 %v299_v62, %v6213_v58  ;;  %v301_v63 = vpop.f32.mrb[30].mxu0  ;;  %v604_v17 = vmul.f32 %v6228_v24, %v415_v40 }
 0x170   :  { %v588_v20 = vmul.f32 %v6216_v16, %v298_v14  ;;  %v303_v48 = vpop.f32.mrb[31].mxu0  ;;  %v476_v27 = vadd.f32 %v475_v42, %v461_v60  ;;  %v302_v61 = vadd.f32 %v301_v63, %v6207_v55  ;;  %v605_v62 = vmul.f32 %v6228_v24, %v416_v56 }
 0x171   :  { %v417_v43 = vmax.f32 %v300_v47, 0.0  ;;  %v304_v46 = vadd.f32 %v303_v48, %v6213_v58  ;;  %v6426_v53 = vadd.f32 %v604_v17, %v586_v18  ;;  %v464_v55 = vmul.f32 %v6364_v54, %v6364_v54 }
 0x172   :  { %v477_v32 = vadd.f32 %v476_v27, %v462_v15  ;;  %v589_v59 = vmul.f32 %v6216_v16, %v302_v61  ;;  %v6428_v42 = vadd.f32 %v605_v62, %v587_v51  ;;  %v465_v15 = vmul.f32 %v6367_v19, %v6367_v19 }
 0x173   :  { %v606_v26 = vmul.f32 %v6228_v24, %v417_v43  ;;  %v418_v14 = vmax.f32 %v304_v46, 0.0  ;;  %v466_v16 = vmul.f32 %v6370_v23, %v6370_v23  ;;  %v467_v63 = vmul.f32 %v6373_v31, %v6373_v31 }
 0x174   :  { %v478_v58 = vadd.f32 %v477_v32, %v463_v29  ;;  %v468_v51 = vmul.f32 %v6376_v35, %v6376_v35  ;;  %v470_v48 = vmul.f32 %v6382_v57, %v6382_v57  ;;  %v471_v61 = vmul.f32 %v6385_v21, %v6385_v21 }
 0x175   :  { %v6432_v60 = vadd.f32 %v606_v26, %v588_v20  ;;  %v607_v28 = vmul.f32 %v6228_v24, %v418_v14  ;;  %v469_v24 = vmul.f32 %v6379_v38, %v6379_v38  ;;  %v472_v29 = vmul.f32 %v6388_v39, %v6388_v39 }
 0x176   :  { %v479_v27 = vadd.f32 %v478_v58, %v464_v55  ;;  %v473_v62 = vmul.f32 %v6390_v30, %v6390_v30 }
 0x177   :  { %v6437_v47 = vadd.f32 %v607_v28, %v589_v59 }
 0x178   :  { %v480_v18 = vadd.f32 %v479_v27, %v465_v15 }
 0x17a   :  { %v481_v40 = vadd.f32 %v480_v18, %v466_v16  ;;  %v6455_v18 = vstv %s5392_s20 }
 0x17c   :  { %v482_v56 = vadd.f32 %v481_v40, %v467_v63  ;;  %v6457_v63 = vstv %s5391_s28  ;;  %v6461_v40 = vmul.f32 %v6455_v18, %v6120_v0  ;;  %v6481_v0 = vmul.f32 %v6455_v18, %v6130_v5  ;;  %v6504_v5 = vld [vmem:[%s10799_s4] ss:$0 sm:$0xff] }
 0x17e   :  { %v483_v20 = vadd.f32 %v482_v56, %v468_v51  ;;  %v6465_v51 = vmul.f32 %v6455_v18, %v6122_v1  ;;  %v6469_v56 = vmul.f32 %v6455_v18, %v6124_v2  ;;  %v6485_v1 = vmul.f32 %v6455_v18, %v6132_v6 }
 0x17f   :  { %v6489_v2 = vmul.f32 %v6455_v18, %v6134_v7  ;;  %v6508_v6 = vmul.f32 %v6455_v18, %v6140_v10  ;;  %v6512_v7 = vmul.f32 %v6455_v18, %v6142_v11 }
 0x180   :  { %v484_v43 = vadd.f32 %v483_v20, %v469_v24  ;;  %v6473_v24 = vmul.f32 %v6455_v18, %v6126_v3  ;;  %v6477_v20 = vmul.f32 %v6455_v18, %v6128_v4  ;;  %v6493_v3 = vmul.f32 %v6455_v18, %v6136_v8 }
 0x181   :  { %v6497_v4 = vmul.f32 %v6455_v18, %v6138_v9  ;;  %v6516_v8 = vmul.f32 %v6455_v18, %v6144_v12  ;;  %v6520_v9 = vmul.f32 %v6455_v18, %v6146_v13  ;;  %v6537_v12 = vld [vmem:[%s10800_s5] ss:$0 sm:$0xff] }
 0x182   :  { %v485_v46 = vadd.f32 %v484_v43, %v470_v48 }
 0x184   :  { %v486_v17 = vadd.f32 %v485_v46, %v471_v61 }
 0x186   :  { %v487_v32 = vadd.f32 %v486_v17, %v472_v29 }
 0x188   :  { %v488_v26 = vadd.f32 %v487_v32, %v473_v62 }
 0x18a   :  { %v489_v59 = vrot.slane %v488_v26, 4 }
 0x18c   :  { %v490_v14 = vadd.f32 %v489_v59, %v488_v26 }
 0x18e   :  { %v491_v55 = vrot.slane %v490_v14, 2 }
 0x190   :  { %v492_v58 = vadd.f32 %v491_v55, %v490_v14 }
 0x192   :  { %v493_v28 = vrot.slane %v492_v58, 1 }
 0x194   :  { %v494_v15 = vadd.f32 %v493_v28, %v492_v58 }
 0x196   :  { %v495_v27 = vmul.f32 0.0078125, %v494_v15 }
 0x198   :  { %v496_v16 = vadd.f32 1e-05, %v495_v27 }
 0x19a   :  { %5922 = vrsqrt.f32 %v496_v16 }
 0x1a4   :  { %v6499_v48 = vpop.eup %5922 }
 0x1a5   :  { %v6524_v43 = vmul.f32 %v6499_v48, %v6382_v57  ;;  %v511_v10 = vmul.f32 %v6499_v48, %v6385_v21  ;;  %v6530_v61 = vmul.f32 %v6499_v48, %v6388_v39  ;;  %v498_v11 = vmul.f32 %v6499_v48, %v6346_v25 }
 0x1a6   :  { %v499_v13 = vmul.f32 %v6499_v48, %v6349_v33  ;;  %v500_v57 = vmul.f32 %v6499_v48, %v6352_v52  ;;  %v501_v21 = vmul.f32 %v6499_v48, %v6355_v22  ;;  %v502_v39 = vmul.f32 %v6499_v48, %v6358_v45 }
 0x1a7   :  { %v532_v46 = vmul.f32 %v6504_v5, %v511_v10  ;;  %v519_v25 = vmul.f32 %v6504_v5, %v498_v11  ;;  %v503_v29 = vmul.f32 %v6499_v48, %v6361_v37  ;;  %v504_v17 = vmul.f32 %v6499_v48, %v6364_v54 }
 0x1a8   :  { %v520_v33 = vmul.f32 %v6504_v5, %v499_v13  ;;  %v521_v52 = vmul.f32 %v6504_v5, %v500_v57  ;;  %v522_v62 = vmul.f32 %v6504_v5, %v501_v21  ;;  %v523_v22 = vmul.f32 %v6504_v5, %v502_v39 }
 0x1a9   :  { %v553_v45 = vadd.f32 %v6537_v12, %v532_v46  ;;  %v540_v32 = vadd.f32 %v6537_v12, %v519_v25  ;;  %v524_v26 = vmul.f32 %v6504_v5, %v503_v29  ;;  %v525_v59 = vmul.f32 %v6504_v5, %v504_v17 }
 0x1aa   :  { %v541_v37 = vadd.f32 %v6537_v12, %v520_v33  ;;  %v542_v54 = vadd.f32 %v6537_v12, %v521_v52  ;;  %v543_v14 = vadd.f32 %v6537_v12, %v522_v62  ;;  %v544_v55 = vadd.f32 %v6537_v12, %v523_v22 }
 0x1ab   :  { %v569_v58 = vmax.f32 %v553_v45, 0.0  ;;  %v556_v28 = vmax.f32 %v540_v32, 0.0  ;;  %v545_v15 = vadd.f32 %v6537_v12, %v524_v26  ;;  %v546_v27 = vadd.f32 %v6537_v12, %v525_v59 }
 0x1ac   :  { %v557_v16 = vmax.f32 %v541_v37, 0.0  ;;  %v558_v10 = vmax.f32 %v542_v54, 0.0  ;;  %v559_v11 = vmax.f32 %v543_v14, 0.0  ;;  %v560_v13 = vmax.f32 %v544_v55, 0.0  ;;  %v10846_v54 = vld [vmem:[#allocation45_spill] sm:$0xff] }
 0x1ad   :  { %v626_v57 = vmul.f32 %v6457_v63, %v556_v28  ;;  %v561_v21 = vmax.f32 %v545_v15, 0.0  ;;  %v562_v39 = vmax.f32 %v546_v27, 0.0  ;;  %v505_v46 = vmul.f32 %v6499_v48, %v6367_v19 }
 0x1ae   :  { %v627_v25 = vmul.f32 %v6457_v63, %v557_v16  ;;  %v628_v29 = vmul.f32 %v6457_v63, %v558_v10  ;;  %v629_v17 = vmul.f32 %v6457_v63, %v559_v11  ;;  %v630_v33 = vmul.f32 %v6457_v63, %v560_v13  ;;  %v10848_v13 = vld [vmem:[#allocation47_spill] sm:$0xff] }
 0x1af   :  { %v642_v52 = vadd.f32 %v626_v57, %v6245_v41  ;;  %v631_v62 = vmul.f32 %v6457_v63, %v561_v21  ;;  %v632_v22 = vmul.f32 %v6457_v63, %v562_v39  ;;  %v526_v45 = vmul.f32 %v6504_v5, %v505_v46  ;;  %v10847_v41 = vld [vmem:[#allocation46_spill] sm:$0xff] }
 0x1b0   :  { %v643_v32 = vadd.f32 %v627_v25, %v6253_v49  ;;  %v644_v19 = vadd.f32 %v628_v29, %v6273_v34  ;;  %v645_v26 = vadd.f32 %v629_v17, %v6281_v44  ;;  %v646_v59 = vadd.f32 %v630_v33, %v6301_v36 }
 0x1b1   :  { %v6583_v37 = vadd.f32 %v6461_v40, %v642_v52  ;;  %v647_v14 = vadd.f32 %v631_v62, %v10846_v54  ;;  %v648_v55 = vadd.f32 %v632_v22, %v10847_v41  ;;  %v547_v28 = vadd.f32 %v6537_v12, %v526_v45 }
 0x1b2   :  { %v6589_v15 = vadd.f32 %v6465_v51, %v643_v32  ;;  %v6592_v49 = vadd.f32 %v6469_v56, %v644_v19  ;;  %v6595_v34 = vadd.f32 %v6473_v24, %v645_v26  ;;  %v6598_v44 = vadd.f32 %v6477_v20, %v646_v59  ;;  %v10849_v26 = vld [vmem:[#allocation40_spill] sm:$0xff] }
 0x1b3   :  { %v6601_v36 = vadd.f32 %v6481_v0, %v647_v14  ;;  %v6604_v40 = vadd.f32 %v6485_v1, %v648_v55  ;;  %v563_v27 = vmax.f32 %v547_v28, 0.0  ;;  %v506_v51 = vmul.f32 %v6499_v48, %v6370_v23  ;;  %v10850_v55 = vld [vmem:[#allocation48_spill] sm:$0xff] }
 0x1b4   :  { %v507_v56 = vmul.f32 %v6499_v48, %v6373_v31  ;;  %v508_v24 = vmul.f32 %v6499_v48, %v6376_v35  ;;  %v509_v20 = vmul.f32 %v6499_v48, %v6379_v38  ;;  %v531_v0 = vmul.f32 %v6504_v5, %v6524_v43 }
 0x1b5   :  { %v633_v16 = vmul.f32 %v6457_v63, %v563_v27  ;;  %v527_v1 = vmul.f32 %v6504_v5, %v506_v51  ;;  %v639_v10 = vmul.f32 %v6457_v63, %v569_v58  ;;  %v533_v23 = vmul.f32 %v6504_v5, %v6530_v61 }
 0x1b6   :  { %v528_v31 = vmul.f32 %v6504_v5, %v507_v56  ;;  %v529_v11 = vmul.f32 %v6504_v5, %v508_v24  ;;  %v530_v35 = vmul.f32 %v6504_v5, %v509_v20  ;;  %v552_v38 = vadd.f32 %v6537_v12, %v531_v0  ;;  %v10851_v56 = vld [vmem:[#allocation49_spill] sm:$0xff]  ;;  %v10852_v20 = vld [vmem:[#allocation50_spill] sm:$0xff] }
 0x1b7   :  { %v649_v57 = vadd.f32 %v633_v16, %v10848_v13  ;;  %v548_v43 = vadd.f32 %v6537_v12, %v527_v1  ;;  %v655_v21 = vadd.f32 %v639_v10, %v6428_v42  ;;  %v554_v39 = vadd.f32 %v6537_v12, %v533_v23  ;;  %v10854_v23 = vld [vmem:[#allocation41_spill] sm:$0xff] }
 0x1b8   :  { %v549_v58 = vadd.f32 %v6537_v12, %v528_v31  ;;  %v550_v61 = vadd.f32 %v6537_v12, %v529_v11  ;;  %v551_v46 = vadd.f32 %v6537_v12, %v530_v35  ;;  %v568_v25 = vmax.f32 %v552_v38, 0.0 }
 0x1b9   :  { %v6633_v29 = vadd.f32 %v6489_v2, %v649_v57  ;;  %v564_v17 = vmax.f32 %v548_v43, 0.0  ;;  %v6636_v33 = vadd.f32 %v6520_v9, %v655_v21  ;;  %v570_v52 = vmax.f32 %v554_v39, 0.0 }
 0x1ba   :  { %v565_v62 = vmax.f32 %v549_v58, 0.0  ;;  %v566_v22 = vmax.f32 %v550_v61, 0.0  ;;  %v567_v42 = vmax.f32 %v551_v46, 0.0  ;;  %v638_v45 = vmul.f32 %v6457_v63, %v568_v25 }
 0x1bb   :  { %v634_v32 = vmul.f32 %v6457_v63, %v564_v17  ;;  %v640_v19 = vmul.f32 %v6457_v63, %v570_v52  ;;  %v674_v59 = vmul.f32 %v6455_v18, %v10849_v26  ;;  %v513_v2 = vmul.f32 %v6499_v48, %v6390_v30 }
 0x1bc   :  { %v635_v54 = vmul.f32 %v6457_v63, %v565_v62  ;;  %v636_v9 = vmul.f32 %v6457_v63, %v566_v22  ;;  %v637_v14 = vmul.f32 %v6457_v63, %v567_v42  ;;  %v654_v41 = vadd.f32 %v638_v45, %v6426_v53 }
 0x1bd   :  { %v650_v28 = vadd.f32 %v634_v32, %v10850_v55  ;;  %v656_v27 = vadd.f32 %v640_v19, %v6432_v60  ;;  %v534_v51 = vmul.f32 %v6504_v5, %v513_v2 }
 0x1be   :  { %v651_v24 = vadd.f32 %v635_v54, %v10851_v56  ;;  %v652_v0 = vadd.f32 %v636_v9, %v10852_v20  ;;  %v653_v30 = vadd.f32 %v637_v14, %v6412_v50  ;;  %v6656_v48 = vadd.f32 %v6516_v8, %v654_v41 }
 0x1bf   :  { %v6659_v16 = vadd.f32 %v6493_v3, %v650_v28  ;;  %v6661_v1 = vadd.f32 %v674_v59, %v656_v27  ;;  %v555_v53 = vadd.f32 %v6537_v12, %v534_v51  ;;  %v675_v3 = vmul.f32 %v6455_v18, %v10854_v23 }
 0x1c0   :  { %v6665_v60 = vadd.f32 %v6497_v4, %v651_v24  ;;  %v6668_v5 = vadd.f32 %v6508_v6, %v652_v0  ;;  %v6671_v10 = vadd.f32 %v6512_v7, %v653_v30 }
 0x1c1   :  { %10853 = vst [vmem:[#allocation45_spill] sm:$0xff] %v6661_v1  ;;  %v571_v50 = vmax.f32 %v555_v53, 0.0 }
 0x1c3   :  { %v641_v8 = vmul.f32 %v6457_v63, %v571_v50 }
 0x1c5   :  { %v657_v31 = vadd.f32 %v641_v8, %v6437_v47 }
 0x1c7   :  { %v6677_v11 = vadd.f32 %v675_v3, %v657_v31 }
 0x1c9   :  { %10855 = vst [vmem:[#allocation46_spill] sm:$0xff] %v6677_v11 }
 0x1ca   :  { %6002 = dma.done.wait [#allocation3 + $0x1], 3072 }
 0x1cb   :  { %6003 = vsyncadd [#allocation3 + $0x1], 4294964224  ;;  %v6681_v4 = vpack.c.bf16 %v6589_v15, %v6583_v37  ;;  %v10856_v6 = vmov 0   ;;  %710 = sst [smem:[#allocation15]] %s6025_s18  ;;  %s694_s12 = scalar_lea.hbm %s10797_s2, 6144  ;;  %v730_v19 = vpack.c.bf16 %v6595_v34, %v6592_v49  ;;  %v731_v59 = vpack.c.bf16 %v6601_v36, %v6598_v44 }
 0x1cc   :  { %811 = vmatprep.mubr.bf16.mxu1 %v10856_v6  ;;  %712 = sst [smem:[#allocation15 + $0x1]] %s6025_s18  ;;  %s6037_s13 = smov [#allocation14]   ;;  %v732_v2 = vpack.c.bf16 %v6633_v29, %v6604_v40  ;;  %v733_v54 = vpack.c.bf16 %v6665_v60, %v6659_v16  ;;  %v734_v9 = vpack.c.bf16 %v6671_v10, %v6668_v5  ;;  %v735_v14 = vpack.c.bf16 %v6636_v33, %v6656_v48 }
 0x1cd   :  { %5657 = vmatprep.mubr.bf16.mxu0 %v6681_v4  ;;  %714 = sst [smem:[#allocation15 + $0x2]] %s6026_s19  ;;  %v736_v41 = vpack.c.bf16 %v6677_v11, %v6661_v1 }
 0x1ce   :  { %716 = sst [smem:[#allocation15 + $0x3]] %s6027_s1 }
 0x1cf   :  { %718 = sst [smem:[#allocation15 + $0x4]] %s6021_s26 }
 0x1d0   :  { %720 = sst [smem:[#allocation15 + $0x5]] %s6028_s22 }
 0x1d1   :  { %722 = sst [smem:[#allocation15 + $0x6]] %s6029_s23 }
 0x1d2   :  { %724 = sst [smem:[#allocation15 + $0x7]] %s6027_s1 }
 0x1d3   :  { %726 = sst [smem:[#allocation15 + $0x8]] %s6030_s24 }
 0x1d4   :  { %728 = dma.general %s694_s12, 3072, %s6101_s17, %s6031_s25, %s6037_s13, [#allocation15], %s6108_s21, 0  }
 0x1d5   :  { %v739_v47 = vld [vmem:[#allocation2 + $0xd0] sm:$0xff]  ;;  %v742_v18 = vld [vmem:[#allocation2 + $0xe8] sm:$0xff]  ;;  %v737_v7 = vld [vmem:[#allocation2 + $0xc0] sm:$0xff]  ;;  %s5398_s14 = sld [smem:[#allocation4 + $0x80]]  ;;  %s5399_s20 = sld [smem:[#allocation4 + $0x81]] }
 0x1d6   :  { %5641 = vmatprep.subr.bf16.mxu0 %v739_v47  ;;  %v738_v63 = vld [vmem:[#allocation2 + $0xc8] sm:$0xff]  ;;  %v741_v12 = vld [vmem:[#allocation2 + $0xe0] sm:$0xff]  ;;  %v740_v38 = vld [vmem:[#allocation2 + $0xd8] sm:$0xff]  ;;  %s5401_s28 = sld [smem:[#allocation4 + $0x83]]  ;;  %s5400_s29 = sld [smem:[#allocation4 + $0x82]] }
 0x1d7   :  { %5642 = vmatpush3.bf16.msra.mxu0 %v739_v47  ;;  %779 = vmatprep.subr.bf16.mxu1 %v738_v63  ;;  %v745_v35 = vld [vmem:[#allocation2 + $0x100] sm:$0xff]  ;;  %v744_v13 = vld [vmem:[#allocation2 + $0xf8] sm:$0xff]  ;;  %v743_v43 = vld [vmem:[#allocation2 + $0xf0] sm:$0xff] }
 0x1d8   :  { %5643 = vmatprep.subr.bf16.mxu0 %v742_v18  ;;  %780 = vmatpush1.bf16.msra.mxu1 %v737_v7  ;;  %v748_v57 = vld [vmem:[#allocation2 + $0x118] sm:$0xff]  ;;  %v747_v21 = vld [vmem:[#allocation2 + $0x110] sm:$0xff]  ;;  %v746_v58 = vld [vmem:[#allocation2 + $0x108] sm:$0xff] }
 0x1d9   :  { %781 = vmatprep.subr.bf16.mxu1 %v741_v12  ;;  %v751_v39 = vld [vmem:[#allocation2 + $0x130] sm:$0xff]  ;;  %v750_v61 = vld [vmem:[#allocation2 + $0x128] sm:$0xff]  ;;  %v749_v25 = vld [vmem:[#allocation2 + $0x120] sm:$0xff] }
 0x1da   :  { %v754_v46 = vld [vmem:[#allocation2 + $0x148] sm:$0xff]  ;;  %v753_v17 = vld [vmem:[#allocation2 + $0x140] sm:$0xff]  ;;  %v752_v62 = vld [vmem:[#allocation2 + $0x138] sm:$0xff] }
 0x1db   :  { %5644 = vmatpush3.bf16.msra.mxu0 %v742_v18  ;;  %v757_v52 = vld [vmem:[#allocation2 + $0x160] sm:$0xff]  ;;  %v756_v22 = vld [vmem:[#allocation2 + $0x158] sm:$0xff]  ;;  %v755_v45 = vld [vmem:[#allocation2 + $0x150] sm:$0xff]  ;;  %v6735_v3 = vstv %s5398_s14  ;;  %v6747_v12 = vstv %s5399_s20 }
 0x1dc   :  { %5645 = vmatprep.subr.bf16.mxu0 %v745_v35  ;;  %782 = vmatpush1.bf16.msra.mxu1 %v740_v38  ;;  %v760_v42 = vld [vmem:[#allocation2 + $0x178] sm:$0xff]  ;;  %v759_v32 = vld [vmem:[#allocation2 + $0x170] sm:$0xff]  ;;  %v758_v26 = vld [vmem:[#allocation2 + $0x168] sm:$0xff] }
 0x1dd   :  { %783 = vmatprep.subr.bf16.mxu1 %v744_v13  ;;  %v5395_v55 = vld [vmem:[%s10798_s3 + $0x1] ss:$8 sm:$0x7]  ;;  %v10858_v51 = vld [vmem:[#allocation43_spill] sm:$0xff] }
 0x1de   :  { %v10857_v28 = vld [vmem:[#allocation42_spill] sm:$0xff]  ;;  %v6729_v56 = vrot.slane %v5395_v55, %v10858_v51  ;;  %v10859_v20 = vld [vmem:[#allocation44_spill] sm:$0xff] }
 0x1df   :  { %5646 = vmatpush3.bf16.msra.mxu0 %v745_v35  ;;  %v6726_v27 = vrot.slane %v5395_v55, %v10857_v28  ;;  %v6732_v0 = vrot.slane %v5395_v55, %v10859_v20 }
 0x1e0   :  { %5647 = vmatprep.subr.bf16.mxu0 %v748_v57  ;;  %784 = vmatpush1.bf16.msra.mxu1 %v743_v43 }
 0x1e1   :  { %785 = vmatprep.subr.bf16.mxu1 %v747_v21 }
 0x1e3   :  { %5648 = vmatpush3.bf16.msra.mxu0 %v748_v57 }
 0x1e4   :  { %5649 = vmatprep.subr.bf16.mxu0 %v751_v39  ;;  %786 = vmatpush1.bf16.msra.mxu1 %v746_v58 }
 0x1e5   :  { %787 = vmatprep.subr.bf16.mxu1 %v750_v61 }
 0x1e7   :  { %5650 = vmatpush3.bf16.msra.mxu0 %v751_v39 }
 0x1e8   :  { %5651 = vmatprep.subr.bf16.mxu0 %v754_v46  ;;  %788 = vmatpush1.bf16.msra.mxu1 %v749_v25 }
 0x1e9   :  { %789 = vmatprep.subr.bf16.mxu1 %v753_v17 }
 0x1eb   :  { %5652 = vmatpush3.bf16.msra.mxu0 %v754_v46 }
 0x1ec   :  { %5653 = vmatprep.subr.bf16.mxu0 %v757_v52  ;;  %790 = vmatpush1.bf16.msra.mxu1 %v752_v62 }
 0x1ed   :  { %791 = vmatprep.subr.bf16.mxu1 %v756_v22 }
 0x1ef   :  { %5654 = vmatpush3.bf16.msra.mxu0 %v757_v52 }
 0x1f0   :  { %5655 = vmatprep.subr.bf16.mxu0 %v760_v42  ;;  %792 = vmatpush1.bf16.msra.mxu1 %v755_v45 }
 0x1f1   :  { %793 = vmatprep.subr.bf16.mxu1 %v759_v32 }
 0x1f3   :  { %5656 = vmatpush3.bf16.msra.mxu0 %v760_v42 }
 0x1f4   :  { %794 = vmatpush1.bf16.msra.mxu1 %v758_v26 }
 0x1f6   :  { %5658 = vmatmul.mubr.bf16.vlgmr.msra.gmra.mrb[32].mxu0 %v730_v19 }
 0x1f7   :  { %5661 = vmatprep.mubr.bf16.mxu0 %v731_v59  ;;  %812 = vmatmul.mubr.bf16.vlgmr.msra.gmra.mrb[16].mxu1 %v6681_v4 }
 0x1f8   :  { %821 = vmatprep.mubr.bf16.mxu1 %v10856_v6 }
 0x1fe   :  { %5662 = vmatmul.mubr.bf16.gmra.mrb[36].mxu0 %v732_v2 }
 0x1ff   :  { %5665 = vmatprep.mubr.bf16.mxu0 %v733_v54  ;;  %822 = vmatmul.mubr.bf16.gmra.mrb[20].mxu1 %v730_v19 }
 0x200   :  { %831 = vmatprep.mubr.bf16.mxu1 %v10856_v6 }
 0x206   :  { %5666 = vmatmul.mubr.bf16.gmra.mrb[40].mxu0 %v734_v9 }
 0x207   :  { %5669 = vmatprep.mubr.bf16.mxu0 %v735_v14  ;;  %832 = vmatmul.mubr.bf16.gmra.mrb[24].mxu1 %v731_v59 }
 0x208   :  { %841 = vmatprep.mubr.bf16.mxu1 %v10856_v6 }
 0x20e   :  { %5670 = vmatmul.mubr.bf16.gmra.mrb[44].mxu0 %v736_v41 }
 0x20f   :  { %842 = vmatmul.mubr.bf16.gmra.mrb[28].mxu1 %v732_v2 }
 0x210   :  { %851 = vmatprep.mubr.bf16.mxu1 %v10856_v6 }
 0x217   :  { %852 = vmatmul.mubr.bf16.gmra.mrb[32].mxu1 %v733_v54 }
 0x218   :  { %861 = vmatprep.mubr.bf16.mxu1 %v10856_v6 }
 0x21f   :  { %862 = vmatmul.mubr.bf16.gmra.mrb[36].mxu1 %v734_v9 }
 0x220   :  { %871 = vmatprep.mubr.bf16.mxu1 %v10856_v6 }
 0x227   :  { %872 = vmatmul.mubr.bf16.gmra.mrb[40].mxu1 %v735_v14 }
 0x228   :  { %881 = vmatprep.mubr.bf16.mxu1 %v10856_v6 }
 0x22f   :  { %882 = vmatmul.mubr.bf16.gmra.mrb[44].mxu1 %v736_v41 }
 0x2c9   :  { %v5659_v24 = vpop.f32.mrb[32].mxu0 }
 0x2ca   :  { %v926_v30 = vpop.f32.mrb[33].mxu0  ;;  %v813_v50 = vpop.f32.mrb[16].mxu1  ;;  %v6745_v7 = vadd.f32 %v5659_v24, %v6729_v56 }
 0x2cb   :  { %v5660_v53 = vpop.f32.mrb[34].mxu0  ;;  %v814_v23 = vadd.f32 %v813_v50, %v6726_v27  ;;  %v815_v31 = vpop.f32.mrb[17].mxu1  ;;  %v6738_v4 = vadd.f32 %v926_v30, %v6729_v56 }
 0x2cc   :  { %v929_v8 = vpop.f32.mrb[35].mxu0  ;;  %v816_v18 = vadd.f32 %v815_v31, %v6732_v0  ;;  %v817_v63 = vpop.f32.mrb[18].mxu1  ;;  %v6755_v39 = vadd.f32 %v5660_v53, %v6729_v56 }
 0x2cd   :  { %v6741_v47 = vadd.f32 %v929_v8, %v6729_v56  ;;  %v818_v35 = vadd.f32 %v817_v63, %v6726_v27  ;;  %v819_v38 = vpop.f32.mrb[19].mxu1  ;;  %v1159_v57 = vmul.f32 %v6735_v3, %v814_v23 }
 0x2ce   :  { %v989_v43 = vmax.f32 %v816_v18, 0.0  ;;  %v820_v21 = vadd.f32 %v819_v38, %v6732_v0 }
 0x2cf   :  { %v1005_v13 = vadd.f32 %v6741_v47, %v6738_v4  ;;  %v1160_v25 = vmul.f32 %v6735_v3, %v818_v35 }
 0x2d0   :  { %v1177_v46 = vmul.f32 %v6747_v12, %v989_v43  ;;  %v990_v17 = vmax.f32 %v820_v21, 0.0 }
 0x2d1   :  { %v1006_v58 = vadd.f32 %v1005_v13, %v6745_v7  ;;  %v5663_v61 = vpop.f32.mrb[36].mxu0 }
 0x2d2   :  { %v942_v52 = vpop.f32.mrb[37].mxu0  ;;  %v6764_v45 = vadd.f32 %v1177_v46, %v1159_v57  ;;  %v1178_v32 = vmul.f32 %v6747_v12, %v990_v17  ;;  %v823_v19 = vpop.f32.mrb[20].mxu1  ;;  %v6776_v24 = vadd.f32 %v5663_v61, %v6729_v56 }
 0x2d3   :  { %v6761_v62 = vadd.f32 %v942_v52, %v6729_v56  ;;  %v1007_v22 = vadd.f32 %v1006_v58, %v6755_v39  ;;  %v5664_v42 = vpop.f32.mrb[38].mxu0  ;;  %v824_v59 = vadd.f32 %v823_v19, %v6726_v27  ;;  %v825_v2 = vpop.f32.mrb[21].mxu1 }
 0x2d4   :  { %v945_v26 = vpop.f32.mrb[39].mxu0  ;;  %v6772_v14 = vadd.f32 %v1178_v32, %v1160_v25  ;;  %v826_v41 = vadd.f32 %v825_v2, %v6732_v0  ;;  %v827_v55 = vpop.f32.mrb[22].mxu1  ;;  %v6783_v18 = vadd.f32 %v5664_v42, %v6729_v56 }
 0x2d5   :  { %v1008_v54 = vadd.f32 %v1007_v22, %v6761_v62  ;;  %v6770_v9 = vadd.f32 %v945_v26, %v6729_v56  ;;  %v828_v30 = vadd.f32 %v827_v55, %v6726_v27  ;;  %v829_v53 = vpop.f32.mrb[23].mxu1  ;;  %v1161_v8 = vmul.f32 %v6735_v3, %v824_v59 }
 0x2d6   :  { %v991_v23 = vmax.f32 %v826_v41, 0.0  ;;  %v830_v31 = vadd.f32 %v829_v53, %v6732_v0 }
 0x2d7   :  { %v1009_v50 = vadd.f32 %v1008_v54, %v6770_v9  ;;  %v1162_v13 = vmul.f32 %v6735_v3, %v828_v30 }
 0x2d8   :  { %v1179_v38 = vmul.f32 %v6747_v12, %v991_v23  ;;  %v992_v57 = vmax.f32 %v830_v31, 0.0 }
 0x2d9   :  { %v1010_v63 = vadd.f32 %v1009_v50, %v6776_v24  ;;  %v5667_v35 = vpop.f32.mrb[40].mxu0 }
 0x2da   :  { %v958_v43 = vpop.f32.mrb[41].mxu0  ;;  %v6792_v46 = vadd.f32 %v1179_v38, %v1161_v8  ;;  %v1180_v25 = vmul.f32 %v6747_v12, %v992_v57  ;;  %v833_v17 = vpop.f32.mrb[24].mxu1  ;;  %v6804_v54 = vadd.f32 %v5667_v35, %v6729_v56 }
 0x2db   :  { %v6789_v21 = vadd.f32 %v958_v43, %v6729_v56  ;;  %v1011_v58 = vadd.f32 %v1010_v63, %v6783_v18  ;;  %v5668_v61 = vpop.f32.mrb[42].mxu0  ;;  %v834_v22 = vadd.f32 %v833_v17, %v6726_v27  ;;  %v835_v42 = vpop.f32.mrb[25].mxu1 }
 0x2dc   :  { %v961_v52 = vpop.f32.mrb[43].mxu0  ;;  %v6800_v26 = vadd.f32 %v1180_v25, %v1162_v13  ;;  %v836_v59 = vadd.f32 %v835_v42, %v6732_v0  ;;  %v837_v2 = vpop.f32.mrb[26].mxu1  ;;  %v6811_v23 = vadd.f32 %v5668_v61, %v6729_v56 }
 0x2dd   :  { %v1012_v32 = vadd.f32 %v1011_v58, %v6789_v21  ;;  %v6798_v19 = vadd.f32 %v961_v52, %v6729_v56  ;;  %v838_v41 = vadd.f32 %v837_v2, %v6726_v27  ;;  %v839_v55 = vpop.f32.mrb[27].mxu1  ;;  %v1163_v53 = vmul.f32 %v6735_v3, %v834_v22 }
 0x2de   :  { %v993_v50 = vmax.f32 %v836_v59, 0.0  ;;  %v840_v8 = vadd.f32 %v839_v55, %v6732_v0 }
 0x2df   :  { %v1013_v30 = vadd.f32 %v1012_v32, %v6798_v19  ;;  %v1164_v35 = vmul.f32 %v6735_v3, %v838_v41 }
 0x2e0   :  { %v1181_v38 = vmul.f32 %v6747_v12, %v993_v50  ;;  %v994_v13 = vmax.f32 %v840_v8, 0.0 }
 0x2e1   :  { %v1014_v31 = vadd.f32 %v1013_v30, %v6804_v54  ;;  %v5671_v63 = vpop.f32.mrb[44].mxu0 }
 0x2e2   :  { %v974_v57 = vpop.f32.mrb[45].mxu0  ;;  %v6820_v17 = vadd.f32 %v1181_v38, %v1163_v53  ;;  %v1182_v61 = vmul.f32 %v6747_v12, %v994_v13  ;;  %v843_v52 = vpop.f32.mrb[28].mxu1  ;;  %v6832_v53 = vadd.f32 %v5671_v63, %v6729_v56 }
 0x2e3   :  { %v6817_v43 = vadd.f32 %v974_v57, %v6729_v56  ;;  %v1015_v58 = vadd.f32 %v1014_v31, %v6811_v23  ;;  %v5672_v25 = vpop.f32.mrb[46].mxu0  ;;  %v844_v42 = vadd.f32 %v843_v52, %v6726_v27  ;;  %v845_v32 = vpop.f32.mrb[29].mxu1 }
 0x2e4   :  { %v977_v22 = vpop.f32.mrb[47].mxu0  ;;  %v6828_v41 = vadd.f32 %v1182_v61, %v1164_v35  ;;  %v846_v55 = vadd.f32 %v845_v32, %v6732_v0  ;;  %v847_v30 = vpop.f32.mrb[30].mxu1 }
 0x2e5   :  { %v1016_v59 = vadd.f32 %v1015_v58, %v6817_v43  ;;  %v6826_v2 = vadd.f32 %v977_v22, %v6729_v56  ;;  %v848_v50 = vadd.f32 %v847_v30, %v6726_v27  ;;  %v849_v8 = vpop.f32.mrb[31].mxu1  ;;  %v1165_v38 = vmul.f32 %v6735_v3, %v844_v42 }
 0x2e6   :  { %10860 = vst [vmem:[#allocation47_spill] sm:$0xff] %v6828_v41  ;;  %v995_v13 = vmax.f32 %v846_v55, 0.0  ;;  %v850_v57 = vadd.f32 %v849_v8, %v6732_v0  ;;  %v986_v58 = vadd.f32 %v5672_v25, %v6729_v56 }
 0x2e7   :  { %v1017_v31 = vadd.f32 %v1016_v59, %v6826_v2  ;;  %v1166_v52 = vmul.f32 %v6735_v3, %v848_v50 }
 0x2e8   :  { %v1183_v61 = vmul.f32 %v6747_v12, %v995_v13  ;;  %v996_v63 = vmax.f32 %v850_v57, 0.0 }
 0x2e9   :  { %v1018_v35 = vadd.f32 %v1017_v31, %v6832_v53 }
 0x2ea   :  { %v6842_v32 = vadd.f32 %v1183_v61, %v1165_v38  ;;  %v1184_v30 = vmul.f32 %v6747_v12, %v996_v63  ;;  %v853_v59 = vpop.f32.mrb[32].mxu1 }
 0x2eb   :  { %v1019_v22 = vadd.f32 %v1018_v35, %v986_v58  ;;  %v854_v42 = vadd.f32 %v853_v59, %v6726_v27  ;;  %v855_v55 = vpop.f32.mrb[33].mxu1 }
 0x2ec   :  { %10861 = vst [vmem:[#allocation40_spill] sm:$0xff] %v6842_v32  ;;  %v6846_v8 = vadd.f32 %v1184_v30, %v1166_v52  ;;  %v856_v56 = vadd.f32 %v855_v55, %v6732_v0  ;;  %v857_v25 = vpop.f32.mrb[34].mxu1 }
 0x2ed   :  { %v1020_v20 = vrot.slane %v1019_v22, 4  ;;  %v858_v31 = vadd.f32 %v857_v25, %v6726_v27  ;;  %v859_v13 = vpop.f32.mrb[35].mxu1  ;;  %v1167_v57 = vmul.f32 %v6735_v3, %v854_v42 }
 0x2ee   :  { %10862 = vst [vmem:[#allocation48_spill] sm:$0xff] %v6846_v8  ;;  %v997_v38 = vmax.f32 %v856_v56, 0.0  ;;  %v860_v35 = vadd.f32 %v859_v13, %v6732_v0 }
 0x2ef   :  { %v1021_v50 = vadd.f32 %v1020_v20, %v1019_v22  ;;  %v1168_v59 = vmul.f32 %v6735_v3, %v858_v31 }
 0x2f0   :  { %v1185_v63 = vmul.f32 %v6747_v12, %v997_v38  ;;  %v998_v51 = vmax.f32 %v860_v35, 0.0 }
 0x2f1   :  { %v1022_v61 = vrot.slane %v1021_v50, 2 }
 0x2f2   :  { %v6854_v30 = vadd.f32 %v1185_v63, %v1167_v57  ;;  %v1186_v55 = vmul.f32 %v6747_v12, %v998_v51  ;;  %v863_v28 = vpop.f32.mrb[36].mxu1 }
 0x2f3   :  { %v1023_v52 = vadd.f32 %v1022_v61, %v1021_v50  ;;  %v865_v25 = vpop.f32.mrb[37].mxu1  ;;  %v864_v42 = vadd.f32 %v863_v28, %v6726_v27 }
 0x2f4   :  { %10863 = vst [vmem:[#allocation49_spill] sm:$0xff] %v6854_v30  ;;  %v6857_v20 = vadd.f32 %v1186_v55, %v1168_v59  ;;  %v867_v22 = vpop.f32.mrb[38].mxu1  ;;  %v866_v56 = vadd.f32 %v865_v25, %v6732_v0 }
 0x2f5   :  { %v1024_v6 = vrot.slane %v1023_v52, 1  ;;  %v869_v13 = vpop.f32.mrb[39].mxu1  ;;  %v1169_v31 = vmul.f32 %v6735_v3, %v864_v42  ;;  %v868_v57 = vadd.f32 %v867_v22, %v6726_v27 }
 0x2f6   :  { %10864 = vst [vmem:[#allocation50_spill] sm:$0xff] %v6857_v20  ;;  %v999_v50 = vmax.f32 %v866_v56, 0.0  ;;  %v870_v51 = vadd.f32 %v869_v13, %v6732_v0 }
 0x2f7   :  { %v1025_v38 = vadd.f32 %v1024_v6, %v1023_v52 }
 0x2f8   :  { %v1187_v42 = vmul.f32 %v6747_v12, %v999_v50  ;;  %v1000_v56 = vmax.f32 %v870_v51, 0.0 }
 0x2f9   :  { %v1026_v11 = vmul.f32 0.0078125, %v1025_v38 }
 0x2fa   :  { %v873_v6 = vpop.f32.mrb[40].mxu1  ;;  %v6923_v13 = vadd.f32 %v1187_v42, %v1169_v31  ;;  %v1188_v38 = vmul.f32 %v6747_v12, %v1000_v56 }
 0x2fb   :  { %v6865_v35 = vsub.f32 %v6738_v4, %v1026_v11  ;;  %v6868_v61 = vsub.f32 %v6741_v47, %v1026_v11  ;;  %v6871_v28 = vsub.f32 %v6745_v7, %v1026_v11  ;;  %v6874_v63 = vsub.f32 %v6755_v39, %v1026_v11  ;;  %v875_v47 = vpop.f32.mrb[41].mxu1 }
 0x2fc   :  { %v6877_v59 = vsub.f32 %v6761_v62, %v1026_v11  ;;  %v6880_v52 = vsub.f32 %v6770_v9, %v1026_v11  ;;  %v6883_v55 = vsub.f32 %v6776_v24, %v1026_v11  ;;  %v6886_v4 = vsub.f32 %v6783_v18, %v1026_v11  ;;  %v877_v9 = vpop.f32.mrb[42].mxu1  ;;  %10865 = vst [vmem:[#allocation41_spill] sm:$0xff] %v6923_v13 }
 0x2fd   :  { %v6889_v7 = vsub.f32 %v6789_v21, %v1026_v11  ;;  %v6892_v39 = vsub.f32 %v6798_v19, %v1026_v11  ;;  %v6895_v25 = vsub.f32 %v6804_v54, %v1026_v11  ;;  %v6898_v62 = vsub.f32 %v6811_v23, %v1026_v11  ;;  %v879_v19 = vpop.f32.mrb[43].mxu1 }
 0x2fe   :  { %v6901_v24 = vsub.f32 %v6817_v43, %v1026_v11  ;;  %v6904_v18 = vsub.f32 %v6826_v2, %v1026_v11  ;;  %v6907_v22 = vsub.f32 %v6832_v53, %v1026_v11  ;;  %v6909_v21 = vsub.f32 %v986_v58, %v1026_v11 }
 0x2ff   :  { %v1043_v54 = vmul.f32 %v6865_v35, %v6865_v35  ;;  %v1044_v23 = vmul.f32 %v6868_v61, %v6868_v61  ;;  %v1170_v43 = vmul.f32 %v6735_v3, %v868_v57  ;;  %v1045_v2 = vmul.f32 %v6871_v28, %v6871_v28 }
 0x300   :  { %v1046_v53 = vmul.f32 %v6874_v63, %v6874_v63  ;;  %v1047_v11 = vmul.f32 %v6877_v59, %v6877_v59  ;;  %v874_v20 = vadd.f32 %v873_v6, %v6726_v27  ;;  %v876_v51 = vadd.f32 %v875_v47, %v6732_v0 }
 0x301   :  { %v1059_v58 = vadd.f32 %v1044_v23, %v1043_v54  ;;  %v878_v57 = vadd.f32 %v877_v9, %v6726_v27  ;;  %v880_v30 = vadd.f32 %v879_v19, %v6732_v0  ;;  %v6931_v41 = vadd.f32 %v1188_v38, %v1170_v43 }
 0x302   :  { %v883_v50 = vpop.f32.mrb[44].mxu1  ;;  %v1171_v31 = vmul.f32 %v6735_v3, %v874_v20  ;;  %v1001_v42 = vmax.f32 %v876_v51, 0.0  ;;  %v1048_v43 = vmul.f32 %v6880_v52, %v6880_v52 }
 0x303   :  { %v884_v1 = vadd.f32 %v883_v50, %v6726_v27  ;;  %v885_v8 = vpop.f32.mrb[45].mxu1  ;;  %v1060_v32 = vadd.f32 %v1059_v58, %v1045_v2  ;;  %v1172_v6 = vmul.f32 %v6735_v3, %v878_v57  ;;  %v1002_v56 = vmax.f32 %v880_v30, 0.0 }
 0x304   :  { %v886_v54 = vadd.f32 %v885_v8, %v6732_v0  ;;  %v887_v23 = vpop.f32.mrb[46].mxu1  ;;  %v1189_v20 = vmul.f32 %v6747_v12, %v1001_v42 }
 0x305   :  { %v1173_v47 = vmul.f32 %v6735_v3, %v884_v1  ;;  %v889_v9 = vpop.f32.mrb[47].mxu1  ;;  %v1061_v13 = vadd.f32 %v1060_v32, %v1046_v53  ;;  %v888_v50 = vadd.f32 %v887_v23, %v6726_v27  ;;  %v1190_v8 = vmul.f32 %v6747_v12, %v1002_v56 }
 0x306   :  { %v1003_v19 = vmax.f32 %v886_v54, 0.0  ;;  %v890_v2 = vadd.f32 %v889_v9, %v6732_v0  ;;  %v6945_v51 = vadd.f32 %v1189_v20, %v1171_v31  ;;  %v1049_v27 = vmul.f32 %v6883_v55, %v6883_v55 }
 0x307   :  { %v1062_v58 = vadd.f32 %v1061_v13, %v1047_v11  ;;  %v1174_v30 = vmul.f32 %v6735_v3, %v888_v50  ;;  %v6947_v32 = vadd.f32 %v1190_v8, %v1172_v6  ;;  %v1050_v11 = vmul.f32 %v6886_v4, %v6886_v4 }
 0x308   :  { %v1191_v38 = vmul.f32 %v6747_v12, %v1003_v19  ;;  %v1004_v1 = vmax.f32 %v890_v2, 0.0  ;;  %v1051_v3 = vmul.f32 %v6889_v7, %v6889_v7  ;;  %v1052_v23 = vmul.f32 %v6892_v39, %v6892_v39 }
 0x309   :  { %v1063_v0 = vadd.f32 %v1062_v58, %v1048_v43  ;;  %v1053_v6 = vmul.f32 %v6895_v25, %v6895_v25  ;;  %v1055_v9 = vmul.f32 %v6901_v24, %v6901_v24  ;;  %v1056_v50 = vmul.f32 %v6904_v18, %v6904_v18 }
 0x30a   :  { %v6951_v53 = vadd.f32 %v1191_v38, %v1173_v47  ;;  %v1192_v57 = vmul.f32 %v6747_v12, %v1004_v1  ;;  %v1054_v12 = vmul.f32 %v6898_v62, %v6898_v62  ;;  %v1057_v43 = vmul.f32 %v6907_v22, %v6907_v22 }
 0x30b   :  { %v1064_v13 = vadd.f32 %v1063_v0, %v1049_v27  ;;  %v1058_v8 = vmul.f32 %v6909_v21, %v6909_v21 }
 0x30c   :  { %v6956_v54 = vadd.f32 %v1192_v57, %v1174_v30 }
 0x30d   :  { %v1065_v31 = vadd.f32 %v1064_v13, %v1050_v11 }
 0x30f   :  { %v1066_v42 = vadd.f32 %v1065_v31, %v1051_v3  ;;  %v6974_v31 = vstv %s5401_s28 }
 0x311   :  { %v1067_v56 = vadd.f32 %v1066_v42, %v1052_v23  ;;  %v6976_v23 = vstv %s5400_s29  ;;  %v6980_v42 = vmul.f32 %v6974_v31, %v6583_v37  ;;  %v7000_v37 = vmul.f32 %v6974_v31, %v6601_v36  ;;  %v7023_v36 = vld [vmem:[%s10799_s4 + $0x1] ss:$0 sm:$0xff] }
 0x313   :  { %v1068_v47 = vadd.f32 %v1067_v56, %v1053_v6  ;;  %v6984_v6 = vmul.f32 %v6974_v31, %v6589_v15  ;;  %v6988_v56 = vmul.f32 %v6974_v31, %v6592_v49  ;;  %v7004_v15 = vmul.f32 %v6974_v31, %v6604_v40 }
 0x314   :  { %v7008_v49 = vmul.f32 %v6974_v31, %v6633_v29  ;;  %v7027_v40 = vmul.f32 %v6974_v31, %v6668_v5  ;;  %v7031_v29 = vmul.f32 %v6974_v31, %v6671_v10 }
 0x315   :  { %v1069_v19 = vadd.f32 %v1068_v47, %v1054_v12  ;;  %v6992_v12 = vmul.f32 %v6974_v31, %v6595_v34  ;;  %v6996_v47 = vmul.f32 %v6974_v31, %v6598_v44  ;;  %v7012_v34 = vmul.f32 %v6974_v31, %v6659_v16 }
 0x316   :  { %v7016_v44 = vmul.f32 %v6974_v31, %v6665_v60  ;;  %v7035_v16 = vmul.f32 %v6974_v31, %v6656_v48  ;;  %v7039_v60 = vmul.f32 %v6974_v31, %v6636_v33  ;;  %v7056_v48 = vld [vmem:[%s10800_s5 + $0x1] ss:$0 sm:$0xff] }
 0x317   :  { %v1070_v2 = vadd.f32 %v1069_v19, %v1055_v9 }
 0x319   :  { %v1071_v20 = vadd.f32 %v1070_v2, %v1056_v50 }
 0x31b   :  { %v1072_v58 = vadd.f32 %v1071_v20, %v1057_v43 }
 0x31d   :  { %v1073_v38 = vadd.f32 %v1072_v58, %v1058_v8 }
 0x31f   :  { %v1074_v30 = vrot.slane %v1073_v38, 4 }
 0x321   :  { %v1075_v1 = vadd.f32 %v1074_v30, %v1073_v38 }
 0x323   :  { %v1076_v27 = vrot.slane %v1075_v1, 2 }
 0x325   :  { %v1077_v0 = vadd.f32 %v1076_v27, %v1075_v1 }
 0x327   :  { %v1078_v57 = vrot.slane %v1077_v0, 1 }
 0x329   :  { %v1079_v11 = vadd.f32 %v1078_v57, %v1077_v0 }
 0x32b   :  { %v1080_v13 = vmul.f32 0.0078125, %v1079_v11 }
 0x32d   :  { %v1081_v3 = vadd.f32 1e-05, %v1080_v13 }
 0x32f   :  { %5924 = vrsqrt.f32 %v1081_v3 }
 0x339   :  { %v7018_v9 = vpop.eup %5924 }
 0x33a   :  { %v7043_v19 = vmul.f32 %v7018_v9, %v6901_v24  ;;  %v1096_v5 = vmul.f32 %v7018_v9, %v6904_v18  ;;  %v7049_v50 = vmul.f32 %v7018_v9, %v6907_v22  ;;  %v1083_v10 = vmul.f32 %v7018_v9, %v6865_v35 }
 0x33b   :  { %v1084_v33 = vmul.f32 %v7018_v9, %v6868_v61  ;;  %v1085_v24 = vmul.f32 %v7018_v9, %v6871_v28  ;;  %v1086_v18 = vmul.f32 %v7018_v9, %v6874_v63  ;;  %v1087_v22 = vmul.f32 %v7018_v9, %v6877_v59 }
 0x33c   :  { %v1117_v2 = vmul.f32 %v7023_v36, %v1096_v5  ;;  %v1104_v35 = vmul.f32 %v7023_v36, %v1083_v10  ;;  %v1088_v43 = vmul.f32 %v7018_v9, %v6880_v52  ;;  %v1089_v20 = vmul.f32 %v7018_v9, %v6883_v55 }
 0x33d   :  { %v1105_v61 = vmul.f32 %v7023_v36, %v1084_v33  ;;  %v1106_v28 = vmul.f32 %v7023_v36, %v1085_v24  ;;  %v1107_v8 = vmul.f32 %v7023_v36, %v1086_v18  ;;  %v1108_v63 = vmul.f32 %v7023_v36, %v1087_v22 }
 0x33e   :  { %v1138_v59 = vadd.f32 %v7056_v48, %v1117_v2  ;;  %v1125_v58 = vadd.f32 %v7056_v48, %v1104_v35  ;;  %v1109_v38 = vmul.f32 %v7023_v36, %v1088_v43  ;;  %v1110_v30 = vmul.f32 %v7023_v36, %v1089_v20 }
 0x33f   :  { %v1126_v52 = vadd.f32 %v7056_v48, %v1105_v61  ;;  %v1127_v55 = vadd.f32 %v7056_v48, %v1106_v28  ;;  %v1128_v1 = vadd.f32 %v7056_v48, %v1107_v8  ;;  %v1129_v27 = vadd.f32 %v7056_v48, %v1108_v63 }
 0x340   :  { %v1154_v0 = vmax.f32 %v1138_v59, 0.0  ;;  %v1141_v57 = vmax.f32 %v1125_v58, 0.0  ;;  %v1130_v11 = vadd.f32 %v7056_v48, %v1109_v38  ;;  %v1131_v13 = vadd.f32 %v7056_v48, %v1110_v30 }
 0x341   :  { %v1142_v3 = vmax.f32 %v1126_v52, 0.0  ;;  %v1143_v5 = vmax.f32 %v1127_v55, 0.0  ;;  %v1144_v10 = vmax.f32 %v1128_v1, 0.0  ;;  %v1145_v33 = vmax.f32 %v1129_v27, 0.0  ;;  %v10866_v55 = vld [vmem:[#allocation47_spill] sm:$0xff] }
 0x342   :  { %v1211_v24 = vmul.f32 %v6976_v23, %v1141_v57  ;;  %v1146_v18 = vmax.f32 %v1130_v11, 0.0  ;;  %v1147_v22 = vmax.f32 %v1131_v13, 0.0  ;;  %v1090_v2 = vmul.f32 %v7018_v9, %v6886_v4 }
 0x343   :  { %v1212_v35 = vmul.f32 %v6976_v23, %v1142_v3  ;;  %v1213_v43 = vmul.f32 %v6976_v23, %v1143_v5  ;;  %v1214_v20 = vmul.f32 %v6976_v23, %v1144_v10  ;;  %v1215_v61 = vmul.f32 %v6976_v23, %v1145_v33  ;;  %v10868_v33 = vld [vmem:[#allocation48_spill] sm:$0xff] }
 0x344   :  { %v1227_v28 = vadd.f32 %v1211_v24, %v6764_v45  ;;  %v1216_v8 = vmul.f32 %v6976_v23, %v1146_v18  ;;  %v1217_v63 = vmul.f32 %v6976_v23, %v1147_v22  ;;  %v1111_v59 = vmul.f32 %v7023_v36, %v1090_v2  ;;  %v10867_v45 = vld [vmem:[#allocation40_spill] sm:$0xff] }
 0x345   :  { %v1228_v58 = vadd.f32 %v1212_v35, %v6772_v14  ;;  %v1229_v4 = vadd.f32 %v1213_v43, %v6792_v46  ;;  %v1230_v38 = vadd.f32 %v1214_v20, %v6800_v26  ;;  %v1231_v30 = vadd.f32 %v1215_v61, %v6820_v17 }
 0x346   :  { %v7102_v52 = vadd.f32 %v6980_v42, %v1227_v28  ;;  %v1232_v1 = vadd.f32 %v1216_v8, %v10866_v55  ;;  %v1233_v27 = vadd.f32 %v1217_v63, %v10867_v45  ;;  %v1132_v57 = vadd.f32 %v7056_v48, %v1111_v59 }
 0x347   :  { %v7108_v11 = vadd.f32 %v6984_v6, %v1228_v58  ;;  %v7111_v14 = vadd.f32 %v6988_v56, %v1229_v4  ;;  %v7114_v46 = vadd.f32 %v6992_v12, %v1230_v38  ;;  %v7117_v26 = vadd.f32 %v6996_v47, %v1231_v30  ;;  %v10869_v38 = vld [vmem:[#allocation45_spill] sm:$0xff] }
 0x348   :  { %v7120_v17 = vadd.f32 %v7000_v37, %v1232_v1  ;;  %v7123_v42 = vadd.f32 %v7004_v15, %v1233_v27  ;;  %v1148_v13 = vmax.f32 %v1132_v57, 0.0  ;;  %v1091_v6 = vmul.f32 %v7018_v9, %v6889_v7  ;;  %v10870_v27 = vld [vmem:[#allocation49_spill] sm:$0xff] }
 0x349   :  { %v1092_v56 = vmul.f32 %v7018_v9, %v6892_v39  ;;  %v1093_v12 = vmul.f32 %v7018_v9, %v6895_v25  ;;  %v1094_v47 = vmul.f32 %v7018_v9, %v6898_v62  ;;  %v1116_v37 = vmul.f32 %v7023_v36, %v7043_v19 }
 0x34a   :  { %v1218_v3 = vmul.f32 %v6976_v23, %v1148_v13  ;;  %v1112_v15 = vmul.f32 %v7023_v36, %v1091_v6  ;;  %v1224_v5 = vmul.f32 %v6976_v23, %v1154_v0  ;;  %v1118_v7 = vmul.f32 %v7023_v36, %v7049_v50 }
 0x34b   :  { %v1113_v39 = vmul.f32 %v7023_v36, %v1092_v56  ;;  %v1114_v10 = vmul.f32 %v7023_v36, %v1093_v12  ;;  %v1115_v25 = vmul.f32 %v7023_v36, %v1094_v47  ;;  %v1137_v62 = vadd.f32 %v7056_v48, %v1116_v37  ;;  %v10871_v56 = vld [vmem:[#allocation50_spill] sm:$0xff]  ;;  %v10872_v47 = vld [vmem:[#allocation41_spill] sm:$0xff] }
 0x34c   :  { %v1234_v24 = vadd.f32 %v1218_v3, %v10868_v33  ;;  %v1133_v19 = vadd.f32 %v7056_v48, %v1112_v15  ;;  %v1240_v18 = vadd.f32 %v1224_v5, %v6947_v32  ;;  %v1139_v22 = vadd.f32 %v7056_v48, %v1118_v7  ;;  %v10874_v7 = vld [vmem:[#allocation46_spill] sm:$0xff] }
 0x34d   :  { %v1134_v0 = vadd.f32 %v7056_v48, %v1113_v39  ;;  %v1135_v50 = vadd.f32 %v7056_v48, %v1114_v10  ;;  %v1136_v2 = vadd.f32 %v7056_v48, %v1115_v25  ;;  %v1153_v35 = vmax.f32 %v1137_v62, 0.0 }
 0x34e   :  { %v7152_v43 = vadd.f32 %v7008_v49, %v1234_v24  ;;  %v1149_v20 = vmax.f32 %v1133_v19, 0.0  ;;  %v7155_v61 = vadd.f32 %v7039_v60, %v1240_v18  ;;  %v1155_v28 = vmax.f32 %v1139_v22, 0.0 }
 0x34f   :  { %v1150_v8 = vmax.f32 %v1134_v0, 0.0  ;;  %v1151_v63 = vmax.f32 %v1135_v50, 0.0  ;;  %v1152_v32 = vmax.f32 %v1136_v2, 0.0  ;;  %v1223_v59 = vmul.f32 %v6976_v23, %v1153_v35 }
 0x350   :  { %v1219_v58 = vmul.f32 %v6976_v23, %v1149_v20  ;;  %v1225_v4 = vmul.f32 %v6976_v23, %v1155_v28  ;;  %v1259_v30 = vmul.f32 %v6974_v31, %v10869_v38  ;;  %v1098_v49 = vmul.f32 %v7018_v9, %v6909_v21 }
 0x351   :  { %v1220_v55 = vmul.f32 %v6976_v23, %v1150_v8  ;;  %v1221_v60 = vmul.f32 %v6976_v23, %v1151_v63  ;;  %v1222_v1 = vmul.f32 %v6976_v23, %v1152_v32  ;;  %v1239_v45 = vadd.f32 %v1223_v59, %v6945_v51 }
 0x352   :  { %v1235_v57 = vadd.f32 %v1219_v58, %v10870_v27  ;;  %v1241_v13 = vadd.f32 %v1225_v4, %v6951_v53  ;;  %v1119_v6 = vmul.f32 %v7023_v36, %v1098_v49 }
 0x353   :  { %v1236_v12 = vadd.f32 %v1220_v55, %v10871_v56  ;;  %v1237_v37 = vadd.f32 %v1221_v60, %v10872_v47  ;;  %v1238_v21 = vadd.f32 %v1222_v1, %v6931_v41  ;;  %v7175_v9 = vadd.f32 %v7035_v16, %v1239_v45 }
 0x354   :  { %v7178_v3 = vadd.f32 %v7012_v34, %v1235_v57  ;;  %v7180_v15 = vadd.f32 %v1259_v30, %v1241_v13  ;;  %v1140_v51 = vadd.f32 %v7056_v48, %v1119_v6  ;;  %v1260_v34 = vmul.f32 %v6974_v31, %v10874_v7 }
 0x355   :  { %v7184_v53 = vadd.f32 %v7016_v44, %v1236_v12  ;;  %v7187_v36 = vadd.f32 %v7027_v40, %v1237_v37  ;;  %v7190_v5 = vadd.f32 %v7031_v29, %v1238_v21 }
 0x356   :  { %10873 = vst [vmem:[#allocation47_spill] sm:$0xff] %v7180_v15  ;;  %v1156_v41 = vmax.f32 %v1140_v51, 0.0 }
 0x358   :  { %v1226_v16 = vmul.f32 %v6976_v23, %v1156_v41 }
 0x35a   :  { %v1242_v39 = vadd.f32 %v1226_v16, %v6956_v54 }
 0x35c   :  { %v7196_v10 = vadd.f32 %v1260_v34, %v1242_v39 }
 0x35e   :  { %10875 = vst [vmem:[#allocation40_spill] sm:$0xff] %v7196_v10 }
 0x35f   :  { %6004 = dma.done.wait [#allocation3], 3072 }
 0x360   :  { %6005 = vsyncadd [#allocation3], 4294964224  ;;  %v7200_v44 = vpack.c.bf16 %v7108_v11, %v7102_v52  ;;  %v10876_v40 = vmov 0   ;;  %1295 = sst [smem:[#allocation17]] %s6025_s18  ;;  %s1279_s13 = scalar_lea.hbm %s10797_s2, 9216  ;;  %v1315_v4 = vpack.c.bf16 %v7114_v46, %v7111_v14  ;;  %v1316_v30 = vpack.c.bf16 %v7120_v17, %v7117_v26 }
 0x361   :  { %1396 = vmatprep.mubr.bf16.mxu0 %v10876_v40  ;;  %1297 = sst [smem:[#allocation17 + $0x1]] %s6025_s18  ;;  %s6038_s14 = smov [#allocation16]   ;;  %v1317_v49 = vpack.c.bf16 %v7152_v43, %v7123_v42  ;;  %v1318_v55 = vpack.c.bf16 %v7184_v53, %v7178_v3  ;;  %v1319_v60 = vpack.c.bf16 %v7190_v5, %v7187_v36  ;;  %v1320_v1 = vpack.c.bf16 %v7155_v61, %v7175_v9 }
 0x362   :  { %5689 = vmatprep.mubr.bf16.mxu1 %v7200_v44  ;;  %1299 = sst [smem:[#allocation17 + $0x2]] %s6026_s19  ;;  %v1321_v45 = vpack.c.bf16 %v7196_v10, %v7180_v15 }
 0x363   :  { %1301 = sst [smem:[#allocation17 + $0x3]] %s6027_s1 }
 0x364   :  { %1303 = sst [smem:[#allocation17 + $0x4]] %s6021_s26 }
 0x365   :  { %1305 = sst [smem:[#allocation17 + $0x5]] %s6028_s22 }
 0x366   :  { %1307 = sst [smem:[#allocation17 + $0x6]] %s6029_s23 }
 0x367   :  { %1309 = sst [smem:[#allocation17 + $0x7]] %s6027_s1 }
 0x368   :  { %1311 = sst [smem:[#allocation17 + $0x8]] %s6030_s24 }
 0x369   :  { %1313 = dma.general %s1279_s13, 3072, %s6166_s7, %s6035_s11, %s6038_s14, [#allocation17], %s6108_s21, 0  }
 0x36a   :  { %v1324_v54 = vld [vmem:[#allocation2 + $0x10] sm:$0xff]  ;;  %v1327_v31 = vld [vmem:[#allocation2 + $0x28] sm:$0xff]  ;;  %v1322_v29 = vld [vmem:[#allocation2] sm:$0xff]  ;;  %s5407_s15 = sld [smem:[#allocation4 + $0x100]]  ;;  %s5408_s28 = sld [smem:[#allocation4 + $0x101]] }
 0x36b   :  { %5673 = vmatprep.subr.bf16.mxu1 %v1324_v54  ;;  %v1323_v23 = vld [vmem:[#allocation2 + $0x8] sm:$0xff]  ;;  %v1326_v48 = vld [vmem:[#allocation2 + $0x20] sm:$0xff]  ;;  %v1325_v62 = vld [vmem:[#allocation2 + $0x18] sm:$0xff]  ;;  %s5410_s29 = sld [smem:[#allocation4 + $0x103]]  ;;  %s5409_s30 = sld [smem:[#allocation4 + $0x102]] }
 0x36c   :  { %5674 = vmatpush3.bf16.msra.mxu1 %v1324_v54  ;;  %1364 = vmatprep.subr.bf16.mxu0 %v1323_v23  ;;  %v1330_v25 = vld [vmem:[#allocation2 + $0x40] sm:$0xff]  ;;  %v1329_v33 = vld [vmem:[#allocation2 + $0x38] sm:$0xff]  ;;  %v1328_v19 = vld [vmem:[#allocation2 + $0x30] sm:$0xff] }
 0x36d   :  { %5675 = vmatprep.subr.bf16.mxu1 %v1327_v31  ;;  %1365 = vmatpush1.bf16.msra.mxu0 %v1322_v29  ;;  %v1333_v24 = vld [vmem:[#allocation2 + $0x58] sm:$0xff]  ;;  %v1332_v18 = vld [vmem:[#allocation2 + $0x50] sm:$0xff]  ;;  %v1331_v0 = vld [vmem:[#allocation2 + $0x48] sm:$0xff] }
 0x36e   :  { %1366 = vmatprep.subr.bf16.mxu0 %v1326_v48  ;;  %v1336_v22 = vld [vmem:[#allocation2 + $0x70] sm:$0xff]  ;;  %v1335_v50 = vld [vmem:[#allocation2 + $0x68] sm:$0xff]  ;;  %v1334_v35 = vld [vmem:[#allocation2 + $0x60] sm:$0xff] }
 0x36f   :  { %v1339_v2 = vld [vmem:[#allocation2 + $0x88] sm:$0xff]  ;;  %v1338_v20 = vld [vmem:[#allocation2 + $0x80] sm:$0xff]  ;;  %v1337_v8 = vld [vmem:[#allocation2 + $0x78] sm:$0xff] }
 0x370   :  { %5676 = vmatpush3.bf16.msra.mxu1 %v1327_v31  ;;  %v1342_v28 = vld [vmem:[#allocation2 + $0xa0] sm:$0xff]  ;;  %v1341_v63 = vld [vmem:[#allocation2 + $0x98] sm:$0xff]  ;;  %v1340_v59 = vld [vmem:[#allocation2 + $0x90] sm:$0xff]  ;;  %v7254_v34 = vstv %s5407_s15  ;;  %v7266_v48 = vstv %s5408_s28 }
 0x371   :  { %5677 = vmatprep.subr.bf16.mxu1 %v1330_v25  ;;  %1367 = vmatpush1.bf16.msra.mxu0 %v1325_v62  ;;  %v1345_v32 = vld [vmem:[#allocation2 + $0xb8] sm:$0xff]  ;;  %v1344_v58 = vld [vmem:[#allocation2 + $0xb0] sm:$0xff]  ;;  %v1343_v38 = vld [vmem:[#allocation2 + $0xa8] sm:$0xff] }
 0x372   :  { %1368 = vmatprep.subr.bf16.mxu0 %v1329_v33  ;;  %v5404_v27 = vld [vmem:[%s10798_s3 + $0x2] ss:$8 sm:$0x7]  ;;  %v10878_v6 = vld [vmem:[#allocation43_spill] sm:$0xff] }
 0x373   :  { %v10877_v57 = vld [vmem:[#allocation42_spill] sm:$0xff]  ;;  %v7248_v56 = vrot.slane %v5404_v27, %v10878_v6  ;;  %v10879_v47 = vld [vmem:[#allocation44_spill] sm:$0xff] }
 0x374   :  { %5678 = vmatpush3.bf16.msra.mxu1 %v1330_v25  ;;  %v7245_v13 = vrot.slane %v5404_v27, %v10877_v57  ;;  %v7251_v37 = vrot.slane %v5404_v27, %v10879_v47 }
 0x375   :  { %5679 = vmatprep.subr.bf16.mxu1 %v1333_v24  ;;  %1369 = vmatpush1.bf16.msra.mxu0 %v1328_v19 }
 0x376   :  { %1370 = vmatprep.subr.bf16.mxu0 %v1332_v18 }
 0x378   :  { %5680 = vmatpush3.bf16.msra.mxu1 %v1333_v24 }
 0x379   :  { %5681 = vmatprep.subr.bf16.mxu1 %v1336_v22  ;;  %1371 = vmatpush1.bf16.msra.mxu0 %v1331_v0 }
 0x37a   :  { %1372 = vmatprep.subr.bf16.mxu0 %v1335_v50 }
 0x37c   :  { %5682 = vmatpush3.bf16.msra.mxu1 %v1336_v22 }
 0x37d   :  { %5683 = vmatprep.subr.bf16.mxu1 %v1339_v2  ;;  %1373 = vmatpush1.bf16.msra.mxu0 %v1334_v35 }
 0x37e   :  { %1374 = vmatprep.subr.bf16.mxu0 %v1338_v20 }
 0x380   :  { %5684 = vmatpush3.bf16.msra.mxu1 %v1339_v2 }
 0x381   :  { %5685 = vmatprep.subr.bf16.mxu1 %v1342_v28  ;;  %1375 = vmatpush1.bf16.msra.mxu0 %v1337_v8 }
 0x382   :  { %1376 = vmatprep.subr.bf16.mxu0 %v1341_v63 }
 0x384   :  { %5686 = vmatpush3.bf16.msra.mxu1 %v1342_v28 }
 0x385   :  { %5687 = vmatprep.subr.bf16.mxu1 %v1345_v32  ;;  %1377 = vmatpush1.bf16.msra.mxu0 %v1340_v59 }
 0x386   :  { %1378 = vmatprep.subr.bf16.mxu0 %v1344_v58 }
 0x388   :  { %5688 = vmatpush3.bf16.msra.mxu1 %v1345_v32 }
 0x389   :  { %1379 = vmatpush1.bf16.msra.mxu0 %v1343_v38 }
 0x38b   :  { %5690 = vmatmul.mubr.bf16.vlgmr.msra.gmra.mrb[48].mxu1 %v1315_v4 }
 0x38c   :  { %5693 = vmatprep.mubr.bf16.mxu1 %v1316_v30  ;;  %1397 = vmatmul.mubr.bf16.vlgmr.msra.gmra.mrb[48].mxu0 %v7200_v44 }
 0x38d   :  { %1406 = vmatprep.mubr.bf16.mxu0 %v10876_v40 }
 0x393   :  { %5694 = vmatmul.mubr.bf16.gmra.mrb[52].mxu1 %v1317_v49 }
 0x394   :  { %5697 = vmatprep.mubr.bf16.mxu1 %v1318_v55  ;;  %1407 = vmatmul.mubr.bf16.gmra.mrb[52].mxu0 %v1315_v4 }
 0x395   :  { %1416 = vmatprep.mubr.bf16.mxu0 %v10876_v40 }
 0x39b   :  { %5698 = vmatmul.mubr.bf16.gmra.mrb[56].mxu1 %v1319_v60 }
 0x39c   :  { %5701 = vmatprep.mubr.bf16.mxu1 %v1320_v1  ;;  %1417 = vmatmul.mubr.bf16.gmra.mrb[56].mxu0 %v1316_v30 }
 0x39d   :  { %1426 = vmatprep.mubr.bf16.mxu0 %v10876_v40 }
 0x3a3   :  { %5702 = vmatmul.mubr.bf16.gmra.mrb[60].mxu1 %v1321_v45 }
 0x3a4   :  { %1427 = vmatmul.mubr.bf16.gmra.mrb[60].mxu0 %v1317_v49 }
 0x3a5   :  { %1436 = vmatprep.mubr.bf16.mxu0 %v10876_v40 }
 0x3ac   :  { %1437 = vmatmul.mubr.bf16.gmra.mrb[64].mxu0 %v1318_v55 }
 0x3ad   :  { %1446 = vmatprep.mubr.bf16.mxu0 %v10876_v40 }
 0x3b4   :  { %1447 = vmatmul.mubr.bf16.gmra.mrb[68].mxu0 %v1319_v60 }
 0x3b5   :  { %1456 = vmatprep.mubr.bf16.mxu0 %v10876_v40 }
 0x3bc   :  { %1457 = vmatmul.mubr.bf16.gmra.mrb[72].mxu0 %v1320_v1 }
 0x3bd   :  { %1466 = vmatprep.mubr.bf16.mxu0 %v10876_v40 }
 0x3c4   :  { %1467 = vmatmul.mubr.bf16.gmra.mrb[76].mxu0 %v1321_v45 }
 0x45e   :  { %v5691_v12 = vpop.f32.mrb[48].mxu1 }
 0x45f   :  { %v1511_v21 = vpop.f32.mrb[49].mxu1  ;;  %v1398_v41 = vpop.f32.mrb[48].mxu0  ;;  %v7264_v29 = vadd.f32 %v5691_v12, %v7248_v56 }
 0x460   :  { %v5692_v51 = vpop.f32.mrb[50].mxu1  ;;  %v1399_v7 = vadd.f32 %v1398_v41, %v7245_v13  ;;  %v1400_v39 = vpop.f32.mrb[49].mxu0  ;;  %v7257_v44 = vadd.f32 %v1511_v21, %v7248_v56 }
 0x461   :  { %v1514_v16 = vpop.f32.mrb[51].mxu1  ;;  %v1401_v31 = vadd.f32 %v1400_v39, %v7251_v37  ;;  %v1402_v23 = vpop.f32.mrb[50].mxu0  ;;  %v7274_v22 = vadd.f32 %v5692_v51, %v7248_v56 }
 0x462   :  { %v7260_v54 = vadd.f32 %v1514_v16, %v7248_v56  ;;  %v1403_v25 = vadd.f32 %v1402_v23, %v7245_v13  ;;  %v1404_v62 = vpop.f32.mrb[51].mxu0  ;;  %v1744_v24 = vmul.f32 %v7254_v34, %v1399_v7 }
 0x463   :  { %v1574_v19 = vmax.f32 %v1401_v31, 0.0  ;;  %v1405_v18 = vadd.f32 %v1404_v62, %v7251_v37 }
 0x464   :  { %v1590_v33 = vadd.f32 %v7260_v54, %v7257_v44  ;;  %v1745_v35 = vmul.f32 %v7254_v34, %v1403_v25 }
 0x465   :  { %v1762_v2 = vmul.f32 %v7266_v48, %v1574_v19  ;;  %v1575_v20 = vmax.f32 %v1405_v18, 0.0 }
 0x466   :  { %v1591_v0 = vadd.f32 %v1590_v33, %v7264_v29  ;;  %v5695_v50 = vpop.f32.mrb[52].mxu1 }
 0x467   :  { %v1527_v28 = vpop.f32.mrb[53].mxu1  ;;  %v7283_v59 = vadd.f32 %v1762_v2, %v1744_v24  ;;  %v1763_v58 = vmul.f32 %v7266_v48, %v1575_v20  ;;  %v1408_v4 = vpop.f32.mrb[52].mxu0  ;;  %v7295_v12 = vadd.f32 %v5695_v50, %v7248_v56 }
 0x468   :  { %v7280_v8 = vadd.f32 %v1527_v28, %v7248_v56  ;;  %v1592_v63 = vadd.f32 %v1591_v0, %v7274_v22  ;;  %v5696_v32 = vpop.f32.mrb[54].mxu1  ;;  %v1409_v30 = vadd.f32 %v1408_v4, %v7245_v13  ;;  %v1410_v49 = vpop.f32.mrb[53].mxu0 }
 0x469   :  { %v1530_v38 = vpop.f32.mrb[55].mxu1  ;;  %v7291_v1 = vadd.f32 %v1763_v58, %v1745_v35  ;;  %v1411_v45 = vadd.f32 %v1410_v49, %v7251_v37  ;;  %v1412_v27 = vpop.f32.mrb[54].mxu0  ;;  %v7302_v31 = vadd.f32 %v5696_v32, %v7248_v56 }
 0x46a   :  { %v1593_v55 = vadd.f32 %v1592_v63, %v7280_v8  ;;  %v7289_v60 = vadd.f32 %v1530_v38, %v7248_v56  ;;  %v1413_v21 = vadd.f32 %v1412_v27, %v7245_v13  ;;  %v1414_v51 = vpop.f32.mrb[55].mxu0  ;;  %v1746_v16 = vmul.f32 %v7254_v34, %v1409_v30 }
 0x46b   :  { %v1576_v7 = vmax.f32 %v1411_v45, 0.0  ;;  %v1415_v39 = vadd.f32 %v1414_v51, %v7251_v37 }
 0x46c   :  { %v1594_v41 = vadd.f32 %v1593_v55, %v7289_v60  ;;  %v1747_v33 = vmul.f32 %v7254_v34, %v1413_v21 }
 0x46d   :  { %v1764_v62 = vmul.f32 %v7266_v48, %v1576_v7  ;;  %v1577_v24 = vmax.f32 %v1415_v39, 0.0 }
 0x46e   :  { %v1595_v23 = vadd.f32 %v1594_v41, %v7295_v12  ;;  %v5699_v25 = vpop.f32.mrb[56].mxu1 }
 0x46f   :  { %v1543_v19 = vpop.f32.mrb[57].mxu1  ;;  %v7311_v2 = vadd.f32 %v1764_v62, %v1746_v16  ;;  %v1765_v35 = vmul.f32 %v7266_v48, %v1577_v24  ;;  %v1418_v20 = vpop.f32.mrb[56].mxu0  ;;  %v7323_v55 = vadd.f32 %v5699_v25, %v7248_v56 }
 0x470   :  { %v7308_v18 = vadd.f32 %v1543_v19, %v7248_v56  ;;  %v1596_v0 = vadd.f32 %v1595_v23, %v7302_v31  ;;  %v5700_v50 = vpop.f32.mrb[58].mxu1  ;;  %v1419_v63 = vadd.f32 %v1418_v20, %v7245_v13  ;;  %v1420_v32 = vpop.f32.mrb[57].mxu0 }
 0x471   :  { %v1546_v28 = vpop.f32.mrb[59].mxu1  ;;  %v7319_v38 = vadd.f32 %v1765_v35, %v1747_v33  ;;  %v1421_v30 = vadd.f32 %v1420_v32, %v7251_v37  ;;  %v1422_v49 = vpop.f32.mrb[58].mxu0  ;;  %v7330_v7 = vadd.f32 %v5700_v50, %v7248_v56 }
 0x472   :  { %v1597_v58 = vadd.f32 %v1596_v0, %v7308_v18  ;;  %v7317_v4 = vadd.f32 %v1546_v28, %v7248_v56  ;;  %v1423_v45 = vadd.f32 %v1422_v49, %v7245_v13  ;;  %v1424_v27 = vpop.f32.mrb[59].mxu0  ;;  %v1748_v51 = vmul.f32 %v7254_v34, %v1419_v63 }
 0x473   :  { %v1578_v41 = vmax.f32 %v1421_v30, 0.0  ;;  %v1425_v16 = vadd.f32 %v1424_v27, %v7251_v37 }
 0x474   :  { %v1598_v21 = vadd.f32 %v1597_v58, %v7317_v4  ;;  %v1749_v25 = vmul.f32 %v7254_v34, %v1423_v45 }
 0x475   :  { %v1766_v62 = vmul.f32 %v7266_v48, %v1578_v41  ;;  %v1579_v33 = vmax.f32 %v1425_v16, 0.0 }
 0x476   :  { %v1599_v39 = vadd.f32 %v1598_v21, %v7323_v55  ;;  %v5703_v23 = vpop.f32.mrb[60].mxu1 }
 0x477   :  { %v1559_v24 = vpop.f32.mrb[61].mxu1  ;;  %v7339_v20 = vadd.f32 %v1766_v62, %v1748_v51  ;;  %v1767_v50 = vmul.f32 %v7266_v48, %v1579_v33  ;;  %v1428_v28 = vpop.f32.mrb[60].mxu0  ;;  %v7351_v51 = vadd.f32 %v5703_v23, %v7248_v56 }
 0x478   :  { %v7336_v19 = vadd.f32 %v1559_v24, %v7248_v56  ;;  %v1600_v0 = vadd.f32 %v1599_v39, %v7330_v7  ;;  %v5704_v35 = vpop.f32.mrb[62].mxu1  ;;  %v1429_v32 = vadd.f32 %v1428_v28, %v7245_v13  ;;  %v1430_v58 = vpop.f32.mrb[61].mxu0 }
 0x479   :  { %v1562_v63 = vpop.f32.mrb[63].mxu1  ;;  %v7347_v45 = vadd.f32 %v1767_v50, %v1749_v25  ;;  %v1431_v27 = vadd.f32 %v1430_v58, %v7251_v37  ;;  %v1432_v21 = vpop.f32.mrb[62].mxu0 }
 0x47a   :  { %v1601_v30 = vadd.f32 %v1600_v0, %v7336_v19  ;;  %v7345_v49 = vadd.f32 %v1562_v63, %v7248_v56  ;;  %v1433_v41 = vadd.f32 %v1432_v21, %v7245_v13  ;;  %v1434_v16 = vpop.f32.mrb[63].mxu0  ;;  %v1750_v62 = vmul.f32 %v7254_v34, %v1429_v32 }
 0x47b   :  { %10880 = vst [vmem:[#allocation48_spill] sm:$0xff] %v7347_v45  ;;  %v1580_v33 = vmax.f32 %v1431_v27, 0.0  ;;  %v1435_v24 = vadd.f32 %v1434_v16, %v7251_v37  ;;  %v1571_v0 = vadd.f32 %v5704_v35, %v7248_v56 }
 0x47c   :  { %v1602_v39 = vadd.f32 %v1601_v30, %v7345_v49  ;;  %v1751_v28 = vmul.f32 %v7254_v34, %v1433_v41 }
 0x47d   :  { %v1768_v50 = vmul.f32 %v7266_v48, %v1580_v33  ;;  %v1581_v23 = vmax.f32 %v1435_v24, 0.0 }
 0x47e   :  { %v1603_v25 = vadd.f32 %v1602_v39, %v7351_v51 }
 0x47f   :  { %v7361_v58 = vadd.f32 %v1768_v50, %v1750_v62  ;;  %v1769_v21 = vmul.f32 %v7266_v48, %v1581_v23  ;;  %v1438_v30 = vpop.f32.mrb[64].mxu0 }
 0x480   :  { %v1604_v63 = vadd.f32 %v1603_v25, %v1571_v0  ;;  %v1439_v32 = vadd.f32 %v1438_v30, %v7245_v13  ;;  %v1440_v27 = vpop.f32.mrb[65].mxu0 }
 0x481   :  { %10881 = vst [vmem:[#allocation45_spill] sm:$0xff] %v7361_v58  ;;  %v7365_v16 = vadd.f32 %v1769_v21, %v1751_v28  ;;  %v1441_v56 = vadd.f32 %v1440_v27, %v7251_v37  ;;  %v1442_v35 = vpop.f32.mrb[66].mxu0 }
 0x482   :  { %v1605_v47 = vrot.slane %v1604_v63, 4  ;;  %v1443_v39 = vadd.f32 %v1442_v35, %v7245_v13  ;;  %v1444_v33 = vpop.f32.mrb[67].mxu0  ;;  %v1752_v24 = vmul.f32 %v7254_v34, %v1439_v32 }
 0x483   :  { %10882 = vst [vmem:[#allocation49_spill] sm:$0xff] %v7365_v16  ;;  %v1582_v62 = vmax.f32 %v1441_v56, 0.0  ;;  %v1445_v25 = vadd.f32 %v1444_v33, %v7251_v37 }
 0x484   :  { %v1606_v41 = vadd.f32 %v1605_v47, %v1604_v63  ;;  %v1753_v30 = vmul.f32 %v7254_v34, %v1443_v39 }
 0x485   :  { %v1770_v23 = vmul.f32 %v7266_v48, %v1582_v62  ;;  %v1583_v6 = vmax.f32 %v1445_v25, 0.0 }
 0x486   :  { %v1607_v50 = vrot.slane %v1606_v41, 2 }
 0x487   :  { %v7373_v21 = vadd.f32 %v1770_v23, %v1752_v24  ;;  %v1771_v27 = vmul.f32 %v7266_v48, %v1583_v6  ;;  %v1448_v57 = vpop.f32.mrb[68].mxu0 }
 0x488   :  { %v1608_v28 = vadd.f32 %v1607_v50, %v1606_v41  ;;  %v1450_v35 = vpop.f32.mrb[69].mxu0  ;;  %v1449_v32 = vadd.f32 %v1448_v57, %v7245_v13 }
 0x489   :  { %10883 = vst [vmem:[#allocation50_spill] sm:$0xff] %v7373_v21  ;;  %v7376_v47 = vadd.f32 %v1771_v27, %v1753_v30  ;;  %v1452_v63 = vpop.f32.mrb[70].mxu0  ;;  %v1451_v56 = vadd.f32 %v1450_v35, %v7251_v37 }
 0x48a   :  { %v1609_v40 = vrot.slane %v1608_v28, 1  ;;  %v1454_v33 = vpop.f32.mrb[71].mxu0  ;;  %v1754_v39 = vmul.f32 %v7254_v34, %v1449_v32  ;;  %v1453_v24 = vadd.f32 %v1452_v63, %v7245_v13 }
 0x48b   :  { %10884 = vst [vmem:[#allocation41_spill] sm:$0xff] %v7376_v47  ;;  %v1584_v41 = vmax.f32 %v1451_v56, 0.0  ;;  %v1455_v6 = vadd.f32 %v1454_v33, %v7251_v37 }
 0x48c   :  { %v1610_v62 = vadd.f32 %v1609_v40, %v1608_v28 }
 0x48d   :  { %v1772_v32 = vmul.f32 %v7266_v48, %v1584_v41  ;;  %v1585_v56 = vmax.f32 %v1455_v6, 0.0 }
 0x48e   :  { %v1611_v10 = vmul.f32 0.0078125, %v1610_v62 }
 0x48f   :  { %v1458_v40 = vpop.f32.mrb[72].mxu0  ;;  %v7442_v33 = vadd.f32 %v1772_v32, %v1754_v39  ;;  %v1773_v62 = vmul.f32 %v7266_v48, %v1585_v56 }
 0x490   :  { %v7384_v25 = vsub.f32 %v7257_v44, %v1611_v10  ;;  %v7387_v50 = vsub.f32 %v7260_v54, %v1611_v10  ;;  %v7390_v57 = vsub.f32 %v7264_v29, %v1611_v10  ;;  %v7393_v23 = vsub.f32 %v7274_v22, %v1611_v10  ;;  %v1460_v54 = vpop.f32.mrb[73].mxu0 }
 0x491   :  { %v7396_v30 = vsub.f32 %v7280_v8, %v1611_v10  ;;  %v7399_v28 = vsub.f32 %v7289_v60, %v1611_v10  ;;  %v7402_v27 = vsub.f32 %v7295_v12, %v1611_v10  ;;  %v7405_v44 = vsub.f32 %v7302_v31, %v1611_v10  ;;  %v1462_v60 = vpop.f32.mrb[74].mxu0  ;;  %10885 = vst [vmem:[#allocation46_spill] sm:$0xff] %v7442_v33 }
 0x492   :  { %v7408_v29 = vsub.f32 %v7308_v18, %v1611_v10  ;;  %v7411_v22 = vsub.f32 %v7317_v4, %v1611_v10  ;;  %v7414_v35 = vsub.f32 %v7323_v55, %v1611_v10  ;;  %v7417_v8 = vsub.f32 %v7330_v7, %v1611_v10  ;;  %v1464_v4 = vpop.f32.mrb[75].mxu0 }
 0x493   :  { %v7420_v12 = vsub.f32 %v7336_v19, %v1611_v10  ;;  %v7423_v31 = vsub.f32 %v7345_v49, %v1611_v10  ;;  %v7426_v63 = vsub.f32 %v7351_v51, %v1611_v10  ;;  %v7428_v18 = vsub.f32 %v1571_v0, %v1611_v10 }
 0x494   :  { %v1628_v55 = vmul.f32 %v7384_v25, %v7384_v25  ;;  %v1629_v7 = vmul.f32 %v7387_v50, %v7387_v50  ;;  %v1755_v19 = vmul.f32 %v7254_v34, %v1453_v24  ;;  %v1630_v49 = vmul.f32 %v7390_v57, %v7390_v57 }
 0x495   :  { %v1631_v51 = vmul.f32 %v7393_v23, %v7393_v23  ;;  %v1632_v10 = vmul.f32 %v7396_v30, %v7396_v30  ;;  %v1459_v47 = vadd.f32 %v1458_v40, %v7245_v13  ;;  %v1461_v6 = vadd.f32 %v1460_v54, %v7251_v37 }
 0x496   :  { %v1644_v0 = vadd.f32 %v1629_v7, %v1628_v55  ;;  %v1463_v24 = vadd.f32 %v1462_v60, %v7245_v13  ;;  %v1465_v21 = vadd.f32 %v1464_v4, %v7251_v37  ;;  %v7450_v45 = vadd.f32 %v1773_v62, %v1755_v19 }
 0x497   :  { %v1468_v41 = vpop.f32.mrb[76].mxu0  ;;  %v1756_v39 = vmul.f32 %v7254_v34, %v1459_v47  ;;  %v1586_v32 = vmax.f32 %v1461_v6, 0.0  ;;  %v1633_v19 = vmul.f32 %v7399_v28, %v7399_v28 }
 0x498   :  { %v1469_v15 = vadd.f32 %v1468_v41, %v7245_v13  ;;  %v1470_v16 = vpop.f32.mrb[77].mxu0  ;;  %v1645_v58 = vadd.f32 %v1644_v0, %v1630_v49  ;;  %v1757_v40 = vmul.f32 %v7254_v34, %v1463_v24  ;;  %v1587_v56 = vmax.f32 %v1465_v21, 0.0 }
 0x499   :  { %v1471_v55 = vadd.f32 %v1470_v16, %v7251_v37  ;;  %v1472_v7 = vpop.f32.mrb[78].mxu0  ;;  %v1774_v47 = vmul.f32 %v7266_v48, %v1586_v32 }
 0x49a   :  { %v1758_v54 = vmul.f32 %v7254_v34, %v1469_v15  ;;  %v1474_v60 = vpop.f32.mrb[79].mxu0  ;;  %v1646_v33 = vadd.f32 %v1645_v58, %v1631_v51  ;;  %v1473_v41 = vadd.f32 %v1472_v7, %v7245_v13  ;;  %v1775_v16 = vmul.f32 %v7266_v48, %v1587_v56 }
 0x49b   :  { %v1588_v4 = vmax.f32 %v1471_v55, 0.0  ;;  %v1475_v49 = vadd.f32 %v1474_v60, %v7251_v37  ;;  %v7464_v6 = vadd.f32 %v1774_v47, %v1756_v39  ;;  %v1634_v13 = vmul.f32 %v7402_v27, %v7402_v27 }
 0x49c   :  { %v1647_v0 = vadd.f32 %v1646_v33, %v1632_v10  ;;  %v1759_v21 = vmul.f32 %v7254_v34, %v1473_v41  ;;  %v7466_v58 = vadd.f32 %v1775_v16, %v1757_v40  ;;  %v1635_v10 = vmul.f32 %v7405_v44, %v7405_v44 }
 0x49d   :  { %v1776_v62 = vmul.f32 %v7266_v48, %v1588_v4  ;;  %v1589_v15 = vmax.f32 %v1475_v49, 0.0  ;;  %v1636_v34 = vmul.f32 %v7408_v29, %v7408_v29  ;;  %v1637_v7 = vmul.f32 %v7411_v22, %v7411_v22 }
 0x49e   :  { %v1648_v37 = vadd.f32 %v1647_v0, %v1633_v19  ;;  %v1638_v40 = vmul.f32 %v7414_v35, %v7414_v35  ;;  %v1640_v60 = vmul.f32 %v7420_v12, %v7420_v12  ;;  %v1641_v41 = vmul.f32 %v7423_v31, %v7423_v31 }
 0x49f   :  { %v7470_v51 = vadd.f32 %v1776_v62, %v1758_v54  ;;  %v1777_v24 = vmul.f32 %v7266_v48, %v1589_v15  ;;  %v1639_v48 = vmul.f32 %v7417_v8, %v7417_v8  ;;  %v1642_v19 = vmul.f32 %v7426_v63, %v7426_v63 }
 0x4a0   :  { %v1649_v33 = vadd.f32 %v1648_v37, %v1634_v13  ;;  %v1643_v16 = vmul.f32 %v7428_v18, %v7428_v18 }
 0x4a1   :  { %v7475_v55 = vadd.f32 %v1777_v24, %v1759_v21 }
 0x4a2   :  { %v1650_v39 = vadd.f32 %v1649_v33, %v1635_v10 }
 0x4a4   :  { %v1651_v32 = vadd.f32 %v1650_v39, %v1636_v34  ;;  %v7493_v39 = vstv %s5410_s29 }
 0x4a6   :  { %v1652_v56 = vadd.f32 %v1651_v32, %v1637_v7  ;;  %v7495_v7 = vstv %s5409_s30  ;;  %v7499_v32 = vmul.f32 %v7493_v39, %v7102_v52  ;;  %v7519_v52 = vmul.f32 %v7493_v39, %v7120_v17  ;;  %v7542_v17 = vld [vmem:[%s10799_s4 + $0x2] ss:$0 sm:$0xff] }
 0x4a8   :  { %v1653_v54 = vadd.f32 %v1652_v56, %v1638_v40  ;;  %v7503_v40 = vmul.f32 %v7493_v39, %v7108_v11  ;;  %v7507_v56 = vmul.f32 %v7493_v39, %v7111_v14  ;;  %v7523_v11 = vmul.f32 %v7493_v39, %v7123_v42 }
 0x4a9   :  { %v7527_v14 = vmul.f32 %v7493_v39, %v7152_v43  ;;  %v7546_v42 = vmul.f32 %v7493_v39, %v7187_v36  ;;  %v7550_v43 = vmul.f32 %v7493_v39, %v7190_v5 }
 0x4aa   :  { %v1654_v4 = vadd.f32 %v1653_v54, %v1639_v48  ;;  %v7511_v48 = vmul.f32 %v7493_v39, %v7114_v46  ;;  %v7515_v54 = vmul.f32 %v7493_v39, %v7117_v26  ;;  %v7531_v46 = vmul.f32 %v7493_v39, %v7178_v3 }
 0x4ab   :  { %v7535_v26 = vmul.f32 %v7493_v39, %v7184_v53  ;;  %v7554_v3 = vmul.f32 %v7493_v39, %v7175_v9  ;;  %v7558_v53 = vmul.f32 %v7493_v39, %v7155_v61  ;;  %v7575_v9 = vld [vmem:[%s10800_s5 + $0x2] ss:$0 sm:$0xff] }
 0x4ac   :  { %v1655_v49 = vadd.f32 %v1654_v4, %v1640_v60 }
 0x4ae   :  { %v1656_v47 = vadd.f32 %v1655_v49, %v1641_v41 }
 0x4b0   :  { %v1657_v0 = vadd.f32 %v1656_v47, %v1642_v19 }
 0x4b2   :  { %v1658_v62 = vadd.f32 %v1657_v0, %v1643_v16 }
 0x4b4   :  { %v1659_v21 = vrot.slane %v1658_v62, 4 }
 0x4b6   :  { %v1660_v15 = vadd.f32 %v1659_v21, %v1658_v62 }
 0x4b8   :  { %v1661_v13 = vrot.slane %v1660_v15, 2 }
 0x4ba   :  { %v1662_v37 = vadd.f32 %v1661_v13, %v1660_v15 }
 0x4bc   :  { %v1663_v24 = vrot.slane %v1662_v37, 1 }
 0x4be   :  { %v1664_v10 = vadd.f32 %v1663_v24, %v1662_v37 }
 0x4c0   :  { %v1665_v33 = vmul.f32 0.0078125, %v1664_v10 }
 0x4c2   :  { %v1666_v34 = vadd.f32 1e-05, %v1665_v33 }
 0x4c4   :  { %5926 = vrsqrt.f32 %v1666_v34 }
 0x4ce   :  { %v7537_v60 = vpop.eup %5926 }
 0x4cf   :  { %v7562_v4 = vmul.f32 %v7537_v60, %v7420_v12  ;;  %v1681_v36 = vmul.f32 %v7537_v60, %v7423_v31  ;;  %v7568_v41 = vmul.f32 %v7537_v60, %v7426_v63  ;;  %v1668_v5 = vmul.f32 %v7537_v60, %v7384_v25 }
 0x4d0   :  { %v1669_v61 = vmul.f32 %v7537_v60, %v7387_v50  ;;  %v1670_v12 = vmul.f32 %v7537_v60, %v7390_v57  ;;  %v1671_v31 = vmul.f32 %v7537_v60, %v7393_v23  ;;  %v1672_v63 = vmul.f32 %v7537_v60, %v7396_v30 }
 0x4d1   :  { %v1702_v49 = vmul.f32 %v7542_v17, %v1681_v36  ;;  %v1689_v25 = vmul.f32 %v7542_v17, %v1668_v5  ;;  %v1673_v19 = vmul.f32 %v7537_v60, %v7399_v28  ;;  %v1674_v47 = vmul.f32 %v7537_v60, %v7402_v27 }
 0x4d2   :  { %v1690_v50 = vmul.f32 %v7542_v17, %v1669_v61  ;;  %v1691_v57 = vmul.f32 %v7542_v17, %v1670_v12  ;;  %v1692_v16 = vmul.f32 %v7542_v17, %v1671_v31  ;;  %v1693_v23 = vmul.f32 %v7542_v17, %v1672_v63 }
 0x4d3   :  { %v1723_v30 = vadd.f32 %v7575_v9, %v1702_v49  ;;  %v1710_v0 = vadd.f32 %v7575_v9, %v1689_v25  ;;  %v1694_v62 = vmul.f32 %v7542_v17, %v1673_v19  ;;  %v1695_v21 = vmul.f32 %v7542_v17, %v1674_v47 }
 0x4d4   :  { %v1711_v28 = vadd.f32 %v7575_v9, %v1690_v50  ;;  %v1712_v27 = vadd.f32 %v7575_v9, %v1691_v57  ;;  %v1713_v15 = vadd.f32 %v7575_v9, %v1692_v16  ;;  %v1714_v13 = vadd.f32 %v7575_v9, %v1693_v23 }
 0x4d5   :  { %v1739_v37 = vmax.f32 %v1723_v30, 0.0  ;;  %v1726_v24 = vmax.f32 %v1710_v0, 0.0  ;;  %v1715_v10 = vadd.f32 %v7575_v9, %v1694_v62  ;;  %v1716_v33 = vadd.f32 %v7575_v9, %v1695_v21 }
 0x4d6   :  { %v1727_v34 = vmax.f32 %v1711_v28, 0.0  ;;  %v1728_v36 = vmax.f32 %v1712_v27, 0.0  ;;  %v1729_v5 = vmax.f32 %v1713_v15, 0.0  ;;  %v1730_v61 = vmax.f32 %v1714_v13, 0.0  ;;  %v10886_v27 = vld [vmem:[#allocation48_spill] sm:$0xff] }
 0x4d7   :  { %v1796_v12 = vmul.f32 %v7495_v7, %v1726_v24  ;;  %v1731_v31 = vmax.f32 %v1715_v10, 0.0  ;;  %v1732_v63 = vmax.f32 %v1716_v33, 0.0  ;;  %v1675_v49 = vmul.f32 %v7537_v60, %v7405_v44 }
 0x4d8   :  { %v1797_v25 = vmul.f32 %v7495_v7, %v1727_v34  ;;  %v1798_v19 = vmul.f32 %v7495_v7, %v1728_v36  ;;  %v1799_v47 = vmul.f32 %v7495_v7, %v1729_v5  ;;  %v1800_v50 = vmul.f32 %v7495_v7, %v1730_v61  ;;  %v10888_v61 = vld [vmem:[#allocation49_spill] sm:$0xff] }
 0x4d9   :  { %v1812_v57 = vadd.f32 %v1796_v12, %v7283_v59  ;;  %v1801_v16 = vmul.f32 %v7495_v7, %v1731_v31  ;;  %v1802_v23 = vmul.f32 %v7495_v7, %v1732_v63  ;;  %v1696_v30 = vmul.f32 %v7542_v17, %v1675_v49  ;;  %v10887_v59 = vld [vmem:[#allocation45_spill] sm:$0xff] }
 0x4da   :  { %v1813_v0 = vadd.f32 %v1797_v25, %v7291_v1  ;;  %v1814_v44 = vadd.f32 %v1798_v19, %v7311_v2  ;;  %v1815_v62 = vadd.f32 %v1799_v47, %v7319_v38  ;;  %v1816_v21 = vadd.f32 %v1800_v50, %v7339_v20 }
 0x4db   :  { %v7621_v28 = vadd.f32 %v7499_v32, %v1812_v57  ;;  %v1817_v15 = vadd.f32 %v1801_v16, %v10886_v27  ;;  %v1818_v13 = vadd.f32 %v1802_v23, %v10887_v59  ;;  %v1717_v24 = vadd.f32 %v7575_v9, %v1696_v30 }
 0x4dc   :  { %v7627_v10 = vadd.f32 %v7503_v40, %v1813_v0  ;;  %v7630_v1 = vadd.f32 %v7507_v56, %v1814_v44  ;;  %v7633_v2 = vadd.f32 %v7511_v48, %v1815_v62  ;;  %v7636_v38 = vadd.f32 %v7515_v54, %v1816_v21  ;;  %v10889_v62 = vld [vmem:[#allocation47_spill] sm:$0xff] }
 0x4dd   :  { %v7639_v20 = vadd.f32 %v7519_v52, %v1817_v15  ;;  %v7642_v32 = vadd.f32 %v7523_v11, %v1818_v13  ;;  %v1733_v33 = vmax.f32 %v1717_v24, 0.0  ;;  %v1676_v40 = vmul.f32 %v7537_v60, %v7408_v29  ;;  %v10890_v13 = vld [vmem:[#allocation50_spill] sm:$0xff] }
 0x4de   :  { %v1677_v56 = vmul.f32 %v7537_v60, %v7411_v22  ;;  %v1678_v48 = vmul.f32 %v7537_v60, %v7414_v35  ;;  %v1679_v54 = vmul.f32 %v7537_v60, %v7417_v8  ;;  %v1701_v52 = vmul.f32 %v7542_v17, %v7562_v4 }
 0x4df   :  { %v1803_v34 = vmul.f32 %v7495_v7, %v1733_v33  ;;  %v1697_v11 = vmul.f32 %v7542_v17, %v1676_v40  ;;  %v1809_v36 = vmul.f32 %v7495_v7, %v1739_v37  ;;  %v1703_v29 = vmul.f32 %v7542_v17, %v7568_v41 }
 0x4e0   :  { %v1698_v22 = vmul.f32 %v7542_v17, %v1677_v56  ;;  %v1699_v5 = vmul.f32 %v7542_v17, %v1678_v48  ;;  %v1700_v35 = vmul.f32 %v7542_v17, %v1679_v54  ;;  %v1722_v8 = vadd.f32 %v7575_v9, %v1701_v52  ;;  %v10891_v56 = vld [vmem:[#allocation41_spill] sm:$0xff]  ;;  %v10892_v54 = vld [vmem:[#allocation46_spill] sm:$0xff] }
 0x4e1   :  { %v1819_v12 = vadd.f32 %v1803_v34, %v10888_v61  ;;  %v1718_v4 = vadd.f32 %v7575_v9, %v1697_v11  ;;  %v1825_v31 = vadd.f32 %v1809_v36, %v7466_v58  ;;  %v1724_v63 = vadd.f32 %v7575_v9, %v1703_v29  ;;  %v10894_v29 = vld [vmem:[#allocation40_spill] sm:$0xff] }
 0x4e2   :  { %v1719_v37 = vadd.f32 %v7575_v9, %v1698_v22  ;;  %v1720_v41 = vadd.f32 %v7575_v9, %v1699_v5  ;;  %v1721_v49 = vadd.f32 %v7575_v9, %v1700_v35  ;;  %v1738_v25 = vmax.f32 %v1722_v8, 0.0 }
 0x4e3   :  { %v7671_v19 = vadd.f32 %v7527_v14, %v1819_v12  ;;  %v1734_v47 = vmax.f32 %v1718_v4, 0.0  ;;  %v7674_v50 = vadd.f32 %v7558_v53, %v1825_v31  ;;  %v1740_v57 = vmax.f32 %v1724_v63, 0.0 }
 0x4e4   :  { %v1735_v16 = vmax.f32 %v1719_v37, 0.0  ;;  %v1736_v23 = vmax.f32 %v1720_v41, 0.0  ;;  %v1737_v58 = vmax.f32 %v1721_v49, 0.0  ;;  %v1808_v30 = vmul.f32 %v7495_v7, %v1738_v25 }
 0x4e5   :  { %v1804_v0 = vmul.f32 %v7495_v7, %v1734_v47  ;;  %v1810_v44 = vmul.f32 %v7495_v7, %v1740_v57  ;;  %v1844_v21 = vmul.f32 %v7493_v39, %v10889_v62  ;;  %v1683_v14 = vmul.f32 %v7537_v60, %v7428_v18 }
 0x4e6   :  { %v1805_v27 = vmul.f32 %v7495_v7, %v1735_v16  ;;  %v1806_v53 = vmul.f32 %v7495_v7, %v1736_v23  ;;  %v1807_v15 = vmul.f32 %v7495_v7, %v1737_v58  ;;  %v1824_v59 = vadd.f32 %v1808_v30, %v7464_v6 }
 0x4e7   :  { %v1820_v24 = vadd.f32 %v1804_v0, %v10890_v13  ;;  %v1826_v33 = vadd.f32 %v1810_v44, %v7470_v51  ;;  %v1704_v40 = vmul.f32 %v7542_v17, %v1683_v14 }
 0x4e8   :  { %v1821_v48 = vadd.f32 %v1805_v27, %v10891_v56  ;;  %v1822_v52 = vadd.f32 %v1806_v53, %v10892_v54  ;;  %v1823_v18 = vadd.f32 %v1807_v15, %v7450_v45  ;;  %v7694_v60 = vadd.f32 %v7554_v3, %v1824_v59 }
 0x4e9   :  { %v7697_v34 = vadd.f32 %v7531_v46, %v1820_v24  ;;  %v7699_v11 = vadd.f32 %v1844_v21, %v1826_v33  ;;  %v1725_v6 = vadd.f32 %v7575_v9, %v1704_v40  ;;  %v1845_v46 = vmul.f32 %v7493_v39, %v10894_v29 }
 0x4ea   :  { %v7703_v51 = vadd.f32 %v7535_v26, %v1821_v48  ;;  %v7706_v17 = vadd.f32 %v7546_v42, %v1822_v52  ;;  %v7709_v36 = vadd.f32 %v7550_v43, %v1823_v18 }
 0x4eb   :  { %10893 = vst [vmem:[#allocation48_spill] sm:$0xff] %v7699_v11  ;;  %v1741_v45 = vmax.f32 %v1725_v6, 0.0 }
 0x4ed   :  { %v1811_v3 = vmul.f32 %v7495_v7, %v1741_v45 }
 0x4ef   :  { %v1827_v22 = vadd.f32 %v1811_v3, %v7475_v55 }
 0x4f1   :  { %v7715_v5 = vadd.f32 %v1845_v46, %v1827_v22 }
 0x4f3   :  { %10895 = vst [vmem:[#allocation45_spill] sm:$0xff] %v7715_v5 }
 0x4f4   :  { %6006 = dma.done.wait [#allocation3 + $0x1], 3072 }
 0x4f5   :  { %6007 = vsyncadd [#allocation3 + $0x1], 4294964224  ;;  %v7719_v26 = vpack.c.bf16 %v7627_v10, %v7621_v28  ;;  %v10896_v42 = vmov 0   ;;  %1880 = sst [smem:[#allocation19]] %s6025_s18  ;;  %s1864_s14 = scalar_lea.hbm %s10797_s2, 12288  ;;  %v1900_v44 = vpack.c.bf16 %v7633_v2, %v7630_v1  ;;  %v1901_v21 = vpack.c.bf16 %v7639_v20, %v7636_v38 }
 0x4f6   :  { %1981 = vmatprep.mubr.bf16.mxu1 %v10896_v42  ;;  %1882 = sst [smem:[#allocation19 + $0x1]] %s6025_s18  ;;  %s6039_s15 = smov [#allocation18]   ;;  %v1902_v14 = vpack.c.bf16 %v7671_v19, %v7642_v32  ;;  %v1903_v27 = vpack.c.bf16 %v7703_v51, %v7697_v34  ;;  %v1904_v53 = vpack.c.bf16 %v7709_v36, %v7706_v17  ;;  %v1905_v15 = vpack.c.bf16 %v7674_v50, %v7694_v60 }
 0x4f7   :  { %5721 = vmatprep.mubr.bf16.mxu0 %v7719_v26  ;;  %1884 = sst [smem:[#allocation19 + $0x2]] %s6026_s19  ;;  %v1906_v59 = vpack.c.bf16 %v7715_v5, %v7699_v11 }
 0x4f8   :  { %1886 = sst [smem:[#allocation19 + $0x3]] %s6027_s1 }
 0x4f9   :  { %1888 = sst [smem:[#allocation19 + $0x4]] %s6021_s26 }
 0x4fa   :  { %1890 = sst [smem:[#allocation19 + $0x5]] %s6028_s22 }
 0x4fb   :  { %1892 = sst [smem:[#allocation19 + $0x6]] %s6029_s23 }
 0x4fc   :  { %1894 = sst [smem:[#allocation19 + $0x7]] %s6027_s1 }
 0x4fd   :  { %1896 = sst [smem:[#allocation19 + $0x8]] %s6030_s24 }
 0x4fe   :  { %1898 = dma.general %s1864_s14, 3072, %s6101_s17, %s6031_s25, %s6039_s15, [#allocation19], %s6108_s21, 0  }
 0x4ff   :  { %v1909_v55 = vld [vmem:[#allocation2 + $0xd0] sm:$0xff]  ;;  %v1912_v39 = vld [vmem:[#allocation2 + $0xe8] sm:$0xff]  ;;  %v1907_v43 = vld [vmem:[#allocation2 + $0xc0] sm:$0xff]  ;;  %s5416_s16 = sld [smem:[#allocation4 + $0x180]]  ;;  %s5417_s29 = sld [smem:[#allocation4 + $0x181]] }
 0x500   :  { %5705 = vmatprep.subr.bf16.mxu0 %v1909_v55  ;;  %v1908_v7 = vld [vmem:[#allocation2 + $0xc8] sm:$0xff]  ;;  %v1911_v9 = vld [vmem:[#allocation2 + $0xe0] sm:$0xff]  ;;  %v1910_v8 = vld [vmem:[#allocation2 + $0xd8] sm:$0xff]  ;;  %s5419_s30 = sld [smem:[#allocation4 + $0x183]]  ;;  %s5418_s0 = sld [smem:[#allocation4 + $0x182]] }
 0x501   :  { %5706 = vmatpush3.bf16.msra.mxu0 %v1909_v55  ;;  %1949 = vmatprep.subr.bf16.mxu1 %v1908_v7  ;;  %v1915_v35 = vld [vmem:[#allocation2 + $0x100] sm:$0xff]  ;;  %v1914_v61 = vld [vmem:[#allocation2 + $0xf8] sm:$0xff]  ;;  %v1913_v4 = vld [vmem:[#allocation2 + $0xf0] sm:$0xff] }
 0x502   :  { %5707 = vmatprep.subr.bf16.mxu0 %v1912_v39  ;;  %1950 = vmatpush1.bf16.msra.mxu1 %v1907_v43  ;;  %v1918_v12 = vld [vmem:[#allocation2 + $0x118] sm:$0xff]  ;;  %v1917_v31 = vld [vmem:[#allocation2 + $0x110] sm:$0xff]  ;;  %v1916_v37 = vld [vmem:[#allocation2 + $0x108] sm:$0xff] }
 0x503   :  { %1951 = vmatprep.subr.bf16.mxu1 %v1911_v9  ;;  %v1921_v63 = vld [vmem:[#allocation2 + $0x130] sm:$0xff]  ;;  %v1920_v41 = vld [vmem:[#allocation2 + $0x128] sm:$0xff]  ;;  %v1919_v25 = vld [vmem:[#allocation2 + $0x120] sm:$0xff] }
 0x504   :  { %v1924_v49 = vld [vmem:[#allocation2 + $0x148] sm:$0xff]  ;;  %v1923_v47 = vld [vmem:[#allocation2 + $0x140] sm:$0xff]  ;;  %v1922_v16 = vld [vmem:[#allocation2 + $0x138] sm:$0xff] }
 0x505   :  { %5708 = vmatpush3.bf16.msra.mxu0 %v1912_v39  ;;  %v1927_v57 = vld [vmem:[#allocation2 + $0x160] sm:$0xff]  ;;  %v1926_v23 = vld [vmem:[#allocation2 + $0x158] sm:$0xff]  ;;  %v1925_v30 = vld [vmem:[#allocation2 + $0x150] sm:$0xff]  ;;  %v7773_v46 = vstv %s5416_s16  ;;  %v7785_v9 = vstv %s5417_s29 }
 0x506   :  { %5709 = vmatprep.subr.bf16.mxu0 %v1915_v35  ;;  %1952 = vmatpush1.bf16.msra.mxu1 %v1910_v8  ;;  %v1930_v58 = vld [vmem:[#allocation2 + $0x178] sm:$0xff]  ;;  %v1929_v0 = vld [vmem:[#allocation2 + $0x170] sm:$0xff]  ;;  %v1928_v62 = vld [vmem:[#allocation2 + $0x168] sm:$0xff] }
 0x507   :  { %1953 = vmatprep.subr.bf16.mxu1 %v1914_v61  ;;  %v5413_v13 = vld [vmem:[%s10798_s3 + $0x3] ss:$8 sm:$0x7]  ;;  %v10898_v40 = vld [vmem:[#allocation43_spill] sm:$0xff] }
 0x508   :  { %v10897_v24 = vld [vmem:[#allocation42_spill] sm:$0xff]  ;;  %v7767_v56 = vrot.slane %v5413_v13, %v10898_v40  ;;  %v10899_v54 = vld [vmem:[#allocation44_spill] sm:$0xff] }
 0x509   :  { %5710 = vmatpush3.bf16.msra.mxu0 %v1915_v35  ;;  %v7764_v33 = vrot.slane %v5413_v13, %v10897_v24  ;;  %v7770_v52 = vrot.slane %v5413_v13, %v10899_v54 }
 0x50a   :  { %5711 = vmatprep.subr.bf16.mxu0 %v1918_v12  ;;  %1954 = vmatpush1.bf16.msra.mxu1 %v1913_v4 }
 0x50b   :  { %1955 = vmatprep.subr.bf16.mxu1 %v1917_v31 }
 0x50d   :  { %5712 = vmatpush3.bf16.msra.mxu0 %v1918_v12 }
 0x50e   :  { %5713 = vmatprep.subr.bf16.mxu0 %v1921_v63  ;;  %1956 = vmatpush1.bf16.msra.mxu1 %v1916_v37 }
 0x50f   :  { %1957 = vmatprep.subr.bf16.mxu1 %v1920_v41 }
 0x511   :  { %5714 = vmatpush3.bf16.msra.mxu0 %v1921_v63 }
 0x512   :  { %5715 = vmatprep.subr.bf16.mxu0 %v1924_v49  ;;  %1958 = vmatpush1.bf16.msra.mxu1 %v1919_v25 }
 0x513   :  { %1959 = vmatprep.subr.bf16.mxu1 %v1923_v47 }
 0x515   :  { %5716 = vmatpush3.bf16.msra.mxu0 %v1924_v49 }
 0x516   :  { %5717 = vmatprep.subr.bf16.mxu0 %v1927_v57  ;;  %1960 = vmatpush1.bf16.msra.mxu1 %v1922_v16 }
 0x517   :  { %1961 = vmatprep.subr.bf16.mxu1 %v1926_v23 }
 0x519   :  { %5718 = vmatpush3.bf16.msra.mxu0 %v1927_v57 }
 0x51a   :  { %5719 = vmatprep.subr.bf16.mxu0 %v1930_v58  ;;  %1962 = vmatpush1.bf16.msra.mxu1 %v1925_v30 }
 0x51b   :  { %1963 = vmatprep.subr.bf16.mxu1 %v1929_v0 }
 0x51d   :  { %5720 = vmatpush3.bf16.msra.mxu0 %v1930_v58 }
 0x51e   :  { %1964 = vmatpush1.bf16.msra.mxu1 %v1928_v62 }
 0x520   :  { %5722 = vmatmul.mubr.bf16.vlgmr.msra.gmra.mrb[80].mxu0 %v1900_v44 }
 0x521   :  { %5725 = vmatprep.mubr.bf16.mxu0 %v1901_v21  ;;  %1982 = vmatmul.mubr.bf16.vlgmr.msra.gmra.mrb[64].mxu1 %v7719_v26 }
 0x522   :  { %1991 = vmatprep.mubr.bf16.mxu1 %v10896_v42 }
 0x528   :  { %5726 = vmatmul.mubr.bf16.gmra.mrb[84].mxu0 %v1902_v14 }
 0x529   :  { %5729 = vmatprep.mubr.bf16.mxu0 %v1903_v27  ;;  %1992 = vmatmul.mubr.bf16.gmra.mrb[68].mxu1 %v1900_v44 }
 0x52a   :  { %2001 = vmatprep.mubr.bf16.mxu1 %v10896_v42 }
 0x530   :  { %5730 = vmatmul.mubr.bf16.gmra.mrb[88].mxu0 %v1904_v53 }
 0x531   :  { %5733 = vmatprep.mubr.bf16.mxu0 %v1905_v15  ;;  %2002 = vmatmul.mubr.bf16.gmra.mrb[72].mxu1 %v1901_v21 }
 0x532   :  { %2011 = vmatprep.mubr.bf16.mxu1 %v10896_v42 }
 0x538   :  { %5734 = vmatmul.mubr.bf16.gmra.mrb[92].mxu0 %v1906_v59 }
 0x539   :  { %2012 = vmatmul.mubr.bf16.gmra.mrb[76].mxu1 %v1902_v14 }
 0x53a   :  { %2021 = vmatprep.mubr.bf16.mxu1 %v10896_v42 }
 0x541   :  { %2022 = vmatmul.mubr.bf16.gmra.mrb[80].mxu1 %v1903_v27 }
 0x542   :  { %2031 = vmatprep.mubr.bf16.mxu1 %v10896_v42 }
 0x549   :  { %2032 = vmatmul.mubr.bf16.gmra.mrb[84].mxu1 %v1904_v53 }
 0x54a   :  { %2041 = vmatprep.mubr.bf16.mxu1 %v10896_v42 }
 0x551   :  { %2042 = vmatmul.mubr.bf16.gmra.mrb[88].mxu1 %v1905_v15 }
 0x552   :  { %2051 = vmatprep.mubr.bf16.mxu1 %v10896_v42 }
 0x559   :  { %2052 = vmatmul.mubr.bf16.gmra.mrb[92].mxu1 %v1906_v59 }
 0x5f3   :  { %v5723_v48 = vpop.f32.mrb[80].mxu0 }
 0x5f4   :  { %v2096_v18 = vpop.f32.mrb[81].mxu0  ;;  %v1983_v45 = vpop.f32.mrb[64].mxu1  ;;  %v7783_v43 = vadd.f32 %v5723_v48, %v7767_v56 }
 0x5f5   :  { %v5724_v6 = vpop.f32.mrb[82].mxu0  ;;  %v1984_v29 = vadd.f32 %v1983_v45, %v7764_v33  ;;  %v1985_v22 = vpop.f32.mrb[65].mxu1  ;;  %v7776_v26 = vadd.f32 %v2096_v18, %v7767_v56 }
 0x5f6   :  { %v2099_v3 = vpop.f32.mrb[83].mxu0  ;;  %v1986_v39 = vadd.f32 %v1985_v22, %v7770_v52  ;;  %v1987_v7 = vpop.f32.mrb[66].mxu1  ;;  %v7793_v63 = vadd.f32 %v5724_v6, %v7767_v56 }
 0x5f7   :  { %v7779_v55 = vadd.f32 %v2099_v3, %v7767_v56  ;;  %v1988_v35 = vadd.f32 %v1987_v7, %v7764_v33  ;;  %v1989_v8 = vpop.f32.mrb[67].mxu1  ;;  %v2329_v12 = vmul.f32 %v7773_v46, %v1984_v29 }
 0x5f8   :  { %v2159_v4 = vmax.f32 %v1986_v39, 0.0  ;;  %v1990_v31 = vadd.f32 %v1989_v8, %v7770_v52 }
 0x5f9   :  { %v2175_v61 = vadd.f32 %v7779_v55, %v7776_v26  ;;  %v2330_v25 = vmul.f32 %v7773_v46, %v1988_v35 }
 0x5fa   :  { %v2347_v49 = vmul.f32 %v7785_v9, %v2159_v4  ;;  %v2160_v47 = vmax.f32 %v1990_v31, 0.0 }
 0x5fb   :  { %v2176_v37 = vadd.f32 %v2175_v61, %v7783_v43  ;;  %v5727_v41 = vpop.f32.mrb[84].mxu0 }
 0x5fc   :  { %v2112_v57 = vpop.f32.mrb[85].mxu0  ;;  %v7802_v30 = vadd.f32 %v2347_v49, %v2329_v12  ;;  %v2348_v0 = vmul.f32 %v7785_v9, %v2160_v47  ;;  %v1993_v44 = vpop.f32.mrb[68].mxu1  ;;  %v7814_v48 = vadd.f32 %v5727_v41, %v7767_v56 }
 0x5fd   :  { %v7799_v16 = vadd.f32 %v2112_v57, %v7767_v56  ;;  %v2177_v23 = vadd.f32 %v2176_v37, %v7793_v63  ;;  %v5728_v58 = vpop.f32.mrb[86].mxu0  ;;  %v1994_v21 = vadd.f32 %v1993_v44, %v7764_v33  ;;  %v1995_v14 = vpop.f32.mrb[69].mxu1 }
 0x5fe   :  { %v2115_v62 = vpop.f32.mrb[87].mxu0  ;;  %v7810_v15 = vadd.f32 %v2348_v0, %v2330_v25  ;;  %v1996_v59 = vadd.f32 %v1995_v14, %v7770_v52  ;;  %v1997_v13 = vpop.f32.mrb[70].mxu1  ;;  %v7821_v39 = vadd.f32 %v5728_v58, %v7767_v56 }
 0x5ff   :  { %v2178_v27 = vadd.f32 %v2177_v23, %v7799_v16  ;;  %v7808_v53 = vadd.f32 %v2115_v62, %v7767_v56  ;;  %v1998_v18 = vadd.f32 %v1997_v13, %v7764_v33  ;;  %v1999_v6 = vpop.f32.mrb[71].mxu1  ;;  %v2331_v3 = vmul.f32 %v7773_v46, %v1994_v21 }
 0x600   :  { %v2161_v29 = vmax.f32 %v1996_v59, 0.0  ;;  %v2000_v22 = vadd.f32 %v1999_v6, %v7770_v52 }
 0x601   :  { %v2179_v45 = vadd.f32 %v2178_v27, %v7808_v53  ;;  %v2332_v61 = vmul.f32 %v7773_v46, %v1998_v18 }
 0x602   :  { %v2349_v8 = vmul.f32 %v7785_v9, %v2161_v29  ;;  %v2162_v12 = vmax.f32 %v2000_v22, 0.0 }
 0x603   :  { %v2180_v7 = vadd.f32 %v2179_v45, %v7814_v48  ;;  %v5731_v35 = vpop.f32.mrb[88].mxu0 }
 0x604   :  { %v2128_v4 = vpop.f32.mrb[89].mxu0  ;;  %v7830_v49 = vadd.f32 %v2349_v8, %v2331_v3  ;;  %v2350_v25 = vmul.f32 %v7785_v9, %v2162_v12  ;;  %v2003_v47 = vpop.f32.mrb[72].mxu1  ;;  %v7842_v27 = vadd.f32 %v5731_v35, %v7767_v56 }
 0x605   :  { %v7827_v31 = vadd.f32 %v2128_v4, %v7767_v56  ;;  %v2181_v37 = vadd.f32 %v2180_v7, %v7821_v39  ;;  %v5732_v41 = vpop.f32.mrb[90].mxu0  ;;  %v2004_v23 = vadd.f32 %v2003_v47, %v7764_v33  ;;  %v2005_v58 = vpop.f32.mrb[73].mxu1 }
 0x606   :  { %v2131_v57 = vpop.f32.mrb[91].mxu0  ;;  %v7838_v62 = vadd.f32 %v2350_v25, %v2332_v61  ;;  %v2006_v21 = vadd.f32 %v2005_v58, %v7770_v52  ;;  %v2007_v14 = vpop.f32.mrb[74].mxu1  ;;  %v7849_v29 = vadd.f32 %v5732_v41, %v7767_v56 }
 0x607   :  { %v2182_v0 = vadd.f32 %v2181_v37, %v7827_v31  ;;  %v7836_v44 = vadd.f32 %v2131_v57, %v7767_v56  ;;  %v2008_v59 = vadd.f32 %v2007_v14, %v7764_v33  ;;  %v2009_v13 = vpop.f32.mrb[75].mxu1  ;;  %v2333_v6 = vmul.f32 %v7773_v46, %v2004_v23 }
 0x608   :  { %v2163_v45 = vmax.f32 %v2006_v21, 0.0  ;;  %v2010_v3 = vadd.f32 %v2009_v13, %v7770_v52 }
 0x609   :  { %v2183_v18 = vadd.f32 %v2182_v0, %v7836_v44  ;;  %v2334_v35 = vmul.f32 %v7773_v46, %v2008_v59 }
 0x60a   :  { %v2351_v8 = vmul.f32 %v7785_v9, %v2163_v45  ;;  %v2164_v61 = vmax.f32 %v2010_v3, 0.0 }
 0x60b   :  { %v2184_v22 = vadd.f32 %v2183_v18, %v7842_v27  ;;  %v5735_v7 = vpop.f32.mrb[92].mxu0 }
 0x60c   :  { %v2144_v12 = vpop.f32.mrb[93].mxu0  ;;  %v7858_v47 = vadd.f32 %v2351_v8, %v2333_v6  ;;  %v2352_v41 = vmul.f32 %v7785_v9, %v2164_v61  ;;  %v2013_v57 = vpop.f32.mrb[76].mxu1  ;;  %v7870_v6 = vadd.f32 %v5735_v7, %v7767_v56 }
 0x60d   :  { %v7855_v4 = vadd.f32 %v2144_v12, %v7767_v56  ;;  %v2185_v37 = vadd.f32 %v2184_v22, %v7849_v29  ;;  %v5736_v25 = vpop.f32.mrb[94].mxu0  ;;  %v2014_v58 = vadd.f32 %v2013_v57, %v7764_v33  ;;  %v2015_v0 = vpop.f32.mrb[77].mxu1 }
 0x60e   :  { %v2147_v23 = vpop.f32.mrb[95].mxu0  ;;  %v7866_v59 = vadd.f32 %v2352_v41, %v2334_v35  ;;  %v2016_v13 = vadd.f32 %v2015_v0, %v7770_v52  ;;  %v2017_v18 = vpop.f32.mrb[78].mxu1 }
 0x60f   :  { %v2186_v21 = vadd.f32 %v2185_v37, %v7855_v4  ;;  %v7864_v14 = vadd.f32 %v2147_v23, %v7767_v56  ;;  %v2018_v45 = vadd.f32 %v2017_v18, %v7764_v33  ;;  %v2019_v3 = vpop.f32.mrb[79].mxu1  ;;  %v2335_v8 = vmul.f32 %v7773_v46, %v2014_v58 }
 0x610   :  { %10900 = vst [vmem:[#allocation49_spill] sm:$0xff] %v7866_v59  ;;  %v2165_v61 = vmax.f32 %v2016_v13, 0.0  ;;  %v2020_v12 = vadd.f32 %v2019_v3, %v7770_v52  ;;  %v2156_v37 = vadd.f32 %v5736_v25, %v7767_v56 }
 0x611   :  { %v2187_v22 = vadd.f32 %v2186_v21, %v7864_v14  ;;  %v2336_v57 = vmul.f32 %v7773_v46, %v2018_v45 }
 0x612   :  { %v2353_v41 = vmul.f32 %v7785_v9, %v2165_v61  ;;  %v2166_v7 = vmax.f32 %v2020_v12, 0.0 }
 0x613   :  { %v2188_v35 = vadd.f32 %v2187_v22, %v7870_v6 }
 0x614   :  { %v7880_v0 = vadd.f32 %v2353_v41, %v2335_v8  ;;  %v2354_v18 = vmul.f32 %v7785_v9, %v2166_v7  ;;  %v2023_v21 = vpop.f32.mrb[80].mxu1 }
 0x615   :  { %v2189_v23 = vadd.f32 %v2188_v35, %v2156_v37  ;;  %v2024_v58 = vadd.f32 %v2023_v21, %v7764_v33  ;;  %v2025_v13 = vpop.f32.mrb[81].mxu1 }
 0x616   :  { %10901 = vst [vmem:[#allocation47_spill] sm:$0xff] %v7880_v0  ;;  %v7884_v3 = vadd.f32 %v2354_v18, %v2336_v57  ;;  %v2026_v56 = vadd.f32 %v2025_v13, %v7770_v52  ;;  %v2027_v25 = vpop.f32.mrb[82].mxu1 }
 0x617   :  { %v2190_v54 = vrot.slane %v2189_v23, 4  ;;  %v2028_v22 = vadd.f32 %v2027_v25, %v7764_v33  ;;  %v2029_v61 = vpop.f32.mrb[83].mxu1  ;;  %v2337_v12 = vmul.f32 %v7773_v46, %v2024_v58 }
 0x618   :  { %10902 = vst [vmem:[#allocation50_spill] sm:$0xff] %v7884_v3  ;;  %v2167_v8 = vmax.f32 %v2026_v56, 0.0  ;;  %v2030_v35 = vadd.f32 %v2029_v61, %v7770_v52 }
 0x619   :  { %v2191_v45 = vadd.f32 %v2190_v54, %v2189_v23  ;;  %v2338_v21 = vmul.f32 %v7773_v46, %v2028_v22 }
 0x61a   :  { %v2355_v7 = vmul.f32 %v7785_v9, %v2167_v8  ;;  %v2168_v40 = vmax.f32 %v2030_v35, 0.0 }
 0x61b   :  { %v2192_v41 = vrot.slane %v2191_v45, 2 }
 0x61c   :  { %v7892_v18 = vadd.f32 %v2355_v7, %v2337_v12  ;;  %v2356_v13 = vmul.f32 %v7785_v9, %v2168_v40  ;;  %v2033_v24 = vpop.f32.mrb[84].mxu1 }
 0x61d   :  { %v2193_v57 = vadd.f32 %v2192_v41, %v2191_v45  ;;  %v2035_v25 = vpop.f32.mrb[85].mxu1  ;;  %v2034_v58 = vadd.f32 %v2033_v24, %v7764_v33 }
 0x61e   :  { %10903 = vst [vmem:[#allocation41_spill] sm:$0xff] %v7892_v18  ;;  %v7895_v54 = vadd.f32 %v2356_v13, %v2338_v21  ;;  %v2037_v23 = vpop.f32.mrb[86].mxu1  ;;  %v2036_v56 = vadd.f32 %v2035_v25, %v7770_v52 }
 0x61f   :  { %v2194_v42 = vrot.slane %v2193_v57, 1  ;;  %v2039_v61 = vpop.f32.mrb[87].mxu1  ;;  %v2339_v22 = vmul.f32 %v7773_v46, %v2034_v58  ;;  %v2038_v12 = vadd.f32 %v2037_v23, %v7764_v33 }
 0x620   :  { %10904 = vst [vmem:[#allocation46_spill] sm:$0xff] %v7895_v54  ;;  %v2169_v45 = vmax.f32 %v2036_v56, 0.0  ;;  %v2040_v40 = vadd.f32 %v2039_v61, %v7770_v52 }
 0x621   :  { %v2195_v8 = vadd.f32 %v2194_v42, %v2193_v57 }
 0x622   :  { %v2357_v58 = vmul.f32 %v7785_v9, %v2169_v45  ;;  %v2170_v56 = vmax.f32 %v2040_v40, 0.0 }
 0x623   :  { %v2196_v5 = vmul.f32 0.0078125, %v2195_v8 }
 0x624   :  { %v2043_v42 = vpop.f32.mrb[88].mxu1  ;;  %v7961_v61 = vadd.f32 %v2357_v58, %v2339_v22  ;;  %v2358_v8 = vmul.f32 %v7785_v9, %v2170_v56 }
 0x625   :  { %v7903_v35 = vsub.f32 %v7776_v26, %v2196_v5  ;;  %v7906_v41 = vsub.f32 %v7779_v55, %v2196_v5  ;;  %v7909_v24 = vsub.f32 %v7783_v43, %v2196_v5  ;;  %v7912_v7 = vsub.f32 %v7793_v63, %v2196_v5  ;;  %v2045_v55 = vpop.f32.mrb[89].mxu1 }
 0x626   :  { %v7915_v21 = vsub.f32 %v7799_v16, %v2196_v5  ;;  %v7918_v57 = vsub.f32 %v7808_v53, %v2196_v5  ;;  %v7921_v13 = vsub.f32 %v7814_v48, %v2196_v5  ;;  %v7924_v26 = vsub.f32 %v7821_v39, %v2196_v5  ;;  %v2047_v53 = vpop.f32.mrb[90].mxu1  ;;  %10905 = vst [vmem:[#allocation40_spill] sm:$0xff] %v7961_v61 }
 0x627   :  { %v7927_v43 = vsub.f32 %v7827_v31, %v2196_v5  ;;  %v7930_v63 = vsub.f32 %v7836_v44, %v2196_v5  ;;  %v7933_v25 = vsub.f32 %v7842_v27, %v2196_v5  ;;  %v7936_v16 = vsub.f32 %v7849_v29, %v2196_v5  ;;  %v2049_v44 = vpop.f32.mrb[91].mxu1 }
 0x628   :  { %v7939_v48 = vsub.f32 %v7855_v4, %v2196_v5  ;;  %v7942_v39 = vsub.f32 %v7864_v14, %v2196_v5  ;;  %v7945_v23 = vsub.f32 %v7870_v6, %v2196_v5  ;;  %v7947_v31 = vsub.f32 %v2156_v37, %v2196_v5 }
 0x629   :  { %v2213_v27 = vmul.f32 %v7903_v35, %v7903_v35  ;;  %v2214_v29 = vmul.f32 %v7906_v41, %v7906_v41  ;;  %v2340_v4 = vmul.f32 %v7773_v46, %v2038_v12  ;;  %v2215_v14 = vmul.f32 %v7909_v24, %v7909_v24 }
 0x62a   :  { %v2216_v6 = vmul.f32 %v7912_v7, %v7912_v7  ;;  %v2217_v5 = vmul.f32 %v7915_v21, %v7915_v21  ;;  %v2044_v54 = vadd.f32 %v2043_v42, %v7764_v33  ;;  %v2046_v40 = vadd.f32 %v2045_v55, %v7770_v52 }
 0x62b   :  { %v2229_v37 = vadd.f32 %v2214_v29, %v2213_v27  ;;  %v2048_v12 = vadd.f32 %v2047_v53, %v7764_v33  ;;  %v2050_v18 = vadd.f32 %v2049_v44, %v7770_v52  ;;  %v7969_v59 = vadd.f32 %v2358_v8, %v2340_v4 }
 0x62c   :  { %v2053_v45 = vpop.f32.mrb[92].mxu1  ;;  %v2341_v22 = vmul.f32 %v7773_v46, %v2044_v54  ;;  %v2171_v58 = vmax.f32 %v2046_v40, 0.0  ;;  %v2218_v4 = vmul.f32 %v7918_v57, %v7918_v57 }
 0x62d   :  { %v2054_v11 = vadd.f32 %v2053_v45, %v7764_v33  ;;  %v2055_v3 = vpop.f32.mrb[93].mxu1  ;;  %v2230_v0 = vadd.f32 %v2229_v37, %v2215_v14  ;;  %v2342_v42 = vmul.f32 %v7773_v46, %v2048_v12  ;;  %v2172_v56 = vmax.f32 %v2050_v18, 0.0 }
 0x62e   :  { %v2056_v27 = vadd.f32 %v2055_v3, %v7770_v52  ;;  %v2057_v29 = vpop.f32.mrb[94].mxu1  ;;  %v2359_v54 = vmul.f32 %v7785_v9, %v2171_v58 }
 0x62f   :  { %v2343_v55 = vmul.f32 %v7773_v46, %v2054_v11  ;;  %v2059_v53 = vpop.f32.mrb[95].mxu1  ;;  %v2231_v61 = vadd.f32 %v2230_v0, %v2216_v6  ;;  %v2058_v45 = vadd.f32 %v2057_v29, %v7764_v33  ;;  %v2360_v3 = vmul.f32 %v7785_v9, %v2172_v56 }
 0x630   :  { %v2173_v44 = vmax.f32 %v2056_v27, 0.0  ;;  %v2060_v14 = vadd.f32 %v2059_v53, %v7770_v52  ;;  %v7983_v40 = vadd.f32 %v2359_v54, %v2341_v22  ;;  %v2219_v33 = vmul.f32 %v7921_v13, %v7921_v13 }
 0x631   :  { %v2232_v37 = vadd.f32 %v2231_v61, %v2217_v5  ;;  %v2344_v18 = vmul.f32 %v7773_v46, %v2058_v45  ;;  %v7985_v0 = vadd.f32 %v2360_v3, %v2342_v42  ;;  %v2220_v5 = vmul.f32 %v7924_v26, %v7924_v26 }
 0x632   :  { %v2361_v8 = vmul.f32 %v7785_v9, %v2173_v44  ;;  %v2174_v11 = vmax.f32 %v2060_v14, 0.0  ;;  %v2221_v46 = vmul.f32 %v7927_v43, %v7927_v43  ;;  %v2222_v29 = vmul.f32 %v7930_v63, %v7930_v63 }
 0x633   :  { %v2233_v52 = vadd.f32 %v2232_v37, %v2218_v4  ;;  %v2223_v42 = vmul.f32 %v7933_v25, %v7933_v25  ;;  %v2225_v53 = vmul.f32 %v7939_v48, %v7939_v48  ;;  %v2226_v45 = vmul.f32 %v7942_v39, %v7942_v39 }
 0x634   :  { %v7989_v6 = vadd.f32 %v2361_v8, %v2343_v55  ;;  %v2362_v12 = vmul.f32 %v7785_v9, %v2174_v11  ;;  %v2224_v9 = vmul.f32 %v7936_v16, %v7936_v16  ;;  %v2227_v4 = vmul.f32 %v7945_v23, %v7945_v23 }
 0x635   :  { %v2234_v61 = vadd.f32 %v2233_v52, %v2219_v33  ;;  %v2228_v3 = vmul.f32 %v7947_v31, %v7947_v31 }
 0x636   :  { %v7994_v27 = vadd.f32 %v2362_v12, %v2344_v18 }
 0x637   :  { %v2235_v22 = vadd.f32 %v2234_v61, %v2220_v5 }
 0x639   :  { %v2236_v58 = vadd.f32 %v2235_v22, %v2221_v46  ;;  %v8012_v22 = vstv %s5419_s30 }
 0x63b   :  { %v2237_v56 = vadd.f32 %v2236_v58, %v2222_v29  ;;  %v8014_v29 = vstv %s5418_s0  ;;  %v8018_v58 = vmul.f32 %v8012_v22, %v7621_v28  ;;  %v8038_v28 = vmul.f32 %v8012_v22, %v7639_v20  ;;  %v8061_v20 = vld [vmem:[%s10799_s4 + $0x3] ss:$0 sm:$0xff] }
 0x63d   :  { %v2238_v55 = vadd.f32 %v2237_v56, %v2223_v42  ;;  %v8022_v42 = vmul.f32 %v8012_v22, %v7627_v10  ;;  %v8026_v56 = vmul.f32 %v8012_v22, %v7630_v1  ;;  %v8042_v10 = vmul.f32 %v8012_v22, %v7642_v32 }
 0x63e   :  { %v8046_v1 = vmul.f32 %v8012_v22, %v7671_v19  ;;  %v8065_v32 = vmul.f32 %v8012_v22, %v7706_v17  ;;  %v8069_v19 = vmul.f32 %v8012_v22, %v7709_v36 }
 0x63f   :  { %v2239_v44 = vadd.f32 %v2238_v55, %v2224_v9  ;;  %v8030_v9 = vmul.f32 %v8012_v22, %v7633_v2  ;;  %v8034_v55 = vmul.f32 %v8012_v22, %v7636_v38  ;;  %v8050_v2 = vmul.f32 %v8012_v22, %v7697_v34 }
 0x640   :  { %v8054_v38 = vmul.f32 %v8012_v22, %v7703_v51  ;;  %v8073_v34 = vmul.f32 %v8012_v22, %v7694_v60  ;;  %v8077_v51 = vmul.f32 %v8012_v22, %v7674_v50  ;;  %v8094_v60 = vld [vmem:[%s10800_s5 + $0x3] ss:$0 sm:$0xff] }
 0x641   :  { %v2240_v14 = vadd.f32 %v2239_v44, %v2225_v53 }
 0x643   :  { %v2241_v54 = vadd.f32 %v2240_v14, %v2226_v45 }
 0x645   :  { %v2242_v37 = vadd.f32 %v2241_v54, %v2227_v4 }
 0x647   :  { %v2243_v8 = vadd.f32 %v2242_v37, %v2228_v3 }
 0x649   :  { %v2244_v18 = vrot.slane %v2243_v8, 4 }
 0x64b   :  { %v2245_v11 = vadd.f32 %v2244_v18, %v2243_v8 }
 0x64d   :  { %v2246_v33 = vrot.slane %v2245_v11, 2 }
 0x64f   :  { %v2247_v52 = vadd.f32 %v2246_v33, %v2245_v11 }
 0x651   :  { %v2248_v12 = vrot.slane %v2247_v52, 1 }
 0x653   :  { %v2249_v5 = vadd.f32 %v2248_v12, %v2247_v52 }
 0x655   :  { %v2250_v61 = vmul.f32 0.0078125, %v2249_v5 }
 0x657   :  { %v2251_v46 = vadd.f32 1e-05, %v2250_v61 }
 0x659   :  { %5928 = vrsqrt.f32 %v2251_v46 }
 0x663   :  { %v8056_v53 = vpop.eup %5928 }
 0x664   :  { %v8081_v44 = vmul.f32 %v8056_v53, %v7939_v48  ;;  %v2266_v17 = vmul.f32 %v8056_v53, %v7942_v39  ;;  %v8087_v45 = vmul.f32 %v8056_v53, %v7945_v23  ;;  %v2253_v36 = vmul.f32 %v8056_v53, %v7903_v35 }
 0x665   :  { %v2254_v50 = vmul.f32 %v8056_v53, %v7906_v41  ;;  %v2255_v48 = vmul.f32 %v8056_v53, %v7909_v24  ;;  %v2256_v39 = vmul.f32 %v8056_v53, %v7912_v7  ;;  %v2257_v23 = vmul.f32 %v8056_v53, %v7915_v21 }
 0x666   :  { %v2287_v14 = vmul.f32 %v8061_v20, %v2266_v17  ;;  %v2274_v35 = vmul.f32 %v8061_v20, %v2253_v36  ;;  %v2258_v4 = vmul.f32 %v8056_v53, %v7918_v57  ;;  %v2259_v54 = vmul.f32 %v8056_v53, %v7921_v13 }
 0x667   :  { %v2275_v41 = vmul.f32 %v8061_v20, %v2254_v50  ;;  %v2276_v24 = vmul.f32 %v8061_v20, %v2255_v48  ;;  %v2277_v3 = vmul.f32 %v8061_v20, %v2256_v39  ;;  %v2278_v7 = vmul.f32 %v8061_v20, %v2257_v23 }
 0x668   :  { %v2308_v21 = vadd.f32 %v8094_v60, %v2287_v14  ;;  %v2295_v37 = vadd.f32 %v8094_v60, %v2274_v35  ;;  %v2279_v8 = vmul.f32 %v8061_v20, %v2258_v4  ;;  %v2280_v18 = vmul.f32 %v8061_v20, %v2259_v54 }
 0x669   :  { %v2296_v57 = vadd.f32 %v8094_v60, %v2275_v41  ;;  %v2297_v13 = vadd.f32 %v8094_v60, %v2276_v24  ;;  %v2298_v11 = vadd.f32 %v8094_v60, %v2277_v3  ;;  %v2299_v33 = vadd.f32 %v8094_v60, %v2278_v7 }
 0x66a   :  { %v2324_v52 = vmax.f32 %v2308_v21, 0.0  ;;  %v2311_v12 = vmax.f32 %v2295_v37, 0.0  ;;  %v2300_v5 = vadd.f32 %v8094_v60, %v2279_v8  ;;  %v2301_v61 = vadd.f32 %v8094_v60, %v2280_v18 }
 0x66b   :  { %v2312_v46 = vmax.f32 %v2296_v57, 0.0  ;;  %v2313_v17 = vmax.f32 %v2297_v13, 0.0  ;;  %v2314_v36 = vmax.f32 %v2298_v11, 0.0  ;;  %v2315_v50 = vmax.f32 %v2299_v33, 0.0  ;;  %v10906_v13 = vld [vmem:[#allocation49_spill] sm:$0xff] }
 0x66c   :  { %v2381_v48 = vmul.f32 %v8014_v29, %v2311_v12  ;;  %v2316_v39 = vmax.f32 %v2300_v5, 0.0  ;;  %v2317_v23 = vmax.f32 %v2301_v61, 0.0  ;;  %v2260_v14 = vmul.f32 %v8056_v53, %v7924_v26 }
 0x66d   :  { %v2382_v35 = vmul.f32 %v8014_v29, %v2312_v46  ;;  %v2383_v4 = vmul.f32 %v8014_v29, %v2313_v17  ;;  %v2384_v54 = vmul.f32 %v8014_v29, %v2314_v36  ;;  %v2385_v41 = vmul.f32 %v8014_v29, %v2315_v50  ;;  %v10908_v50 = vld [vmem:[#allocation50_spill] sm:$0xff] }
 0x66e   :  { %v2397_v24 = vadd.f32 %v2381_v48, %v7802_v30  ;;  %v2386_v3 = vmul.f32 %v8014_v29, %v2316_v39  ;;  %v2387_v7 = vmul.f32 %v8014_v29, %v2317_v23  ;;  %v2281_v21 = vmul.f32 %v8061_v20, %v2260_v14  ;;  %v10907_v30 = vld [vmem:[#allocation47_spill] sm:$0xff] }
 0x66f   :  { %v2398_v37 = vadd.f32 %v2382_v35, %v7810_v15  ;;  %v2399_v26 = vadd.f32 %v2383_v4, %v7830_v49  ;;  %v2400_v8 = vadd.f32 %v2384_v54, %v7838_v62  ;;  %v2401_v18 = vadd.f32 %v2385_v41, %v7858_v47 }
 0x670   :  { %v8140_v57 = vadd.f32 %v8018_v58, %v2397_v24  ;;  %v2402_v11 = vadd.f32 %v2386_v3, %v10906_v13  ;;  %v2403_v33 = vadd.f32 %v2387_v7, %v10907_v30  ;;  %v2302_v12 = vadd.f32 %v8094_v60, %v2281_v21 }
 0x671   :  { %v8146_v5 = vadd.f32 %v8022_v42, %v2398_v37  ;;  %v8149_v15 = vadd.f32 %v8026_v56, %v2399_v26  ;;  %v8152_v49 = vadd.f32 %v8030_v9, %v2400_v8  ;;  %v8155_v62 = vadd.f32 %v8034_v55, %v2401_v18  ;;  %v10909_v8 = vld [vmem:[#allocation48_spill] sm:$0xff] }
 0x672   :  { %v8158_v47 = vadd.f32 %v8038_v28, %v2402_v11  ;;  %v8161_v58 = vadd.f32 %v8042_v10, %v2403_v33  ;;  %v2318_v61 = vmax.f32 %v2302_v12, 0.0  ;;  %v2261_v42 = vmul.f32 %v8056_v53, %v7927_v43  ;;  %v10910_v33 = vld [vmem:[#allocation41_spill] sm:$0xff] }
 0x673   :  { %v2262_v56 = vmul.f32 %v8056_v53, %v7930_v63  ;;  %v2263_v9 = vmul.f32 %v8056_v53, %v7933_v25  ;;  %v2264_v55 = vmul.f32 %v8056_v53, %v7936_v16  ;;  %v2286_v28 = vmul.f32 %v8061_v20, %v8081_v44 }
 0x674   :  { %v2388_v46 = vmul.f32 %v8014_v29, %v2318_v61  ;;  %v2282_v10 = vmul.f32 %v8061_v20, %v2261_v42  ;;  %v2394_v17 = vmul.f32 %v8014_v29, %v2324_v52  ;;  %v2288_v43 = vmul.f32 %v8061_v20, %v8087_v45 }
 0x675   :  { %v2283_v63 = vmul.f32 %v8061_v20, %v2262_v56  ;;  %v2284_v36 = vmul.f32 %v8061_v20, %v2263_v9  ;;  %v2285_v25 = vmul.f32 %v8061_v20, %v2264_v55  ;;  %v2307_v16 = vadd.f32 %v8094_v60, %v2286_v28  ;;  %v10911_v56 = vld [vmem:[#allocation46_spill] sm:$0xff]  ;;  %v10912_v55 = vld [vmem:[#allocation40_spill] sm:$0xff] }
 0x676   :  { %v2404_v48 = vadd.f32 %v2388_v46, %v10908_v50  ;;  %v2303_v44 = vadd.f32 %v8094_v60, %v2282_v10  ;;  %v2410_v39 = vadd.f32 %v2394_v17, %v7985_v0  ;;  %v2309_v23 = vadd.f32 %v8094_v60, %v2288_v43  ;;  %v10914_v43 = vld [vmem:[#allocation45_spill] sm:$0xff] }
 0x677   :  { %v2304_v52 = vadd.f32 %v8094_v60, %v2283_v63  ;;  %v2305_v45 = vadd.f32 %v8094_v60, %v2284_v36  ;;  %v2306_v14 = vadd.f32 %v8094_v60, %v2285_v25  ;;  %v2323_v35 = vmax.f32 %v2307_v16, 0.0 }
 0x678   :  { %v8190_v4 = vadd.f32 %v8046_v1, %v2404_v48  ;;  %v2319_v54 = vmax.f32 %v2303_v44, 0.0  ;;  %v8193_v41 = vadd.f32 %v8077_v51, %v2410_v39  ;;  %v2325_v24 = vmax.f32 %v2309_v23, 0.0 }
 0x679   :  { %v2320_v3 = vmax.f32 %v2304_v52, 0.0  ;;  %v2321_v7 = vmax.f32 %v2305_v45, 0.0  ;;  %v2322_v0 = vmax.f32 %v2306_v14, 0.0  ;;  %v2393_v21 = vmul.f32 %v8014_v29, %v2323_v35 }
 0x67a   :  { %v2389_v37 = vmul.f32 %v8014_v29, %v2319_v54  ;;  %v2395_v26 = vmul.f32 %v8014_v29, %v2325_v24  ;;  %v2429_v18 = vmul.f32 %v8012_v22, %v10909_v8  ;;  %v2268_v1 = vmul.f32 %v8056_v53, %v7947_v31 }
 0x67b   :  { %v2390_v13 = vmul.f32 %v8014_v29, %v2320_v3  ;;  %v2391_v51 = vmul.f32 %v8014_v29, %v2321_v7  ;;  %v2392_v11 = vmul.f32 %v8014_v29, %v2322_v0  ;;  %v2409_v30 = vadd.f32 %v2393_v21, %v7983_v40 }
 0x67c   :  { %v2405_v12 = vadd.f32 %v2389_v37, %v10910_v33  ;;  %v2411_v61 = vadd.f32 %v2395_v26, %v7989_v6  ;;  %v2289_v42 = vmul.f32 %v8061_v20, %v2268_v1 }
 0x67d   :  { %v2406_v9 = vadd.f32 %v2390_v13, %v10911_v56  ;;  %v2407_v28 = vadd.f32 %v2391_v51, %v10912_v55  ;;  %v2408_v31 = vadd.f32 %v2392_v11, %v7969_v59  ;;  %v8213_v53 = vadd.f32 %v8073_v34, %v2409_v30 }
 0x67e   :  { %v8216_v46 = vadd.f32 %v8050_v2, %v2405_v12  ;;  %v8218_v10 = vadd.f32 %v2429_v18, %v2411_v61  ;;  %v2310_v40 = vadd.f32 %v8094_v60, %v2289_v42  ;;  %v2430_v2 = vmul.f32 %v8012_v22, %v10914_v43 }
 0x67f   :  { %v8222_v6 = vadd.f32 %v8054_v38, %v2406_v9  ;;  %v8225_v20 = vadd.f32 %v8065_v32, %v2407_v28  ;;  %v8228_v17 = vadd.f32 %v8069_v19, %v2408_v31 }
 0x680   :  { %10913 = vst [vmem:[#allocation49_spill] sm:$0xff] %v8218_v10  ;;  %v2326_v59 = vmax.f32 %v2310_v40, 0.0 }
 0x682   :  { %v2396_v34 = vmul.f32 %v8014_v29, %v2326_v59 }
 0x684   :  { %v2412_v63 = vadd.f32 %v2396_v34, %v7994_v27 }
 0x686   :  { %v8234_v36 = vadd.f32 %v2430_v2, %v2412_v63 }
 0x688   :  { %10915 = vst [vmem:[#allocation47_spill] sm:$0xff] %v8234_v36 }
 0x689   :  { %6008 = dma.done.wait [#allocation3], 3072 }
 0x68a   :  { %6009 = vsyncadd [#allocation3], 4294964224  ;;  %v8238_v38 = vpack.c.bf16 %v8146_v5, %v8140_v57  ;;  %v10916_v32 = vmov 0   ;;  %2465 = sst [smem:[#allocation21]] %s6025_s18  ;;  %s2449_s15 = scalar_lea.hbm %s10797_s2, 15360  ;;  %v2485_v26 = vpack.c.bf16 %v8152_v49, %v8149_v15  ;;  %v2486_v18 = vpack.c.bf16 %v8158_v47, %v8155_v62 }
 0x68b   :  { %2566 = vmatprep.mubr.bf16.mxu0 %v10916_v32  ;;  %2467 = sst [smem:[#allocation21 + $0x1]] %s6025_s18  ;;  %s6040_s16 = smov [#allocation20]   ;;  %v2487_v1 = vpack.c.bf16 %v8190_v4, %v8161_v58  ;;  %v2488_v13 = vpack.c.bf16 %v8222_v6, %v8216_v46  ;;  %v2489_v51 = vpack.c.bf16 %v8228_v17, %v8225_v20  ;;  %v2490_v11 = vpack.c.bf16 %v8193_v41, %v8213_v53 }
 0x68c   :  { %5753 = vmatprep.mubr.bf16.mxu1 %v8238_v38  ;;  %2469 = sst [smem:[#allocation21 + $0x2]] %s6026_s19  ;;  %v2491_v30 = vpack.c.bf16 %v8234_v36, %v8218_v10 }
 0x68d   :  { %2471 = sst [smem:[#allocation21 + $0x3]] %s6027_s1 }
 0x68e   :  { %2473 = sst [smem:[#allocation21 + $0x4]] %s6021_s26 }
 0x68f   :  { %2475 = sst [smem:[#allocation21 + $0x5]] %s6028_s22 }
 0x690   :  { %2477 = sst [smem:[#allocation21 + $0x6]] %s6029_s23 }
 0x691   :  { %2479 = sst [smem:[#allocation21 + $0x7]] %s6027_s1 }
 0x692   :  { %2481 = sst [smem:[#allocation21 + $0x8]] %s6030_s24 }
 0x693   :  { %2483 = dma.general %s2449_s15, 3072, %s6166_s7, %s6035_s11, %s6040_s16, [#allocation21], %s6108_s21, 0  }
 0x694   :  { %v2494_v27 = vld [vmem:[#allocation2 + $0x10] sm:$0xff]  ;;  %v2497_v22 = vld [vmem:[#allocation2 + $0x28] sm:$0xff]  ;;  %v2492_v19 = vld [vmem:[#allocation2] sm:$0xff]  ;;  %s5425_s20 = sld [smem:[#allocation4 + $0x200]]  ;;  %s5426_s30 = sld [smem:[#allocation4 + $0x201]] }
 0x695   :  { %5737 = vmatprep.subr.bf16.mxu1 %v2494_v27  ;;  %v2493_v29 = vld [vmem:[#allocation2 + $0x8] sm:$0xff]  ;;  %v2496_v60 = vld [vmem:[#allocation2 + $0x20] sm:$0xff]  ;;  %v2495_v16 = vld [vmem:[#allocation2 + $0x18] sm:$0xff]  ;;  %s5428_s0 = sld [smem:[#allocation4 + $0x203]]  ;;  %s5427_s8 = sld [smem:[#allocation4 + $0x202]] }
 0x696   :  { %5738 = vmatpush3.bf16.msra.mxu1 %v2494_v27  ;;  %2534 = vmatprep.subr.bf16.mxu0 %v2493_v29  ;;  %v2500_v25 = vld [vmem:[#allocation2 + $0x40] sm:$0xff]  ;;  %v2499_v50 = vld [vmem:[#allocation2 + $0x38] sm:$0xff]  ;;  %v2498_v44 = vld [vmem:[#allocation2 + $0x30] sm:$0xff] }
 0x697   :  { %5739 = vmatprep.subr.bf16.mxu1 %v2497_v22  ;;  %2535 = vmatpush1.bf16.msra.mxu0 %v2492_v19  ;;  %v2503_v48 = vld [vmem:[#allocation2 + $0x58] sm:$0xff]  ;;  %v2502_v39 = vld [vmem:[#allocation2 + $0x50] sm:$0xff]  ;;  %v2501_v52 = vld [vmem:[#allocation2 + $0x48] sm:$0xff] }
 0x698   :  { %2536 = vmatprep.subr.bf16.mxu0 %v2496_v60  ;;  %v2506_v23 = vld [vmem:[#allocation2 + $0x70] sm:$0xff]  ;;  %v2505_v45 = vld [vmem:[#allocation2 + $0x68] sm:$0xff]  ;;  %v2504_v35 = vld [vmem:[#allocation2 + $0x60] sm:$0xff] }
 0x699   :  { %v2509_v14 = vld [vmem:[#allocation2 + $0x88] sm:$0xff]  ;;  %v2508_v54 = vld [vmem:[#allocation2 + $0x80] sm:$0xff]  ;;  %v2507_v3 = vld [vmem:[#allocation2 + $0x78] sm:$0xff] }
 0x69a   :  { %5740 = vmatpush3.bf16.msra.mxu1 %v2497_v22  ;;  %v2512_v24 = vld [vmem:[#allocation2 + $0xa0] sm:$0xff]  ;;  %v2511_v7 = vld [vmem:[#allocation2 + $0x98] sm:$0xff]  ;;  %v2510_v21 = vld [vmem:[#allocation2 + $0x90] sm:$0xff]  ;;  %v8292_v2 = vstv %s5425_s20  ;;  %v8304_v60 = vstv %s5426_s30 }
 0x69b   :  { %5741 = vmatprep.subr.bf16.mxu1 %v2500_v25  ;;  %2537 = vmatpush1.bf16.msra.mxu0 %v2495_v16  ;;  %v2515_v0 = vld [vmem:[#allocation2 + $0xb8] sm:$0xff]  ;;  %v2514_v37 = vld [vmem:[#allocation2 + $0xb0] sm:$0xff]  ;;  %v2513_v8 = vld [vmem:[#allocation2 + $0xa8] sm:$0xff] }
 0x69c   :  { %2538 = vmatprep.subr.bf16.mxu0 %v2499_v50  ;;  %v5422_v33 = vld [vmem:[%s10798_s3 + $0x4] ss:$8 sm:$0x7]  ;;  %v10918_v42 = vld [vmem:[#allocation43_spill] sm:$0xff] }
 0x69d   :  { %v10917_v12 = vld [vmem:[#allocation42_spill] sm:$0xff]  ;;  %v8286_v56 = vrot.slane %v5422_v33, %v10918_v42  ;;  %v10919_v55 = vld [vmem:[#allocation44_spill] sm:$0xff] }
 0x69e   :  { %5742 = vmatpush3.bf16.msra.mxu1 %v2500_v25  ;;  %v8283_v61 = vrot.slane %v5422_v33, %v10917_v12  ;;  %v8289_v28 = vrot.slane %v5422_v33, %v10919_v55 }
 0x69f   :  { %5743 = vmatprep.subr.bf16.mxu1 %v2503_v48  ;;  %2539 = vmatpush1.bf16.msra.mxu0 %v2498_v44 }
 0x6a0   :  { %2540 = vmatprep.subr.bf16.mxu0 %v2502_v39 }
 0x6a2   :  { %5744 = vmatpush3.bf16.msra.mxu1 %v2503_v48 }
 0x6a3   :  { %5745 = vmatprep.subr.bf16.mxu1 %v2506_v23  ;;  %2541 = vmatpush1.bf16.msra.mxu0 %v2501_v52 }
 0x6a4   :  { %2542 = vmatprep.subr.bf16.mxu0 %v2505_v45 }
 0x6a6   :  { %5746 = vmatpush3.bf16.msra.mxu1 %v2506_v23 }
 0x6a7   :  { %5747 = vmatprep.subr.bf16.mxu1 %v2509_v14  ;;  %2543 = vmatpush1.bf16.msra.mxu0 %v2504_v35 }
 0x6a8   :  { %2544 = vmatprep.subr.bf16.mxu0 %v2508_v54 }
 0x6aa   :  { %5748 = vmatpush3.bf16.msra.mxu1 %v2509_v14 }
 0x6ab   :  { %5749 = vmatprep.subr.bf16.mxu1 %v2512_v24  ;;  %2545 = vmatpush1.bf16.msra.mxu0 %v2507_v3 }
 0x6ac   :  { %2546 = vmatprep.subr.bf16.mxu0 %v2511_v7 }
 0x6ae   :  { %5750 = vmatpush3.bf16.msra.mxu1 %v2512_v24 }
 0x6af   :  { %5751 = vmatprep.subr.bf16.mxu1 %v2515_v0  ;;  %2547 = vmatpush1.bf16.msra.mxu0 %v2510_v21 }
 0x6b0   :  { %2548 = vmatprep.subr.bf16.mxu0 %v2514_v37 }
 0x6b2   :  { %5752 = vmatpush3.bf16.msra.mxu1 %v2515_v0 }
 0x6b3   :  { %2549 = vmatpush1.bf16.msra.mxu0 %v2513_v8 }
 0x6b5   :  { %5754 = vmatmul.mubr.bf16.vlgmr.msra.gmra.mrb[96].mxu1 %v2485_v26 }
 0x6b6   :  { %5757 = vmatprep.mubr.bf16.mxu1 %v2486_v18  ;;  %2567 = vmatmul.mubr.bf16.vlgmr.msra.gmra.mrb[96].mxu0 %v8238_v38 }
 0x6b7   :  { %2576 = vmatprep.mubr.bf16.mxu0 %v10916_v32 }
 0x6bd   :  { %5758 = vmatmul.mubr.bf16.gmra.mrb[100].mxu1 %v2487_v1 }
 0x6be   :  { %5761 = vmatprep.mubr.bf16.mxu1 %v2488_v13  ;;  %2577 = vmatmul.mubr.bf16.gmra.mrb[100].mxu0 %v2485_v26 }
 0x6bf   :  { %2586 = vmatprep.mubr.bf16.mxu0 %v10916_v32 }
 0x6c5   :  { %5762 = vmatmul.mubr.bf16.gmra.mrb[104].mxu1 %v2489_v51 }
 0x6c6   :  { %5765 = vmatprep.mubr.bf16.mxu1 %v2490_v11  ;;  %2587 = vmatmul.mubr.bf16.gmra.mrb[104].mxu0 %v2486_v18 }
 0x6c7   :  { %2596 = vmatprep.mubr.bf16.mxu0 %v10916_v32 }
 0x6cd   :  { %5766 = vmatmul.mubr.bf16.gmra.mrb[108].mxu1 %v2491_v30 }
 0x6ce   :  { %2597 = vmatmul.mubr.bf16.gmra.mrb[108].mxu0 %v2487_v1 }
 0x6cf   :  { %2606 = vmatprep.mubr.bf16.mxu0 %v10916_v32 }
 0x6d6   :  { %2607 = vmatmul.mubr.bf16.gmra.mrb[112].mxu0 %v2488_v13 }
 0x6d7   :  { %2616 = vmatprep.mubr.bf16.mxu0 %v10916_v32 }
 0x6de   :  { %2617 = vmatmul.mubr.bf16.gmra.mrb[116].mxu0 %v2489_v51 }
 0x6df   :  { %2626 = vmatprep.mubr.bf16.mxu0 %v10916_v32 }
 0x6e6   :  { %2627 = vmatmul.mubr.bf16.gmra.mrb[120].mxu0 %v2490_v11 }
 0x6e7   :  { %2636 = vmatprep.mubr.bf16.mxu0 %v10916_v32 }
 0x6ee   :  { %2637 = vmatmul.mubr.bf16.gmra.mrb[124].mxu0 %v2491_v30 }
 0x788   :  { %v5755_v9 = vpop.f32.mrb[96].mxu1 }
 0x789   :  { %v2681_v31 = vpop.f32.mrb[97].mxu1  ;;  %v2568_v59 = vpop.f32.mrb[96].mxu0  ;;  %v8302_v19 = vadd.f32 %v5755_v9, %v8286_v56 }
 0x78a   :  { %v5756_v40 = vpop.f32.mrb[98].mxu1  ;;  %v2569_v43 = vadd.f32 %v2568_v59, %v8283_v61  ;;  %v2570_v63 = vpop.f32.mrb[97].mxu0  ;;  %v8295_v38 = vadd.f32 %v2681_v31, %v8286_v56 }
 0x78b   :  { %v2684_v34 = vpop.f32.mrb[99].mxu1  ;;  %v2571_v22 = vadd.f32 %v2570_v63, %v8289_v28  ;;  %v2572_v29 = vpop.f32.mrb[98].mxu0  ;;  %v8312_v23 = vadd.f32 %v5756_v40, %v8286_v56 }
 0x78c   :  { %v8298_v27 = vadd.f32 %v2684_v34, %v8286_v56  ;;  %v2573_v25 = vadd.f32 %v2572_v29, %v8283_v61  ;;  %v2574_v16 = vpop.f32.mrb[99].mxu0  ;;  %v2914_v48 = vmul.f32 %v8292_v2, %v2569_v43 }
 0x78d   :  { %v2744_v44 = vmax.f32 %v2571_v22, 0.0  ;;  %v2575_v39 = vadd.f32 %v2574_v16, %v8289_v28 }
 0x78e   :  { %v2760_v50 = vadd.f32 %v8298_v27, %v8295_v38  ;;  %v2915_v35 = vmul.f32 %v8292_v2, %v2573_v25 }
 0x78f   :  { %v2932_v14 = vmul.f32 %v8304_v60, %v2744_v44  ;;  %v2745_v54 = vmax.f32 %v2575_v39, 0.0 }
 0x790   :  { %v2761_v52 = vadd.f32 %v2760_v50, %v8302_v19  ;;  %v5759_v45 = vpop.f32.mrb[100].mxu1 }
 0x791   :  { %v2697_v24 = vpop.f32.mrb[101].mxu1  ;;  %v8321_v21 = vadd.f32 %v2932_v14, %v2914_v48  ;;  %v2933_v37 = vmul.f32 %v8304_v60, %v2745_v54  ;;  %v2578_v26 = vpop.f32.mrb[100].mxu0  ;;  %v8333_v9 = vadd.f32 %v5759_v45, %v8286_v56 }
 0x792   :  { %v8318_v3 = vadd.f32 %v2697_v24, %v8286_v56  ;;  %v2762_v7 = vadd.f32 %v2761_v52, %v8312_v23  ;;  %v5760_v0 = vpop.f32.mrb[102].mxu1  ;;  %v2579_v18 = vadd.f32 %v2578_v26, %v8283_v61  ;;  %v2580_v1 = vpop.f32.mrb[101].mxu0 }
 0x793   :  { %v2700_v8 = vpop.f32.mrb[103].mxu1  ;;  %v8329_v11 = vadd.f32 %v2933_v37, %v2915_v35  ;;  %v2581_v30 = vadd.f32 %v2580_v1, %v8289_v28  ;;  %v2582_v33 = vpop.f32.mrb[102].mxu0  ;;  %v8340_v22 = vadd.f32 %v5760_v0, %v8286_v56 }
 0x794   :  { %v2763_v13 = vadd.f32 %v2762_v7, %v8318_v3  ;;  %v8327_v51 = vadd.f32 %v2700_v8, %v8286_v56  ;;  %v2583_v31 = vadd.f32 %v2582_v33, %v8283_v61  ;;  %v2584_v40 = vpop.f32.mrb[103].mxu0  ;;  %v2916_v34 = vmul.f32 %v8292_v2, %v2579_v18 }
 0x795   :  { %v2746_v43 = vmax.f32 %v2581_v30, 0.0  ;;  %v2585_v63 = vadd.f32 %v2584_v40, %v8289_v28 }
 0x796   :  { %v2764_v59 = vadd.f32 %v2763_v13, %v8327_v51  ;;  %v2917_v50 = vmul.f32 %v8292_v2, %v2583_v31 }
 0x797   :  { %v2934_v16 = vmul.f32 %v8304_v60, %v2746_v43  ;;  %v2747_v48 = vmax.f32 %v2585_v63, 0.0 }
 0x798   :  { %v2765_v29 = vadd.f32 %v2764_v59, %v8333_v9  ;;  %v5763_v25 = vpop.f32.mrb[104].mxu1 }
 0x799   :  { %v2713_v44 = vpop.f32.mrb[105].mxu1  ;;  %v8349_v14 = vadd.f32 %v2934_v16, %v2916_v34  ;;  %v2935_v35 = vmul.f32 %v8304_v60, %v2747_v48  ;;  %v2588_v54 = vpop.f32.mrb[104].mxu0  ;;  %v8361_v13 = vadd.f32 %v5763_v25, %v8286_v56 }
 0x79a   :  { %v8346_v39 = vadd.f32 %v2713_v44, %v8286_v56  ;;  %v2766_v52 = vadd.f32 %v2765_v29, %v8340_v22  ;;  %v5764_v45 = vpop.f32.mrb[106].mxu1  ;;  %v2589_v7 = vadd.f32 %v2588_v54, %v8283_v61  ;;  %v2590_v0 = vpop.f32.mrb[105].mxu0 }
 0x79b   :  { %v2716_v24 = vpop.f32.mrb[107].mxu1  ;;  %v8357_v8 = vadd.f32 %v2935_v35, %v2917_v50  ;;  %v2591_v18 = vadd.f32 %v2590_v0, %v8289_v28  ;;  %v2592_v1 = vpop.f32.mrb[106].mxu0  ;;  %v8368_v43 = vadd.f32 %v5764_v45, %v8286_v56 }
 0x79c   :  { %v2767_v37 = vadd.f32 %v2766_v52, %v8346_v39  ;;  %v8355_v26 = vadd.f32 %v2716_v24, %v8286_v56  ;;  %v2593_v30 = vadd.f32 %v2592_v1, %v8283_v61  ;;  %v2594_v33 = vpop.f32.mrb[107].mxu0  ;;  %v2918_v40 = vmul.f32 %v8292_v2, %v2589_v7 }
 0x79d   :  { %v2748_v59 = vmax.f32 %v2591_v18, 0.0  ;;  %v2595_v34 = vadd.f32 %v2594_v33, %v8289_v28 }
 0x79e   :  { %v2768_v31 = vadd.f32 %v2767_v37, %v8355_v26  ;;  %v2919_v25 = vmul.f32 %v8292_v2, %v2593_v30 }
 0x79f   :  { %v2936_v16 = vmul.f32 %v8304_v60, %v2748_v59  ;;  %v2749_v50 = vmax.f32 %v2595_v34, 0.0 }
 0x7a0   :  { %v2769_v63 = vadd.f32 %v2768_v31, %v8361_v13  ;;  %v5767_v29 = vpop.f32.mrb[108].mxu1 }
 0x7a1   :  { %v2729_v48 = vpop.f32.mrb[109].mxu1  ;;  %v8377_v54 = vadd.f32 %v2936_v16, %v2918_v40  ;;  %v2937_v45 = vmul.f32 %v8304_v60, %v2749_v50  ;;  %v2598_v24 = vpop.f32.mrb[108].mxu0  ;;  %v8389_v40 = vadd.f32 %v5767_v29, %v8286_v56 }
 0x7a2   :  { %v8374_v44 = vadd.f32 %v2729_v48, %v8286_v56  ;;  %v2770_v52 = vadd.f32 %v2769_v63, %v8368_v43  ;;  %v5768_v35 = vpop.f32.mrb[110].mxu1  ;;  %v2599_v0 = vadd.f32 %v2598_v24, %v8283_v61  ;;  %v2600_v37 = vpop.f32.mrb[109].mxu0 }
 0x7a3   :  { %v2732_v7 = vpop.f32.mrb[111].mxu1  ;;  %v8385_v30 = vadd.f32 %v2937_v45, %v2919_v25  ;;  %v2601_v33 = vadd.f32 %v2600_v37, %v8289_v28  ;;  %v2602_v31 = vpop.f32.mrb[110].mxu0 }
 0x7a4   :  { %v2771_v18 = vadd.f32 %v2770_v52, %v8374_v44  ;;  %v8383_v1 = vadd.f32 %v2732_v7, %v8286_v56  ;;  %v2603_v59 = vadd.f32 %v2602_v31, %v8283_v61  ;;  %v2604_v34 = vpop.f32.mrb[111].mxu0  ;;  %v2920_v16 = vmul.f32 %v8292_v2, %v2599_v0 }
 0x7a5   :  { %10920 = vst [vmem:[#allocation50_spill] sm:$0xff] %v8385_v30  ;;  %v2750_v50 = vmax.f32 %v2601_v33, 0.0  ;;  %v2605_v48 = vadd.f32 %v2604_v34, %v8289_v28  ;;  %v2741_v52 = vadd.f32 %v5768_v35, %v8286_v56 }
 0x7a6   :  { %v2772_v63 = vadd.f32 %v2771_v18, %v8383_v1  ;;  %v2921_v24 = vmul.f32 %v8292_v2, %v2603_v59 }
 0x7a7   :  { %v2938_v45 = vmul.f32 %v8304_v60, %v2750_v50  ;;  %v2751_v29 = vmax.f32 %v2605_v48, 0.0 }
 0x7a8   :  { %v2773_v25 = vadd.f32 %v2772_v63, %v8389_v40 }
 0x7a9   :  { %v8399_v37 = vadd.f32 %v2938_v45, %v2920_v16  ;;  %v2939_v31 = vmul.f32 %v8304_v60, %v2751_v29  ;;  %v2608_v18 = vpop.f32.mrb[112].mxu0 }
 0x7aa   :  { %v2774_v7 = vadd.f32 %v2773_v25, %v2741_v52  ;;  %v2609_v0 = vadd.f32 %v2608_v18, %v8283_v61  ;;  %v2610_v33 = vpop.f32.mrb[113].mxu0 }
 0x7ab   :  { %10921 = vst [vmem:[#allocation48_spill] sm:$0xff] %v8399_v37  ;;  %v8403_v34 = vadd.f32 %v2939_v31, %v2921_v24  ;;  %v2611_v56 = vadd.f32 %v2610_v33, %v8289_v28  ;;  %v2612_v35 = vpop.f32.mrb[114].mxu0 }
 0x7ac   :  { %v2775_v55 = vrot.slane %v2774_v7, 4  ;;  %v2613_v63 = vadd.f32 %v2612_v35, %v8283_v61  ;;  %v2614_v50 = vpop.f32.mrb[115].mxu0  ;;  %v2922_v48 = vmul.f32 %v8292_v2, %v2609_v0 }
 0x7ad   :  { %10922 = vst [vmem:[#allocation41_spill] sm:$0xff] %v8403_v34  ;;  %v2752_v16 = vmax.f32 %v2611_v56, 0.0  ;;  %v2615_v25 = vadd.f32 %v2614_v50, %v8289_v28 }
 0x7ae   :  { %v2776_v59 = vadd.f32 %v2775_v55, %v2774_v7  ;;  %v2923_v18 = vmul.f32 %v8292_v2, %v2613_v63 }
 0x7af   :  { %v2940_v29 = vmul.f32 %v8304_v60, %v2752_v16  ;;  %v2753_v42 = vmax.f32 %v2615_v25, 0.0 }
 0x7b0   :  { %v2777_v45 = vrot.slane %v2776_v59, 2 }
 0x7b1   :  { %v8411_v31 = vadd.f32 %v2940_v29, %v2922_v48  ;;  %v2941_v33 = vmul.f32 %v8304_v60, %v2753_v42  ;;  %v2618_v12 = vpop.f32.mrb[116].mxu0 }
 0x7b2   :  { %v2778_v24 = vadd.f32 %v2777_v45, %v2776_v59  ;;  %v2620_v35 = vpop.f32.mrb[117].mxu0  ;;  %v2619_v0 = vadd.f32 %v2618_v12, %v8283_v61 }
 0x7b3   :  { %10923 = vst [vmem:[#allocation46_spill] sm:$0xff] %v8411_v31  ;;  %v8414_v55 = vadd.f32 %v2941_v33, %v2923_v18  ;;  %v2622_v7 = vpop.f32.mrb[118].mxu0  ;;  %v2621_v56 = vadd.f32 %v2620_v35, %v8289_v28 }
 0x7b4   :  { %v2779_v32 = vrot.slane %v2778_v24, 1  ;;  %v2624_v50 = vpop.f32.mrb[119].mxu0  ;;  %v2924_v63 = vmul.f32 %v8292_v2, %v2619_v0  ;;  %v2623_v48 = vadd.f32 %v2622_v7, %v8283_v61 }
 0x7b5   :  { %10924 = vst [vmem:[#allocation40_spill] sm:$0xff] %v8414_v55  ;;  %v2754_v59 = vmax.f32 %v2621_v56, 0.0  ;;  %v2625_v42 = vadd.f32 %v2624_v50, %v8289_v28 }
 0x7b6   :  { %v2780_v16 = vadd.f32 %v2779_v32, %v2778_v24 }
 0x7b7   :  { %v2942_v0 = vmul.f32 %v8304_v60, %v2754_v59  ;;  %v2755_v56 = vmax.f32 %v2625_v42, 0.0 }
 0x7b8   :  { %v2781_v36 = vmul.f32 0.0078125, %v2780_v16 }
 0x7b9   :  { %v2628_v32 = vpop.f32.mrb[120].mxu0  ;;  %v8480_v50 = vadd.f32 %v2942_v0, %v2924_v63  ;;  %v2943_v16 = vmul.f32 %v8304_v60, %v2755_v56 }
 0x7ba   :  { %v8422_v25 = vsub.f32 %v8295_v38, %v2781_v36  ;;  %v8425_v45 = vsub.f32 %v8298_v27, %v2781_v36  ;;  %v8428_v12 = vsub.f32 %v8302_v19, %v2781_v36  ;;  %v8431_v29 = vsub.f32 %v8312_v23, %v2781_v36  ;;  %v2630_v27 = vpop.f32.mrb[121].mxu0 }
 0x7bb   :  { %v8434_v18 = vsub.f32 %v8318_v3, %v2781_v36  ;;  %v8437_v24 = vsub.f32 %v8327_v51, %v2781_v36  ;;  %v8440_v33 = vsub.f32 %v8333_v9, %v2781_v36  ;;  %v8443_v38 = vsub.f32 %v8340_v22, %v2781_v36  ;;  %v2632_v51 = vpop.f32.mrb[122].mxu0  ;;  %10925 = vst [vmem:[#allocation45_spill] sm:$0xff] %v8480_v50 }
 0x7bc   :  { %v8446_v19 = vsub.f32 %v8346_v39, %v2781_v36  ;;  %v8449_v23 = vsub.f32 %v8355_v26, %v2781_v36  ;;  %v8452_v35 = vsub.f32 %v8361_v13, %v2781_v36  ;;  %v8455_v3 = vsub.f32 %v8368_v43, %v2781_v36  ;;  %v2634_v26 = vpop.f32.mrb[123].mxu0 }
 0x7bd   :  { %v8458_v9 = vsub.f32 %v8374_v44, %v2781_v36  ;;  %v8461_v22 = vsub.f32 %v8383_v1, %v2781_v36  ;;  %v8464_v7 = vsub.f32 %v8389_v40, %v2781_v36  ;;  %v8466_v39 = vsub.f32 %v2741_v52, %v2781_v36 }
 0x7be   :  { %v2798_v13 = vmul.f32 %v8422_v25, %v8422_v25  ;;  %v2799_v43 = vmul.f32 %v8425_v45, %v8425_v45  ;;  %v2925_v44 = vmul.f32 %v8292_v2, %v2623_v48  ;;  %v2800_v1 = vmul.f32 %v8428_v12, %v8428_v12 }
 0x7bf   :  { %v2801_v40 = vmul.f32 %v8431_v29, %v8431_v29  ;;  %v2802_v36 = vmul.f32 %v8434_v18, %v8434_v18  ;;  %v2629_v55 = vadd.f32 %v2628_v32, %v8283_v61  ;;  %v2631_v42 = vadd.f32 %v2630_v27, %v8289_v28 }
 0x7c0   :  { %v2814_v52 = vadd.f32 %v2799_v43, %v2798_v13  ;;  %v2633_v48 = vadd.f32 %v2632_v51, %v8283_v61  ;;  %v2635_v31 = vadd.f32 %v2634_v26, %v8289_v28  ;;  %v8488_v30 = vadd.f32 %v2943_v16, %v2925_v44 }
 0x7c1   :  { %v2638_v59 = vpop.f32.mrb[124].mxu0  ;;  %v2926_v63 = vmul.f32 %v8292_v2, %v2629_v55  ;;  %v2756_v0 = vmax.f32 %v2631_v42, 0.0  ;;  %v2803_v44 = vmul.f32 %v8437_v24, %v8437_v24 }
 0x7c2   :  { %v2639_v10 = vadd.f32 %v2638_v59, %v8283_v61  ;;  %v2640_v34 = vpop.f32.mrb[125].mxu0  ;;  %v2815_v37 = vadd.f32 %v2814_v52, %v2800_v1  ;;  %v2927_v32 = vmul.f32 %v8292_v2, %v2633_v48  ;;  %v2757_v56 = vmax.f32 %v2635_v31, 0.0 }
 0x7c3   :  { %v2641_v13 = vadd.f32 %v2640_v34, %v8289_v28  ;;  %v2642_v43 = vpop.f32.mrb[126].mxu0  ;;  %v2944_v55 = vmul.f32 %v8304_v60, %v2756_v0 }
 0x7c4   :  { %v2928_v27 = vmul.f32 %v8292_v2, %v2639_v10  ;;  %v2644_v51 = vpop.f32.mrb[127].mxu0  ;;  %v2816_v50 = vadd.f32 %v2815_v37, %v2801_v40  ;;  %v2643_v59 = vadd.f32 %v2642_v43, %v8283_v61  ;;  %v2945_v34 = vmul.f32 %v8304_v60, %v2757_v56 }
 0x7c5   :  { %v2758_v26 = vmax.f32 %v2641_v13, 0.0  ;;  %v2645_v1 = vadd.f32 %v2644_v51, %v8289_v28  ;;  %v8502_v42 = vadd.f32 %v2944_v55, %v2926_v63  ;;  %v2804_v61 = vmul.f32 %v8440_v33, %v8440_v33 }
 0x7c6   :  { %v2817_v52 = vadd.f32 %v2816_v50, %v2802_v36  ;;  %v2929_v31 = vmul.f32 %v8292_v2, %v2643_v59  ;;  %v8504_v37 = vadd.f32 %v2945_v34, %v2927_v32  ;;  %v2805_v36 = vmul.f32 %v8443_v38, %v8443_v38 }
 0x7c7   :  { %v2946_v16 = vmul.f32 %v8304_v60, %v2758_v26  ;;  %v2759_v10 = vmax.f32 %v2645_v1, 0.0  ;;  %v2806_v2 = vmul.f32 %v8446_v19, %v8446_v19  ;;  %v2807_v43 = vmul.f32 %v8449_v23, %v8449_v23 }
 0x7c8   :  { %v2818_v28 = vadd.f32 %v2817_v52, %v2803_v44  ;;  %v2808_v32 = vmul.f32 %v8452_v35, %v8452_v35  ;;  %v2810_v51 = vmul.f32 %v8458_v9, %v8458_v9  ;;  %v2811_v59 = vmul.f32 %v8461_v22, %v8461_v22 }
 0x7c9   :  { %v8508_v40 = vadd.f32 %v2946_v16, %v2928_v27  ;;  %v2947_v48 = vmul.f32 %v8304_v60, %v2759_v10  ;;  %v2809_v60 = vmul.f32 %v8455_v3, %v8455_v3  ;;  %v2812_v44 = vmul.f32 %v8464_v7, %v8464_v7 }
 0x7ca   :  { %v2819_v50 = vadd.f32 %v2818_v28, %v2804_v61  ;;  %v2813_v34 = vmul.f32 %v8466_v39, %v8466_v39 }
 0x7cb   :  { %v8513_v13 = vadd.f32 %v2947_v48, %v2929_v31 }
 0x7cc   :  { %v2820_v63 = vadd.f32 %v2819_v50, %v2805_v36 }
 0x7ce   :  { %v2821_v0 = vadd.f32 %v2820_v63, %v2806_v2  ;;  %v8531_v63 = vstv %s5428_s0 }
 0x7d0   :  { %v2822_v56 = vadd.f32 %v2821_v0, %v2807_v43  ;;  %v8533_v43 = vstv %s5427_s8  ;;  %v8537_v0 = vmul.f32 %v8531_v63, %v8140_v57  ;;  %v8557_v57 = vmul.f32 %v8531_v63, %v8158_v47  ;;  %v8580_v47 = vld [vmem:[%s10799_s4 + $0x4] ss:$0 sm:$0xff] }
 0x7d2   :  { %v2823_v27 = vadd.f32 %v2822_v56, %v2808_v32  ;;  %v8541_v32 = vmul.f32 %v8531_v63, %v8146_v5  ;;  %v8545_v56 = vmul.f32 %v8531_v63, %v8149_v15  ;;  %v8561_v5 = vmul.f32 %v8531_v63, %v8161_v58 }
 0x7d3   :  { %v8565_v15 = vmul.f32 %v8531_v63, %v8190_v4  ;;  %v8584_v58 = vmul.f32 %v8531_v63, %v8225_v20  ;;  %v8588_v4 = vmul.f32 %v8531_v63, %v8228_v17 }
 0x7d4   :  { %v2824_v26 = vadd.f32 %v2823_v27, %v2809_v60  ;;  %v8549_v60 = vmul.f32 %v8531_v63, %v8152_v49  ;;  %v8553_v27 = vmul.f32 %v8531_v63, %v8155_v62  ;;  %v8569_v49 = vmul.f32 %v8531_v63, %v8216_v46 }
 0x7d5   :  { %v8573_v62 = vmul.f32 %v8531_v63, %v8222_v6  ;;  %v8592_v46 = vmul.f32 %v8531_v63, %v8213_v53  ;;  %v8596_v6 = vmul.f32 %v8531_v63, %v8193_v41  ;;  %v8613_v53 = vld [vmem:[%s10800_s5 + $0x4] ss:$0 sm:$0xff] }
 0x7d6   :  { %v2825_v1 = vadd.f32 %v2824_v26, %v2810_v51 }
 0x7d8   :  { %v2826_v55 = vadd.f32 %v2825_v1, %v2811_v59 }
 0x7da   :  { %v2827_v52 = vadd.f32 %v2826_v55, %v2812_v44 }
 0x7dc   :  { %v2828_v16 = vadd.f32 %v2827_v52, %v2813_v34 }
 0x7de   :  { %v2829_v31 = vrot.slane %v2828_v16, 4 }
 0x7e0   :  { %v2830_v10 = vadd.f32 %v2829_v31, %v2828_v16 }
 0x7e2   :  { %v2831_v61 = vrot.slane %v2830_v10, 2 }
 0x7e4   :  { %v2832_v28 = vadd.f32 %v2831_v61, %v2830_v10 }
 0x7e6   :  { %v2833_v48 = vrot.slane %v2832_v28, 1 }
 0x7e8   :  { %v2834_v36 = vadd.f32 %v2833_v48, %v2832_v28 }
 0x7ea   :  { %v2835_v50 = vmul.f32 0.0078125, %v2834_v36 }
 0x7ec   :  { %v2836_v2 = vadd.f32 1e-05, %v2835_v50 }
 0x7ee   :  { %5930 = vrsqrt.f32 %v2836_v2 }
 0x7f8   :  { %v8575_v51 = vpop.eup %5930 }
 0x7f9   :  { %v8600_v26 = vmul.f32 %v8575_v51, %v8458_v9  ;;  %v2851_v20 = vmul.f32 %v8575_v51, %v8461_v22  ;;  %v8606_v59 = vmul.f32 %v8575_v51, %v8464_v7  ;;  %v2838_v17 = vmul.f32 %v8575_v51, %v8422_v25 }
 0x7fa   :  { %v2839_v41 = vmul.f32 %v8575_v51, %v8425_v45  ;;  %v2840_v9 = vmul.f32 %v8575_v51, %v8428_v12  ;;  %v2841_v22 = vmul.f32 %v8575_v51, %v8431_v29  ;;  %v2842_v7 = vmul.f32 %v8575_v51, %v8434_v18 }
 0x7fb   :  { %v2872_v1 = vmul.f32 %v8580_v47, %v2851_v20  ;;  %v2859_v25 = vmul.f32 %v8580_v47, %v2838_v17  ;;  %v2843_v44 = vmul.f32 %v8575_v51, %v8437_v24  ;;  %v2844_v55 = vmul.f32 %v8575_v51, %v8440_v33 }
 0x7fc   :  { %v2860_v45 = vmul.f32 %v8580_v47, %v2839_v41  ;;  %v2861_v12 = vmul.f32 %v8580_v47, %v2840_v9  ;;  %v2862_v34 = vmul.f32 %v8580_v47, %v2841_v22  ;;  %v2863_v29 = vmul.f32 %v8580_v47, %v2842_v7 }
 0x7fd   :  { %v2893_v18 = vadd.f32 %v8613_v53, %v2872_v1  ;;  %v2880_v52 = vadd.f32 %v8613_v53, %v2859_v25  ;;  %v2864_v16 = vmul.f32 %v8580_v47, %v2843_v44  ;;  %v2865_v31 = vmul.f32 %v8580_v47, %v2844_v55 }
 0x7fe   :  { %v2881_v24 = vadd.f32 %v8613_v53, %v2860_v45  ;;  %v2882_v33 = vadd.f32 %v8613_v53, %v2861_v12  ;;  %v2883_v10 = vadd.f32 %v8613_v53, %v2862_v34  ;;  %v2884_v61 = vadd.f32 %v8613_v53, %v2863_v29 }
 0x7ff   :  { %v2909_v28 = vmax.f32 %v2893_v18, 0.0  ;;  %v2896_v48 = vmax.f32 %v2880_v52, 0.0  ;;  %v2885_v36 = vadd.f32 %v8613_v53, %v2864_v16  ;;  %v2886_v50 = vadd.f32 %v8613_v53, %v2865_v31 }
 0x800   :  { %v2897_v2 = vmax.f32 %v2881_v24, 0.0  ;;  %v2898_v20 = vmax.f32 %v2882_v33, 0.0  ;;  %v2899_v17 = vmax.f32 %v2883_v10, 0.0  ;;  %v2900_v41 = vmax.f32 %v2884_v61, 0.0  ;;  %v10926_v33 = vld [vmem:[#allocation50_spill] sm:$0xff] }
 0x801   :  { %v2966_v9 = vmul.f32 %v8533_v43, %v2896_v48  ;;  %v2901_v22 = vmax.f32 %v2885_v36, 0.0  ;;  %v2902_v7 = vmax.f32 %v2886_v50, 0.0  ;;  %v2845_v1 = vmul.f32 %v8575_v51, %v8443_v38 }
 0x802   :  { %v2967_v25 = vmul.f32 %v8533_v43, %v2897_v2  ;;  %v2968_v44 = vmul.f32 %v8533_v43, %v2898_v20  ;;  %v2969_v55 = vmul.f32 %v8533_v43, %v2899_v17  ;;  %v2970_v45 = vmul.f32 %v8533_v43, %v2900_v41  ;;  %v10928_v41 = vld [vmem:[#allocation41_spill] sm:$0xff] }
 0x803   :  { %v2982_v12 = vadd.f32 %v2966_v9, %v8321_v21  ;;  %v2971_v34 = vmul.f32 %v8533_v43, %v2901_v22  ;;  %v2972_v29 = vmul.f32 %v8533_v43, %v2902_v7  ;;  %v2866_v18 = vmul.f32 %v8580_v47, %v2845_v1  ;;  %v10927_v21 = vld [vmem:[#allocation48_spill] sm:$0xff] }
 0x804   :  { %v2983_v52 = vadd.f32 %v2967_v25, %v8329_v11  ;;  %v2984_v38 = vadd.f32 %v2968_v44, %v8349_v14  ;;  %v2985_v16 = vadd.f32 %v2969_v55, %v8357_v8  ;;  %v2986_v31 = vadd.f32 %v2970_v45, %v8377_v54 }
 0x805   :  { %v8659_v24 = vadd.f32 %v8537_v0, %v2982_v12  ;;  %v2987_v10 = vadd.f32 %v2971_v34, %v10926_v33  ;;  %v2988_v61 = vadd.f32 %v2972_v29, %v10927_v21  ;;  %v2887_v48 = vadd.f32 %v8613_v53, %v2866_v18 }
 0x806   :  { %v8665_v36 = vadd.f32 %v8541_v32, %v2983_v52  ;;  %v8668_v11 = vadd.f32 %v8545_v56, %v2984_v38  ;;  %v8671_v14 = vadd.f32 %v8549_v60, %v2985_v16  ;;  %v8674_v8 = vadd.f32 %v8553_v27, %v2986_v31  ;;  %v10929_v16 = vld [vmem:[#allocation49_spill] sm:$0xff] }
 0x807   :  { %v8677_v54 = vadd.f32 %v8557_v57, %v2987_v10  ;;  %v8680_v0 = vadd.f32 %v8561_v5, %v2988_v61  ;;  %v2903_v50 = vmax.f32 %v2887_v48, 0.0  ;;  %v2846_v32 = vmul.f32 %v8575_v51, %v8446_v19  ;;  %v10930_v61 = vld [vmem:[#allocation46_spill] sm:$0xff] }
 0x808   :  { %v2847_v56 = vmul.f32 %v8575_v51, %v8449_v23  ;;  %v2848_v60 = vmul.f32 %v8575_v51, %v8452_v35  ;;  %v2849_v27 = vmul.f32 %v8575_v51, %v8455_v3  ;;  %v2871_v57 = vmul.f32 %v8580_v47, %v8600_v26 }
 0x809   :  { %v2973_v2 = vmul.f32 %v8533_v43, %v2903_v50  ;;  %v2867_v5 = vmul.f32 %v8580_v47, %v2846_v32  ;;  %v2979_v20 = vmul.f32 %v8533_v43, %v2909_v28  ;;  %v2873_v19 = vmul.f32 %v8580_v47, %v8606_v59 }
 0x80a   :  { %v2868_v23 = vmul.f32 %v8580_v47, %v2847_v56  ;;  %v2869_v17 = vmul.f32 %v8580_v47, %v2848_v60  ;;  %v2870_v35 = vmul.f32 %v8580_v47, %v2849_v27  ;;  %v2892_v3 = vadd.f32 %v8613_v53, %v2871_v57  ;;  %v10931_v56 = vld [vmem:[#allocation40_spill] sm:$0xff]  ;;  %v10932_v27 = vld [vmem:[#allocation45_spill] sm:$0xff] }
 0x80b   :  { %v2989_v9 = vadd.f32 %v2973_v2, %v10928_v41  ;;  %v2888_v26 = vadd.f32 %v8613_v53, %v2867_v5  ;;  %v2995_v22 = vadd.f32 %v2979_v20, %v8504_v37  ;;  %v2894_v7 = vadd.f32 %v8613_v53, %v2873_v19  ;;  %v10934_v19 = vld [vmem:[#allocation47_spill] sm:$0xff] }
 0x80c   :  { %v2889_v28 = vadd.f32 %v8613_v53, %v2868_v23  ;;  %v2890_v59 = vadd.f32 %v8613_v53, %v2869_v17  ;;  %v2891_v1 = vadd.f32 %v8613_v53, %v2870_v35  ;;  %v2908_v25 = vmax.f32 %v2892_v3, 0.0 }
 0x80d   :  { %v8709_v44 = vadd.f32 %v8565_v15, %v2989_v9  ;;  %v2904_v55 = vmax.f32 %v2888_v26, 0.0  ;;  %v8712_v45 = vadd.f32 %v8596_v6, %v2995_v22  ;;  %v2910_v12 = vmax.f32 %v2894_v7, 0.0 }
 0x80e   :  { %v2905_v34 = vmax.f32 %v2889_v28, 0.0  ;;  %v2906_v29 = vmax.f32 %v2890_v59, 0.0  ;;  %v2907_v37 = vmax.f32 %v2891_v1, 0.0  ;;  %v2978_v18 = vmul.f32 %v8533_v43, %v2908_v25 }
 0x80f   :  { %v2974_v52 = vmul.f32 %v8533_v43, %v2904_v55  ;;  %v2980_v38 = vmul.f32 %v8533_v43, %v2910_v12  ;;  %v3014_v31 = vmul.f32 %v8531_v63, %v10929_v16  ;;  %v2853_v15 = vmul.f32 %v8575_v51, %v8466_v39 }
 0x810   :  { %v2975_v33 = vmul.f32 %v8533_v43, %v2905_v34  ;;  %v2976_v6 = vmul.f32 %v8533_v43, %v2906_v29  ;;  %v2977_v10 = vmul.f32 %v8533_v43, %v2907_v37  ;;  %v2994_v21 = vadd.f32 %v2978_v18, %v8502_v42 }
 0x811   :  { %v2990_v48 = vadd.f32 %v2974_v52, %v10930_v61  ;;  %v2996_v50 = vadd.f32 %v2980_v38, %v8508_v40  ;;  %v2874_v32 = vmul.f32 %v8580_v47, %v2853_v15 }
 0x812   :  { %v2991_v60 = vadd.f32 %v2975_v33, %v10931_v56  ;;  %v2992_v57 = vadd.f32 %v2976_v6, %v10932_v27  ;;  %v2993_v39 = vadd.f32 %v2977_v10, %v8488_v30  ;;  %v8732_v51 = vadd.f32 %v8592_v46, %v2994_v21 }
 0x813   :  { %v8735_v2 = vadd.f32 %v8569_v49, %v2990_v48  ;;  %v8737_v5 = vadd.f32 %v3014_v31, %v2996_v50  ;;  %v2895_v42 = vadd.f32 %v8613_v53, %v2874_v32  ;;  %v3015_v49 = vmul.f32 %v8531_v63, %v10934_v19 }
 0x814   :  { %v8741_v40 = vadd.f32 %v8573_v62, %v2991_v60  ;;  %v8744_v47 = vadd.f32 %v8584_v58, %v2992_v57  ;;  %v8747_v20 = vadd.f32 %v8588_v4, %v2993_v39 }
 0x815   :  { %10933 = vst [vmem:[#allocation50_spill] sm:$0xff] %v8737_v5  ;;  %v2911_v30 = vmax.f32 %v2895_v42, 0.0 }
 0x817   :  { %v2981_v46 = vmul.f32 %v8533_v43, %v2911_v30 }
 0x819   :  { %v2997_v23 = vadd.f32 %v2981_v46, %v8513_v13 }
 0x81b   :  { %v8753_v17 = vadd.f32 %v3015_v49, %v2997_v23 }
 0x81d   :  { %10935 = vst [vmem:[#allocation48_spill] sm:$0xff] %v8753_v17 }
 0x81e   :  { %6010 = dma.done.wait [#allocation3 + $0x1], 3072 }
 0x81f   :  { %6011 = vsyncadd [#allocation3 + $0x1], 4294964224  ;;  %v8757_v62 = vpack.c.bf16 %v8665_v36, %v8659_v24  ;;  %v10936_v58 = vmov 0   ;;  %3050 = sst [smem:[#allocation23]] %s6025_s18  ;;  %s3034_s16 = scalar_lea.hbm %s10797_s2, 18432  ;;  %v3070_v38 = vpack.c.bf16 %v8671_v14, %v8668_v11  ;;  %v3071_v31 = vpack.c.bf16 %v8677_v54, %v8674_v8 }
 0x820   :  { %3151 = vmatprep.mubr.bf16.mxu1 %v10936_v58  ;;  %3052 = sst [smem:[#allocation23 + $0x1]] %s6025_s18  ;;  %s6041_s20 = smov [#allocation22]   ;;  %v3072_v15 = vpack.c.bf16 %v8709_v44, %v8680_v0  ;;  %v3073_v33 = vpack.c.bf16 %v8741_v40, %v8735_v2  ;;  %v3074_v6 = vpack.c.bf16 %v8747_v20, %v8744_v47  ;;  %v3075_v10 = vpack.c.bf16 %v8712_v45, %v8732_v51 }
 0x821   :  { %5785 = vmatprep.mubr.bf16.mxu0 %v8757_v62  ;;  %3054 = sst [smem:[#allocation23 + $0x2]] %s6026_s19  ;;  %v3076_v21 = vpack.c.bf16 %v8753_v17, %v8737_v5 }
 0x822   :  { %3056 = sst [smem:[#allocation23 + $0x3]] %s6027_s1 }
 0x823   :  { %3058 = sst [smem:[#allocation23 + $0x4]] %s6021_s26 }
 0x824   :  { %3060 = sst [smem:[#allocation23 + $0x5]] %s6028_s22 }
 0x825   :  { %3062 = sst [smem:[#allocation23 + $0x6]] %s6029_s23 }
 0x826   :  { %3064 = sst [smem:[#allocation23 + $0x7]] %s6027_s1 }
 0x827   :  { %3066 = sst [smem:[#allocation23 + $0x8]] %s6030_s24 }
 0x828   :  { %3068 = dma.general %s3034_s16, 3072, %s6101_s17, %s6031_s25, %s6041_s20, [#allocation23], %s6108_s21, 0  }
 0x829   :  { %v3079_v13 = vld [vmem:[#allocation2 + $0xd0] sm:$0xff]  ;;  %v3082_v63 = vld [vmem:[#allocation2 + $0xe8] sm:$0xff]  ;;  %v3077_v4 = vld [vmem:[#allocation2 + $0xc0] sm:$0xff]  ;;  %s5434_s28 = sld [smem:[#allocation4 + $0x280]]  ;;  %s5435_s0 = sld [smem:[#allocation4 + $0x281]] }
 0x82a   :  { %5769 = vmatprep.subr.bf16.mxu0 %v3079_v13  ;;  %v3078_v43 = vld [vmem:[#allocation2 + $0xc8] sm:$0xff]  ;;  %v3081_v53 = vld [vmem:[#allocation2 + $0xe0] sm:$0xff]  ;;  %v3080_v3 = vld [vmem:[#allocation2 + $0xd8] sm:$0xff]  ;;  %s5437_s8 = sld [smem:[#allocation4 + $0x283]]  ;;  %s5436_s9 = sld [smem:[#allocation4 + $0x282]] }
 0x82b   :  { %5770 = vmatpush3.bf16.msra.mxu0 %v3079_v13  ;;  %3119 = vmatprep.subr.bf16.mxu1 %v3078_v43  ;;  %v3085_v35 = vld [vmem:[#allocation2 + $0x100] sm:$0xff]  ;;  %v3084_v41 = vld [vmem:[#allocation2 + $0xf8] sm:$0xff]  ;;  %v3083_v26 = vld [vmem:[#allocation2 + $0xf0] sm:$0xff] }
 0x82c   :  { %5771 = vmatprep.subr.bf16.mxu0 %v3082_v63  ;;  %3120 = vmatpush1.bf16.msra.mxu1 %v3077_v4  ;;  %v3088_v9 = vld [vmem:[#allocation2 + $0x118] sm:$0xff]  ;;  %v3087_v22 = vld [vmem:[#allocation2 + $0x110] sm:$0xff]  ;;  %v3086_v28 = vld [vmem:[#allocation2 + $0x108] sm:$0xff] }
 0x82d   :  { %3121 = vmatprep.subr.bf16.mxu1 %v3081_v53  ;;  %v3091_v7 = vld [vmem:[#allocation2 + $0x130] sm:$0xff]  ;;  %v3090_v59 = vld [vmem:[#allocation2 + $0x128] sm:$0xff]  ;;  %v3089_v25 = vld [vmem:[#allocation2 + $0x120] sm:$0xff] }
 0x82e   :  { %v3094_v1 = vld [vmem:[#allocation2 + $0x148] sm:$0xff]  ;;  %v3093_v55 = vld [vmem:[#allocation2 + $0x140] sm:$0xff]  ;;  %v3092_v34 = vld [vmem:[#allocation2 + $0x138] sm:$0xff] }
 0x82f   :  { %5772 = vmatpush3.bf16.msra.mxu0 %v3082_v63  ;;  %v3097_v12 = vld [vmem:[#allocation2 + $0x160] sm:$0xff]  ;;  %v3096_v29 = vld [vmem:[#allocation2 + $0x158] sm:$0xff]  ;;  %v3095_v18 = vld [vmem:[#allocation2 + $0x150] sm:$0xff]  ;;  %v8811_v49 = vstv %s5434_s28  ;;  %v8823_v53 = vstv %s5435_s0 }
 0x830   :  { %5773 = vmatprep.subr.bf16.mxu0 %v3085_v35  ;;  %3122 = vmatpush1.bf16.msra.mxu1 %v3080_v3  ;;  %v3100_v37 = vld [vmem:[#allocation2 + $0x178] sm:$0xff]  ;;  %v3099_v52 = vld [vmem:[#allocation2 + $0x170] sm:$0xff]  ;;  %v3098_v16 = vld [vmem:[#allocation2 + $0x168] sm:$0xff] }
 0x831   :  { %3123 = vmatprep.subr.bf16.mxu1 %v3084_v41  ;;  %v5431_v61 = vld [vmem:[%s10798_s3 + $0x5] ss:$8 sm:$0x7]  ;;  %v10938_v32 = vld [vmem:[#allocation43_spill] sm:$0xff] }
 0x832   :  { %v10937_v48 = vld [vmem:[#allocation42_spill] sm:$0xff]  ;;  %v8805_v56 = vrot.slane %v5431_v61, %v10938_v32  ;;  %v10939_v27 = vld [vmem:[#allocation44_spill] sm:$0xff] }
 0x833   :  { %5774 = vmatpush3.bf16.msra.mxu0 %v3085_v35  ;;  %v8802_v50 = vrot.slane %v5431_v61, %v10937_v48  ;;  %v8808_v57 = vrot.slane %v5431_v61, %v10939_v27 }
 0x834   :  { %5775 = vmatprep.subr.bf16.mxu0 %v3088_v9  ;;  %3124 = vmatpush1.bf16.msra.mxu1 %v3083_v26 }
 0x835   :  { %3125 = vmatprep.subr.bf16.mxu1 %v3087_v22 }
 0x837   :  { %5776 = vmatpush3.bf16.msra.mxu0 %v3088_v9 }
 0x838   :  { %5777 = vmatprep.subr.bf16.mxu0 %v3091_v7  ;;  %3126 = vmatpush1.bf16.msra.mxu1 %v3086_v28 }
 0x839   :  { %3127 = vmatprep.subr.bf16.mxu1 %v3090_v59 }
 0x83b   :  { %5778 = vmatpush3.bf16.msra.mxu0 %v3091_v7 }
 0x83c   :  { %5779 = vmatprep.subr.bf16.mxu0 %v3094_v1  ;;  %3128 = vmatpush1.bf16.msra.mxu1 %v3089_v25 }
 0x83d   :  { %3129 = vmatprep.subr.bf16.mxu1 %v3093_v55 }
 0x83f   :  { %5780 = vmatpush3.bf16.msra.mxu0 %v3094_v1 }
 0x840   :  { %5781 = vmatprep.subr.bf16.mxu0 %v3097_v12  ;;  %3130 = vmatpush1.bf16.msra.mxu1 %v3092_v34 }
 0x841   :  { %3131 = vmatprep.subr.bf16.mxu1 %v3096_v29 }
 0x843   :  { %5782 = vmatpush3.bf16.msra.mxu0 %v3097_v12 }
 0x844   :  { %5783 = vmatprep.subr.bf16.mxu0 %v3100_v37  ;;  %3132 = vmatpush1.bf16.msra.mxu1 %v3095_v18 }
 0x845   :  { %3133 = vmatprep.subr.bf16.mxu1 %v3099_v52 }
 0x847   :  { %5784 = vmatpush3.bf16.msra.mxu0 %v3100_v37 }
 0x848   :  { %3134 = vmatpush1.bf16.msra.mxu1 %v3098_v16 }
 0x84a   :  { %5786 = vmatmul.mubr.bf16.vlgmr.msra.gmra.mrb[128].mxu0 %v3070_v38 }
 0x84b   :  { %5789 = vmatprep.mubr.bf16.mxu0 %v3071_v31  ;;  %3152 = vmatmul.mubr.bf16.vlgmr.msra.gmra.mrb[112].mxu1 %v8757_v62 }
 0x84c   :  { %3161 = vmatprep.mubr.bf16.mxu1 %v10936_v58 }
 0x852   :  { %5790 = vmatmul.mubr.bf16.gmra.mrb[132].mxu0 %v3072_v15 }
 0x853   :  { %5793 = vmatprep.mubr.bf16.mxu0 %v3073_v33  ;;  %3162 = vmatmul.mubr.bf16.gmra.mrb[116].mxu1 %v3070_v38 }
 0x854   :  { %3171 = vmatprep.mubr.bf16.mxu1 %v10936_v58 }
 0x85a   :  { %5794 = vmatmul.mubr.bf16.gmra.mrb[136].mxu0 %v3074_v6 }
 0x85b   :  { %5797 = vmatprep.mubr.bf16.mxu0 %v3075_v10  ;;  %3172 = vmatmul.mubr.bf16.gmra.mrb[120].mxu1 %v3071_v31 }
 0x85c   :  { %3181 = vmatprep.mubr.bf16.mxu1 %v10936_v58 }
 0x862   :  { %5798 = vmatmul.mubr.bf16.gmra.mrb[140].mxu0 %v3076_v21 }
 0x863   :  { %3182 = vmatmul.mubr.bf16.gmra.mrb[124].mxu1 %v3072_v15 }
 0x864   :  { %3191 = vmatprep.mubr.bf16.mxu1 %v10936_v58 }
 0x86b   :  { %3192 = vmatmul.mubr.bf16.gmra.mrb[128].mxu1 %v3073_v33 }
 0x86c   :  { %3201 = vmatprep.mubr.bf16.mxu1 %v10936_v58 }
 0x873   :  { %3202 = vmatmul.mubr.bf16.gmra.mrb[132].mxu1 %v3074_v6 }
 0x874   :  { %3211 = vmatprep.mubr.bf16.mxu1 %v10936_v58 }
 0x87b   :  { %3212 = vmatmul.mubr.bf16.gmra.mrb[136].mxu1 %v3075_v10 }
 0x87c   :  { %3221 = vmatprep.mubr.bf16.mxu1 %v10936_v58 }
 0x883   :  { %3222 = vmatmul.mubr.bf16.gmra.mrb[140].mxu1 %v3076_v21 }
 0x91d   :  { %v5787_v60 = vpop.f32.mrb[128].mxu0 }
 0x91e   :  { %v3266_v39 = vpop.f32.mrb[129].mxu0  ;;  %v3153_v30 = vpop.f32.mrb[112].mxu1  ;;  %v8821_v4 = vadd.f32 %v5787_v60, %v8805_v56 }
 0x91f   :  { %v5788_v42 = vpop.f32.mrb[130].mxu0  ;;  %v3154_v19 = vadd.f32 %v3153_v30, %v8802_v50  ;;  %v3155_v23 = vpop.f32.mrb[113].mxu1  ;;  %v8814_v62 = vadd.f32 %v3266_v39, %v8805_v56 }
 0x920   :  { %v3269_v46 = vpop.f32.mrb[131].mxu0  ;;  %v3156_v63 = vadd.f32 %v3155_v23, %v8808_v57  ;;  %v3157_v43 = vpop.f32.mrb[114].mxu1  ;;  %v8831_v7 = vadd.f32 %v5788_v42, %v8805_v56 }
 0x921   :  { %v8817_v13 = vadd.f32 %v3269_v46, %v8805_v56  ;;  %v3158_v35 = vadd.f32 %v3157_v43, %v8802_v50  ;;  %v3159_v3 = vpop.f32.mrb[115].mxu1  ;;  %v3499_v9 = vmul.f32 %v8811_v49, %v3154_v19 }
 0x922   :  { %v3329_v26 = vmax.f32 %v3156_v63, 0.0  ;;  %v3160_v22 = vadd.f32 %v3159_v3, %v8808_v57 }
 0x923   :  { %v3345_v41 = vadd.f32 %v8817_v13, %v8814_v62  ;;  %v3500_v25 = vmul.f32 %v8811_v49, %v3158_v35 }
 0x924   :  { %v3517_v1 = vmul.f32 %v8823_v53, %v3329_v26  ;;  %v3330_v55 = vmax.f32 %v3160_v22, 0.0 }
 0x925   :  { %v3346_v28 = vadd.f32 %v3345_v41, %v8821_v4  ;;  %v5791_v59 = vpop.f32.mrb[132].mxu0 }
 0x926   :  { %v3282_v12 = vpop.f32.mrb[133].mxu0  ;;  %v8840_v18 = vadd.f32 %v3517_v1, %v3499_v9  ;;  %v3518_v52 = vmul.f32 %v8823_v53, %v3330_v55  ;;  %v3163_v38 = vpop.f32.mrb[116].mxu1  ;;  %v8852_v60 = vadd.f32 %v5791_v59, %v8805_v56 }
 0x927   :  { %v8837_v34 = vadd.f32 %v3282_v12, %v8805_v56  ;;  %v3347_v29 = vadd.f32 %v3346_v28, %v8831_v7  ;;  %v5792_v37 = vpop.f32.mrb[134].mxu0  ;;  %v3164_v31 = vadd.f32 %v3163_v38, %v8802_v50  ;;  %v3165_v15 = vpop.f32.mrb[117].mxu1 }
 0x928   :  { %v3285_v16 = vpop.f32.mrb[135].mxu0  ;;  %v8848_v10 = vadd.f32 %v3518_v52, %v3500_v25  ;;  %v3166_v21 = vadd.f32 %v3165_v15, %v8808_v57  ;;  %v3167_v61 = vpop.f32.mrb[118].mxu1  ;;  %v8859_v63 = vadd.f32 %v5792_v37, %v8805_v56 }
 0x929   :  { %v3348_v33 = vadd.f32 %v3347_v29, %v8837_v34  ;;  %v8846_v6 = vadd.f32 %v3285_v16, %v8805_v56  ;;  %v3168_v39 = vadd.f32 %v3167_v61, %v8802_v50  ;;  %v3169_v42 = vpop.f32.mrb[119].mxu1  ;;  %v3501_v46 = vmul.f32 %v8811_v49, %v3164_v31 }
 0x92a   :  { %v3331_v19 = vmax.f32 %v3166_v21, 0.0  ;;  %v3170_v23 = vadd.f32 %v3169_v42, %v8808_v57 }
 0x92b   :  { %v3349_v30 = vadd.f32 %v3348_v33, %v8846_v6  ;;  %v3502_v41 = vmul.f32 %v8811_v49, %v3168_v39 }
 0x92c   :  { %v3519_v3 = vmul.f32 %v8823_v53, %v3331_v19  ;;  %v3332_v9 = vmax.f32 %v3170_v23, 0.0 }
 0x92d   :  { %v3350_v43 = vadd.f32 %v3349_v30, %v8852_v60  ;;  %v5795_v35 = vpop.f32.mrb[136].mxu0 }
 0x92e   :  { %v3298_v26 = vpop.f32.mrb[137].mxu0  ;;  %v8868_v1 = vadd.f32 %v3519_v3, %v3501_v46  ;;  %v3520_v25 = vmul.f32 %v8823_v53, %v3332_v9  ;;  %v3173_v55 = vpop.f32.mrb[120].mxu1  ;;  %v8880_v33 = vadd.f32 %v5795_v35, %v8805_v56 }
 0x92f   :  { %v8865_v22 = vadd.f32 %v3298_v26, %v8805_v56  ;;  %v3351_v28 = vadd.f32 %v3350_v43, %v8859_v63  ;;  %v5796_v59 = vpop.f32.mrb[138].mxu0  ;;  %v3174_v29 = vadd.f32 %v3173_v55, %v8802_v50  ;;  %v3175_v37 = vpop.f32.mrb[121].mxu1 }
 0x930   :  { %v3301_v12 = vpop.f32.mrb[139].mxu0  ;;  %v8876_v16 = vadd.f32 %v3520_v25, %v3502_v41  ;;  %v3176_v31 = vadd.f32 %v3175_v37, %v8808_v57  ;;  %v3177_v15 = vpop.f32.mrb[122].mxu1  ;;  %v8887_v19 = vadd.f32 %v5796_v59, %v8805_v56 }
 0x931   :  { %v3352_v52 = vadd.f32 %v3351_v28, %v8865_v22  ;;  %v8874_v38 = vadd.f32 %v3301_v12, %v8805_v56  ;;  %v3178_v21 = vadd.f32 %v3177_v15, %v8802_v50  ;;  %v3179_v61 = vpop.f32.mrb[123].mxu1  ;;  %v3503_v42 = vmul.f32 %v8811_v49, %v3174_v29 }
 0x932   :  { %v3333_v30 = vmax.f32 %v3176_v31, 0.0  ;;  %v3180_v46 = vadd.f32 %v3179_v61, %v8808_v57 }
 0x933   :  { %v3353_v39 = vadd.f32 %v3352_v52, %v8874_v38  ;;  %v3504_v35 = vmul.f32 %v8811_v49, %v3178_v21 }
 0x934   :  { %v3521_v3 = vmul.f32 %v8823_v53, %v3333_v30  ;;  %v3334_v41 = vmax.f32 %v3180_v46, 0.0 }
 0x935   :  { %v3354_v23 = vadd.f32 %v3353_v39, %v8880_v33  ;;  %v5799_v43 = vpop.f32.mrb[140].mxu0 }
 0x936   :  { %v3314_v9 = vpop.f32.mrb[141].mxu0  ;;  %v8896_v55 = vadd.f32 %v3521_v3, %v3503_v42  ;;  %v3522_v59 = vmul.f32 %v8823_v53, %v3334_v41  ;;  %v3183_v12 = vpop.f32.mrb[124].mxu1  ;;  %v8908_v42 = vadd.f32 %v5799_v43, %v8805_v56 }
 0x937   :  { %v8893_v26 = vadd.f32 %v3314_v9, %v8805_v56  ;;  %v3355_v28 = vadd.f32 %v3354_v23, %v8887_v19  ;;  %v5800_v25 = vpop.f32.mrb[142].mxu0  ;;  %v3184_v37 = vadd.f32 %v3183_v12, %v8802_v50  ;;  %v3185_v52 = vpop.f32.mrb[125].mxu1 }
 0x938   :  { %v3317_v29 = vpop.f32.mrb[143].mxu0  ;;  %v8904_v21 = vadd.f32 %v3522_v59, %v3504_v35  ;;  %v3186_v61 = vadd.f32 %v3185_v52, %v8808_v57  ;;  %v3187_v39 = vpop.f32.mrb[126].mxu1 }
 0x939   :  { %v3356_v31 = vadd.f32 %v3355_v28, %v8893_v26  ;;  %v8902_v15 = vadd.f32 %v3317_v29, %v8805_v56  ;;  %v3188_v30 = vadd.f32 %v3187_v39, %v8802_v50  ;;  %v3189_v46 = vpop.f32.mrb[127].mxu1  ;;  %v3505_v3 = vmul.f32 %v8811_v49, %v3184_v37 }
 0x93a   :  { %10940 = vst [vmem:[#allocation41_spill] sm:$0xff] %v8904_v21  ;;  %v3335_v41 = vmax.f32 %v3186_v61, 0.0  ;;  %v3190_v9 = vadd.f32 %v3189_v46, %v8808_v57  ;;  %v3326_v28 = vadd.f32 %v5800_v25, %v8805_v56 }
 0x93b   :  { %v3357_v23 = vadd.f32 %v3356_v31, %v8902_v15  ;;  %v3506_v12 = vmul.f32 %v8811_v49, %v3188_v30 }
 0x93c   :  { %v3523_v59 = vmul.f32 %v8823_v53, %v3335_v41  ;;  %v3336_v43 = vmax.f32 %v3190_v9, 0.0 }
 0x93d   :  { %v3358_v35 = vadd.f32 %v3357_v23, %v8908_v42 }
 0x93e   :  { %v8918_v52 = vadd.f32 %v3523_v59, %v3505_v3  ;;  %v3524_v39 = vmul.f32 %v8823_v53, %v3336_v43  ;;  %v3193_v31 = vpop.f32.mrb[128].mxu1 }
 0x93f   :  { %v3359_v29 = vadd.f32 %v3358_v35, %v3326_v28  ;;  %v3194_v37 = vadd.f32 %v3193_v31, %v8802_v50  ;;  %v3195_v61 = vpop.f32.mrb[129].mxu1 }
 0x940   :  { %10941 = vst [vmem:[#allocation49_spill] sm:$0xff] %v8918_v52  ;;  %v8922_v46 = vadd.f32 %v3524_v39, %v3506_v12  ;;  %v3196_v56 = vadd.f32 %v3195_v61, %v8808_v57  ;;  %v3197_v25 = vpop.f32.mrb[130].mxu1 }
 0x941   :  { %v3360_v27 = vrot.slane %v3359_v29, 4  ;;  %v3198_v23 = vadd.f32 %v3197_v25, %v8802_v50  ;;  %v3199_v41 = vpop.f32.mrb[131].mxu1  ;;  %v3507_v9 = vmul.f32 %v8811_v49, %v3194_v37 }
 0x942   :  { %10942 = vst [vmem:[#allocation46_spill] sm:$0xff] %v8922_v46  ;;  %v3337_v3 = vmax.f32 %v3196_v56, 0.0  ;;  %v3200_v35 = vadd.f32 %v3199_v41, %v8808_v57 }
 0x943   :  { %v3361_v30 = vadd.f32 %v3360_v27, %v3359_v29  ;;  %v3508_v31 = vmul.f32 %v8811_v49, %v3198_v23 }
 0x944   :  { %v3525_v43 = vmul.f32 %v8823_v53, %v3337_v3  ;;  %v3338_v32 = vmax.f32 %v3200_v35, 0.0 }
 0x945   :  { %v3362_v59 = vrot.slane %v3361_v30, 2 }
 0x946   :  { %v8930_v39 = vadd.f32 %v3525_v43, %v3507_v9  ;;  %v3526_v61 = vmul.f32 %v8823_v53, %v3338_v32  ;;  %v3203_v48 = vpop.f32.mrb[132].mxu1 }
 0x947   :  { %v3363_v12 = vadd.f32 %v3362_v59, %v3361_v30  ;;  %v3205_v25 = vpop.f32.mrb[133].mxu1  ;;  %v3204_v37 = vadd.f32 %v3203_v48, %v8802_v50 }
 0x948   :  { %10943 = vst [vmem:[#allocation40_spill] sm:$0xff] %v8930_v39  ;;  %v8933_v27 = vadd.f32 %v3526_v61, %v3508_v31  ;;  %v3207_v29 = vpop.f32.mrb[134].mxu1  ;;  %v3206_v56 = vadd.f32 %v3205_v25, %v8808_v57 }
 0x949   :  { %v3364_v58 = vrot.slane %v3363_v12, 1  ;;  %v3209_v41 = vpop.f32.mrb[135].mxu1  ;;  %v3509_v23 = vmul.f32 %v8811_v49, %v3204_v37  ;;  %v3208_v9 = vadd.f32 %v3207_v29, %v8802_v50 }
 0x94a   :  { %10944 = vst [vmem:[#allocation45_spill] sm:$0xff] %v8933_v27  ;;  %v3339_v30 = vmax.f32 %v3206_v56, 0.0  ;;  %v3210_v32 = vadd.f32 %v3209_v41, %v8808_v57 }
 0x94b   :  { %v3365_v3 = vadd.f32 %v3364_v58, %v3363_v12 }
 0x94c   :  { %v3527_v37 = vmul.f32 %v8823_v53, %v3339_v30  ;;  %v3340_v56 = vmax.f32 %v3210_v32, 0.0 }
 0x94d   :  { %v3366_v17 = vmul.f32 0.0078125, %v3365_v3 }
 0x94e   :  { %v3213_v58 = vpop.f32.mrb[136].mxu1  ;;  %v8999_v41 = vadd.f32 %v3527_v37, %v3509_v23  ;;  %v3528_v3 = vmul.f32 %v8823_v53, %v3340_v56 }
 0x94f   :  { %v8941_v35 = vsub.f32 %v8814_v62, %v3366_v17  ;;  %v8944_v59 = vsub.f32 %v8817_v13, %v3366_v17  ;;  %v8947_v48 = vsub.f32 %v8821_v4, %v3366_v17  ;;  %v8950_v43 = vsub.f32 %v8831_v7, %v3366_v17  ;;  %v3215_v13 = vpop.f32.mrb[137].mxu1 }
 0x950   :  { %v8953_v31 = vsub.f32 %v8837_v34, %v3366_v17  ;;  %v8956_v12 = vsub.f32 %v8846_v6, %v3366_v17  ;;  %v8959_v61 = vsub.f32 %v8852_v60, %v3366_v17  ;;  %v8962_v62 = vsub.f32 %v8859_v63, %v3366_v17  ;;  %v3217_v6 = vpop.f32.mrb[138].mxu1  ;;  %10945 = vst [vmem:[#allocation47_spill] sm:$0xff] %v8999_v41 }
 0x951   :  { %v8965_v4 = vsub.f32 %v8865_v22, %v3366_v17  ;;  %v8968_v7 = vsub.f32 %v8874_v38, %v3366_v17  ;;  %v8971_v25 = vsub.f32 %v8880_v33, %v3366_v17  ;;  %v8974_v34 = vsub.f32 %v8887_v19, %v3366_v17  ;;  %v3219_v38 = vpop.f32.mrb[139].mxu1 }
 0x952   :  { %v8977_v60 = vsub.f32 %v8893_v26, %v3366_v17  ;;  %v8980_v63 = vsub.f32 %v8902_v15, %v3366_v17  ;;  %v8983_v29 = vsub.f32 %v8908_v42, %v3366_v17  ;;  %v8985_v22 = vsub.f32 %v3326_v28, %v3366_v17 }
 0x953   :  { %v3383_v33 = vmul.f32 %v8941_v35, %v8941_v35  ;;  %v3384_v19 = vmul.f32 %v8944_v59, %v8944_v59  ;;  %v3510_v26 = vmul.f32 %v8811_v49, %v3208_v9  ;;  %v3385_v15 = vmul.f32 %v8947_v48, %v8947_v48 }
 0x954   :  { %v3386_v42 = vmul.f32 %v8950_v43, %v8950_v43  ;;  %v3387_v17 = vmul.f32 %v8953_v31, %v8953_v31  ;;  %v3214_v27 = vadd.f32 %v3213_v58, %v8802_v50  ;;  %v3216_v32 = vadd.f32 %v3215_v13, %v8808_v57 }
 0x955   :  { %v3399_v28 = vadd.f32 %v3384_v19, %v3383_v33  ;;  %v3218_v9 = vadd.f32 %v3217_v6, %v8802_v50  ;;  %v3220_v39 = vadd.f32 %v3219_v38, %v8808_v57  ;;  %v9007_v21 = vadd.f32 %v3528_v3, %v3510_v26 }
 0x956   :  { %v3223_v30 = vpop.f32.mrb[140].mxu1  ;;  %v3511_v23 = vmul.f32 %v8811_v49, %v3214_v27  ;;  %v3341_v37 = vmax.f32 %v3216_v32, 0.0  ;;  %v3388_v26 = vmul.f32 %v8956_v12, %v8956_v12 }
 0x957   :  { %v3224_v5 = vadd.f32 %v3223_v30, %v8802_v50  ;;  %v3225_v46 = vpop.f32.mrb[141].mxu1  ;;  %v3400_v52 = vadd.f32 %v3399_v28, %v3385_v15  ;;  %v3512_v58 = vmul.f32 %v8811_v49, %v3218_v9  ;;  %v3342_v56 = vmax.f32 %v3220_v39, 0.0 }
 0x958   :  { %v3226_v33 = vadd.f32 %v3225_v46, %v8808_v57  ;;  %v3227_v19 = vpop.f32.mrb[142].mxu1  ;;  %v3529_v27 = vmul.f32 %v8823_v53, %v3341_v37 }
 0x959   :  { %v3513_v13 = vmul.f32 %v8811_v49, %v3224_v5  ;;  %v3229_v6 = vpop.f32.mrb[143].mxu1  ;;  %v3401_v41 = vadd.f32 %v3400_v52, %v3386_v42  ;;  %v3228_v30 = vadd.f32 %v3227_v19, %v8802_v50  ;;  %v3530_v46 = vmul.f32 %v8823_v53, %v3342_v56 }
 0x95a   :  { %v3343_v38 = vmax.f32 %v3226_v33, 0.0  ;;  %v3230_v15 = vadd.f32 %v3229_v6, %v8808_v57  ;;  %v9021_v32 = vadd.f32 %v3529_v27, %v3511_v23  ;;  %v3389_v50 = vmul.f32 %v8959_v61, %v8959_v61 }
 0x95b   :  { %v3402_v28 = vadd.f32 %v3401_v41, %v3387_v17  ;;  %v3514_v39 = vmul.f32 %v8811_v49, %v3228_v30  ;;  %v9023_v52 = vadd.f32 %v3530_v46, %v3512_v58  ;;  %v3390_v17 = vmul.f32 %v8962_v62, %v8962_v62 }
 0x95c   :  { %v3531_v3 = vmul.f32 %v8823_v53, %v3343_v38  ;;  %v3344_v5 = vmax.f32 %v3230_v15, 0.0  ;;  %v3391_v49 = vmul.f32 %v8965_v4, %v8965_v4  ;;  %v3392_v19 = vmul.f32 %v8968_v7, %v8968_v7 }
 0x95d   :  { %v3403_v57 = vadd.f32 %v3402_v28, %v3388_v26  ;;  %v3393_v58 = vmul.f32 %v8971_v25, %v8971_v25  ;;  %v3395_v6 = vmul.f32 %v8977_v60, %v8977_v60  ;;  %v3396_v30 = vmul.f32 %v8980_v63, %v8980_v63 }
 0x95e   :  { %v9027_v42 = vadd.f32 %v3531_v3, %v3513_v13  ;;  %v3532_v9 = vmul.f32 %v8823_v53, %v3344_v5  ;;  %v3394_v53 = vmul.f32 %v8974_v34, %v8974_v34  ;;  %v3397_v26 = vmul.f32 %v8983_v29, %v8983_v29 }
 0x95f   :  { %v3404_v41 = vadd.f32 %v3403_v57, %v3389_v50  ;;  %v3398_v46 = vmul.f32 %v8985_v22, %v8985_v22 }
 0x960   :  { %v9032_v33 = vadd.f32 %v3532_v9, %v3514_v39 }
 0x961   :  { %v3405_v23 = vadd.f32 %v3404_v41, %v3390_v17 }
 0x963   :  { %v3406_v37 = vadd.f32 %v3405_v23, %v3391_v49  ;;  %v9050_v23 = vstv %s5437_s8 }
 0x965   :  { %v3407_v56 = vadd.f32 %v3406_v37, %v3392_v19  ;;  %v9052_v19 = vstv %s5436_s9  ;;  %v9056_v37 = vmul.f32 %v9050_v23, %v8659_v24  ;;  %v9076_v24 = vmul.f32 %v9050_v23, %v8677_v54  ;;  %v9099_v54 = vld [vmem:[%s10799_s4 + $0x5] ss:$0 sm:$0xff] }
 0x967   :  { %v3408_v13 = vadd.f32 %v3407_v56, %v3393_v58  ;;  %v9060_v58 = vmul.f32 %v9050_v23, %v8665_v36  ;;  %v9064_v56 = vmul.f32 %v9050_v23, %v8668_v11  ;;  %v9080_v36 = vmul.f32 %v9050_v23, %v8680_v0 }
 0x968   :  { %v9084_v11 = vmul.f32 %v9050_v23, %v8709_v44  ;;  %v9103_v0 = vmul.f32 %v9050_v23, %v8744_v47  ;;  %v9107_v44 = vmul.f32 %v9050_v23, %v8747_v20 }
 0x969   :  { %v3409_v38 = vadd.f32 %v3408_v13, %v3394_v53  ;;  %v9068_v53 = vmul.f32 %v9050_v23, %v8671_v14  ;;  %v9072_v13 = vmul.f32 %v9050_v23, %v8674_v8  ;;  %v9088_v14 = vmul.f32 %v9050_v23, %v8735_v2 }
 0x96a   :  { %v9092_v8 = vmul.f32 %v9050_v23, %v8741_v40  ;;  %v9111_v2 = vmul.f32 %v9050_v23, %v8732_v51  ;;  %v9115_v40 = vmul.f32 %v9050_v23, %v8712_v45  ;;  %v9132_v51 = vld [vmem:[%s10800_s5 + $0x5] ss:$0 sm:$0xff] }
 0x96b   :  { %v3410_v15 = vadd.f32 %v3409_v38, %v3395_v6 }
 0x96d   :  { %v3411_v27 = vadd.f32 %v3410_v15, %v3396_v30 }
 0x96f   :  { %v3412_v28 = vadd.f32 %v3411_v27, %v3397_v26 }
 0x971   :  { %v3413_v3 = vadd.f32 %v3412_v28, %v3398_v46 }
 0x973   :  { %v3414_v39 = vrot.slane %v3413_v3, 4 }
 0x975   :  { %v3415_v5 = vadd.f32 %v3414_v39, %v3413_v3 }
 0x977   :  { %v3416_v50 = vrot.slane %v3415_v5, 2 }
 0x979   :  { %v3417_v57 = vadd.f32 %v3416_v50, %v3415_v5 }
 0x97b   :  { %v3418_v9 = vrot.slane %v3417_v57, 1 }
 0x97d   :  { %v3419_v17 = vadd.f32 %v3418_v9, %v3417_v57 }
 0x97f   :  { %v3420_v41 = vmul.f32 0.0078125, %v3419_v17 }
 0x981   :  { %v3421_v49 = vadd.f32 1e-05, %v3420_v41 }
 0x983   :  { %5932 = vrsqrt.f32 %v3421_v49 }
 0x98d   :  { %v9094_v6 = vpop.eup %5932 }
 0x98e   :  { %v9119_v38 = vmul.f32 %v9094_v6, %v8977_v60  ;;  %v3436_v47 = vmul.f32 %v9094_v6, %v8980_v63  ;;  %v9125_v30 = vmul.f32 %v9094_v6, %v8983_v29  ;;  %v3423_v20 = vmul.f32 %v9094_v6, %v8941_v35 }
 0x98f   :  { %v3424_v45 = vmul.f32 %v9094_v6, %v8944_v59  ;;  %v3425_v60 = vmul.f32 %v9094_v6, %v8947_v48  ;;  %v3426_v63 = vmul.f32 %v9094_v6, %v8950_v43  ;;  %v3427_v29 = vmul.f32 %v9094_v6, %v8953_v31 }
 0x990   :  { %v3457_v15 = vmul.f32 %v9099_v54, %v3436_v47  ;;  %v3444_v35 = vmul.f32 %v9099_v54, %v3423_v20  ;;  %v3428_v26 = vmul.f32 %v9094_v6, %v8956_v12  ;;  %v3429_v27 = vmul.f32 %v9094_v6, %v8959_v61 }
 0x991   :  { %v3445_v59 = vmul.f32 %v9099_v54, %v3424_v45  ;;  %v3446_v48 = vmul.f32 %v9099_v54, %v3425_v60  ;;  %v3447_v46 = vmul.f32 %v9099_v54, %v3426_v63  ;;  %v3448_v43 = vmul.f32 %v9099_v54, %v3427_v29 }
 0x992   :  { %v3478_v31 = vadd.f32 %v9132_v51, %v3457_v15  ;;  %v3465_v28 = vadd.f32 %v9132_v51, %v3444_v35  ;;  %v3449_v3 = vmul.f32 %v9099_v54, %v3428_v26  ;;  %v3450_v39 = vmul.f32 %v9099_v54, %v3429_v27 }
 0x993   :  { %v3466_v12 = vadd.f32 %v9132_v51, %v3445_v59  ;;  %v3467_v61 = vadd.f32 %v9132_v51, %v3446_v48  ;;  %v3468_v5 = vadd.f32 %v9132_v51, %v3447_v46  ;;  %v3469_v50 = vadd.f32 %v9132_v51, %v3448_v43 }
 0x994   :  { %v3494_v57 = vmax.f32 %v3478_v31, 0.0  ;;  %v3481_v9 = vmax.f32 %v3465_v28, 0.0  ;;  %v3470_v17 = vadd.f32 %v9132_v51, %v3449_v3  ;;  %v3471_v41 = vadd.f32 %v9132_v51, %v3450_v39 }
 0x995   :  { %v3482_v49 = vmax.f32 %v3466_v12, 0.0  ;;  %v3483_v47 = vmax.f32 %v3467_v61, 0.0  ;;  %v3484_v20 = vmax.f32 %v3468_v5, 0.0  ;;  %v3485_v45 = vmax.f32 %v3469_v50, 0.0  ;;  %v10946_v61 = vld [vmem:[#allocation41_spill] sm:$0xff] }
 0x996   :  { %v3551_v60 = vmul.f32 %v9052_v19, %v3481_v9  ;;  %v3486_v63 = vmax.f32 %v3470_v17, 0.0  ;;  %v3487_v29 = vmax.f32 %v3471_v41, 0.0  ;;  %v3430_v15 = vmul.f32 %v9094_v6, %v8962_v62 }
 0x997   :  { %v3552_v35 = vmul.f32 %v9052_v19, %v3482_v49  ;;  %v3553_v26 = vmul.f32 %v9052_v19, %v3483_v47  ;;  %v3554_v27 = vmul.f32 %v9052_v19, %v3484_v20  ;;  %v3555_v59 = vmul.f32 %v9052_v19, %v3485_v45  ;;  %v10948_v45 = vld [vmem:[#allocation46_spill] sm:$0xff] }
 0x998   :  { %v3567_v48 = vadd.f32 %v3551_v60, %v8840_v18  ;;  %v3556_v46 = vmul.f32 %v9052_v19, %v3486_v63  ;;  %v3557_v43 = vmul.f32 %v9052_v19, %v3487_v29  ;;  %v3451_v31 = vmul.f32 %v9099_v54, %v3430_v15  ;;  %v10947_v18 = vld [vmem:[#allocation49_spill] sm:$0xff] }
 0x999   :  { %v3568_v28 = vadd.f32 %v3552_v35, %v8848_v10  ;;  %v3569_v62 = vadd.f32 %v3553_v26, %v8868_v1  ;;  %v3570_v3 = vadd.f32 %v3554_v27, %v8876_v16  ;;  %v3571_v39 = vadd.f32 %v3555_v59, %v8896_v55 }
 0x99a   :  { %v9178_v12 = vadd.f32 %v9056_v37, %v3567_v48  ;;  %v3572_v5 = vadd.f32 %v3556_v46, %v10946_v61  ;;  %v3573_v50 = vadd.f32 %v3557_v43, %v10947_v18  ;;  %v3472_v9 = vadd.f32 %v9132_v51, %v3451_v31 }
 0x99b   :  { %v9184_v17 = vadd.f32 %v9060_v58, %v3568_v28  ;;  %v9187_v10 = vadd.f32 %v9064_v56, %v3569_v62  ;;  %v9190_v1 = vadd.f32 %v9068_v53, %v3570_v3  ;;  %v9193_v16 = vadd.f32 %v9072_v13, %v3571_v39  ;;  %v10949_v3 = vld [vmem:[#allocation50_spill] sm:$0xff] }
 0x99c   :  { %v9196_v55 = vadd.f32 %v9076_v24, %v3572_v5  ;;  %v9199_v37 = vadd.f32 %v9080_v36, %v3573_v50  ;;  %v3488_v41 = vmax.f32 %v3472_v9, 0.0  ;;  %v3431_v58 = vmul.f32 %v9094_v6, %v8965_v4  ;;  %v10950_v50 = vld [vmem:[#allocation40_spill] sm:$0xff] }
 0x99d   :  { %v3432_v56 = vmul.f32 %v9094_v6, %v8968_v7  ;;  %v3433_v53 = vmul.f32 %v9094_v6, %v8971_v25  ;;  %v3434_v13 = vmul.f32 %v9094_v6, %v8974_v34  ;;  %v3456_v24 = vmul.f32 %v9099_v54, %v9119_v38 }
 0x99e   :  { %v3558_v49 = vmul.f32 %v9052_v19, %v3488_v41  ;;  %v3452_v36 = vmul.f32 %v9099_v54, %v3431_v58  ;;  %v3564_v47 = vmul.f32 %v9052_v19, %v3494_v57  ;;  %v3458_v4 = vmul.f32 %v9099_v54, %v9125_v30 }
 0x99f   :  { %v3453_v7 = vmul.f32 %v9099_v54, %v3432_v56  ;;  %v3454_v20 = vmul.f32 %v9099_v54, %v3433_v53  ;;  %v3455_v25 = vmul.f32 %v9099_v54, %v3434_v13  ;;  %v3477_v34 = vadd.f32 %v9132_v51, %v3456_v24  ;;  %v10951_v56 = vld [vmem:[#allocation45_spill] sm:$0xff]  ;;  %v10952_v13 = vld [vmem:[#allocation47_spill] sm:$0xff] }
 0x9a0   :  { %v3574_v60 = vadd.f32 %v3558_v49, %v10948_v45  ;;  %v3473_v38 = vadd.f32 %v9132_v51, %v3452_v36  ;;  %v3580_v63 = vadd.f32 %v3564_v47, %v9023_v52  ;;  %v3479_v29 = vadd.f32 %v9132_v51, %v3458_v4  ;;  %v10954_v4 = vld [vmem:[#allocation48_spill] sm:$0xff] }
 0x9a1   :  { %v3474_v57 = vadd.f32 %v9132_v51, %v3453_v7  ;;  %v3475_v30 = vadd.f32 %v9132_v51, %v3454_v20  ;;  %v3476_v15 = vadd.f32 %v9132_v51, %v3455_v25  ;;  %v3493_v35 = vmax.f32 %v3477_v34, 0.0 }
 0x9a2   :  { %v9228_v26 = vadd.f32 %v9084_v11, %v3574_v60  ;;  %v3489_v27 = vmax.f32 %v3473_v38, 0.0  ;;  %v9231_v59 = vadd.f32 %v9115_v40, %v3580_v63  ;;  %v3495_v48 = vmax.f32 %v3479_v29, 0.0 }
 0x9a3   :  { %v3490_v46 = vmax.f32 %v3474_v57, 0.0  ;;  %v3491_v43 = vmax.f32 %v3475_v30, 0.0  ;;  %v3492_v52 = vmax.f32 %v3476_v15, 0.0  ;;  %v3563_v31 = vmul.f32 %v9052_v19, %v3493_v35 }
 0x9a4   :  { %v3559_v28 = vmul.f32 %v9052_v19, %v3489_v27  ;;  %v3565_v62 = vmul.f32 %v9052_v19, %v3495_v48  ;;  %v3599_v39 = vmul.f32 %v9050_v23, %v10949_v3  ;;  %v3438_v11 = vmul.f32 %v9094_v6, %v8985_v22 }
 0x9a5   :  { %v3560_v61 = vmul.f32 %v9052_v19, %v3490_v46  ;;  %v3561_v40 = vmul.f32 %v9052_v19, %v3491_v43  ;;  %v3562_v5 = vmul.f32 %v9052_v19, %v3492_v52  ;;  %v3579_v18 = vadd.f32 %v3563_v31, %v9021_v32 }
 0x9a6   :  { %v3575_v9 = vadd.f32 %v3559_v28, %v10950_v50  ;;  %v3581_v41 = vadd.f32 %v3565_v62, %v9027_v42  ;;  %v3459_v58 = vmul.f32 %v9099_v54, %v3438_v11 }
 0x9a7   :  { %v3576_v53 = vadd.f32 %v3560_v61, %v10951_v56  ;;  %v3577_v24 = vadd.f32 %v3561_v40, %v10952_v13  ;;  %v3578_v22 = vadd.f32 %v3562_v5, %v9007_v21  ;;  %v9251_v6 = vadd.f32 %v9111_v2, %v3579_v18 }
 0x9a8   :  { %v9254_v49 = vadd.f32 %v9088_v14, %v3575_v9  ;;  %v9256_v36 = vadd.f32 %v3599_v39, %v3581_v41  ;;  %v3480_v32 = vadd.f32 %v9132_v51, %v3459_v58  ;;  %v3600_v14 = vmul.f32 %v9050_v23, %v10954_v4 }
 0x9a9   :  { %v9260_v42 = vadd.f32 %v9092_v8, %v3576_v53  ;;  %v9263_v54 = vadd.f32 %v9103_v0, %v3577_v24  ;;  %v9266_v47 = vadd.f32 %v9107_v44, %v3578_v22 }
 0x9aa   :  { %10953 = vst [vmem:[#allocation41_spill] sm:$0xff] %v9256_v36  ;;  %v3496_v21 = vmax.f32 %v3480_v32, 0.0 }
 0x9ac   :  { %v3566_v2 = vmul.f32 %v9052_v19, %v3496_v21 }
 0x9ae   :  { %v3582_v7 = vadd.f32 %v3566_v2, %v9032_v33 }
 0x9b0   :  { %v9272_v20 = vadd.f32 %v3600_v14, %v3582_v7 }
 0x9b2   :  { %10955 = vst [vmem:[#allocation49_spill] sm:$0xff] %v9272_v20 }
 0x9b3   :  { %6012 = dma.done.wait [#allocation3], 3072 }
 0x9b4   :  { %6013 = vsyncadd [#allocation3], 4294964224  ;;  %v9276_v8 = vpack.c.bf16 %v9184_v17, %v9178_v12  ;;  %v10956_v0 = vmov 0   ;;  %3635 = sst [smem:[#allocation25]] %s6025_s18  ;;  %s3619_s20 = scalar_lea.hbm %s10797_s2, 21504  ;;  %v3655_v62 = vpack.c.bf16 %v9190_v1, %v9187_v10  ;;  %v3656_v39 = vpack.c.bf16 %v9196_v55, %v9193_v16 }
 0x9b5   :  { %3736 = vmatprep.mubr.bf16.mxu0 %v10956_v0  ;;  %3637 = sst [smem:[#allocation25 + $0x1]] %s6025_s18  ;;  %s6042_s28 = smov [#allocation24]   ;;  %v3657_v11 = vpack.c.bf16 %v9228_v26, %v9199_v37  ;;  %v3658_v61 = vpack.c.bf16 %v9260_v42, %v9254_v49  ;;  %v3659_v40 = vpack.c.bf16 %v9266_v47, %v9263_v54  ;;  %v3660_v5 = vpack.c.bf16 %v9231_v59, %v9251_v6 }
 0x9b6   :  { %5817 = vmatprep.mubr.bf16.mxu1 %v9276_v8  ;;  %3639 = sst [smem:[#allocation25 + $0x2]] %s6026_s19  ;;  %v3661_v18 = vpack.c.bf16 %v9272_v20, %v9256_v36 }
 0x9b7   :  { %3641 = sst [smem:[#allocation25 + $0x3]] %s6027_s1 }
 0x9b8   :  { %3643 = sst [smem:[#allocation25 + $0x4]] %s6021_s26 }
 0x9b9   :  { %3645 = sst [smem:[#allocation25 + $0x5]] %s6028_s22 }
 0x9ba   :  { %3647 = sst [smem:[#allocation25 + $0x6]] %s6029_s23 }
 0x9bb   :  { %3649 = sst [smem:[#allocation25 + $0x7]] %s6027_s1 }
 0x9bc   :  { %3651 = sst [smem:[#allocation25 + $0x8]] %s6030_s24 }
 0x9bd   :  { %3653 = dma.general %s3619_s20, 3072, %s6166_s7, %s6035_s11, %s6042_s28, [#allocation25], %s6108_s21, 0  }
 0x9be   :  { %v3664_v33 = vld [vmem:[#allocation2 + $0x10] sm:$0xff]  ;;  %v3667_v23 = vld [vmem:[#allocation2 + $0x28] sm:$0xff]  ;;  %v3662_v44 = vld [vmem:[#allocation2] sm:$0xff]  ;;  %s5443_s7 = sld [smem:[#allocation4 + $0x300]]  ;;  %s5444_s30 = sld [smem:[#allocation4 + $0x301]] }
 0x9bf   :  { %5801 = vmatprep.subr.bf16.mxu1 %v3664_v33  ;;  %v3663_v19 = vld [vmem:[#allocation2 + $0x8] sm:$0xff]  ;;  %v3666_v51 = vld [vmem:[#allocation2 + $0x20] sm:$0xff]  ;;  %v3665_v34 = vld [vmem:[#allocation2 + $0x18] sm:$0xff]  ;;  %s5446_s0 = sld [smem:[#allocation4 + $0x303]]  ;;  %s5445_s8 = sld [smem:[#allocation4 + $0x302]] }
 0x9c0   :  { %5802 = vmatpush3.bf16.msra.mxu1 %v3664_v33  ;;  %3704 = vmatprep.subr.bf16.mxu0 %v3663_v19  ;;  %v3670_v25 = vld [vmem:[#allocation2 + $0x40] sm:$0xff]  ;;  %v3669_v45 = vld [vmem:[#allocation2 + $0x38] sm:$0xff]  ;;  %v3668_v38 = vld [vmem:[#allocation2 + $0x30] sm:$0xff] }
 0x9c1   :  { %5803 = vmatprep.subr.bf16.mxu1 %v3667_v23  ;;  %3705 = vmatpush1.bf16.msra.mxu0 %v3662_v44  ;;  %v3673_v60 = vld [vmem:[#allocation2 + $0x58] sm:$0xff]  ;;  %v3672_v63 = vld [vmem:[#allocation2 + $0x50] sm:$0xff]  ;;  %v3671_v57 = vld [vmem:[#allocation2 + $0x48] sm:$0xff] }
 0x9c2   :  { %3706 = vmatprep.subr.bf16.mxu0 %v3666_v51  ;;  %v3676_v29 = vld [vmem:[#allocation2 + $0x70] sm:$0xff]  ;;  %v3675_v30 = vld [vmem:[#allocation2 + $0x68] sm:$0xff]  ;;  %v3674_v35 = vld [vmem:[#allocation2 + $0x60] sm:$0xff] }
 0x9c3   :  { %v3679_v15 = vld [vmem:[#allocation2 + $0x88] sm:$0xff]  ;;  %v3678_v27 = vld [vmem:[#allocation2 + $0x80] sm:$0xff]  ;;  %v3677_v46 = vld [vmem:[#allocation2 + $0x78] sm:$0xff] }
 0x9c4   :  { %5804 = vmatpush3.bf16.msra.mxu1 %v3667_v23  ;;  %v3682_v48 = vld [vmem:[#allocation2 + $0xa0] sm:$0xff]  ;;  %v3681_v43 = vld [vmem:[#allocation2 + $0x98] sm:$0xff]  ;;  %v3680_v31 = vld [vmem:[#allocation2 + $0x90] sm:$0xff]  ;;  %v9330_v14 = vstv %s5443_s7  ;;  %v9342_v51 = vstv %s5444_s30 }
 0x9c5   :  { %5805 = vmatprep.subr.bf16.mxu1 %v3670_v25  ;;  %3707 = vmatpush1.bf16.msra.mxu0 %v3665_v34  ;;  %v3685_v52 = vld [vmem:[#allocation2 + $0xb8] sm:$0xff]  ;;  %v3684_v28 = vld [vmem:[#allocation2 + $0xb0] sm:$0xff]  ;;  %v3683_v3 = vld [vmem:[#allocation2 + $0xa8] sm:$0xff] }
 0x9c6   :  { %3708 = vmatprep.subr.bf16.mxu0 %v3669_v45  ;;  %v5440_v50 = vld [vmem:[%s10798_s3 + $0x6] ss:$8 sm:$0x7]  ;;  %v10958_v58 = vld [vmem:[#allocation43_spill] sm:$0xff] }
 0x9c7   :  { %v10957_v9 = vld [vmem:[#allocation42_spill] sm:$0xff]  ;;  %v9324_v56 = vrot.slane %v5440_v50, %v10958_v58  ;;  %v10959_v13 = vld [vmem:[#allocation44_spill] sm:$0xff] }
 0x9c8   :  { %5806 = vmatpush3.bf16.msra.mxu1 %v3670_v25  ;;  %v9321_v41 = vrot.slane %v5440_v50, %v10957_v9  ;;  %v9327_v24 = vrot.slane %v5440_v50, %v10959_v13 }
 0x9c9   :  { %5807 = vmatprep.subr.bf16.mxu1 %v3673_v60  ;;  %3709 = vmatpush1.bf16.msra.mxu0 %v3668_v38 }
 0x9ca   :  { %3710 = vmatprep.subr.bf16.mxu0 %v3672_v63 }
 0x9cc   :  { %5808 = vmatpush3.bf16.msra.mxu1 %v3673_v60 }
 0x9cd   :  { %5809 = vmatprep.subr.bf16.mxu1 %v3676_v29  ;;  %3711 = vmatpush1.bf16.msra.mxu0 %v3671_v57 }
 0x9ce   :  { %3712 = vmatprep.subr.bf16.mxu0 %v3675_v30 }
 0x9d0   :  { %5810 = vmatpush3.bf16.msra.mxu1 %v3676_v29 }
 0x9d1   :  { %5811 = vmatprep.subr.bf16.mxu1 %v3679_v15  ;;  %3713 = vmatpush1.bf16.msra.mxu0 %v3674_v35 }
 0x9d2   :  { %3714 = vmatprep.subr.bf16.mxu0 %v3678_v27 }
 0x9d4   :  { %5812 = vmatpush3.bf16.msra.mxu1 %v3679_v15 }
 0x9d5   :  { %5813 = vmatprep.subr.bf16.mxu1 %v3682_v48  ;;  %3715 = vmatpush1.bf16.msra.mxu0 %v3677_v46 }
 0x9d6   :  { %3716 = vmatprep.subr.bf16.mxu0 %v3681_v43 }
 0x9d8   :  { %5814 = vmatpush3.bf16.msra.mxu1 %v3682_v48 }
 0x9d9   :  { %5815 = vmatprep.subr.bf16.mxu1 %v3685_v52  ;;  %3717 = vmatpush1.bf16.msra.mxu0 %v3680_v31 }
 0x9da   :  { %3718 = vmatprep.subr.bf16.mxu0 %v3684_v28 }
 0x9dc   :  { %5816 = vmatpush3.bf16.msra.mxu1 %v3685_v52 }
 0x9dd   :  { %3719 = vmatpush1.bf16.msra.mxu0 %v3683_v3 }
 0x9df   :  { %5818 = vmatmul.mubr.bf16.vlgmr.msra.gmra.mrb[144].mxu1 %v3655_v62 }
 0x9e0   :  { %5821 = vmatprep.mubr.bf16.mxu1 %v3656_v39  ;;  %3737 = vmatmul.mubr.bf16.vlgmr.msra.gmra.mrb[144].mxu0 %v9276_v8 }
 0x9e1   :  { %3746 = vmatprep.mubr.bf16.mxu0 %v10956_v0 }
 0x9e7   :  { %5822 = vmatmul.mubr.bf16.gmra.mrb[148].mxu1 %v3657_v11 }
 0x9e8   :  { %5825 = vmatprep.mubr.bf16.mxu1 %v3658_v61  ;;  %3747 = vmatmul.mubr.bf16.gmra.mrb[148].mxu0 %v3655_v62 }
 0x9e9   :  { %3756 = vmatprep.mubr.bf16.mxu0 %v10956_v0 }
 0x9ef   :  { %5826 = vmatmul.mubr.bf16.gmra.mrb[152].mxu1 %v3659_v40 }
 0x9f0   :  { %5829 = vmatprep.mubr.bf16.mxu1 %v3660_v5  ;;  %3757 = vmatmul.mubr.bf16.gmra.mrb[152].mxu0 %v3656_v39 }
 0x9f1   :  { %3766 = vmatprep.mubr.bf16.mxu0 %v10956_v0 }
 0x9f7   :  { %5830 = vmatmul.mubr.bf16.gmra.mrb[156].mxu1 %v3661_v18 }
 0x9f8   :  { %3767 = vmatmul.mubr.bf16.gmra.mrb[156].mxu0 %v3657_v11 }
 0x9f9   :  { %3776 = vmatprep.mubr.bf16.mxu0 %v10956_v0 }
 0xa00   :  { %3777 = vmatmul.mubr.bf16.gmra.mrb[160].mxu0 %v3658_v61 }
 0xa01   :  { %3786 = vmatprep.mubr.bf16.mxu0 %v10956_v0 }
 0xa08   :  { %3787 = vmatmul.mubr.bf16.gmra.mrb[164].mxu0 %v3659_v40 }
 0xa09   :  { %3796 = vmatprep.mubr.bf16.mxu0 %v10956_v0 }
 0xa10   :  { %3797 = vmatmul.mubr.bf16.gmra.mrb[168].mxu0 %v3660_v5 }
 0xa11   :  { %3806 = vmatprep.mubr.bf16.mxu0 %v10956_v0 }
 0xa18   :  { %3807 = vmatmul.mubr.bf16.gmra.mrb[172].mxu0 %v3661_v18 }
 0xab2   :  { %v5819_v53 = vpop.f32.mrb[144].mxu1 }
 0xab3   :  { %v3851_v22 = vpop.f32.mrb[145].mxu1  ;;  %v3738_v21 = vpop.f32.mrb[144].mxu0  ;;  %v9340_v44 = vadd.f32 %v5819_v53, %v9324_v56 }
 0xab4   :  { %v5820_v32 = vpop.f32.mrb[146].mxu1  ;;  %v3739_v4 = vadd.f32 %v3738_v21, %v9321_v41  ;;  %v3740_v7 = vpop.f32.mrb[145].mxu0  ;;  %v9333_v8 = vadd.f32 %v3851_v22, %v9324_v56 }
 0xab5   :  { %v3854_v2 = vpop.f32.mrb[147].mxu1  ;;  %v3741_v23 = vadd.f32 %v3740_v7, %v9327_v24  ;;  %v3742_v19 = vpop.f32.mrb[146].mxu0  ;;  %v9350_v29 = vadd.f32 %v5820_v32, %v9324_v56 }
 0xab6   :  { %v9336_v33 = vadd.f32 %v3854_v2, %v9324_v56  ;;  %v3743_v25 = vadd.f32 %v3742_v19, %v9321_v41  ;;  %v3744_v34 = vpop.f32.mrb[147].mxu0  ;;  %v4084_v60 = vmul.f32 %v9330_v14, %v3739_v4 }
 0xab7   :  { %v3914_v38 = vmax.f32 %v3741_v23, 0.0  ;;  %v3745_v63 = vadd.f32 %v3744_v34, %v9327_v24 }
 0xab8   :  { %v3930_v45 = vadd.f32 %v9336_v33, %v9333_v8  ;;  %v4085_v35 = vmul.f32 %v9330_v14, %v3743_v25 }
 0xab9   :  { %v4102_v15 = vmul.f32 %v9342_v51, %v3914_v38  ;;  %v3915_v27 = vmax.f32 %v3745_v63, 0.0 }
 0xaba   :  { %v3931_v57 = vadd.f32 %v3930_v45, %v9340_v44  ;;  %v5823_v30 = vpop.f32.mrb[148].mxu1 }
 0xabb   :  { %v3867_v48 = vpop.f32.mrb[149].mxu1  ;;  %v9359_v31 = vadd.f32 %v4102_v15, %v4084_v60  ;;  %v4103_v28 = vmul.f32 %v9342_v51, %v3915_v27  ;;  %v3748_v62 = vpop.f32.mrb[148].mxu0  ;;  %v9371_v53 = vadd.f32 %v5823_v30, %v9324_v56 }
 0xabc   :  { %v9356_v46 = vadd.f32 %v3867_v48, %v9324_v56  ;;  %v3932_v43 = vadd.f32 %v3931_v57, %v9350_v29  ;;  %v5824_v52 = vpop.f32.mrb[150].mxu1  ;;  %v3749_v39 = vadd.f32 %v3748_v62, %v9321_v41  ;;  %v3750_v11 = vpop.f32.mrb[149].mxu0 }
 0xabd   :  { %v3870_v3 = vpop.f32.mrb[151].mxu1  ;;  %v9367_v5 = vadd.f32 %v4103_v28, %v4085_v35  ;;  %v3751_v18 = vadd.f32 %v3750_v11, %v9327_v24  ;;  %v3752_v50 = vpop.f32.mrb[150].mxu0  ;;  %v9378_v23 = vadd.f32 %v5824_v52, %v9324_v56 }
 0xabe   :  { %v3933_v61 = vadd.f32 %v3932_v43, %v9356_v46  ;;  %v9365_v40 = vadd.f32 %v3870_v3, %v9324_v56  ;;  %v3753_v22 = vadd.f32 %v3752_v50, %v9321_v41  ;;  %v3754_v32 = vpop.f32.mrb[151].mxu0  ;;  %v4086_v2 = vmul.f32 %v9330_v14, %v3749_v39 }
 0xabf   :  { %v3916_v4 = vmax.f32 %v3751_v18, 0.0  ;;  %v3755_v7 = vadd.f32 %v3754_v32, %v9327_v24 }
 0xac0   :  { %v3934_v21 = vadd.f32 %v3933_v61, %v9365_v40  ;;  %v4087_v45 = vmul.f32 %v9330_v14, %v3753_v22 }
 0xac1   :  { %v4104_v34 = vmul.f32 %v9342_v51, %v3916_v4  ;;  %v3917_v60 = vmax.f32 %v3755_v7, 0.0 }
 0xac2   :  { %v3935_v19 = vadd.f32 %v3934_v21, %v9371_v53  ;;  %v5827_v25 = vpop.f32.mrb[152].mxu1 }
 0xac3   :  { %v3883_v38 = vpop.f32.mrb[153].mxu1  ;;  %v9387_v15 = vadd.f32 %v4104_v34, %v4086_v2  ;;  %v4105_v35 = vmul.f32 %v9342_v51, %v3917_v60  ;;  %v3758_v27 = vpop.f32.mrb[152].mxu0  ;;  %v9399_v61 = vadd.f32 %v5827_v25, %v9324_v56 }
 0xac4   :  { %v9384_v63 = vadd.f32 %v3883_v38, %v9324_v56  ;;  %v3936_v57 = vadd.f32 %v3935_v19, %v9378_v23  ;;  %v5828_v30 = vpop.f32.mrb[154].mxu1  ;;  %v3759_v43 = vadd.f32 %v3758_v27, %v9321_v41  ;;  %v3760_v52 = vpop.f32.mrb[153].mxu0 }
 0xac5   :  { %v3886_v48 = vpop.f32.mrb[155].mxu1  ;;  %v9395_v3 = vadd.f32 %v4105_v35, %v4087_v45  ;;  %v3761_v39 = vadd.f32 %v3760_v52, %v9327_v24  ;;  %v3762_v11 = vpop.f32.mrb[154].mxu0  ;;  %v9406_v4 = vadd.f32 %v5828_v30, %v9324_v56 }
 0xac6   :  { %v3937_v28 = vadd.f32 %v3936_v57, %v9384_v63  ;;  %v9393_v62 = vadd.f32 %v3886_v48, %v9324_v56  ;;  %v3763_v18 = vadd.f32 %v3762_v11, %v9321_v41  ;;  %v3764_v50 = vpop.f32.mrb[155].mxu0  ;;  %v4088_v32 = vmul.f32 %v9330_v14, %v3759_v43 }
 0xac7   :  { %v3918_v21 = vmax.f32 %v3761_v39, 0.0  ;;  %v3765_v2 = vadd.f32 %v3764_v50, %v9327_v24 }
 0xac8   :  { %v3938_v22 = vadd.f32 %v3937_v28, %v9393_v62  ;;  %v4089_v25 = vmul.f32 %v9330_v14, %v3763_v18 }
 0xac9   :  { %v4106_v34 = vmul.f32 %v9342_v51, %v3918_v21  ;;  %v3919_v45 = vmax.f32 %v3765_v2, 0.0 }
 0xaca   :  { %v3939_v7 = vadd.f32 %v3938_v22, %v9399_v61  ;;  %v5831_v19 = vpop.f32.mrb[156].mxu1 }
 0xacb   :  { %v3899_v60 = vpop.f32.mrb[157].mxu1  ;;  %v9415_v27 = vadd.f32 %v4106_v34, %v4088_v32  ;;  %v4107_v30 = vmul.f32 %v9342_v51, %v3919_v45  ;;  %v3768_v48 = vpop.f32.mrb[156].mxu0  ;;  %v9427_v32 = vadd.f32 %v5831_v19, %v9324_v56 }
 0xacc   :  { %v9412_v38 = vadd.f32 %v3899_v60, %v9324_v56  ;;  %v3940_v57 = vadd.f32 %v3939_v7, %v9406_v4  ;;  %v5832_v35 = vpop.f32.mrb[158].mxu1  ;;  %v3769_v52 = vadd.f32 %v3768_v48, %v9321_v41  ;;  %v3770_v28 = vpop.f32.mrb[157].mxu0 }
 0xacd   :  { %v3902_v43 = vpop.f32.mrb[159].mxu1  ;;  %v9423_v18 = vadd.f32 %v4107_v30, %v4089_v25  ;;  %v3771_v50 = vadd.f32 %v3770_v28, %v9327_v24  ;;  %v3772_v22 = vpop.f32.mrb[158].mxu0 }
 0xace   :  { %v3941_v39 = vadd.f32 %v3940_v57, %v9412_v38  ;;  %v9421_v11 = vadd.f32 %v3902_v43, %v9324_v56  ;;  %v3773_v21 = vadd.f32 %v3772_v22, %v9321_v41  ;;  %v3774_v2 = vpop.f32.mrb[159].mxu0  ;;  %v4090_v34 = vmul.f32 %v9330_v14, %v3769_v52 }
 0xacf   :  { %10960 = vst [vmem:[#allocation46_spill] sm:$0xff] %v9423_v18  ;;  %v3920_v45 = vmax.f32 %v3771_v50, 0.0  ;;  %v3775_v60 = vadd.f32 %v3774_v2, %v9327_v24  ;;  %v3911_v57 = vadd.f32 %v5832_v35, %v9324_v56 }
 0xad0   :  { %v3942_v7 = vadd.f32 %v3941_v39, %v9421_v11  ;;  %v4091_v48 = vmul.f32 %v9330_v14, %v3773_v21 }
 0xad1   :  { %v4108_v30 = vmul.f32 %v9342_v51, %v3920_v45  ;;  %v3921_v19 = vmax.f32 %v3775_v60, 0.0 }
 0xad2   :  { %v3943_v25 = vadd.f32 %v3942_v7, %v9427_v32 }
 0xad3   :  { %v9437_v28 = vadd.f32 %v4108_v30, %v4090_v34  ;;  %v4109_v22 = vmul.f32 %v9342_v51, %v3921_v19  ;;  %v3778_v39 = vpop.f32.mrb[160].mxu0 }
 0xad4   :  { %v3944_v43 = vadd.f32 %v3943_v25, %v3911_v57  ;;  %v3779_v52 = vadd.f32 %v3778_v39, %v9321_v41  ;;  %v3780_v50 = vpop.f32.mrb[161].mxu0 }
 0xad5   :  { %10961 = vst [vmem:[#allocation50_spill] sm:$0xff] %v9437_v28  ;;  %v9441_v2 = vadd.f32 %v4109_v22, %v4091_v48  ;;  %v3781_v56 = vadd.f32 %v3780_v50, %v9327_v24  ;;  %v3782_v35 = vpop.f32.mrb[162].mxu0 }
 0xad6   :  { %v3945_v13 = vrot.slane %v3944_v43, 4  ;;  %v3783_v7 = vadd.f32 %v3782_v35, %v9321_v41  ;;  %v3784_v45 = vpop.f32.mrb[163].mxu0  ;;  %v4092_v60 = vmul.f32 %v9330_v14, %v3779_v52 }
 0xad7   :  { %10962 = vst [vmem:[#allocation40_spill] sm:$0xff] %v9441_v2  ;;  %v3922_v34 = vmax.f32 %v3781_v56, 0.0  ;;  %v3785_v25 = vadd.f32 %v3784_v45, %v9327_v24 }
 0xad8   :  { %v3946_v21 = vadd.f32 %v3945_v13, %v3944_v43  ;;  %v4093_v39 = vmul.f32 %v9330_v14, %v3783_v7 }
 0xad9   :  { %v4110_v19 = vmul.f32 %v9342_v51, %v3922_v34  ;;  %v3923_v58 = vmax.f32 %v3785_v25, 0.0 }
 0xada   :  { %v3947_v30 = vrot.slane %v3946_v21, 2 }
 0xadb   :  { %v9449_v22 = vadd.f32 %v4110_v19, %v4092_v60  ;;  %v4111_v50 = vmul.f32 %v9342_v51, %v3923_v58  ;;  %v3788_v9 = vpop.f32.mrb[164].mxu0 }
 0xadc   :  { %v3948_v48 = vadd.f32 %v3947_v30, %v3946_v21  ;;  %v3790_v35 = vpop.f32.mrb[165].mxu0  ;;  %v3789_v52 = vadd.f32 %v3788_v9, %v9321_v41 }
 0xadd   :  { %10963 = vst [vmem:[#allocation45_spill] sm:$0xff] %v9449_v22  ;;  %v9452_v13 = vadd.f32 %v4111_v50, %v4093_v39  ;;  %v3792_v43 = vpop.f32.mrb[166].mxu0  ;;  %v3791_v56 = vadd.f32 %v3790_v35, %v9327_v24 }
 0xade   :  { %v3949_v0 = vrot.slane %v3948_v48, 1  ;;  %v3794_v45 = vpop.f32.mrb[167].mxu0  ;;  %v4094_v7 = vmul.f32 %v9330_v14, %v3789_v52  ;;  %v3793_v60 = vadd.f32 %v3792_v43, %v9321_v41 }
 0xadf   :  { %10964 = vst [vmem:[#allocation47_spill] sm:$0xff] %v9452_v13  ;;  %v3924_v21 = vmax.f32 %v3791_v56, 0.0  ;;  %v3795_v58 = vadd.f32 %v3794_v45, %v9327_v24 }
 0xae0   :  { %v3950_v34 = vadd.f32 %v3949_v0, %v3948_v48 }
 0xae1   :  { %v4112_v52 = vmul.f32 %v9342_v51, %v3924_v21  ;;  %v3925_v56 = vmax.f32 %v3795_v58, 0.0 }
 0xae2   :  { %v3951_v20 = vmul.f32 0.0078125, %v3950_v34 }
 0xae3   :  { %v3798_v0 = vpop.f32.mrb[168].mxu0  ;;  %v9518_v45 = vadd.f32 %v4112_v52, %v4094_v7  ;;  %v4113_v34 = vmul.f32 %v9342_v51, %v3925_v56 }
 0xae4   :  { %v9460_v25 = vsub.f32 %v9333_v8, %v3951_v20  ;;  %v9463_v30 = vsub.f32 %v9336_v33, %v3951_v20  ;;  %v9466_v9 = vsub.f32 %v9340_v44, %v3951_v20  ;;  %v9469_v19 = vsub.f32 %v9350_v29, %v3951_v20  ;;  %v3800_v33 = vpop.f32.mrb[169].mxu0 }
 0xae5   :  { %v9472_v39 = vsub.f32 %v9356_v46, %v3951_v20  ;;  %v9475_v48 = vsub.f32 %v9365_v40, %v3951_v20  ;;  %v9478_v50 = vsub.f32 %v9371_v53, %v3951_v20  ;;  %v9481_v8 = vsub.f32 %v9378_v23, %v3951_v20  ;;  %v3802_v40 = vpop.f32.mrb[170].mxu0  ;;  %10965 = vst [vmem:[#allocation48_spill] sm:$0xff] %v9518_v45 }
 0xae6   :  { %v9484_v44 = vsub.f32 %v9384_v63, %v3951_v20  ;;  %v9487_v29 = vsub.f32 %v9393_v62, %v3951_v20  ;;  %v9490_v35 = vsub.f32 %v9399_v61, %v3951_v20  ;;  %v9493_v46 = vsub.f32 %v9406_v4, %v3951_v20  ;;  %v3804_v62 = vpop.f32.mrb[171].mxu0 }
 0xae7   :  { %v9496_v53 = vsub.f32 %v9412_v38, %v3951_v20  ;;  %v9499_v23 = vsub.f32 %v9421_v11, %v3951_v20  ;;  %v9502_v43 = vsub.f32 %v9427_v32, %v3951_v20  ;;  %v9504_v63 = vsub.f32 %v3911_v57, %v3951_v20 }
 0xae8   :  { %v3968_v61 = vmul.f32 %v9460_v25, %v9460_v25  ;;  %v3969_v4 = vmul.f32 %v9463_v30, %v9463_v30  ;;  %v4095_v38 = vmul.f32 %v9330_v14, %v3793_v60  ;;  %v3970_v11 = vmul.f32 %v9466_v9, %v9466_v9 }
 0xae9   :  { %v3971_v32 = vmul.f32 %v9469_v19, %v9469_v19  ;;  %v3972_v20 = vmul.f32 %v9472_v39, %v9472_v39  ;;  %v3799_v13 = vadd.f32 %v3798_v0, %v9321_v41  ;;  %v3801_v58 = vadd.f32 %v3800_v33, %v9327_v24 }
 0xaea   :  { %v3984_v57 = vadd.f32 %v3969_v4, %v3968_v61  ;;  %v3803_v60 = vadd.f32 %v3802_v40, %v9321_v41  ;;  %v3805_v22 = vadd.f32 %v3804_v62, %v9327_v24  ;;  %v9526_v18 = vadd.f32 %v4113_v34, %v4095_v38 }
 0xaeb   :  { %v3808_v21 = vpop.f32.mrb[172].mxu0  ;;  %v4096_v7 = vmul.f32 %v9330_v14, %v3799_v13  ;;  %v3926_v52 = vmax.f32 %v3801_v58, 0.0  ;;  %v3973_v38 = vmul.f32 %v9475_v48, %v9475_v48 }
 0xaec   :  { %v3809_v36 = vadd.f32 %v3808_v21, %v9321_v41  ;;  %v3810_v2 = vpop.f32.mrb[173].mxu0  ;;  %v3985_v28 = vadd.f32 %v3984_v57, %v3970_v11  ;;  %v4097_v0 = vmul.f32 %v9330_v14, %v3803_v60  ;;  %v3927_v56 = vmax.f32 %v3805_v22, 0.0 }
 0xaed   :  { %v3811_v61 = vadd.f32 %v3810_v2, %v9327_v24  ;;  %v3812_v4 = vpop.f32.mrb[174].mxu0  ;;  %v4114_v13 = vmul.f32 %v9342_v51, %v3926_v52 }
 0xaee   :  { %v4098_v33 = vmul.f32 %v9330_v14, %v3809_v36  ;;  %v3814_v40 = vpop.f32.mrb[175].mxu0  ;;  %v3986_v45 = vadd.f32 %v3985_v28, %v3971_v32  ;;  %v3813_v21 = vadd.f32 %v3812_v4, %v9321_v41  ;;  %v4115_v2 = vmul.f32 %v9342_v51, %v3927_v56 }
 0xaef   :  { %v3928_v62 = vmax.f32 %v3811_v61, 0.0  ;;  %v3815_v11 = vadd.f32 %v3814_v40, %v9327_v24  ;;  %v9540_v58 = vadd.f32 %v4114_v13, %v4096_v7  ;;  %v3974_v41 = vmul.f32 %v9478_v50, %v9478_v50 }
 0xaf0   :  { %v3987_v57 = vadd.f32 %v3986_v45, %v3972_v20  ;;  %v4099_v22 = vmul.f32 %v9330_v14, %v3813_v21  ;;  %v9542_v28 = vadd.f32 %v4115_v2, %v4097_v0  ;;  %v3975_v20 = vmul.f32 %v9481_v8, %v9481_v8 }
 0xaf1   :  { %v4116_v34 = vmul.f32 %v9342_v51, %v3928_v62  ;;  %v3929_v36 = vmax.f32 %v3815_v11, 0.0  ;;  %v3976_v14 = vmul.f32 %v9484_v44, %v9484_v44  ;;  %v3977_v4 = vmul.f32 %v9487_v29, %v9487_v29 }
 0xaf2   :  { %v3988_v24 = vadd.f32 %v3987_v57, %v3973_v38  ;;  %v3978_v0 = vmul.f32 %v9490_v35, %v9490_v35  ;;  %v3980_v40 = vmul.f32 %v9496_v53, %v9496_v53  ;;  %v3981_v21 = vmul.f32 %v9499_v23, %v9499_v23 }
 0xaf3   :  { %v9546_v32 = vadd.f32 %v4116_v34, %v4098_v33  ;;  %v4117_v60 = vmul.f32 %v9342_v51, %v3929_v36  ;;  %v3979_v51 = vmul.f32 %v9493_v46, %v9493_v46  ;;  %v3982_v38 = vmul.f32 %v9502_v43, %v9502_v43 }
 0xaf4   :  { %v3989_v45 = vadd.f32 %v3988_v24, %v3974_v41  ;;  %v3983_v2 = vmul.f32 %v9504_v63, %v9504_v63 }
 0xaf5   :  { %v9551_v61 = vadd.f32 %v4117_v60, %v4099_v22 }
 0xaf6   :  { %v3990_v7 = vadd.f32 %v3989_v45, %v3975_v20 }
 0xaf8   :  { %v3991_v52 = vadd.f32 %v3990_v7, %v3976_v14  ;;  %v9569_v7 = vstv %s5446_s0 }
 0xafa   :  { %v3992_v56 = vadd.f32 %v3991_v52, %v3977_v4  ;;  %v9571_v4 = vstv %s5445_s8  ;;  %v9575_v52 = vmul.f32 %v9569_v7, %v9178_v12  ;;  %v9595_v12 = vmul.f32 %v9569_v7, %v9196_v55  ;;  %v9618_v55 = vld [vmem:[%s10799_s4 + $0x6] ss:$0 sm:$0xff] }
 0xafc   :  { %v3993_v33 = vadd.f32 %v3992_v56, %v3978_v0  ;;  %v9579_v0 = vmul.f32 %v9569_v7, %v9184_v17  ;;  %v9583_v56 = vmul.f32 %v9569_v7, %v9187_v10  ;;  %v9599_v17 = vmul.f32 %v9569_v7, %v9199_v37 }
 0xafd   :  { %v9603_v10 = vmul.f32 %v9569_v7, %v9228_v26  ;;  %v9622_v37 = vmul.f32 %v9569_v7, %v9263_v54  ;;  %v9626_v26 = vmul.f32 %v9569_v7, %v9266_v47 }
 0xafe   :  { %v3994_v62 = vadd.f32 %v3993_v33, %v3979_v51  ;;  %v9587_v51 = vmul.f32 %v9569_v7, %v9190_v1  ;;  %v9591_v33 = vmul.f32 %v9569_v7, %v9193_v16  ;;  %v9607_v1 = vmul.f32 %v9569_v7, %v9254_v49 }
 0xaff   :  { %v9611_v16 = vmul.f32 %v9569_v7, %v9260_v42  ;;  %v9630_v49 = vmul.f32 %v9569_v7, %v9251_v6  ;;  %v9634_v42 = vmul.f32 %v9569_v7, %v9231_v59  ;;  %v9651_v6 = vld [vmem:[%s10800_s5 + $0x6] ss:$0 sm:$0xff] }
 0xb00   :  { %v3995_v11 = vadd.f32 %v3994_v62, %v3980_v40 }
 0xb02   :  { %v3996_v13 = vadd.f32 %v3995_v11, %v3981_v21 }
 0xb04   :  { %v3997_v57 = vadd.f32 %v3996_v13, %v3982_v38 }
 0xb06   :  { %v3998_v34 = vadd.f32 %v3997_v57, %v3983_v2 }
 0xb08   :  { %v3999_v22 = vrot.slane %v3998_v34, 4 }
 0xb0a   :  { %v4000_v36 = vadd.f32 %v3999_v22, %v3998_v34 }
 0xb0c   :  { %v4001_v41 = vrot.slane %v4000_v36, 2 }
 0xb0e   :  { %v4002_v24 = vadd.f32 %v4001_v41, %v4000_v36 }
 0xb10   :  { %v4003_v60 = vrot.slane %v4002_v24, 1 }
 0xb12   :  { %v4004_v20 = vadd.f32 %v4003_v60, %v4002_v24 }
 0xb14   :  { %v4005_v45 = vmul.f32 0.0078125, %v4004_v20 }
 0xb16   :  { %v4006_v14 = vadd.f32 1e-05, %v4005_v45 }
 0xb18   :  { %5934 = vrsqrt.f32 %v4006_v14 }
 0xb22   :  { %v9613_v40 = vpop.eup %5934 }
 0xb23   :  { %v9638_v62 = vmul.f32 %v9613_v40, %v9496_v53  ;;  %v4021_v54 = vmul.f32 %v9613_v40, %v9499_v23  ;;  %v9644_v21 = vmul.f32 %v9613_v40, %v9502_v43  ;;  %v4008_v47 = vmul.f32 %v9613_v40, %v9460_v25 }
 0xb24   :  { %v4009_v59 = vmul.f32 %v9613_v40, %v9463_v30  ;;  %v4010_v53 = vmul.f32 %v9613_v40, %v9466_v9  ;;  %v4011_v23 = vmul.f32 %v9613_v40, %v9469_v19  ;;  %v4012_v43 = vmul.f32 %v9613_v40, %v9472_v39 }
 0xb25   :  { %v4042_v11 = vmul.f32 %v9618_v55, %v4021_v54  ;;  %v4029_v25 = vmul.f32 %v9618_v55, %v4008_v47  ;;  %v4013_v38 = vmul.f32 %v9613_v40, %v9475_v48  ;;  %v4014_v13 = vmul.f32 %v9613_v40, %v9478_v50 }
 0xb26   :  { %v4030_v30 = vmul.f32 %v9618_v55, %v4009_v59  ;;  %v4031_v9 = vmul.f32 %v9618_v55, %v4010_v53  ;;  %v4032_v2 = vmul.f32 %v9618_v55, %v4011_v23  ;;  %v4033_v19 = vmul.f32 %v9618_v55, %v4012_v43 }
 0xb27   :  { %v4063_v39 = vadd.f32 %v9651_v6, %v4042_v11  ;;  %v4050_v57 = vadd.f32 %v9651_v6, %v4029_v25  ;;  %v4034_v34 = vmul.f32 %v9618_v55, %v4013_v38  ;;  %v4035_v22 = vmul.f32 %v9618_v55, %v4014_v13 }
 0xb28   :  { %v4051_v48 = vadd.f32 %v9651_v6, %v4030_v30  ;;  %v4052_v50 = vadd.f32 %v9651_v6, %v4031_v9  ;;  %v4053_v36 = vadd.f32 %v9651_v6, %v4032_v2  ;;  %v4054_v41 = vadd.f32 %v9651_v6, %v4033_v19 }
 0xb29   :  { %v4079_v24 = vmax.f32 %v4063_v39, 0.0  ;;  %v4066_v60 = vmax.f32 %v4050_v57, 0.0  ;;  %v4055_v20 = vadd.f32 %v9651_v6, %v4034_v34  ;;  %v4056_v45 = vadd.f32 %v9651_v6, %v4035_v22 }
 0xb2a   :  { %v4067_v14 = vmax.f32 %v4051_v48, 0.0  ;;  %v4068_v54 = vmax.f32 %v4052_v50, 0.0  ;;  %v4069_v47 = vmax.f32 %v4053_v36, 0.0  ;;  %v4070_v59 = vmax.f32 %v4054_v41, 0.0  ;;  %v10966_v50 = vld [vmem:[#allocation46_spill] sm:$0xff] }
 0xb2b   :  { %v4136_v53 = vmul.f32 %v9571_v4, %v4066_v60  ;;  %v4071_v23 = vmax.f32 %v4055_v20, 0.0  ;;  %v4072_v43 = vmax.f32 %v4056_v45, 0.0  ;;  %v4015_v11 = vmul.f32 %v9613_v40, %v9481_v8 }
 0xb2c   :  { %v4137_v25 = vmul.f32 %v9571_v4, %v4067_v14  ;;  %v4138_v38 = vmul.f32 %v9571_v4, %v4068_v54  ;;  %v4139_v13 = vmul.f32 %v9571_v4, %v4069_v47  ;;  %v4140_v30 = vmul.f32 %v9571_v4, %v4070_v59  ;;  %v10968_v59 = vld [vmem:[#allocation40_spill] sm:$0xff] }
 0xb2d   :  { %v4152_v9 = vadd.f32 %v4136_v53, %v9359_v31  ;;  %v4141_v2 = vmul.f32 %v9571_v4, %v4071_v23  ;;  %v4142_v19 = vmul.f32 %v9571_v4, %v4072_v43  ;;  %v4036_v39 = vmul.f32 %v9618_v55, %v4015_v11  ;;  %v10967_v31 = vld [vmem:[#allocation50_spill] sm:$0xff] }
 0xb2e   :  { %v4153_v57 = vadd.f32 %v4137_v25, %v9367_v5  ;;  %v4154_v8 = vadd.f32 %v4138_v38, %v9387_v15  ;;  %v4155_v34 = vadd.f32 %v4139_v13, %v9395_v3  ;;  %v4156_v22 = vadd.f32 %v4140_v30, %v9415_v27 }
 0xb2f   :  { %v9697_v48 = vadd.f32 %v9575_v52, %v4152_v9  ;;  %v4157_v36 = vadd.f32 %v4141_v2, %v10966_v50  ;;  %v4158_v41 = vadd.f32 %v4142_v19, %v10967_v31  ;;  %v4057_v60 = vadd.f32 %v9651_v6, %v4036_v39 }
 0xb30   :  { %v9703_v20 = vadd.f32 %v9579_v0, %v4153_v57  ;;  %v9706_v5 = vadd.f32 %v9583_v56, %v4154_v8  ;;  %v9709_v15 = vadd.f32 %v9587_v51, %v4155_v34  ;;  %v9712_v3 = vadd.f32 %v9591_v33, %v4156_v22  ;;  %v10969_v34 = vld [vmem:[#allocation41_spill] sm:$0xff] }
 0xb31   :  { %v9715_v27 = vadd.f32 %v9595_v12, %v4157_v36  ;;  %v9718_v52 = vadd.f32 %v9599_v17, %v4158_v41  ;;  %v4073_v45 = vmax.f32 %v4057_v60, 0.0  ;;  %v4016_v0 = vmul.f32 %v9613_v40, %v9484_v44  ;;  %v10970_v41 = vld [vmem:[#allocation45_spill] sm:$0xff] }
 0xb32   :  { %v4017_v56 = vmul.f32 %v9613_v40, %v9487_v29  ;;  %v4018_v51 = vmul.f32 %v9613_v40, %v9490_v35  ;;  %v4019_v33 = vmul.f32 %v9613_v40, %v9493_v46  ;;  %v4041_v12 = vmul.f32 %v9618_v55, %v9638_v62 }
 0xb33   :  { %v4143_v14 = vmul.f32 %v9571_v4, %v4073_v45  ;;  %v4037_v17 = vmul.f32 %v9618_v55, %v4016_v0  ;;  %v4149_v54 = vmul.f32 %v9571_v4, %v4079_v24  ;;  %v4043_v44 = vmul.f32 %v9618_v55, %v9644_v21 }
 0xb34   :  { %v4038_v29 = vmul.f32 %v9618_v55, %v4017_v56  ;;  %v4039_v47 = vmul.f32 %v9618_v55, %v4018_v51  ;;  %v4040_v35 = vmul.f32 %v9618_v55, %v4019_v33  ;;  %v4062_v46 = vadd.f32 %v9651_v6, %v4041_v12  ;;  %v10971_v56 = vld [vmem:[#allocation47_spill] sm:$0xff]  ;;  %v10972_v33 = vld [vmem:[#allocation48_spill] sm:$0xff] }
 0xb35   :  { %v4159_v53 = vadd.f32 %v4143_v14, %v10968_v59  ;;  %v4058_v62 = vadd.f32 %v9651_v6, %v4037_v17  ;;  %v4165_v23 = vadd.f32 %v4149_v54, %v9542_v28  ;;  %v4064_v43 = vadd.f32 %v9651_v6, %v4043_v44  ;;  %v10974_v44 = vld [vmem:[#allocation49_spill] sm:$0xff] }
 0xb36   :  { %v4059_v24 = vadd.f32 %v9651_v6, %v4038_v29  ;;  %v4060_v21 = vadd.f32 %v9651_v6, %v4039_v47  ;;  %v4061_v11 = vadd.f32 %v9651_v6, %v4040_v35  ;;  %v4078_v25 = vmax.f32 %v4062_v46, 0.0 }
 0xb37   :  { %v9747_v38 = vadd.f32 %v9603_v10, %v4159_v53  ;;  %v4074_v13 = vmax.f32 %v4058_v62, 0.0  ;;  %v9750_v30 = vadd.f32 %v9634_v42, %v4165_v23  ;;  %v4080_v9 = vmax.f32 %v4064_v43, 0.0 }
 0xb38   :  { %v4075_v2 = vmax.f32 %v4059_v24, 0.0  ;;  %v4076_v19 = vmax.f32 %v4060_v21, 0.0  ;;  %v4077_v28 = vmax.f32 %v4061_v11, 0.0  ;;  %v4148_v39 = vmul.f32 %v9571_v4, %v4078_v25 }
 0xb39   :  { %v4144_v57 = vmul.f32 %v9571_v4, %v4074_v13  ;;  %v4150_v8 = vmul.f32 %v9571_v4, %v4080_v9  ;;  %v4184_v22 = vmul.f32 %v9569_v7, %v10969_v34  ;;  %v4023_v10 = vmul.f32 %v9613_v40, %v9504_v63 }
 0xb3a   :  { %v4145_v50 = vmul.f32 %v9571_v4, %v4075_v2  ;;  %v4146_v42 = vmul.f32 %v9571_v4, %v4076_v19  ;;  %v4147_v36 = vmul.f32 %v9571_v4, %v4077_v28  ;;  %v4164_v31 = vadd.f32 %v4148_v39, %v9540_v58 }
 0xb3b   :  { %v4160_v60 = vadd.f32 %v4144_v57, %v10970_v41  ;;  %v4166_v45 = vadd.f32 %v4150_v8, %v9546_v32  ;;  %v4044_v0 = vmul.f32 %v9618_v55, %v4023_v10 }
 0xb3c   :  { %v4161_v51 = vadd.f32 %v4145_v50, %v10971_v56  ;;  %v4162_v12 = vadd.f32 %v4146_v42, %v10972_v33  ;;  %v4163_v63 = vadd.f32 %v4147_v36, %v9526_v18  ;;  %v9770_v40 = vadd.f32 %v9630_v49, %v4164_v31 }
 0xb3d   :  { %v9773_v14 = vadd.f32 %v9607_v1, %v4160_v60  ;;  %v9775_v17 = vadd.f32 %v4184_v22, %v4166_v45  ;;  %v4065_v58 = vadd.f32 %v9651_v6, %v4044_v0  ;;  %v4185_v1 = vmul.f32 %v9569_v7, %v10974_v44 }
 0xb3e   :  { %v9779_v32 = vadd.f32 %v9611_v16, %v4161_v51  ;;  %v9782_v55 = vadd.f32 %v9622_v37, %v4162_v12  ;;  %v9785_v54 = vadd.f32 %v9626_v26, %v4163_v63 }
 0xb3f   :  { %10973 = vst [vmem:[#allocation46_spill] sm:$0xff] %v9775_v17  ;;  %v4081_v18 = vmax.f32 %v4065_v58, 0.0 }
 0xb41   :  { %v4151_v49 = vmul.f32 %v9571_v4, %v4081_v18 }
 0xb43   :  { %v4167_v29 = vadd.f32 %v4151_v49, %v9551_v61 }
 0xb45   :  { %v9791_v47 = vadd.f32 %v4185_v1, %v4167_v29 }
 0xb47   :  { %10975 = vst [vmem:[#allocation50_spill] sm:$0xff] %v9791_v47 }
 0xb48   :  { %6014 = dma.done.wait [#allocation3 + $0x1], 3072 }
 0xb49   :  { %6015 = vsyncadd [#allocation3 + $0x1], 4294964224  ;;  %v9795_v16 = vpack.c.bf16 %v9703_v20, %v9697_v48  ;;  %v10976_v37 = vmov 0   ;;  %4220 = sst [smem:[#allocation27]] %s6025_s18  ;;  %s4204_s16 = scalar_lea.hbm %s10797_s2, 24576  ;;  %v4240_v8 = vpack.c.bf16 %v9709_v15, %v9706_v5  ;;  %v4241_v22 = vpack.c.bf16 %v9715_v27, %v9712_v3 }
 0xb4a   :  { %4321 = vmatprep.mubr.bf16.mxu1 %v10976_v37  ;;  %4222 = sst [smem:[#allocation27 + $0x1]] %s6025_s18  ;;  %s6043_s18 = smov [#allocation26]   ;;  %v4242_v10 = vpack.c.bf16 %v9747_v38, %v9718_v52  ;;  %v4243_v50 = vpack.c.bf16 %v9779_v32, %v9773_v14  ;;  %v4244_v42 = vpack.c.bf16 %v9785_v54, %v9782_v55  ;;  %v4245_v36 = vpack.c.bf16 %v9750_v30, %v9770_v40 }
 0xb4b   :  { %5849 = vmatprep.mubr.bf16.mxu0 %v9795_v16  ;;  %4224 = sst [smem:[#allocation27 + $0x2]] %s6026_s19  ;;  %v4246_v31 = vpack.c.bf16 %v9791_v47, %v9775_v17 }
 0xb4c   :  { %4226 = sst [smem:[#allocation27 + $0x3]] %s6027_s1 }
 0xb4d   :  { %4228 = sst [smem:[#allocation27 + $0x4]] %s6021_s26 }
 0xb4e   :  { %4230 = sst [smem:[#allocation27 + $0x5]] %s6028_s22 }
 0xb4f   :  { %4232 = sst [smem:[#allocation27 + $0x6]] %s6029_s23 }
 0xb50   :  { %4234 = sst [smem:[#allocation27 + $0x7]] %s6027_s1 }
 0xb51   :  { %4236 = sst [smem:[#allocation27 + $0x8]] %s6030_s24 }
 0xb52   :  { %4238 = dma.general %s4204_s16, 3072, %s6101_s17, %s6031_s25, %s6043_s18, [#allocation27], %s6108_s21, 0  }
 0xb53   :  { %v4249_v61 = vld [vmem:[#allocation2 + $0xd0] sm:$0xff]  ;;  %v4252_v7 = vld [vmem:[#allocation2 + $0xe8] sm:$0xff]  ;;  %v4247_v26 = vld [vmem:[#allocation2 + $0xc0] sm:$0xff]  ;;  %s5452_s2 = sld [smem:[#allocation4 + $0x380]]  ;;  %s5453_s1 = sld [smem:[#allocation4 + $0x381]] }
 0xb54   :  { %5833 = vmatprep.subr.bf16.mxu0 %v4249_v61  ;;  %v4248_v4 = vld [vmem:[#allocation2 + $0xc8] sm:$0xff]  ;;  %v4251_v6 = vld [vmem:[#allocation2 + $0xe0] sm:$0xff]  ;;  %v4250_v46 = vld [vmem:[#allocation2 + $0xd8] sm:$0xff]  ;;  %s5455_s21 = sld [smem:[#allocation4 + $0x383]]  ;;  %s5454_s22 = sld [smem:[#allocation4 + $0x382]] }
 0xb55   :  { %5834 = vmatpush3.bf16.msra.mxu0 %v4249_v61  ;;  %4289 = vmatprep.subr.bf16.mxu1 %v4248_v4  ;;  %v4255_v35 = vld [vmem:[#allocation2 + $0x100] sm:$0xff]  ;;  %v4254_v59 = vld [vmem:[#allocation2 + $0xf8] sm:$0xff]  ;;  %v4253_v62 = vld [vmem:[#allocation2 + $0xf0] sm:$0xff] }
 0xb56   :  { %5835 = vmatprep.subr.bf16.mxu0 %v4252_v7  ;;  %4290 = vmatpush1.bf16.msra.mxu1 %v4247_v26  ;;  %v4258_v53 = vld [vmem:[#allocation2 + $0x118] sm:$0xff]  ;;  %v4257_v23 = vld [vmem:[#allocation2 + $0x110] sm:$0xff]  ;;  %v4256_v24 = vld [vmem:[#allocation2 + $0x108] sm:$0xff] }
 0xb57   :  { %4291 = vmatprep.subr.bf16.mxu1 %v4251_v6  ;;  %v4261_v43 = vld [vmem:[#allocation2 + $0x130] sm:$0xff]  ;;  %v4260_v21 = vld [vmem:[#allocation2 + $0x128] sm:$0xff]  ;;  %v4259_v25 = vld [vmem:[#allocation2 + $0x120] sm:$0xff] }
 0xb58   :  { %v4264_v11 = vld [vmem:[#allocation2 + $0x148] sm:$0xff]  ;;  %v4263_v13 = vld [vmem:[#allocation2 + $0x140] sm:$0xff]  ;;  %v4262_v2 = vld [vmem:[#allocation2 + $0x138] sm:$0xff] }
 0xb59   :  { %5836 = vmatpush3.bf16.msra.mxu0 %v4252_v7  ;;  %v4267_v9 = vld [vmem:[#allocation2 + $0x160] sm:$0xff]  ;;  %v4266_v19 = vld [vmem:[#allocation2 + $0x158] sm:$0xff]  ;;  %v4265_v39 = vld [vmem:[#allocation2 + $0x150] sm:$0xff]  ;;  %v9849_v1 = vstv %s5452_s2  ;;  %v9861_v6 = vstv %s5453_s1 }
 0xb5a   :  { %5837 = vmatprep.subr.bf16.mxu0 %v4255_v35  ;;  %4292 = vmatpush1.bf16.msra.mxu1 %v4250_v46  ;;  %v4270_v28 = vld [vmem:[#allocation2 + $0x178] sm:$0xff]  ;;  %v4269_v57 = vld [vmem:[#allocation2 + $0x170] sm:$0xff]  ;;  %v4268_v34 = vld [vmem:[#allocation2 + $0x168] sm:$0xff] }
 0xb5b   :  { %4293 = vmatprep.subr.bf16.mxu1 %v4254_v59  ;;  %v5449_v41 = vld [vmem:[%s10798_s3 + $0x7] ss:$8 sm:$0x7]  ;;  %v10978_v0 = vld [vmem:[#allocation43_spill] sm:$0xff] }
 0xb5c   :  { %v10977_v60 = vld [vmem:[#allocation42_spill] sm:$0xff]  ;;  %v9843_v56 = vrot.slane %v5449_v41, %v10978_v0  ;;  %v10979_v33 = vld [vmem:[#allocation44_spill] sm:$0xff] }
 0xb5d   :  { %5838 = vmatpush3.bf16.msra.mxu0 %v4255_v35  ;;  %v9840_v45 = vrot.slane %v5449_v41, %v10977_v60  ;;  %v9846_v12 = vrot.slane %v5449_v41, %v10979_v33 }
 0xb5e   :  { %5839 = vmatprep.subr.bf16.mxu0 %v4258_v53  ;;  %4294 = vmatpush1.bf16.msra.mxu1 %v4253_v62 }
 0xb5f   :  { %4295 = vmatprep.subr.bf16.mxu1 %v4257_v23 }
 0xb61   :  { %5840 = vmatpush3.bf16.msra.mxu0 %v4258_v53 }
 0xb62   :  { %5841 = vmatprep.subr.bf16.mxu0 %v4261_v43  ;;  %4296 = vmatpush1.bf16.msra.mxu1 %v4256_v24 }
 0xb63   :  { %4297 = vmatprep.subr.bf16.mxu1 %v4260_v21 }
 0xb65   :  { %5842 = vmatpush3.bf16.msra.mxu0 %v4261_v43 }
 0xb66   :  { %5843 = vmatprep.subr.bf16.mxu0 %v4264_v11  ;;  %4298 = vmatpush1.bf16.msra.mxu1 %v4259_v25 }
 0xb67   :  { %4299 = vmatprep.subr.bf16.mxu1 %v4263_v13 }
 0xb69   :  { %5844 = vmatpush3.bf16.msra.mxu0 %v4264_v11 }
 0xb6a   :  { %5845 = vmatprep.subr.bf16.mxu0 %v4267_v9  ;;  %4300 = vmatpush1.bf16.msra.mxu1 %v4262_v2 }
 0xb6b   :  { %4301 = vmatprep.subr.bf16.mxu1 %v4266_v19 }
 0xb6d   :  { %5846 = vmatpush3.bf16.msra.mxu0 %v4267_v9 }
 0xb6e   :  { %5847 = vmatprep.subr.bf16.mxu0 %v4270_v28  ;;  %4302 = vmatpush1.bf16.msra.mxu1 %v4265_v39 }
 0xb6f   :  { %4303 = vmatprep.subr.bf16.mxu1 %v4269_v57 }
 0xb71   :  { %5848 = vmatpush3.bf16.msra.mxu0 %v4270_v28 }
 0xb72   :  { %4304 = vmatpush1.bf16.msra.mxu1 %v4268_v34 }
 0xb74   :  { %5850 = vmatmul.mubr.bf16.vlgmr.msra.gmra.mrb[176].mxu0 %v4240_v8 }
 0xb75   :  { %5853 = vmatprep.mubr.bf16.mxu0 %v4241_v22  ;;  %4322 = vmatmul.mubr.bf16.vlgmr.msra.gmra.mrb[160].mxu1 %v9795_v16 }
 0xb76   :  { %4331 = vmatprep.mubr.bf16.mxu1 %v10976_v37 }
 0xb7c   :  { %5854 = vmatmul.mubr.bf16.gmra.mrb[180].mxu0 %v4242_v10 }
 0xb7d   :  { %5857 = vmatprep.mubr.bf16.mxu0 %v4243_v50  ;;  %4332 = vmatmul.mubr.bf16.gmra.mrb[164].mxu1 %v4240_v8 }
 0xb7e   :  { %4341 = vmatprep.mubr.bf16.mxu1 %v10976_v37 }
 0xb84   :  { %5858 = vmatmul.mubr.bf16.gmra.mrb[184].mxu0 %v4244_v42 }
 0xb85   :  { %5861 = vmatprep.mubr.bf16.mxu0 %v4245_v36  ;;  %4342 = vmatmul.mubr.bf16.gmra.mrb[168].mxu1 %v4241_v22 }
 0xb86   :  { %4351 = vmatprep.mubr.bf16.mxu1 %v10976_v37 }
 0xb8c   :  { %5862 = vmatmul.mubr.bf16.gmra.mrb[188].mxu0 %v4246_v31 }
 0xb8d   :  { %4352 = vmatmul.mubr.bf16.gmra.mrb[172].mxu1 %v4242_v10 }
 0xb8e   :  { %4361 = vmatprep.mubr.bf16.mxu1 %v10976_v37 }
 0xb95   :  { %4362 = vmatmul.mubr.bf16.gmra.mrb[176].mxu1 %v4243_v50 }
 0xb96   :  { %4371 = vmatprep.mubr.bf16.mxu1 %v10976_v37 }
 0xb9d   :  { %4372 = vmatmul.mubr.bf16.gmra.mrb[180].mxu1 %v4244_v42 }
 0xb9e   :  { %4381 = vmatprep.mubr.bf16.mxu1 %v10976_v37 }
 0xba5   :  { %4382 = vmatmul.mubr.bf16.gmra.mrb[184].mxu1 %v4245_v36 }
 0xba6   :  { %4391 = vmatprep.mubr.bf16.mxu1 %v10976_v37 }
 0xbad   :  { %4392 = vmatmul.mubr.bf16.gmra.mrb[188].mxu1 %v4246_v31 }
 0xc47   :  { %v5851_v51 = vpop.f32.mrb[176].mxu0 }
 0xc48   :  { %v4436_v63 = vpop.f32.mrb[177].mxu0  ;;  %v4323_v18 = vpop.f32.mrb[160].mxu1  ;;  %v9859_v26 = vadd.f32 %v5851_v51, %v9843_v56 }
 0xc49   :  { %v5852_v58 = vpop.f32.mrb[178].mxu0  ;;  %v4324_v44 = vadd.f32 %v4323_v18, %v9840_v45  ;;  %v4325_v29 = vpop.f32.mrb[161].mxu1  ;;  %v9852_v16 = vadd.f32 %v4436_v63, %v9843_v56 }
 0xc4a   :  { %v4439_v49 = vpop.f32.mrb[179].mxu0  ;;  %v4326_v7 = vadd.f32 %v4325_v29, %v9846_v12  ;;  %v4327_v4 = vpop.f32.mrb[162].mxu1  ;;  %v9869_v43 = vadd.f32 %v5852_v58, %v9843_v56 }
 0xc4b   :  { %v9855_v61 = vadd.f32 %v4439_v49, %v9843_v56  ;;  %v4328_v35 = vadd.f32 %v4327_v4, %v9840_v45  ;;  %v4329_v46 = vpop.f32.mrb[163].mxu1  ;;  %v4669_v53 = vmul.f32 %v9849_v1, %v4324_v44 }
 0xc4c   :  { %v4499_v62 = vmax.f32 %v4326_v7, 0.0  ;;  %v4330_v23 = vadd.f32 %v4329_v46, %v9846_v12 }
 0xc4d   :  { %v4515_v59 = vadd.f32 %v9855_v61, %v9852_v16  ;;  %v4670_v25 = vmul.f32 %v9849_v1, %v4328_v35 }
 0xc4e   :  { %v4687_v11 = vmul.f32 %v9861_v6, %v4499_v62  ;;  %v4500_v13 = vmax.f32 %v4330_v23, 0.0 }
 0xc4f   :  { %v4516_v24 = vadd.f32 %v4515_v59, %v9859_v26  ;;  %v5855_v21 = vpop.f32.mrb[180].mxu0 }
 0xc50   :  { %v4452_v9 = vpop.f32.mrb[181].mxu0  ;;  %v9878_v39 = vadd.f32 %v4687_v11, %v4669_v53  ;;  %v4688_v57 = vmul.f32 %v9861_v6, %v4500_v13  ;;  %v4333_v8 = vpop.f32.mrb[164].mxu1  ;;  %v9890_v51 = vadd.f32 %v5855_v21, %v9843_v56 }
 0xc51   :  { %v9875_v2 = vadd.f32 %v4452_v9, %v9843_v56  ;;  %v4517_v19 = vadd.f32 %v4516_v24, %v9869_v43  ;;  %v5856_v28 = vpop.f32.mrb[182].mxu0  ;;  %v4334_v22 = vadd.f32 %v4333_v8, %v9840_v45  ;;  %v4335_v10 = vpop.f32.mrb[165].mxu1 }
 0xc52   :  { %v4455_v34 = vpop.f32.mrb[183].mxu0  ;;  %v9886_v36 = vadd.f32 %v4688_v57, %v4670_v25  ;;  %v4336_v31 = vadd.f32 %v4335_v10, %v9846_v12  ;;  %v4337_v41 = vpop.f32.mrb[166].mxu1  ;;  %v9897_v7 = vadd.f32 %v5856_v28, %v9843_v56 }
 0xc53   :  { %v4518_v50 = vadd.f32 %v4517_v19, %v9875_v2  ;;  %v9884_v42 = vadd.f32 %v4455_v34, %v9843_v56  ;;  %v4338_v63 = vadd.f32 %v4337_v41, %v9840_v45  ;;  %v4339_v58 = vpop.f32.mrb[167].mxu1  ;;  %v4671_v49 = vmul.f32 %v9849_v1, %v4334_v22 }
 0xc54   :  { %v4501_v44 = vmax.f32 %v4336_v31, 0.0  ;;  %v4340_v29 = vadd.f32 %v4339_v58, %v9846_v12 }
 0xc55   :  { %v4519_v18 = vadd.f32 %v4518_v50, %v9884_v42  ;;  %v4672_v59 = vmul.f32 %v9849_v1, %v4338_v63 }
 0xc56   :  { %v4689_v46 = vmul.f32 %v9861_v6, %v4501_v44  ;;  %v4502_v53 = vmax.f32 %v4340_v29, 0.0 }
 0xc57   :  { %v4520_v4 = vadd.f32 %v4519_v18, %v9890_v51  ;;  %v5859_v35 = vpop.f32.mrb[184].mxu0 }
 0xc58   :  { %v4468_v62 = vpop.f32.mrb[185].mxu0  ;;  %v9906_v11 = vadd.f32 %v4689_v46, %v4671_v49  ;;  %v4690_v25 = vmul.f32 %v9861_v6, %v4502_v53  ;;  %v4343_v13 = vpop.f32.mrb[168].mxu1  ;;  %v9918_v50 = vadd.f32 %v5859_v35, %v9843_v56 }
 0xc59   :  { %v9903_v23 = vadd.f32 %v4468_v62, %v9843_v56  ;;  %v4521_v24 = vadd.f32 %v4520_v4, %v9897_v7  ;;  %v5860_v21 = vpop.f32.mrb[186].mxu0  ;;  %v4344_v19 = vadd.f32 %v4343_v13, %v9840_v45  ;;  %v4345_v28 = vpop.f32.mrb[169].mxu1 }
 0xc5a   :  { %v4471_v9 = vpop.f32.mrb[187].mxu0  ;;  %v9914_v34 = vadd.f32 %v4690_v25, %v4672_v59  ;;  %v4346_v22 = vadd.f32 %v4345_v28, %v9846_v12  ;;  %v4347_v10 = vpop.f32.mrb[170].mxu1  ;;  %v9925_v44 = vadd.f32 %v5860_v21, %v9843_v56 }
 0xc5b   :  { %v4522_v57 = vadd.f32 %v4521_v24, %v9903_v23  ;;  %v9912_v8 = vadd.f32 %v4471_v9, %v9843_v56  ;;  %v4348_v31 = vadd.f32 %v4347_v10, %v9840_v45  ;;  %v4349_v41 = vpop.f32.mrb[171].mxu1  ;;  %v4673_v58 = vmul.f32 %v9849_v1, %v4344_v19 }
 0xc5c   :  { %v4503_v18 = vmax.f32 %v4346_v22, 0.0  ;;  %v4350_v49 = vadd.f32 %v4349_v41, %v9846_v12 }
 0xc5d   :  { %v4523_v63 = vadd.f32 %v4522_v57, %v9912_v8  ;;  %v4674_v35 = vmul.f32 %v9849_v1, %v4348_v31 }
 0xc5e   :  { %v4691_v46 = vmul.f32 %v9861_v6, %v4503_v18  ;;  %v4504_v59 = vmax.f32 %v4350_v49, 0.0 }
 0xc5f   :  { %v4524_v29 = vadd.f32 %v4523_v63, %v9918_v50  ;;  %v5863_v4 = vpop.f32.mrb[188].mxu0 }
 0xc60   :  { %v4484_v53 = vpop.f32.mrb[189].mxu0  ;;  %v9934_v13 = vadd.f32 %v4691_v46, %v4673_v58  ;;  %v4692_v21 = vmul.f32 %v9861_v6, %v4504_v59  ;;  %v4353_v9 = vpop.f32.mrb[172].mxu1  ;;  %v9946_v58 = vadd.f32 %v5863_v4, %v9843_v56 }
 0xc61   :  { %v9931_v62 = vadd.f32 %v4484_v53, %v9843_v56  ;;  %v4525_v24 = vadd.f32 %v4524_v29, %v9925_v44  ;;  %v5864_v25 = vpop.f32.mrb[190].mxu0  ;;  %v4354_v28 = vadd.f32 %v4353_v9, %v9840_v45  ;;  %v4355_v57 = vpop.f32.mrb[173].mxu1 }
 0xc62   :  { %v4487_v19 = vpop.f32.mrb[191].mxu0  ;;  %v9942_v31 = vadd.f32 %v4692_v21, %v4674_v35  ;;  %v4356_v41 = vadd.f32 %v4355_v57, %v9846_v12  ;;  %v4357_v63 = vpop.f32.mrb[174].mxu1 }
 0xc63   :  { %v4526_v22 = vadd.f32 %v4525_v24, %v9931_v62  ;;  %v9940_v10 = vadd.f32 %v4487_v19, %v9843_v56  ;;  %v4358_v18 = vadd.f32 %v4357_v63, %v9840_v45  ;;  %v4359_v49 = vpop.f32.mrb[175].mxu1  ;;  %v4675_v46 = vmul.f32 %v9849_v1, %v4354_v28 }
 0xc64   :  { %10980 = vst [vmem:[#allocation40_spill] sm:$0xff] %v9942_v31  ;;  %v4505_v59 = vmax.f32 %v4356_v41, 0.0  ;;  %v4360_v53 = vadd.f32 %v4359_v49, %v9846_v12  ;;  %v4496_v24 = vadd.f32 %v5864_v25, %v9843_v56 }
 0xc65   :  { %v4527_v29 = vadd.f32 %v4526_v22, %v9940_v10  ;;  %v4676_v9 = vmul.f32 %v9849_v1, %v4358_v18 }
 0xc66   :  { %v4693_v21 = vmul.f32 %v9861_v6, %v4505_v59  ;;  %v4506_v4 = vmax.f32 %v4360_v53, 0.0 }
 0xc67   :  { %v4528_v35 = vadd.f32 %v4527_v29, %v9946_v58 }
 0xc68   :  { %v9956_v57 = vadd.f32 %v4693_v21, %v4675_v46  ;;  %v4694_v63 = vmul.f32 %v9861_v6, %v4506_v4  ;;  %v4363_v22 = vpop.f32.mrb[176].mxu1 }
 0xc69   :  { %v4529_v19 = vadd.f32 %v4528_v35, %v4496_v24  ;;  %v4364_v28 = vadd.f32 %v4363_v22, %v9840_v45  ;;  %v4365_v41 = vpop.f32.mrb[177].mxu1 }
 0xc6a   :  { %10981 = vst [vmem:[#allocation41_spill] sm:$0xff] %v9956_v57  ;;  %v9960_v49 = vadd.f32 %v4694_v63, %v4676_v9  ;;  %v4366_v56 = vadd.f32 %v4365_v41, %v9846_v12  ;;  %v4367_v25 = vpop.f32.mrb[178].mxu1 }
 0xc6b   :  { %v4530_v33 = vrot.slane %v4529_v19, 4  ;;  %v4368_v29 = vadd.f32 %v4367_v25, %v9840_v45  ;;  %v4369_v59 = vpop.f32.mrb[179].mxu1  ;;  %v4677_v53 = vmul.f32 %v9849_v1, %v4364_v28 }
 0xc6c   :  { %10982 = vst [vmem:[#allocation45_spill] sm:$0xff] %v9960_v49  ;;  %v4507_v46 = vmax.f32 %v4366_v56, 0.0  ;;  %v4370_v35 = vadd.f32 %v4369_v59, %v9846_v12 }
 0xc6d   :  { %v4531_v18 = vadd.f32 %v4530_v33, %v4529_v19  ;;  %v4678_v22 = vmul.f32 %v9849_v1, %v4368_v29 }
 0xc6e   :  { %v4695_v4 = vmul.f32 %v9861_v6, %v4507_v46  ;;  %v4508_v0 = vmax.f32 %v4370_v35, 0.0 }
 0xc6f   :  { %v4532_v21 = vrot.slane %v4531_v18, 2 }
 0xc70   :  { %v9968_v63 = vadd.f32 %v4695_v4, %v4677_v53  ;;  %v4696_v41 = vmul.f32 %v9861_v6, %v4508_v0  ;;  %v4373_v60 = vpop.f32.mrb[180].mxu1 }
 0xc71   :  { %v4533_v9 = vadd.f32 %v4532_v21, %v4531_v18  ;;  %v4375_v25 = vpop.f32.mrb[181].mxu1  ;;  %v4374_v28 = vadd.f32 %v4373_v60, %v9840_v45 }
 0xc72   :  { %10983 = vst [vmem:[#allocation47_spill] sm:$0xff] %v9968_v63  ;;  %v9971_v33 = vadd.f32 %v4696_v41, %v4678_v22  ;;  %v4377_v19 = vpop.f32.mrb[182].mxu1  ;;  %v4376_v56 = vadd.f32 %v4375_v25, %v9846_v12 }
 0xc73   :  { %v4534_v37 = vrot.slane %v4533_v9, 1  ;;  %v4379_v59 = vpop.f32.mrb[183].mxu1  ;;  %v4679_v29 = vmul.f32 %v9849_v1, %v4374_v28  ;;  %v4378_v53 = vadd.f32 %v4377_v19, %v9840_v45 }
 0xc74   :  { %10984 = vst [vmem:[#allocation48_spill] sm:$0xff] %v9971_v33  ;;  %v4509_v18 = vmax.f32 %v4376_v56, 0.0  ;;  %v4380_v0 = vadd.f32 %v4379_v59, %v9846_v12 }
 0xc75   :  { %v4535_v46 = vadd.f32 %v4534_v37, %v4533_v9 }
 0xc76   :  { %v4697_v28 = vmul.f32 %v9861_v6, %v4509_v18  ;;  %v4510_v56 = vmax.f32 %v4380_v0, 0.0 }
 0xc77   :  { %v4536_v47 = vmul.f32 0.0078125, %v4535_v46 }
 0xc78   :  { %v4383_v37 = vpop.f32.mrb[184].mxu1  ;;  %v10037_v59 = vadd.f32 %v4697_v28, %v4679_v29  ;;  %v4698_v46 = vmul.f32 %v9861_v6, %v4510_v56 }
 0xc79   :  { %v9979_v35 = vsub.f32 %v9852_v16, %v4536_v47  ;;  %v9982_v21 = vsub.f32 %v9855_v61, %v4536_v47  ;;  %v9985_v60 = vsub.f32 %v9859_v26, %v4536_v47  ;;  %v9988_v4 = vsub.f32 %v9869_v43, %v4536_v47  ;;  %v4385_v61 = vpop.f32.mrb[185].mxu1 }
 0xc7a   :  { %v9991_v22 = vsub.f32 %v9875_v2, %v4536_v47  ;;  %v9994_v9 = vsub.f32 %v9884_v42, %v4536_v47  ;;  %v9997_v41 = vsub.f32 %v9890_v51, %v4536_v47  ;;  %v10000_v16 = vsub.f32 %v9897_v7, %v4536_v47  ;;  %v4387_v42 = vpop.f32.mrb[186].mxu1  ;;  %10985 = vst [vmem:[#allocation49_spill] sm:$0xff] %v10037_v59 }
 0xc7b   :  { %v10003_v26 = vsub.f32 %v9903_v23, %v4536_v47  ;;  %v10006_v43 = vsub.f32 %v9912_v8, %v4536_v47  ;;  %v10009_v25 = vsub.f32 %v9918_v50, %v4536_v47  ;;  %v10012_v2 = vsub.f32 %v9925_v44, %v4536_v47  ;;  %v4389_v8 = vpop.f32.mrb[187].mxu1 }
 0xc7c   :  { %v10015_v51 = vsub.f32 %v9931_v62, %v4536_v47  ;;  %v10018_v7 = vsub.f32 %v9940_v10, %v4536_v47  ;;  %v10021_v19 = vsub.f32 %v9946_v58, %v4536_v47  ;;  %v10023_v23 = vsub.f32 %v4496_v24, %v4536_v47 }
 0xc7d   :  { %v4553_v50 = vmul.f32 %v9979_v35, %v9979_v35  ;;  %v4554_v44 = vmul.f32 %v9982_v21, %v9982_v21  ;;  %v4680_v62 = vmul.f32 %v9849_v1, %v4378_v53  ;;  %v4555_v10 = vmul.f32 %v9985_v60, %v9985_v60 }
 0xc7e   :  { %v4556_v58 = vmul.f32 %v9988_v4, %v9988_v4  ;;  %v4557_v47 = vmul.f32 %v9991_v22, %v9991_v22  ;;  %v4384_v33 = vadd.f32 %v4383_v37, %v9840_v45  ;;  %v4386_v0 = vadd.f32 %v4385_v61, %v9846_v12 }
 0xc7f   :  { %v4569_v24 = vadd.f32 %v4554_v44, %v4553_v50  ;;  %v4388_v53 = vadd.f32 %v4387_v42, %v9840_v45  ;;  %v4390_v63 = vadd.f32 %v4389_v8, %v9846_v12  ;;  %v10045_v31 = vadd.f32 %v4698_v46, %v4680_v62 }
 0xc80   :  { %v4393_v18 = vpop.f32.mrb[188].mxu1  ;;  %v4681_v29 = vmul.f32 %v9849_v1, %v4384_v33  ;;  %v4511_v28 = vmax.f32 %v4386_v0, 0.0  ;;  %v4558_v62 = vmul.f32 %v9994_v9, %v9994_v9 }
 0xc81   :  { %v4394_v17 = vadd.f32 %v4393_v18, %v9840_v45  ;;  %v4395_v49 = vpop.f32.mrb[189].mxu1  ;;  %v4570_v57 = vadd.f32 %v4569_v24, %v4555_v10  ;;  %v4682_v37 = vmul.f32 %v9849_v1, %v4388_v53  ;;  %v4512_v56 = vmax.f32 %v4390_v63, 0.0 }
 0xc82   :  { %v4396_v50 = vadd.f32 %v4395_v49, %v9846_v12  ;;  %v4397_v44 = vpop.f32.mrb[190].mxu1  ;;  %v4699_v33 = vmul.f32 %v9861_v6, %v4511_v28 }
 0xc83   :  { %v4683_v61 = vmul.f32 %v9849_v1, %v4394_v17  ;;  %v4399_v42 = vpop.f32.mrb[191].mxu1  ;;  %v4571_v59 = vadd.f32 %v4570_v57, %v4556_v58  ;;  %v4398_v18 = vadd.f32 %v4397_v44, %v9840_v45  ;;  %v4700_v49 = vmul.f32 %v9861_v6, %v4512_v56 }
 0xc84   :  { %v4513_v8 = vmax.f32 %v4396_v50, 0.0  ;;  %v4400_v10 = vadd.f32 %v4399_v42, %v9846_v12  ;;  %v10059_v0 = vadd.f32 %v4699_v33, %v4681_v29  ;;  %v4559_v45 = vmul.f32 %v9997_v41, %v9997_v41 }
 0xc85   :  { %v4572_v24 = vadd.f32 %v4571_v59, %v4557_v47  ;;  %v4684_v63 = vmul.f32 %v9849_v1, %v4398_v18  ;;  %v10061_v57 = vadd.f32 %v4700_v49, %v4682_v37  ;;  %v4560_v47 = vmul.f32 %v10000_v16, %v10000_v16 }
 0xc86   :  { %v4701_v46 = vmul.f32 %v9861_v6, %v4513_v8  ;;  %v4514_v17 = vmax.f32 %v4400_v10, 0.0  ;;  %v4561_v1 = vmul.f32 %v10003_v26, %v10003_v26  ;;  %v4562_v44 = vmul.f32 %v10006_v43, %v10006_v43 }
 0xc87   :  { %v4573_v12 = vadd.f32 %v4572_v24, %v4558_v62  ;;  %v4563_v37 = vmul.f32 %v10009_v25, %v10009_v25  ;;  %v4565_v42 = vmul.f32 %v10015_v51, %v10015_v51  ;;  %v4566_v18 = vmul.f32 %v10018_v7, %v10018_v7 }
 0xc88   :  { %v10065_v58 = vadd.f32 %v4701_v46, %v4683_v61  ;;  %v4702_v53 = vmul.f32 %v9861_v6, %v4514_v17  ;;  %v4564_v6 = vmul.f32 %v10012_v2, %v10012_v2  ;;  %v4567_v62 = vmul.f32 %v10021_v19, %v10021_v19 }
 0xc89   :  { %v4574_v59 = vadd.f32 %v4573_v12, %v4559_v45  ;;  %v4568_v49 = vmul.f32 %v10023_v23, %v10023_v23 }
 0xc8a   :  { %v10070_v50 = vadd.f32 %v4702_v53, %v4684_v63 }
 0xc8b   :  { %v4575_v29 = vadd.f32 %v4574_v59, %v4560_v47 }
 0xc8d   :  { %v4576_v28 = vadd.f32 %v4575_v29, %v4561_v1  ;;  %v10088_v29 = vstv %s5455_s21 }
 0xc8f   :  { %v4577_v56 = vadd.f32 %v4576_v28, %v4562_v44  ;;  %v10090_v44 = vstv %s5454_s22  ;;  %v10094_v28 = vmul.f32 %v10088_v29, %v9697_v48  ;;  %v10114_v48 = vmul.f32 %v10088_v29, %v9715_v27  ;;  %v10137_v27 = vld [vmem:[%s10799_s4 + $0x7] ss:$0 sm:$0xff] }
 0xc91   :  { %v4578_v61 = vadd.f32 %v4577_v56, %v4563_v37  ;;  %v10098_v37 = vmul.f32 %v10088_v29, %v9703_v20  ;;  %v10102_v56 = vmul.f32 %v10088_v29, %v9706_v5  ;;  %v10118_v20 = vmul.f32 %v10088_v29, %v9718_v52 }
 0xc92   :  { %v10122_v5 = vmul.f32 %v10088_v29, %v9747_v38  ;;  %v10141_v52 = vmul.f32 %v10088_v29, %v9782_v55  ;;  %v10145_v38 = vmul.f32 %v10088_v29, %v9785_v54 }
 0xc93   :  { %v4579_v8 = vadd.f32 %v4578_v61, %v4564_v6  ;;  %v10106_v6 = vmul.f32 %v10088_v29, %v9709_v15  ;;  %v10110_v61 = vmul.f32 %v10088_v29, %v9712_v3  ;;  %v10126_v15 = vmul.f32 %v10088_v29, %v9773_v14 }
 0xc94   :  { %v10130_v3 = vmul.f32 %v10088_v29, %v9779_v32  ;;  %v10149_v14 = vmul.f32 %v10088_v29, %v9770_v40  ;;  %v10153_v32 = vmul.f32 %v10088_v29, %v9750_v30  ;;  %v10170_v40 = vld [vmem:[%s10800_s5 + $0x7] ss:$0 sm:$0xff] }
 0xc95   :  { %v4580_v10 = vadd.f32 %v4579_v8, %v4565_v42 }
 0xc97   :  { %v4581_v33 = vadd.f32 %v4580_v10, %v4566_v18 }
 0xc99   :  { %v4582_v24 = vadd.f32 %v4581_v33, %v4567_v62 }
 0xc9b   :  { %v4583_v46 = vadd.f32 %v4582_v24, %v4568_v49 }
 0xc9d   :  { %v4584_v63 = vrot.slane %v4583_v46, 4 }
 0xc9f   :  { %v4585_v17 = vadd.f32 %v4584_v63, %v4583_v46 }
 0xca1   :  { %v4586_v45 = vrot.slane %v4585_v17, 2 }
 0xca3   :  { %v4587_v12 = vadd.f32 %v4586_v45, %v4585_v17 }
 0xca5   :  { %v4588_v53 = vrot.slane %v4587_v12, 1 }
 0xca7   :  { %v4589_v47 = vadd.f32 %v4588_v53, %v4587_v12 }
 0xca9   :  { %v4590_v59 = vmul.f32 0.0078125, %v4589_v47 }
 0xcab   :  { %v4591_v1 = vadd.f32 1e-05, %v4590_v59 }
 0xcad   :  { %5936 = vrsqrt.f32 %v4591_v1 }
 0xcb7   :  { %v10132_v42 = vpop.eup %5936 }
 0xcb8   :  { %v10157_v8 = vmul.f32 %v10132_v42, %v10015_v51  ;;  %v4606_v55 = vmul.f32 %v10132_v42, %v10018_v7  ;;  %v10163_v18 = vmul.f32 %v10132_v42, %v10021_v19  ;;  %v4593_v54 = vmul.f32 %v10132_v42, %v9979_v35 }
 0xcb9   :  { %v4594_v30 = vmul.f32 %v10132_v42, %v9982_v21  ;;  %v4595_v51 = vmul.f32 %v10132_v42, %v9985_v60  ;;  %v4596_v7 = vmul.f32 %v10132_v42, %v9988_v4  ;;  %v4597_v19 = vmul.f32 %v10132_v42, %v9991_v22 }
 0xcba   :  { %v4627_v10 = vmul.f32 %v10137_v27, %v4606_v55  ;;  %v4614_v35 = vmul.f32 %v10137_v27, %v4593_v54  ;;  %v4598_v62 = vmul.f32 %v10132_v42, %v9994_v9  ;;  %v4599_v33 = vmul.f32 %v10132_v42, %v9997_v41 }
 0xcbb   :  { %v4615_v21 = vmul.f32 %v10137_v27, %v4594_v30  ;;  %v4616_v60 = vmul.f32 %v10137_v27, %v4595_v51  ;;  %v4617_v49 = vmul.f32 %v10137_v27, %v4596_v7  ;;  %v4618_v4 = vmul.f32 %v10137_v27, %v4597_v19 }
 0xcbc   :  { %v4648_v22 = vadd.f32 %v10170_v40, %v4627_v10  ;;  %v4635_v24 = vadd.f32 %v10170_v40, %v4614_v35  ;;  %v4619_v46 = vmul.f32 %v10137_v27, %v4598_v62  ;;  %v4620_v63 = vmul.f32 %v10137_v27, %v4599_v33 }
 0xcbd   :  { %v4636_v9 = vadd.f32 %v10170_v40, %v4615_v21  ;;  %v4637_v41 = vadd.f32 %v10170_v40, %v4616_v60  ;;  %v4638_v17 = vadd.f32 %v10170_v40, %v4617_v49  ;;  %v4639_v45 = vadd.f32 %v10170_v40, %v4618_v4 }
 0xcbe   :  { %v4664_v12 = vmax.f32 %v4648_v22, 0.0  ;;  %v4651_v53 = vmax.f32 %v4635_v24, 0.0  ;;  %v4640_v47 = vadd.f32 %v10170_v40, %v4619_v46  ;;  %v4641_v59 = vadd.f32 %v10170_v40, %v4620_v63 }
 0xcbf   :  { %v4652_v1 = vmax.f32 %v4636_v9, 0.0  ;;  %v4653_v55 = vmax.f32 %v4637_v41, 0.0  ;;  %v4654_v54 = vmax.f32 %v4638_v17, 0.0  ;;  %v4655_v30 = vmax.f32 %v4639_v45, 0.0  ;;  %v10986_v41 = vld [vmem:[#allocation40_spill] sm:$0xff] }
 0xcc0   :  { %v4721_v51 = vmul.f32 %v10090_v44, %v4651_v53  ;;  %v4656_v7 = vmax.f32 %v4640_v47, 0.0  ;;  %v4657_v19 = vmax.f32 %v4641_v59, 0.0  ;;  %v4600_v10 = vmul.f32 %v10132_v42, %v10000_v16 }
 0xcc1   :  { %v4722_v35 = vmul.f32 %v10090_v44, %v4652_v1  ;;  %v4723_v62 = vmul.f32 %v10090_v44, %v4653_v55  ;;  %v4724_v33 = vmul.f32 %v10090_v44, %v4654_v54  ;;  %v4725_v21 = vmul.f32 %v10090_v44, %v4655_v30  ;;  %v10988_v30 = vld [vmem:[#allocation45_spill] sm:$0xff] }
 0xcc2   :  { %v4737_v60 = vadd.f32 %v4721_v51, %v9878_v39  ;;  %v4726_v49 = vmul.f32 %v10090_v44, %v4656_v7  ;;  %v4727_v4 = vmul.f32 %v10090_v44, %v4657_v19  ;;  %v4621_v22 = vmul.f32 %v10137_v27, %v4600_v10  ;;  %v10987_v39 = vld [vmem:[#allocation41_spill] sm:$0xff] }
 0xcc3   :  { %v4738_v24 = vadd.f32 %v4722_v35, %v9886_v36  ;;  %v4739_v16 = vadd.f32 %v4723_v62, %v9906_v11  ;;  %v4740_v46 = vadd.f32 %v4724_v33, %v9914_v34  ;;  %v4741_v63 = vadd.f32 %v4725_v21, %v9934_v13 }
 0xcc4   :  { %v10216_v9 = vadd.f32 %v10094_v28, %v4737_v60  ;;  %v4742_v17 = vadd.f32 %v4726_v49, %v10986_v41  ;;  %v4743_v45 = vadd.f32 %v4727_v4, %v10987_v39  ;;  %v4642_v53 = vadd.f32 %v10170_v40, %v4621_v22 }
 0xcc5   :  { %v10222_v47 = vadd.f32 %v10098_v37, %v4738_v24  ;;  %v10225_v36 = vadd.f32 %v10102_v56, %v4739_v16  ;;  %v10228_v11 = vadd.f32 %v10106_v6, %v4740_v46  ;;  %v10231_v34 = vadd.f32 %v10110_v61, %v4741_v63  ;;  %v10989_v46 = vld [vmem:[#allocation46_spill] sm:$0xff] }
 0xcc6   :  { %v10234_v13 = vadd.f32 %v10114_v48, %v4742_v17  ;;  %v10237_v28 = vadd.f32 %v10118_v20, %v4743_v45  ;;  %v4658_v59 = vmax.f32 %v4642_v53, 0.0  ;;  %v4601_v37 = vmul.f32 %v10132_v42, %v10003_v26  ;;  %v10990_v45 = vld [vmem:[#allocation47_spill] sm:$0xff] }
 0xcc7   :  { %v4602_v56 = vmul.f32 %v10132_v42, %v10006_v43  ;;  %v4603_v6 = vmul.f32 %v10132_v42, %v10009_v25  ;;  %v4604_v61 = vmul.f32 %v10132_v42, %v10012_v2  ;;  %v4626_v48 = vmul.f32 %v10137_v27, %v10157_v8 }
 0xcc8   :  { %v4728_v1 = vmul.f32 %v10090_v44, %v4658_v59  ;;  %v4622_v20 = vmul.f32 %v10137_v27, %v4601_v37  ;;  %v4734_v55 = vmul.f32 %v10090_v44, %v4664_v12  ;;  %v4628_v26 = vmul.f32 %v10137_v27, %v10163_v18 }
 0xcc9   :  { %v4623_v43 = vmul.f32 %v10137_v27, %v4602_v56  ;;  %v4624_v54 = vmul.f32 %v10137_v27, %v4603_v6  ;;  %v4625_v25 = vmul.f32 %v10137_v27, %v4604_v61  ;;  %v4647_v2 = vadd.f32 %v10170_v40, %v4626_v48  ;;  %v10991_v56 = vld [vmem:[#allocation48_spill] sm:$0xff]  ;;  %v10992_v61 = vld [vmem:[#allocation49_spill] sm:$0xff] }
 0xcca   :  { %v4744_v51 = vadd.f32 %v4728_v1, %v10988_v30  ;;  %v4643_v8 = vadd.f32 %v10170_v40, %v4622_v20  ;;  %v4750_v7 = vadd.f32 %v4734_v55, %v10061_v57  ;;  %v4649_v19 = vadd.f32 %v10170_v40, %v4628_v26  ;;  %v10994_v26 = vld [vmem:[#allocation50_spill] sm:$0xff] }
 0xccb   :  { %v4644_v12 = vadd.f32 %v10170_v40, %v4623_v43  ;;  %v4645_v18 = vadd.f32 %v10170_v40, %v4624_v54  ;;  %v4646_v10 = vadd.f32 %v10170_v40, %v4625_v25  ;;  %v4663_v35 = vmax.f32 %v4647_v2, 0.0 }
 0xccc   :  { %v10266_v62 = vadd.f32 %v10122_v5, %v4744_v51  ;;  %v4659_v33 = vmax.f32 %v4643_v8, 0.0  ;;  %v10269_v21 = vadd.f32 %v10153_v32, %v4750_v7  ;;  %v4665_v60 = vmax.f32 %v4649_v19, 0.0 }
 0xccd   :  { %v4660_v49 = vmax.f32 %v4644_v12, 0.0  ;;  %v4661_v4 = vmax.f32 %v4645_v18, 0.0  ;;  %v4662_v57 = vmax.f32 %v4646_v10, 0.0  ;;  %v4733_v22 = vmul.f32 %v10090_v44, %v4663_v35 }
 0xcce   :  { %v4729_v24 = vmul.f32 %v10090_v44, %v4659_v33  ;;  %v4735_v16 = vmul.f32 %v10090_v44, %v4665_v60  ;;  %v4769_v63 = vmul.f32 %v10088_v29, %v10989_v46  ;;  %v4608_v5 = vmul.f32 %v10132_v42, %v10023_v23 }
 0xccf   :  { %v4730_v41 = vmul.f32 %v10090_v44, %v4660_v49  ;;  %v4731_v32 = vmul.f32 %v10090_v44, %v4661_v4  ;;  %v4732_v17 = vmul.f32 %v10090_v44, %v4662_v57  ;;  %v4749_v39 = vadd.f32 %v4733_v22, %v10059_v0 }
 0xcd0   :  { %v4745_v53 = vadd.f32 %v4729_v24, %v10990_v45  ;;  %v4751_v59 = vadd.f32 %v4735_v16, %v10065_v58  ;;  %v4629_v37 = vmul.f32 %v10137_v27, %v4608_v5 }
 0xcd1   :  { %v4746_v6 = vadd.f32 %v4730_v41, %v10991_v56  ;;  %v4747_v48 = vadd.f32 %v4731_v32, %v10992_v61  ;;  %v4748_v23 = vadd.f32 %v4732_v17, %v10045_v31  ;;  %v10289_v42 = vadd.f32 %v10149_v14, %v4749_v39 }
 0xcd2   :  { %v10292_v1 = vadd.f32 %v10126_v15, %v4745_v53  ;;  %v10294_v20 = vadd.f32 %v4769_v63, %v4751_v59  ;;  %v4650_v0 = vadd.f32 %v10170_v40, %v4629_v37  ;;  %v4770_v15 = vmul.f32 %v10088_v29, %v10994_v26 }
 0xcd3   :  { %v10298_v58 = vadd.f32 %v10130_v3, %v4746_v6  ;;  %v10301_v27 = vadd.f32 %v10141_v52, %v4747_v48  ;;  %v10304_v55 = vadd.f32 %v10145_v38, %v4748_v23 }
 0xcd4   :  { %10993 = vst [vmem:[#allocation40_spill] sm:$0xff] %v10294_v20  ;;  %v4666_v31 = vmax.f32 %v4650_v0, 0.0 }
 0xcd6   :  { %v4736_v14 = vmul.f32 %v10090_v44, %v4666_v31 }
 0xcd8   :  { %v4752_v43 = vadd.f32 %v4736_v14, %v10070_v50 }
 0xcda   :  { %v10310_v54 = vadd.f32 %v4770_v15, %v4752_v43 }
 0xcdc   :  { %10995 = vst [vmem:[#allocation41_spill] sm:$0xff] %v10310_v54 }
 0xcdd   :  { %6016 = dma.done.wait [#allocation3], 3072 }
 0xcde   :  { %6017 = vsyncadd [#allocation3], 4294964224  ;;  %v4789_v3 = vpack.c.bf16 %v10222_v47, %v10216_v9  ;;  %v10996_v52 = vmov 0   ;;  %v4799_v38 = vld [vmem:[#allocation2 + $0x10] sm:$0xff]  ;;  %v4802_v40 = vld [vmem:[#allocation2 + $0x28] sm:$0xff]  ;;  %v4790_v16 = vpack.c.bf16 %v10228_v11, %v10225_v36  ;;  %v4791_v63 = vpack.c.bf16 %v10234_v13, %v10231_v34  ;;  %s5459_s28 = sld [smem:[#allocation4 + $0x400]] }
 0xcdf   :  { %4871 = vmatprep.mubr.bf16.mxu0 %v10996_v52  ;;  %5865 = vmatprep.subr.bf16.mxu1 %v4799_v38  ;;  %v4798_v44 = vld [vmem:[#allocation2 + $0x8] sm:$0xff]  ;;  %v4797_v29 = vld [vmem:[#allocation2] sm:$0xff]  ;;  %v4800_v2 = vld [vmem:[#allocation2 + $0x18] sm:$0xff]  ;;  %v4792_v5 = vpack.c.bf16 %v10266_v62, %v10237_v28  ;;  %v4793_v41 = vpack.c.bf16 %v10298_v58, %v10292_v1  ;;  %v4794_v32 = vpack.c.bf16 %v10304_v55, %v10301_v27  ;;  %s5460_s29 = sld [smem:[#allocation4 + $0x401]]  ;;  %s5461_s30 = sld [smem:[#allocation4 + $0x402]] }
 0xce0   :  { %5881 = vmatprep.mubr.bf16.mxu1 %v4789_v3  ;;  %5866 = vmatpush3.bf16.msra.mxu1 %v4799_v38  ;;  %v4801_v25 = vld [vmem:[#allocation2 + $0x20] sm:$0xff]  ;;  %v4804_v30 = vld [vmem:[#allocation2 + $0x38] sm:$0xff]  ;;  %v4803_v8 = vld [vmem:[#allocation2 + $0x30] sm:$0xff]  ;;  %v4795_v17 = vpack.c.bf16 %v10269_v21, %v10289_v42  ;;  %v4796_v39 = vpack.c.bf16 %v10310_v54, %v10294_v20 }
 0xce1   :  { %5867 = vmatprep.subr.bf16.mxu1 %v4802_v40  ;;  %4839 = vmatprep.subr.bf16.mxu0 %v4798_v44  ;;  %v4805_v50 = vld [vmem:[#allocation2 + $0x40] sm:$0xff]  ;;  %v4808_v51 = vld [vmem:[#allocation2 + $0x58] sm:$0xff]  ;;  %v4807_v7 = vld [vmem:[#allocation2 + $0x50] sm:$0xff] }
 0xce2   :  { %4840 = vmatpush1.bf16.msra.mxu0 %v4797_v29  ;;  %v4811_v19 = vld [vmem:[#allocation2 + $0x70] sm:$0xff]  ;;  %v4806_v12 = vld [vmem:[#allocation2 + $0x48] sm:$0xff]  ;;  %v4809_v35 = vld [vmem:[#allocation2 + $0x60] sm:$0xff] }
 0xce3   :  { %4841 = vmatprep.subr.bf16.mxu0 %v4801_v25  ;;  %v4810_v18 = vld [vmem:[#allocation2 + $0x68] sm:$0xff]  ;;  %v4813_v33 = vld [vmem:[#allocation2 + $0x80] sm:$0xff]  ;;  %v4812_v49 = vld [vmem:[#allocation2 + $0x78] sm:$0xff] }
 0xce4   :  { %5868 = vmatpush3.bf16.msra.mxu1 %v4802_v40  ;;  %v4814_v10 = vld [vmem:[#allocation2 + $0x88] sm:$0xff]  ;;  %v4817_v60 = vld [vmem:[#allocation2 + $0xa0] sm:$0xff]  ;;  %v4816_v4 = vld [vmem:[#allocation2 + $0x98] sm:$0xff]  ;;  %v10349_v15 = vstv %s5459_s28 }
 0xce5   :  { %5869 = vmatprep.subr.bf16.mxu1 %v4805_v50  ;;  %v4820_v57 = vld [vmem:[#allocation2 + $0xb8] sm:$0xff]  ;;  %v4815_v22 = vld [vmem:[#allocation2 + $0x90] sm:$0xff]  ;;  %v4818_v46 = vld [vmem:[#allocation2 + $0xa8] sm:$0xff]  ;;  %v10361_v29 = vstv %s5460_s29 }
 0xce6   :  { %4842 = vmatpush1.bf16.msra.mxu0 %v4800_v2  ;;  %v4819_v24 = vld [vmem:[#allocation2 + $0xb0] sm:$0xff]  ;;  %v5456_v45 = vld [vmem:[%s10798_s3 + $0x18] ss:$8 sm:$0x7]  ;;  %s5462_s3 = sld [smem:[#allocation4 + $0x403]] }
 0xce7   :  { %4843 = vmatprep.subr.bf16.mxu0 %v4804_v30  ;;  %v10997_v53 = vld [vmem:[#allocation42_spill] sm:$0xff]  ;;  %v10998_v37 = vld [vmem:[#allocation43_spill] sm:$0xff]  ;;  %v10999_v61 = vld [vmem:[#allocation44_spill] sm:$0xff] }
 0xce8   :  { %5870 = vmatpush3.bf16.msra.mxu1 %v4805_v50  ;;  %v10340_v59 = vrot.slane %v5456_v45, %v10997_v53  ;;  %v10343_v56 = vrot.slane %v5456_v45, %v10998_v37  ;;  %v10346_v48 = vrot.slane %v5456_v45, %v10999_v61 }
 0xce9   :  { %5871 = vmatprep.subr.bf16.mxu1 %v4808_v51 }
 0xcea   :  { %4844 = vmatpush1.bf16.msra.mxu0 %v4803_v8 }
 0xceb   :  { %4845 = vmatprep.subr.bf16.mxu0 %v4807_v7 }
 0xcec   :  { %5872 = vmatpush3.bf16.msra.mxu1 %v4808_v51 }
 0xced   :  { %5873 = vmatprep.subr.bf16.mxu1 %v4811_v19 }
 0xcee   :  { %4846 = vmatpush1.bf16.msra.mxu0 %v4806_v12 }
 0xcef   :  { %4847 = vmatprep.subr.bf16.mxu0 %v4810_v18 }
 0xcf0   :  { %5874 = vmatpush3.bf16.msra.mxu1 %v4811_v19 }
 0xcf1   :  { %5875 = vmatprep.subr.bf16.mxu1 %v4814_v10 }
 0xcf2   :  { %4848 = vmatpush1.bf16.msra.mxu0 %v4809_v35 }
 0xcf3   :  { %4849 = vmatprep.subr.bf16.mxu0 %v4813_v33 }
 0xcf4   :  { %5876 = vmatpush3.bf16.msra.mxu1 %v4814_v10 }
 0xcf5   :  { %5877 = vmatprep.subr.bf16.mxu1 %v4817_v60 }
 0xcf6   :  { %4850 = vmatpush1.bf16.msra.mxu0 %v4812_v49 }
 0xcf7   :  { %4851 = vmatprep.subr.bf16.mxu0 %v4816_v4 }
 0xcf8   :  { %5878 = vmatpush3.bf16.msra.mxu1 %v4817_v60 }
 0xcf9   :  { %5879 = vmatprep.subr.bf16.mxu1 %v4820_v57 }
 0xcfa   :  { %4852 = vmatpush1.bf16.msra.mxu0 %v4815_v22 }
 0xcfb   :  { %4853 = vmatprep.subr.bf16.mxu0 %v4819_v24 }
 0xcfc   :  { %5880 = vmatpush3.bf16.msra.mxu1 %v4820_v57 }
 0xcfe   :  { %4854 = vmatpush1.bf16.msra.mxu0 %v4818_v46 }
 0xcff   :  { %5882 = vmatmul.mubr.bf16.vlgmr.msra.gmra.mrb[192].mxu1 %v4790_v16 }
 0xd00   :  { %5885 = vmatprep.mubr.bf16.mxu1 %v4791_v63 }
 0xd01   :  { %4872 = vmatmul.mubr.bf16.vlgmr.msra.gmra.mrb[192].mxu0 %v4789_v3 }
 0xd02   :  { %4881 = vmatprep.mubr.bf16.mxu0 %v10996_v52 }
 0xd07   :  { %5886 = vmatmul.mubr.bf16.gmra.mrb[196].mxu1 %v4792_v5 }
 0xd08   :  { %5889 = vmatprep.mubr.bf16.mxu1 %v4793_v41 }
 0xd09   :  { %4882 = vmatmul.mubr.bf16.gmra.mrb[196].mxu0 %v4790_v16 }
 0xd0a   :  { %4891 = vmatprep.mubr.bf16.mxu0 %v10996_v52 }
 0xd0f   :  { %5890 = vmatmul.mubr.bf16.gmra.mrb[200].mxu1 %v4794_v32 }
 0xd10   :  { %5893 = vmatprep.mubr.bf16.mxu1 %v4795_v17 }
 0xd11   :  { %4892 = vmatmul.mubr.bf16.gmra.mrb[200].mxu0 %v4791_v63 }
 0xd12   :  { %4901 = vmatprep.mubr.bf16.mxu0 %v10996_v52 }
 0xd17   :  { %5894 = vmatmul.mubr.bf16.gmra.mrb[204].mxu1 %v4796_v39 }
 0xd19   :  { %4902 = vmatmul.mubr.bf16.gmra.mrb[204].mxu0 %v4792_v5 }
 0xd1a   :  { %4911 = vmatprep.mubr.bf16.mxu0 %v10996_v52 }
 0xd21   :  { %4912 = vmatmul.mubr.bf16.gmra.mrb[208].mxu0 %v4793_v41 }
 0xd22   :  { %4921 = vmatprep.mubr.bf16.mxu0 %v10996_v52 }
 0xd29   :  { %4922 = vmatmul.mubr.bf16.gmra.mrb[212].mxu0 %v4794_v32 }
 0xd2a   :  { %4931 = vmatprep.mubr.bf16.mxu0 %v10996_v52 }
 0xd31   :  { %4932 = vmatmul.mubr.bf16.gmra.mrb[216].mxu0 %v4795_v17 }
 0xd32   :  { %4941 = vmatprep.mubr.bf16.mxu0 %v10996_v52 }
 0xd39   :  { %4942 = vmatmul.mubr.bf16.gmra.mrb[220].mxu0 %v4796_v39 }
 0xdd2   :  { %v5883_v6 = vpop.f32.mrb[192].mxu1 }
 0xdd3   :  { %v4986_v23 = vpop.f32.mrb[193].mxu1  ;;  %v10359_v44 = vadd.f32 %v5883_v6, %v10343_v56 }
 0xdd4   :  { %v5884_v0 = vpop.f32.mrb[194].mxu1  ;;  %v4873_v31 = vpop.f32.mrb[192].mxu0  ;;  %v10352_v3 = vadd.f32 %v4986_v23, %v10343_v56 }
 0xdd5   :  { %v4989_v14 = vpop.f32.mrb[195].mxu1  ;;  %v4874_v26 = vadd.f32 %v4873_v31, %v10340_v59  ;;  %v4875_v43 = vpop.f32.mrb[193].mxu0  ;;  %v10369_v7 = vadd.f32 %v5884_v0, %v10343_v56 }
 0xdd6   :  { %v10355_v52 = vadd.f32 %v4989_v14, %v10343_v56  ;;  %v4876_v38 = vadd.f32 %v4875_v43, %v10346_v48  ;;  %v4877_v40 = vpop.f32.mrb[194].mxu0 }
 0xdd7   :  { %v4878_v25 = vadd.f32 %v4877_v40, %v10340_v59  ;;  %v4879_v50 = vpop.f32.mrb[195].mxu0  ;;  %v5219_v30 = vmul.f32 %v10349_v15, %v4874_v26 }
 0xdd8   :  { %v5065_v2 = vadd.f32 %v10355_v52, %v10352_v3  ;;  %v5049_v51 = vmax.f32 %v4876_v38, 0.0  ;;  %v4880_v8 = vadd.f32 %v4879_v50, %v10346_v48 }
 0xdd9   :  { %v5220_v10 = vmul.f32 %v10349_v15, %v4878_v25 }
 0xdda   :  { %v5066_v19 = vadd.f32 %v5065_v2, %v10359_v44  ;;  %v5887_v12 = vpop.f32.mrb[196].mxu1  ;;  %v5237_v18 = vmul.f32 %v10361_v29, %v5049_v51  ;;  %v5050_v35 = vmax.f32 %v4880_v8, 0.0 }
 0xddb   :  { %v5002_v33 = vpop.f32.mrb[197].mxu1  ;;  %v10390_v45 = vadd.f32 %v5887_v12, %v10343_v56 }
 0xddc   :  { %v10375_v60 = vadd.f32 %v5002_v33, %v10343_v56  ;;  %v5067_v49 = vadd.f32 %v5066_v19, %v10369_v7  ;;  %v5888_v4 = vpop.f32.mrb[198].mxu1  ;;  %v10378_v57 = vadd.f32 %v5237_v18, %v5219_v30  ;;  %v5238_v22 = vmul.f32 %v10361_v29, %v5050_v35  ;;  %v4883_v24 = vpop.f32.mrb[196].mxu0 }
 0xddd   :  { %v5005_v16 = vpop.f32.mrb[199].mxu1  ;;  %v4884_v46 = vadd.f32 %v4883_v24, %v10340_v59  ;;  %v4885_v63 = vpop.f32.mrb[197].mxu0  ;;  %v10397_v31 = vadd.f32 %v5888_v4, %v10343_v56 }
 0xdde   :  { %v5068_v5 = vadd.f32 %v5067_v49, %v10375_v60  ;;  %v10384_v41 = vadd.f32 %v5005_v16, %v10343_v56  ;;  %v10386_v32 = vadd.f32 %v5238_v22, %v5220_v10  ;;  %v4886_v17 = vadd.f32 %v4885_v63, %v10346_v48  ;;  %v4887_v39 = vpop.f32.mrb[198].mxu0 }
 0xddf   :  { %v4888_v53 = vadd.f32 %v4887_v39, %v10340_v59  ;;  %v4889_v37 = vpop.f32.mrb[199].mxu0  ;;  %v5221_v61 = vmul.f32 %v10349_v15, %v4884_v46 }
 0xde0   :  { %v5069_v6 = vadd.f32 %v5068_v5, %v10384_v41  ;;  %v5051_v23 = vmax.f32 %v4886_v17, 0.0  ;;  %v4890_v0 = vadd.f32 %v4889_v37, %v10346_v48 }
 0xde1   :  { %v5222_v38 = vmul.f32 %v10349_v15, %v4888_v53 }
 0xde2   :  { %v5070_v14 = vadd.f32 %v5069_v6, %v10390_v45  ;;  %v5891_v26 = vpop.f32.mrb[200].mxu1  ;;  %v5239_v43 = vmul.f32 %v10361_v29, %v5051_v23  ;;  %v5052_v40 = vmax.f32 %v4890_v0, 0.0 }
 0xde3   :  { %v5018_v25 = vpop.f32.mrb[201].mxu1  ;;  %v10418_v24 = vadd.f32 %v5891_v26, %v10343_v56 }
 0xde4   :  { %v10403_v50 = vadd.f32 %v5018_v25, %v10343_v56  ;;  %v5071_v2 = vadd.f32 %v5070_v14, %v10397_v31  ;;  %v5892_v30 = vpop.f32.mrb[202].mxu1  ;;  %v10406_v51 = vadd.f32 %v5239_v43, %v5221_v61  ;;  %v5240_v8 = vmul.f32 %v10361_v29, %v5052_v40  ;;  %v4893_v19 = vpop.f32.mrb[200].mxu0 }
 0xde5   :  { %v5021_v12 = vpop.f32.mrb[203].mxu1  ;;  %v4894_v18 = vadd.f32 %v4893_v19, %v10340_v59  ;;  %v4895_v10 = vpop.f32.mrb[201].mxu0  ;;  %v10425_v53 = vadd.f32 %v5892_v30, %v10343_v56 }
 0xde6   :  { %v5072_v35 = vadd.f32 %v5071_v2, %v10403_v50  ;;  %v10412_v33 = vadd.f32 %v5021_v12, %v10343_v56  ;;  %v10414_v49 = vadd.f32 %v5240_v8, %v5222_v38  ;;  %v4896_v4 = vadd.f32 %v4895_v10, %v10346_v48  ;;  %v4897_v22 = vpop.f32.mrb[202].mxu0 }
 0xde7   :  { %v4898_v16 = vadd.f32 %v4897_v22, %v10340_v59  ;;  %v4899_v46 = vpop.f32.mrb[203].mxu0  ;;  %v5223_v5 = vmul.f32 %v10349_v15, %v4894_v18 }
 0xde8   :  { %v5073_v63 = vadd.f32 %v5072_v35, %v10412_v33  ;;  %v5053_v17 = vmax.f32 %v4896_v4, 0.0  ;;  %v4900_v39 = vadd.f32 %v4899_v46, %v10346_v48 }
 0xde9   :  { %v5224_v23 = vmul.f32 %v10349_v15, %v4898_v16 }
 0xdea   :  { %v5074_v37 = vadd.f32 %v5073_v63, %v10418_v24  ;;  %v5895_v6 = vpop.f32.mrb[204].mxu1  ;;  %v5241_v61 = vmul.f32 %v10361_v29, %v5053_v17  ;;  %v5054_v0 = vmax.f32 %v4900_v39, 0.0 }
 0xdeb   :  { %v5034_v14 = vpop.f32.mrb[205].mxu1  ;;  %v10446_v22 = vadd.f32 %v5895_v6, %v10343_v56 }
 0xdec   :  { %v10431_v26 = vadd.f32 %v5034_v14, %v10343_v56  ;;  %v5075_v43 = vadd.f32 %v5074_v37, %v10425_v53  ;;  %v5896_v38 = vpop.f32.mrb[206].mxu1  ;;  %v10434_v40 = vadd.f32 %v5241_v61, %v5223_v5  ;;  %v5242_v25 = vmul.f32 %v10361_v29, %v5054_v0  ;;  %v4903_v2 = vpop.f32.mrb[204].mxu0 }
 0xded   :  { %v5037_v30 = vpop.f32.mrb[207].mxu1  ;;  %v4904_v8 = vadd.f32 %v4903_v2, %v10340_v59  ;;  %v4905_v19 = vpop.f32.mrb[205].mxu0  ;;  %v5046_v37 = vadd.f32 %v5896_v38, %v10343_v56 }
 0xdee   :  { %v5076_v12 = vadd.f32 %v5075_v43, %v10431_v26  ;;  %v10440_v18 = vadd.f32 %v5037_v30, %v10343_v56  ;;  %v10442_v10 = vadd.f32 %v5242_v25, %v5224_v23  ;;  %v4906_v35 = vadd.f32 %v4905_v19, %v10346_v48  ;;  %v4907_v4 = vpop.f32.mrb[206].mxu0 }
 0xdef   :  { %v4908_v16 = vadd.f32 %v4907_v4, %v10340_v59  ;;  %v4909_v46 = vpop.f32.mrb[207].mxu0  ;;  %v5225_v5 = vmul.f32 %v10349_v15, %v4904_v8 }
 0xdf0   :  { %11000 = vst [vmem:[#allocation45_spill] sm:$0xff] %v10442_v10  ;;  %v5077_v63 = vadd.f32 %v5076_v12, %v10440_v18  ;;  %v5055_v17 = vmax.f32 %v4906_v35, 0.0  ;;  %v4910_v39 = vadd.f32 %v4909_v46, %v10346_v48 }
 0xdf1   :  { %v5226_v0 = vmul.f32 %v10349_v15, %v4908_v16 }
 0xdf2   :  { %v5078_v61 = vadd.f32 %v5077_v63, %v10446_v22  ;;  %v5243_v23 = vmul.f32 %v10361_v29, %v5055_v17  ;;  %v5056_v6 = vmax.f32 %v4910_v39, 0.0 }
 0xdf4   :  { %v5079_v14 = vadd.f32 %v5078_v61, %v5046_v37  ;;  %v10456_v43 = vadd.f32 %v5243_v23, %v5225_v5  ;;  %v5244_v25 = vmul.f32 %v10361_v29, %v5056_v6  ;;  %v4913_v2 = vpop.f32.mrb[208].mxu0 }
 0xdf5   :  { %v4914_v30 = vadd.f32 %v4913_v2, %v10340_v59  ;;  %v4915_v8 = vpop.f32.mrb[209].mxu0 }
 0xdf6   :  { %11001 = vst [vmem:[#allocation46_spill] sm:$0xff] %v10456_v43  ;;  %v5080_v19 = vrot.slane %v5079_v14, 4  ;;  %v10460_v12 = vadd.f32 %v5244_v25, %v5226_v0  ;;  %v4916_v56 = vadd.f32 %v4915_v8, %v10346_v48  ;;  %v4917_v38 = vpop.f32.mrb[210].mxu0 }
 0xdf7   :  { %v4918_v35 = vadd.f32 %v4917_v38, %v10340_v59  ;;  %v4919_v4 = vpop.f32.mrb[211].mxu0  ;;  %v5227_v46 = vmul.f32 %v10349_v15, %v4914_v30 }
 0xdf8   :  { %11002 = vst [vmem:[#allocation47_spill] sm:$0xff] %v10460_v12  ;;  %v5081_v16 = vadd.f32 %v5080_v19, %v5079_v14  ;;  %v5057_v63 = vmax.f32 %v4916_v56, 0.0  ;;  %v4920_v5 = vadd.f32 %v4919_v4, %v10346_v48 }
 0xdf9   :  { %v5228_v61 = vmul.f32 %v10349_v15, %v4918_v35 }
 0xdfa   :  { %v5082_v17 = vrot.slane %v5081_v16, 2  ;;  %v5245_v39 = vmul.f32 %v10361_v29, %v5057_v63  ;;  %v5058_v23 = vmax.f32 %v4920_v5, 0.0 }
 0xdfc   :  { %v5083_v0 = vadd.f32 %v5082_v17, %v5081_v16  ;;  %v10468_v6 = vadd.f32 %v5245_v39, %v5227_v46  ;;  %v5246_v25 = vmul.f32 %v10361_v29, %v5058_v23  ;;  %v4923_v2 = vpop.f32.mrb[212].mxu0 }
 0xdfd   :  { %v4925_v8 = vpop.f32.mrb[213].mxu0  ;;  %v4924_v19 = vadd.f32 %v4923_v2, %v10340_v59 }
 0xdfe   :  { %11003 = vst [vmem:[#allocation48_spill] sm:$0xff] %v10468_v6  ;;  %v5084_v38 = vrot.slane %v5083_v0, 1  ;;  %v10471_v14 = vadd.f32 %v5246_v25, %v5228_v61  ;;  %v4927_v30 = vpop.f32.mrb[214].mxu0  ;;  %v4926_v56 = vadd.f32 %v4925_v8, %v10346_v48 }
 0xdff   :  { %v4929_v4 = vpop.f32.mrb[215].mxu0  ;;  %v5229_v35 = vmul.f32 %v10349_v15, %v4924_v19  ;;  %v4928_v46 = vadd.f32 %v4927_v30, %v10340_v59 }
 0xe00   :  { %11004 = vst [vmem:[#allocation49_spill] sm:$0xff] %v10471_v14  ;;  %v5085_v63 = vadd.f32 %v5084_v38, %v5083_v0  ;;  %v5059_v16 = vmax.f32 %v4926_v56, 0.0  ;;  %v4930_v5 = vadd.f32 %v4929_v4, %v10346_v48 }
 0xe02   :  { %v5086_v54 = vmul.f32 0.0078125, %v5085_v63  ;;  %v5247_v19 = vmul.f32 %v10361_v29, %v5059_v16  ;;  %v5060_v56 = vmax.f32 %v4930_v5, 0.0 }
 0xe04   :  { %v10479_v17 = vsub.f32 %v10352_v3, %v5086_v54  ;;  %v10482_v39 = vsub.f32 %v10355_v52, %v5086_v54  ;;  %v10485_v61 = vsub.f32 %v10359_v44, %v5086_v54  ;;  %v10488_v23 = vsub.f32 %v10369_v7, %v5086_v54  ;;  %v4933_v0 = vpop.f32.mrb[216].mxu0 }
 0xe05   :  { %v10491_v25 = vsub.f32 %v10375_v60, %v5086_v54  ;;  %v10494_v2 = vsub.f32 %v10384_v41, %v5086_v54  ;;  %v10497_v8 = vsub.f32 %v10390_v45, %v5086_v54  ;;  %v10500_v3 = vsub.f32 %v10397_v31, %v5086_v54  ;;  %v4935_v52 = vpop.f32.mrb[217].mxu0 }
 0xe06   :  { %v10503_v44 = vsub.f32 %v10403_v50, %v5086_v54  ;;  %v10506_v7 = vsub.f32 %v10412_v33, %v5086_v54  ;;  %v10509_v38 = vsub.f32 %v10418_v24, %v5086_v54  ;;  %v10512_v60 = vsub.f32 %v10425_v53, %v5086_v54  ;;  %v4937_v41 = vpop.f32.mrb[218].mxu0 }
 0xe07   :  { %v10515_v45 = vsub.f32 %v10431_v26, %v5086_v54  ;;  %v10518_v31 = vsub.f32 %v10440_v18, %v5086_v54  ;;  %v10521_v30 = vsub.f32 %v10446_v22, %v5086_v54  ;;  %v10523_v50 = vsub.f32 %v5046_v37, %v5086_v54  ;;  %v4939_v33 = vpop.f32.mrb[219].mxu0 }
 0xe08   :  { %v5103_v24 = vmul.f32 %v10479_v17, %v10479_v17  ;;  %v5104_v53 = vmul.f32 %v10482_v39, %v10482_v39  ;;  %v5230_v26 = vmul.f32 %v10349_v15, %v4928_v46  ;;  %v5105_v18 = vmul.f32 %v10485_v61, %v10485_v61 }
 0xe09   :  { %v5106_v22 = vmul.f32 %v10488_v23, %v10488_v23  ;;  %v5107_v54 = vmul.f32 %v10491_v25, %v10491_v25  ;;  %v10537_v4 = vadd.f32 %v5247_v19, %v5229_v35  ;;  %v5248_v63 = vmul.f32 %v10361_v29, %v5060_v56 }
 0xe0a   :  { %v5119_v37 = vadd.f32 %v5104_v53, %v5103_v24  ;;  %v4934_v14 = vadd.f32 %v4933_v0, %v10340_v59  ;;  %v4936_v5 = vadd.f32 %v4935_v52, %v10346_v48  ;;  %v4938_v46 = vadd.f32 %v4937_v41, %v10340_v59 }
 0xe0b   :  { %11005 = vst [vmem:[#allocation50_spill] sm:$0xff] %v10537_v4  ;;  %v4940_v6 = vadd.f32 %v4939_v33, %v10346_v48  ;;  %v10545_v10 = vadd.f32 %v5248_v63, %v5230_v26  ;;  %v5108_v26 = vmul.f32 %v10494_v2, %v10494_v2 }
 0xe0c   :  { %v4943_v16 = vpop.f32.mrb[220].mxu0  ;;  %v5120_v43 = vadd.f32 %v5119_v37, %v5105_v18  ;;  %v5231_v35 = vmul.f32 %v10349_v15, %v4934_v14  ;;  %v5061_v19 = vmax.f32 %v4936_v5, 0.0  ;;  %v5232_v0 = vmul.f32 %v10349_v15, %v4938_v46 }
 0xe0d   :  { %v4944_v20 = vadd.f32 %v4943_v16, %v10340_v59  ;;  %v4945_v12 = vpop.f32.mrb[221].mxu0  ;;  %v5062_v56 = vmax.f32 %v4940_v6, 0.0 }
 0xe0e   :  { %v4946_v24 = vadd.f32 %v4945_v12, %v10346_v48  ;;  %v4947_v53 = vpop.f32.mrb[222].mxu0  ;;  %v5121_v4 = vadd.f32 %v5120_v43, %v5106_v22  ;;  %v5249_v14 = vmul.f32 %v10361_v29, %v5061_v19 }
 0xe0f   :  { %v5233_v52 = vmul.f32 %v10349_v15, %v4944_v20  ;;  %v4949_v41 = vpop.f32.mrb[223].mxu0  ;;  %v4948_v16 = vadd.f32 %v4947_v53, %v10340_v59  ;;  %v5250_v12 = vmul.f32 %v10361_v29, %v5062_v56  ;;  %v5109_v59 = vmul.f32 %v10497_v8, %v10497_v8 }
 0xe10   :  { %v5063_v33 = vmax.f32 %v4946_v24, 0.0  ;;  %v4950_v18 = vadd.f32 %v4949_v41, %v10346_v48  ;;  %v5122_v37 = vadd.f32 %v5121_v4, %v5107_v54  ;;  %v10559_v5 = vadd.f32 %v5249_v14, %v5231_v35 }
 0xe11   :  { %v5234_v6 = vmul.f32 %v10349_v15, %v4948_v16  ;;  %v10561_v43 = vadd.f32 %v5250_v12, %v5232_v0  ;;  %v5110_v54 = vmul.f32 %v10500_v3, %v10500_v3  ;;  %v5111_v15 = vmul.f32 %v10503_v44, %v10503_v44 }
 0xe12   :  { %v5251_v63 = vmul.f32 %v10361_v29, %v5063_v33  ;;  %v5064_v20 = vmax.f32 %v4950_v18, 0.0  ;;  %v5123_v48 = vadd.f32 %v5122_v37, %v5108_v26  ;;  %v5112_v53 = vmul.f32 %v10506_v7, %v10506_v7 }
 0xe13   :  { %v5113_v0 = vmul.f32 %v10509_v38, %v10509_v38  ;;  %v5115_v41 = vmul.f32 %v10515_v45, %v10515_v45  ;;  %v5116_v16 = vmul.f32 %v10518_v31, %v10518_v31  ;;  %v5117_v26 = vmul.f32 %v10521_v30, %v10521_v30 }
 0xe14   :  { %v10565_v22 = vadd.f32 %v5251_v63, %v5233_v52  ;;  %v5252_v46 = vmul.f32 %v10361_v29, %v5064_v20  ;;  %v5124_v4 = vadd.f32 %v5123_v48, %v5109_v59  ;;  %v5114_v29 = vmul.f32 %v10512_v60, %v10512_v60 }
 0xe15   :  { %v5118_v12 = vmul.f32 %v10523_v50, %v10523_v50 }
 0xe16   :  { %v10570_v24 = vadd.f32 %v5252_v46, %v5234_v6  ;;  %v5125_v35 = vadd.f32 %v5124_v4, %v5110_v54 }
 0xe18   :  { %v5126_v19 = vadd.f32 %v5125_v35, %v5111_v15  ;;  %v10588_v35 = vstv %s5462_s3 }
 0xe1a   :  { %v5127_v56 = vadd.f32 %v5126_v19, %v5112_v53  ;;  %v10590_v53 = vstv %s5461_s30  ;;  %v10594_v19 = vmul.f32 %v10588_v35, %v10216_v9  ;;  %v10614_v9 = vmul.f32 %v10588_v35, %v10234_v13  ;;  %v10637_v13 = vld [vmem:[%s10799_s4 + $0x8] ss:$0 sm:$0xff] }
 0xe1c   :  { %v5128_v52 = vadd.f32 %v5127_v56, %v5113_v0  ;;  %v10598_v0 = vmul.f32 %v10588_v35, %v10222_v47  ;;  %v10602_v56 = vmul.f32 %v10588_v35, %v10225_v36  ;;  %v10618_v47 = vmul.f32 %v10588_v35, %v10237_v28 }
 0xe1d   :  { %v10622_v36 = vmul.f32 %v10588_v35, %v10266_v62  ;;  %v10641_v28 = vmul.f32 %v10588_v35, %v10301_v27  ;;  %v10645_v62 = vmul.f32 %v10588_v35, %v10304_v55 }
 0xe1e   :  { %v5129_v33 = vadd.f32 %v5128_v52, %v5114_v29  ;;  %v10606_v29 = vmul.f32 %v10588_v35, %v10228_v11  ;;  %v10610_v52 = vmul.f32 %v10588_v35, %v10231_v34  ;;  %v10626_v11 = vmul.f32 %v10588_v35, %v10292_v1 }
 0xe1f   :  { %v10630_v34 = vmul.f32 %v10588_v35, %v10298_v58  ;;  %v10649_v1 = vmul.f32 %v10588_v35, %v10289_v42  ;;  %v10653_v58 = vmul.f32 %v10588_v35, %v10269_v21  ;;  %v10670_v42 = vld [vmem:[%s10800_s5 + $0x8] ss:$0 sm:$0xff]  ;;  %s6044_s5 = smov [#allocation9]  }
 0xe20   :  { %v5130_v18 = vadd.f32 %v5129_v33, %v5115_v41  ;;  %s5358_s10 = sshll.u32 %s6044_s5, 4  ;;  %s5359_s10 = int_to_ptr.vmem [resolvable:$true] %s5358_s10 }
 0xe21   :  { %s5974_s12 = scalar_lea.vmem %s5359_s10, 2048  ;;  %p5979_p0 = scmp.lt.s32.totalorder %s5359_s10, %s5359_s10 }
 0xe22   :  { %v5131_v14 = vadd.f32 %v5130_v18, %v5116_v16  ;;  %p5975_p13 = scmp.ne.s32.totalorder %s5359_s10, %s5974_s12  ;;  %p5980_p1 = scmp.lt.s32.totalorder %s5974_s12, %s5974_s12 }
 0xe24   :  { %v5132_v37 = vadd.f32 %v5131_v14, %v5117_v26  ;;  %p5981_p2 = por %p5980_p1, %p5979_p0 }
 0xe26   :  { %v5133_v63 = vadd.f32 %v5132_v37, %v5118_v12  ;;  %p5982_p3 = pnand %p5981_p2, %p5975_p13 }
 0xe28   :  { %v5134_v6 = vrot.slane %v5133_v63, 4 }
 0xe2a   :  { %v5135_v20 = vadd.f32 %v5134_v6, %v5133_v63 }
 0xe2c   :  { %v5136_v59 = vrot.slane %v5135_v20, 2 }
 0xe2e   :  { %v5137_v48 = vadd.f32 %v5136_v59, %v5135_v20 }
 0xe30   :  { %v5138_v46 = vrot.slane %v5137_v48, 1 }
 0xe32   :  { %v5139_v54 = vadd.f32 %v5138_v46, %v5137_v48 }
 0xe34   :  { %v5140_v4 = vmul.f32 0.0078125, %v5139_v54 }
 0xe36   :  { %v5141_v15 = vadd.f32 1e-05, %v5140_v4 }
 0xe38   :  { %5938 = vrsqrt.f32 %v5141_v15 }
 0xe42   :  { %v10632_v41 = vpop.eup %5938 }
 0xe43   :  { %v10657_v33 = vmul.f32 %v10632_v41, %v10515_v45  ;;  %v5156_v27 = vmul.f32 %v10632_v41, %v10518_v31  ;;  %v10663_v16 = vmul.f32 %v10632_v41, %v10521_v30  ;;  %v5143_v55 = vmul.f32 %v10632_v41, %v10479_v17 }
 0xe44   :  { %v5144_v21 = vmul.f32 %v10632_v41, %v10482_v39  ;;  %v5145_v45 = vmul.f32 %v10632_v41, %v10485_v61  ;;  %v5146_v31 = vmul.f32 %v10632_v41, %v10488_v23  ;;  %v5147_v30 = vmul.f32 %v10632_v41, %v10491_v25 }
 0xe45   :  { %v5177_v18 = vmul.f32 %v10637_v13, %v5156_v27  ;;  %v5164_v17 = vmul.f32 %v10637_v13, %v5143_v55  ;;  %v5148_v26 = vmul.f32 %v10632_v41, %v10494_v2  ;;  %v5149_v14 = vmul.f32 %v10632_v41, %v10497_v8 }
 0xe46   :  { %v5165_v39 = vmul.f32 %v10637_v13, %v5144_v21  ;;  %v5166_v61 = vmul.f32 %v10637_v13, %v5145_v45  ;;  %v5167_v12 = vmul.f32 %v10637_v13, %v5146_v31  ;;  %v5168_v23 = vmul.f32 %v10637_v13, %v5147_v30 }
 0xe47   :  { %v5198_v25 = vadd.f32 %v10670_v42, %v5177_v18  ;;  %v5185_v37 = vadd.f32 %v10670_v42, %v5164_v17  ;;  %v5169_v63 = vmul.f32 %v10637_v13, %v5148_v26  ;;  %v5170_v6 = vmul.f32 %v10637_v13, %v5149_v14 }
 0xe48   :  { %v5186_v2 = vadd.f32 %v10670_v42, %v5165_v39  ;;  %v5187_v8 = vadd.f32 %v10670_v42, %v5166_v61  ;;  %v5188_v20 = vadd.f32 %v10670_v42, %v5167_v12  ;;  %v5189_v59 = vadd.f32 %v10670_v42, %v5168_v23 }
 0xe49   :  { %v5214_v48 = vmax.f32 %v5198_v25, 0.0  ;;  %v5201_v46 = vmax.f32 %v5185_v37, 0.0  ;;  %v5190_v54 = vadd.f32 %v10670_v42, %v5169_v63  ;;  %v5191_v4 = vadd.f32 %v10670_v42, %v5170_v6 }
 0xe4a   :  { %v5202_v15 = vmax.f32 %v5186_v2, 0.0  ;;  %v5203_v27 = vmax.f32 %v5187_v8, 0.0  ;;  %v5204_v55 = vmax.f32 %v5188_v20, 0.0  ;;  %v5205_v21 = vmax.f32 %v5189_v59, 0.0  ;;  %v11006_v8 = vld [vmem:[#allocation45_spill] sm:$0xff]  ;;  %v11007_v59 = vld [vmem:[#allocation46_spill] sm:$0xff] }
 0xe4b   :  { %v5271_v45 = vmul.f32 %v10590_v53, %v5201_v46  ;;  %v5206_v31 = vmax.f32 %v5190_v54, 0.0  ;;  %v5207_v30 = vmax.f32 %v5191_v4, 0.0  ;;  %v5150_v18 = vmul.f32 %v10632_v41, %v10500_v3 }
 0xe4c   :  { %v5272_v17 = vmul.f32 %v10590_v53, %v5202_v15  ;;  %v5273_v26 = vmul.f32 %v10590_v53, %v5203_v27  ;;  %v5274_v14 = vmul.f32 %v10590_v53, %v5204_v55  ;;  %v5275_v39 = vmul.f32 %v10590_v53, %v5205_v21 }
 0xe4d   :  { %v5287_v61 = vadd.f32 %v5271_v45, %v10378_v57  ;;  %v5276_v12 = vmul.f32 %v10590_v53, %v5206_v31  ;;  %v5277_v23 = vmul.f32 %v10590_v53, %v5207_v30  ;;  %v5171_v25 = vmul.f32 %v10637_v13, %v5150_v18 }
 0xe4e   :  { %v5288_v37 = vadd.f32 %v5272_v17, %v10386_v32  ;;  %v5289_v3 = vadd.f32 %v5273_v26, %v10406_v51  ;;  %v5290_v63 = vadd.f32 %v5274_v14, %v10414_v49  ;;  %v5291_v6 = vadd.f32 %v5275_v39, %v10434_v40 }
 0xe4f   :  { %v5321_v2 = vadd.f32 %v10594_v19, %v5287_v61  ;;  %v5292_v20 = vadd.f32 %v5276_v12, %v11006_v8  ;;  %v5293_v57 = vadd.f32 %v5277_v23, %v11007_v59  ;;  %v5192_v46 = vadd.f32 %v10670_v42, %v5171_v25  ;;  %v11010_v59 = vld [vmem:[#allocation48_spill] sm:$0xff] }
 0xe50   :  { %v5322_v54 = vadd.f32 %v10598_v0, %v5288_v37  ;;  %v5323_v4 = vadd.f32 %v10602_v56, %v5289_v3  ;;  %v5324_v32 = vadd.f32 %v10606_v29, %v5290_v63  ;;  %v5325_v51 = vadd.f32 %v10610_v52, %v5291_v6  ;;  %v11009_v63 = vld [vmem:[#allocation40_spill] sm:$0xff] }
 0xe51   :  { %5337 = vst [vmem:[#allocation9] sm:$0xff] %v5321_v2  ;;  %v5326_v49 = vadd.f32 %v10614_v9, %v5292_v20  ;;  %v5327_v40 = vadd.f32 %v10618_v47, %v5293_v57  ;;  %v5208_v19 = vmax.f32 %v5192_v46, 0.0  ;;  %v5151_v15 = vmul.f32 %v10632_v41, %v10503_v44 }
 0xe52   :  { %5338 = vst [vmem:[#allocation9 + $0x8] sm:$0xff] %v5322_v54  ;;  %5339 = vst [vmem:[#allocation9 + $0x10] sm:$0xff] %v5323_v4  ;;  %v5152_v0 = vmul.f32 %v10632_v41, %v10506_v7  ;;  %v5153_v56 = vmul.f32 %v10632_v41, %v10509_v38  ;;  %v5154_v29 = vmul.f32 %v10632_v41, %v10512_v60  ;;  %v11011_v4 = vld [vmem:[#allocation49_spill] sm:$0xff] }
 0xe53   :  { %5340 = vst [vmem:[#allocation9 + $0x18] sm:$0xff] %v5324_v32  ;;  %5341 = vst [vmem:[#allocation9 + $0x20] sm:$0xff] %v5325_v51  ;;  %v5176_v52 = vmul.f32 %v10637_v13, %v10657_v33  ;;  %v5278_v44 = vmul.f32 %v10590_v53, %v5208_v19  ;;  %v5172_v9 = vmul.f32 %v10637_v13, %v5151_v15  ;;  %v11008_v33 = vld [vmem:[#allocation47_spill] sm:$0xff]  ;;  %v11012_v51 = vld [vmem:[#allocation50_spill] sm:$0xff] }
 0xe54   :  { %5342 = vst [vmem:[#allocation9 + $0x28] sm:$0xff] %v5326_v49  ;;  %5343 = vst [vmem:[#allocation9 + $0x30] sm:$0xff] %v5327_v40  ;;  %v5284_v47 = vmul.f32 %v10590_v53, %v5214_v48  ;;  %v5178_v7 = vmul.f32 %v10637_v13, %v10663_v16  ;;  %v5173_v27 = vmul.f32 %v10637_v13, %v5152_v0 }
 0xe55   :  { %v5174_v38 = vmul.f32 %v10637_v13, %v5153_v56  ;;  %v5175_v60 = vmul.f32 %v10637_v13, %v5154_v29  ;;  %v5197_v55 = vadd.f32 %v10670_v42, %v5176_v52  ;;  %v5294_v21 = vadd.f32 %v5278_v44, %v11008_v33 }
 0xe56   :  { %v5193_v45 = vadd.f32 %v10670_v42, %v5172_v9  ;;  %v5300_v31 = vadd.f32 %v5284_v47, %v10561_v43  ;;  %v5199_v30 = vadd.f32 %v10670_v42, %v5178_v7  ;;  %v5194_v48 = vadd.f32 %v10670_v42, %v5173_v27 }
 0xe57   :  { %v5195_v16 = vadd.f32 %v10670_v42, %v5174_v38  ;;  %v5196_v18 = vadd.f32 %v10670_v42, %v5175_v60  ;;  %v5213_v17 = vmax.f32 %v5197_v55, 0.0  ;;  %v5328_v26 = vadd.f32 %v10622_v36, %v5294_v21 }
 0xe58   :  { %v5209_v14 = vmax.f32 %v5193_v45, 0.0  ;;  %v5334_v39 = vadd.f32 %v10653_v58, %v5300_v31  ;;  %v5215_v61 = vmax.f32 %v5199_v30, 0.0  ;;  %v5210_v12 = vmax.f32 %v5194_v48, 0.0 }
 0xe59   :  { %v5211_v23 = vmax.f32 %v5195_v16, 0.0  ;;  %v5212_v25 = vmax.f32 %v5196_v18, 0.0  ;;  %v5283_v43 = vmul.f32 %v10590_v53, %v5213_v17  ;;  %5344 = vst [vmem:[#allocation9 + $0x38] sm:$0xff] %v5328_v26  ;;  %v5319_v6 = vmul.f32 %v10588_v35, %v11009_v63 }
 0xe5a   :  { %v5279_v37 = vmul.f32 %v10590_v53, %v5209_v14  ;;  %5350 = vst [vmem:[#allocation9 + $0x68] sm:$0xff] %v5334_v39  ;;  %v5285_v3 = vmul.f32 %v10590_v53, %v5215_v61  ;;  %v5158_v36 = vmul.f32 %v10632_v41, %v10523_v50  ;;  %v5280_v58 = vmul.f32 %v10590_v53, %v5210_v12 }
 0xe5b   :  { %v5281_v2 = vmul.f32 %v10590_v53, %v5211_v23  ;;  %v5282_v8 = vmul.f32 %v10590_v53, %v5212_v25  ;;  %v5299_v20 = vadd.f32 %v5283_v43, %v10559_v5 }
 0xe5c   :  { %v5295_v57 = vadd.f32 %v5279_v37, %v11010_v59  ;;  %v5301_v46 = vadd.f32 %v5285_v3, %v10565_v22  ;;  %v5179_v54 = vmul.f32 %v10637_v13, %v5158_v36  ;;  %v5296_v32 = vadd.f32 %v5280_v58, %v11011_v4 }
 0xe5d   :  { %v5297_v49 = vadd.f32 %v5281_v2, %v11012_v51  ;;  %v5298_v50 = vadd.f32 %v5282_v8, %v10545_v10  ;;  %v5333_v41 = vadd.f32 %v10649_v1, %v5299_v20  ;;  %v11013_v1 = vld [vmem:[#allocation41_spill] sm:$0xff] }
 0xe5e   :  { %v5329_v40 = vadd.f32 %v10626_v11, %v5295_v57  ;;  %v5335_v19 = vadd.f32 %v5319_v6, %v5301_v46  ;;  %v5200_v15 = vadd.f32 %v10670_v42, %v5179_v54  ;;  %v5330_v5 = vadd.f32 %v10630_v34, %v5296_v32 }
 0xe5f   :  { %v5331_v0 = vadd.f32 %v10641_v28, %v5297_v49  ;;  %v5332_v22 = vadd.f32 %v10645_v62, %v5298_v50  ;;  %5349 = vst [vmem:[#allocation9 + $0x60] sm:$0xff] %v5333_v41  ;;  %v5320_v11 = vmul.f32 %v10588_v35, %v11013_v1 }
 0xe60   :  { %5345 = vst [vmem:[#allocation9 + $0x40] sm:$0xff] %v5329_v40  ;;  %5351 = vst [vmem:[#allocation9 + $0x70] sm:$0xff] %v5335_v19  ;;  %v5216_v13 = vmax.f32 %v5200_v15, 0.0 }
 0xe61   :  { %5346 = vst [vmem:[#allocation9 + $0x48] sm:$0xff] %v5330_v5  ;;  %5347 = vst [vmem:[#allocation9 + $0x50] sm:$0xff] %v5331_v0 }
 0xe62   :  { %5348 = vst [vmem:[#allocation9 + $0x58] sm:$0xff] %v5332_v22  ;;  %v5286_v10 = vmul.f32 %v10590_v53, %v5216_v13 }
 0xe64   :  { %v5302_v34 = vadd.f32 %v5286_v10, %v10570_v24 }
 0xe66   :  { %v5336_v42 = vadd.f32 %v5320_v11, %v5302_v34 }
 0xe68   :  { %5352 = vst [vmem:[#allocation9 + $0x78] sm:$0xff] %v5336_v42 }
 0xe69   :  { %5985 = shalt.err (!%p5982_p3)
}
 0xe6a   :  { %s5986_s15 = scalar_lea.hbm %s10801_s6, 2048 }
 0xe6b   :  { %p5987_p4 = scmp.ne.s32.totalorder %s10801_s6, %s5986_s15  ;;  %p5990_p5 = scmp.lt.u32.totalorder %s5986_s15, %s10801_s6 }
 0xe6d   :  { %p5992_p6 = pnand %p5990_p5, %p5987_p4 }
 0xe6f   :  { %5995 = shalt.err (!%p5992_p6)
}
 0xe70   :  { %5364 = dma.vmem_to_hbm [thread:$0]  %s5359_s10, 2048, %s10801_s6, [#allocation6], %s6021_s26, %s6021_s26, %s6022_s27  }
 0xe71   :  { %6018 = dma.done.wait [#allocation6], 2048  }
 0xe72   :  { %6019 = vsyncadd [#allocation6], 4294965248 }
 0xe73   :  { %5368 = vsyncpa [#allocation5], 1 }
 0xe74   :  { %5369 = vsyncpa [#allocation6], 1 }
 0xe75   :  { %5370 = vsyncpa [#allocation7], 1 }
 0xe76   :  { %5371 = vsyncmov [#allocation3] }
 0xe79   :  { %s5372_s21 = vpop.sfrf %5371 }
 0xe7a   :  { %p5463_p7 = scmp.ne.s32.totalorder %s5372_s21, 0 }
 0xe7c   :  { %5376 = shalt.err (%p5463_p7)  }
 0xe7d   :  { %5378 = vsyncmov [#allocation3 + $0x1] }
 0xe80   :  { %s5379_s22 = vpop.sfrf %5378 }
 0xe81   :  { %p5464_p8 = scmp.ne.s32.totalorder %s5379_s22, 0 }
 0xe83   :  { %5383 = shalt.err (%p5464_p8)  }

</bundles_post_ra>
